<compile_context>
chip_gen: v5e
topology: v5e:2x2
jax: 0.10.0
libtpu: 0.0.40
codegen_flags: <defaults>
</compile_context>

<pallas_src>
import functools
import math

import jax
import jax.numpy as jnp
from jax import lax
from jax.experimental import pallas as pl
from jax.experimental.pallas import tpu as pltpu

NEG = -1e30      # Python float -> stays a jaxpr literal inside the kernel
LN_EPS = 1e-5    # PyTorch LayerNorm default

# index layout of the packed per-layer (D, D) weight slab: (L, 8, D, D)
WQ_S, WK_S, WV_S, WO_S, WQ_C, WK_C, WV_C, WO_C = range(8)
# index layout of the packed per-layer (1, D) vector slab: (L, 15, 1, D)
(BQ_S, BK_S, BV_S, BO_S, BQ_C, BK_C, BV_C, BO_C, FF_B2,
 LN1_G, LN1_B, LN2_G, LN2_B, LN3_G, LN3_B) = range(15)
# final-norm vector slab: (4, 1, D)
DEC_G, DEC_B, FIN_G, FIN_B = range(4)


# ----------------------------------------------------------------------------
# One fused Pallas kernel: full TransformerDecoder + norms + TokenClassification
# ----------------------------------------------------------------------------
def _decoder_fused_kernel(
        x_ref, mem_ref, tpad_ref, mpad_ref,
        wdd_ref, vec_ref, ffw1_ref, ffb1_ref, ffw2_ref,
        fvec_ref, cw1_ref, cb1_ref, cw2_ref, cb2_ref,
        out_ref, *, n_head):
    B, S = tpad_ref.shape
    Sm = mpad_ref.shape[1]
    D = x_ref.shape[1]
    L = wdd_ref.shape[0]
    H = n_head
    Dh = D // H

    def mm(a, w_bf16):
        # MXU matmul: bf16 operands, fp32 accumulation (weights already bf16).
        return jnp.dot(a.astype(jnp.bfloat16), w_bf16,
                       preferred_element_type=jnp.float32)

    def lnorm(x, g, b):
        mu = jnp.mean(x, axis=-1, keepdims=True)
        var = jnp.mean(jnp.square(x - mu), axis=-1, keepdims=True)
        return (x - mu) * lax.rsqrt(var + LN_EPS) * g + b

    def gelu_tanh(x):
        # tanh-approx GELU (EUP slot); ~1e-3 off PyTorch's exact erf GELU.
        c0 = 0.7978845608028654   # sqrt(2/pi)
        return 0.5 * x * (1.0 + jnp.tanh(c0 * (x + 0.044715 * x * x * x)))

    def split_heads(t, seq):
        # (B*seq, D) -> (B*H, seq, Dh): heads become a single leading batch
        # dim so one batched einsum covers every (batch, head) pair.
        return (t.reshape(B, seq, H, Dh).transpose(0, 2, 1, 3)
                 .reshape(B * H, seq, Dh).astype(jnp.bfloat16))

    def attention(q, k, v, bias, wo_bf16, bo):
        # q: (B*Sq, D); k, v: (B*Sk, D); bias additive (B, Sq|1, Sk).
        # Returns (B*Sq, D) after the (single) output projection.
        Sq = q.shape[0] // B
        Sk = k.shape[0] // B
        qh, kh, vh = split_heads(q, Sq), split_heads(k, Sk), split_heads(v, Sk)
        # 1/sqrt(Dh) already folded into Wq / bq at init.
        s = jnp.einsum('gqd,gkd->gqk', qh, kh,
                       preferred_element_type=jnp.float32)       # (B*H, Sq, Sk)
        s = s.reshape(B, H, Sq, Sk) + bias[:, None, :, :]
        m = jnp.max(s, axis=-1, keepdims=True)
        p = jnp.exp(s - m)
        p = p / jnp.sum(p, axis=-1, keepdims=True)
        o = jnp.einsum('gqk,gkd->gqd',
                       p.reshape(B * H, Sq, Sk).astype(jnp.bfloat16), vh,
                       preferred_element_type=jnp.float32)       # (B*H, Sq, Dh)
        o = o.reshape(B, H, Sq, Dh).transpose(0, 2, 1, 3).reshape(B * Sq, D)
        return mm(o, wo_bf16) + bo                               # ONE out-proj

    # ---- additive attention biases built in-kernel (Python-float literals) --
    rows = lax.broadcasted_iota(jnp.int32, (S, S), 0)
    cols = lax.broadcasted_iota(jnp.int32, (S, S), 1)
    causal = (cols > rows).astype(jnp.float32) * NEG              # (S, S)
    self_bias = causal[None, :, :] + tpad_ref[...][:, None, :]    # (B, S, S)
    cross_bias = mpad_ref[...][:, None, :]                        # (B, 1, Sm)

    x = x_ref[...]                     # (B*S, D) fp32, resident whole kernel
    mem = mem_ref[...]                 # (B*Sm, D) fp32

    for l in range(L):                 # static unroll over decoder layers
        # ---------------- self attention (lane-aligned per-proj matmuls) ----
        q = mm(x, wdd_ref[l, WQ_S]) + vec_ref[l, BQ_S]
        k = mm(x, wdd_ref[l, WK_S]) + vec_ref[l, BK_S]
        v = mm(x, wdd_ref[l, WV_S]) + vec_ref[l, BV_S]
        sa = attention(q, k, v, self_bias, wdd_ref[l, WO_S], vec_ref[l, BO_S])
        x = lnorm(x + sa, vec_ref[l, LN1_G], vec_ref[l, LN1_B])   # post-norm

        # ---------------- cross attention on memory --------------------------
        q = mm(x, wdd_ref[l, WQ_C]) + vec_ref[l, BQ_C]
        k = mm(mem, wdd_ref[l, WK_C]) + vec_ref[l, BK_C]
        v = mm(mem, wdd_ref[l, WV_C]) + vec_ref[l, BV_C]
        ca = attention(q, k, v, cross_bias, wdd_ref[l, WO_C], vec_ref[l, BO_C])
        x = lnorm(x + ca, vec_ref[l, LN2_G], vec_ref[l, LN2_B])

        # ---------------- feed-forward (tanh GELU -> EUP) ---------------------
        h1 = gelu_tanh(mm(x, ffw1_ref[l]) + ffb1_ref[l])
        h2 = mm(h1, ffw2_ref[l]) + vec_ref[l, FF_B2]
        x = lnorm(x + h2, vec_ref[l, LN3_G], vec_ref[l, LN3_B])

    # ---- TransformerDecoder final norm, decoder_layer_normalizer, head ------
    x = lnorm(x, fvec_ref[DEC_G], fvec_ref[DEC_B])
    x = lnorm(x, fvec_ref[FIN_G], fvec_ref[FIN_B])
    hcls = jnp.maximum(mm(x, cw1_ref[...]) + cb1_ref[...], 0.0)   # ReLU
    out_ref[...] = mm(hcls, cw2_ref[...]) + cb2_ref[...]          # lane-dense


# ----------------------------------------------------------------------------
# Plain-JAX glue (embedding gather, positional encoding, mask rows)
# ----------------------------------------------------------------------------
def sinusoidal_pe(seq_len, d_model):
    # standard sinusoidal PositionalEncoding; dropout is identity at inference.
    pos = jnp.arange(seq_len, dtype=jnp.float32)[:, None]
    div = jnp.exp(jnp.arange(0, d_model, 2, dtype=jnp.float32)
                  * (-math.log(10000.0) / d_model))
    pe = jnp.zeros((seq_len, d_model), jnp.float32)
    pe = pe.at[:, 0::2].set(jnp.sin(pos * div))
    pe = pe.at[:, 1::2].set(jnp.cos(pos * div))
    return pe


def spell_corrector_forward(params, x_ids, memory, memory_kpm, *,
                            n_head, vocab_size):
    """Mirrors SpellCorrectorNet.forward(x, memory, memory_key_padding_mask)."""
    B, S = x_ids.shape
    D = params["embedding"].shape[1]
    Sm = memory.shape[1]
    Vp = params["cls_w2"].shape[1]          # lane-padded vocab (multiple of 128)

    # TODO(synk): embedding gather + sinusoidal PE stay as plain-JAX glue (no
    # clean single Pallas gather equivalent worth a kernel at this size).
    x = jnp.take(params["embedding"], x_ids, axis=0) + sinusoidal_pe(S, D)[None]
    x2d = x.reshape(B * S, D).astype(jnp.float32)
    mem2d = memory.astype(jnp.float32).reshape(B * Sm, D)
    tpad = jnp.where(x_ids == 0, NEG, 0.0).astype(jnp.float32)    # (B, S)
    mpad = jnp.where(memory_kpm, NEG, 0.0).astype(jnp.float32)    # (B, Sm)

    kernel = functools.partial(_decoder_fused_kernel, n_head=n_head)
    logits_padded = pl.pallas_call(
        kernel,
        out_shape=jax.ShapeDtypeStruct((B * S, Vp), jnp.float32),
        # whole problem (~1 MB) is VMEM-resident; explicit limit leaves headroom
        # on v7x (64 MiB physical) and raises the v5e 16 MiB scoped default.
        compiler_params=pltpu.CompilerParams(vmem_limit_bytes=32 * 1024 * 1024),
    )(x2d, mem2d, tpad, mpad,
      params["w_dd"], params["vecs"],
      params["ff_w1"], params["ff_b1"], params["ff_w2"],
      params["final_vecs"],
      params["cls_w1"], params["cls_b1"], params["cls_w2"], params["cls_b2"])
    return logits_padded[:, :vocab_size].reshape(B, S, vocab_size)


# ----------------------------------------------------------------------------
# Deterministic synthetic parameters, packed into a few stacked slabs
# ----------------------------------------------------------------------------
def init_params(seed, vocab, d_model, n_head, n_layer, d_ff):
    base = jax.random.PRNGKey(seed)
    ctr = [0]

    def w(shape, scale=0.02):
        ctr[0] += 1
        return scale * jax.random.normal(jax.random.fold_in(base, ctr[0]),
                                         shape, jnp.float32)

    D, F, L, V = d_model, d_ff, n_layer, vocab
    assert D % n_head == 0
    q_scale = 1.0 / math.sqrt(D // n_head)        # folded into Wq / bq
    Vp = ((V + 127) // 128) * 128                 # lane-dense head output

    # packed (L, 8, D, D) MXU weight slab, stored bf16
    wq_s, wk_s, wv_s, wo_s = (w((L, D, D)) * q_scale, w((L, D, D)),
                              w((L, D, D)), w((L, D, D)))
    wq_c, wk_c, wv_c, wo_c = (w((L, D, D)) * q_scale, w((L, D, D)),
                              w((L, D, D)), w((L, D, D)))
    w_dd = jnp.stack([wq_s, wk_s, wv_s, wo_s, wq_c, wk_c, wv_c, wo_c],
                     axis=1).astype(jnp.bfloat16)

    # packed (L, 15, 1, D) vector slab: biases + LayerNorm gammas/betas
    ones = jnp.ones((L, 1, D), jnp.float32)
    zeros = jnp.zeros((L, 1, D), jnp.float32)
    vecs = jnp.stack(
        [w((L, 1, D)) * q_scale, w((L, 1, D)), w((L, 1, D)), w((L, 1, D)),   # self
         w((L, 1, D)) * q_scale, w((L, 1, D)), w((L, 1, D)), w((L, 1, D)),   # cross
         w((L, 1, D)),                                                        # ff_b2
         ones, zeros, ones, zeros, ones, zeros],                              # LN1-3
        axis=1)

    # TransformerDecoder final norm + decoder_layer_normalizer: (4, 1, D)
    final_vecs = jnp.stack([jnp.ones((1, D), jnp.float32),
                            jnp.zeros((1, D), jnp.float32),
                            jnp.ones((1, D), jnp.float32),
                            jnp.zeros((1, D), jnp.float32)], axis=0)

    # TokenClassification head, output lane-padded V -> Vp with zeros
    cls_w2 = jnp.zeros((D, Vp), jnp.float32).at[:, :V].set(w((D, V)))
    cls_b2 = jnp.zeros((1, Vp), jnp.float32).at[:, :V].set(w((1, V)))

    return {
        "embedding": w((V, D)).at[0].set(0.0),          # padding_idx=0 row zero
        "w_dd": w_dd,
        "vecs": vecs,
        "ff_w1": w((L, D, F)).astype(jnp.bfloat16), "ff_b1": w((L, 1, F)),
        "ff_w2": w((L, F, D)).astype(jnp.bfloat16),
        "final_vecs": final_vecs,
        "cls_w1": w((D, D)).astype(jnp.bfloat16), "cls_b1": w((1, D)),
        "cls_w2": cls_w2.astype(jnp.bfloat16), "cls_b2": cls_b2,
    }


# ----------------------------------------------------------------------------
if __name__ == "__main__":
    VOCAB, D_MODEL, N_HEAD, N_LAYER = 64, 32, 4, 2
    D_FF = 2048            # PyTorch TransformerDecoderLayer default dim_feedforward
    B, S, S_MEM = 2, 8, 8  # small test shapes

    params = init_params(0, VOCAB, D_MODEL, N_HEAD, N_LAYER, D_FF)

    key = jax.random.PRNGKey(0)
    k1, k2 = jax.random.split(key)
    x_ids = jax.random.randint(k1, (B, S), 1, VOCAB).astype(jnp.int32)
    x_ids = x_ids.at[:, -1].set(0)  # trailing padding token -> exercises tgt mask
    # `memory` stands in for generate_memory() output (already in decoder d_model)
    memory = 0.1 * jax.random.normal(k2, (B, S_MEM, D_MODEL), jnp.float32)
    memory_kpm = jnp.zeros((B, S_MEM), dtype=bool).at[:, -1].set(True)

    fwd = jax.jit(functools.partial(spell_corrector_forward,
                                    n_head=N_HEAD, vocab_size=VOCAB))
    logits = fwd(params, x_ids, memory, memory_kpm)
    jax.block_until_ready(logits)

    assert logits.shape == (B, S, VOCAB), logits.shape
    assert bool(jnp.all(jnp.isfinite(logits)))
    print("KERNEL_OK")
</pallas_src>

<mosaic_0001>
module attributes {stable_mosaic.version = 11 : i64} {
  func.func @_decoder_fused_kernel(%arg0: memref<16x32xf32, #tpu.memory_space<vmem>>, %arg1: memref<16x32xf32, #tpu.memory_space<vmem>>, %arg2: memref<2x8xf32, #tpu.memory_space<vmem>>, %arg3: memref<2x8xf32, #tpu.memory_space<vmem>>, %arg4: memref<2x8x32x32xbf16, #tpu.memory_space<vmem>>, %arg5: memref<2x15x1x32xf32, #tpu.memory_space<vmem>>, %arg6: memref<2x32x2048xbf16, #tpu.memory_space<vmem>>, %arg7: memref<2x1x2048xf32, #tpu.memory_space<vmem>>, %arg8: memref<2x2048x32xbf16, #tpu.memory_space<vmem>>, %arg9: memref<4x1x32xf32, #tpu.memory_space<vmem>>, %arg10: memref<32x32xbf16, #tpu.memory_space<vmem>>, %arg11: memref<1x32xf32, #tpu.memory_space<vmem>>, %arg12: memref<32x128xbf16, #tpu.memory_space<vmem>>, %arg13: memref<1x128xf32, #tpu.memory_space<vmem>>, %arg14: memref<16x128xf32, #tpu.memory_space<vmem>>) attributes {dimension_semantics = [], scalar_prefetch = 0 : i64, scratch_operands = 0 : i64, tpu.core_type = #tpu.core_type<tc>} {
    %0 = tpu.iota {dimensions = array<i32: 0>} : vector<8x8xi32>
    %1 = tpu.iota {dimensions = array<i32: 1>} : vector<8x8xi32>
    %2 = arith.cmpi sgt, %1, %0 : vector<8x8xi32>
    %3 = arith.extui %2 : vector<8x8xi1> to vector<8x8xi32>
    %4 = arith.sitofp %3 : vector<8x8xi32> to vector<8x8xf32>
    %cst = arith.constant -1.000000e+30 : f32
    %5 = vector.broadcast %cst : f32 to vector<8x8xf32>
    %6 = arith.mulf %4, %5 : vector<8x8xf32>
    %7 = vector.shape_cast %6 : vector<8x8xf32> to vector<1x8x8xf32>
    %c0 = arith.constant 0 : index
    %c0_0 = arith.constant 0 : index
    %8 = vector.load %arg2[%c0, %c0_0] : memref<2x8xf32, #tpu.memory_space<vmem>>, vector<2x8xf32>
    %9 = vector.shape_cast %8 : vector<2x8xf32> to vector<2x1x8xf32>
    %10 = vector.broadcast %7 : vector<1x8x8xf32> to vector<2x8x8xf32>
    %11 = vector.broadcast %9 : vector<2x1x8xf32> to vector<2x8x8xf32>
    %12 = arith.addf %10, %11 : vector<2x8x8xf32>
    %c0_1 = arith.constant 0 : index
    %c0_2 = arith.constant 0 : index
    %13 = vector.load %arg3[%c0_1, %c0_2] : memref<2x8xf32, #tpu.memory_space<vmem>>, vector<2x8xf32>
    %14 = vector.shape_cast %13 : vector<2x8xf32> to vector<2x1x8xf32>
    %c0_3 = arith.constant 0 : index
    %c0_4 = arith.constant 0 : index
    %15 = vector.load %arg0[%c0_3, %c0_4] : memref<16x32xf32, #tpu.memory_space<vmem>>, vector<16x32xf32>
    %c0_5 = arith.constant 0 : index
    %c0_6 = arith.constant 0 : index
    %16 = vector.load %arg1[%c0_5, %c0_6] : memref<16x32xf32, #tpu.memory_space<vmem>>, vector<16x32xf32>
    %c0_7 = arith.constant 0 : index
    %c0_8 = arith.constant 0 : index
    %c0_9 = arith.constant 0 : index
    %c0_10 = arith.constant 0 : index
    %17 = vector.load %arg4[%c0_7, %c0_8, %c0_9, %c0_10] : memref<2x8x32x32xbf16, #tpu.memory_space<vmem>>, vector<1x1x32x32xbf16>
    %18 = vector.shape_cast %17 : vector<1x1x32x32xbf16> to vector<32x32xbf16>
    %19 = arith.truncf %15 : vector<16x32xf32> to vector<16x32xbf16>
    %cst_11 = arith.constant dense<0.000000e+00> : vector<16x32xf32>
    %20 = tpu.matmul %19, %18, %cst_11 {dimension_numbers = #tpu.dot_dimension_numbers<[1], [0], [0], [1], [0, 0, 1, 1], [], []>} : vector<16x32xbf16>, vector<32x32xbf16>, vector<16x32xf32> -> vector<16x32xf32>
    %c0_12 = arith.constant 0 : index
    %c0_13 = arith.constant 0 : index
    %c0_14 = arith.constant 0 : index
    %c0_15 = arith.constant 0 : index
    %21 = vector.load %arg5[%c0_12, %c0_13, %c0_14, %c0_15] : memref<2x15x1x32xf32, #tpu.memory_space<vmem>>, vector<1x1x1x32xf32>
    %22 = vector.shape_cast %21 : vector<1x1x1x32xf32> to vector<1x32xf32>
    %23 = vector.broadcast %22 : vector<1x32xf32> to vector<16x32xf32>
    %24 = arith.addf %20, %23 : vector<16x32xf32>
    %c0_16 = arith.constant 0 : index
    %c1 = arith.constant 1 : index
    %c0_17 = arith.constant 0 : index
    %c0_18 = arith.constant 0 : index
    %25 = vector.load %arg4[%c0_16, %c1, %c0_17, %c0_18] : memref<2x8x32x32xbf16, #tpu.memory_space<vmem>>, vector<1x1x32x32xbf16>
    %26 = vector.shape_cast %25 : vector<1x1x32x32xbf16> to vector<32x32xbf16>
    %27 = arith.truncf %15 : vector<16x32xf32> to vector<16x32xbf16>
    %cst_19 = arith.constant dense<0.000000e+00> : vector<16x32xf32>
    %28 = tpu.matmul %27, %26, %cst_19 {dimension_numbers = #tpu.dot_dimension_numbers<[1], [0], [0], [1], [0, 0, 1, 1], [], []>} : vector<16x32xbf16>, vector<32x32xbf16>, vector<16x32xf32> -> vector<16x32xf32>
    %c0_20 = arith.constant 0 : index
    %c1_21 = arith.constant 1 : index
    %c0_22 = arith.constant 0 : index
    %c0_23 = arith.constant 0 : index
    %29 = vector.load %arg5[%c0_20, %c1_21, %c0_22, %c0_23] : memref<2x15x1x32xf32, #tpu.memory_space<vmem>>, vector<1x1x1x32xf32>
    %30 = vector.shape_cast %29 : vector<1x1x1x32xf32> to vector<1x32xf32>
    %31 = vector.broadcast %30 : vector<1x32xf32> to vector<16x32xf32>
    %32 = arith.addf %28, %31 : vector<16x32xf32>
    %c0_24 = arith.constant 0 : index
    %c2 = arith.constant 2 : index
    %c0_25 = arith.constant 0 : index
    %c0_26 = arith.constant 0 : index
    %33 = vector.load %arg4[%c0_24, %c2, %c0_25, %c0_26] : memref<2x8x32x32xbf16, #tpu.memory_space<vmem>>, vector<1x1x32x32xbf16>
    %34 = vector.shape_cast %33 : vector<1x1x32x32xbf16> to vector<32x32xbf16>
    %35 = arith.truncf %15 : vector<16x32xf32> to vector<16x32xbf16>
    %cst_27 = arith.constant dense<0.000000e+00> : vector<16x32xf32>
    %36 = tpu.matmul %35, %34, %cst_27 {dimension_numbers = #tpu.dot_dimension_numbers<[1], [0], [0], [1], [0, 0, 1, 1], [], []>} : vector<16x32xbf16>, vector<32x32xbf16>, vector<16x32xf32> -> vector<16x32xf32>
    %c0_28 = arith.constant 0 : index
    %c2_29 = arith.constant 2 : index
    %c0_30 = arith.constant 0 : index
    %c0_31 = arith.constant 0 : index
    %37 = vector.load %arg5[%c0_28, %c2_29, %c0_30, %c0_31] : memref<2x15x1x32xf32, #tpu.memory_space<vmem>>, vector<1x1x1x32xf32>
    %38 = vector.shape_cast %37 : vector<1x1x1x32xf32> to vector<1x32xf32>
    %39 = vector.broadcast %38 : vector<1x32xf32> to vector<16x32xf32>
    %40 = arith.addf %36, %39 : vector<16x32xf32>
    %c0_32 = arith.constant 0 : index
    %c3 = arith.constant 3 : index
    %c0_33 = arith.constant 0 : index
    %c0_34 = arith.constant 0 : index
    %41 = vector.load %arg4[%c0_32, %c3, %c0_33, %c0_34] : memref<2x8x32x32xbf16, #tpu.memory_space<vmem>>, vector<1x1x32x32xbf16>
    %42 = vector.shape_cast %41 : vector<1x1x32x32xbf16> to vector<32x32xbf16>
    %c0_35 = arith.constant 0 : index
    %c3_36 = arith.constant 3 : index
    %c0_37 = arith.constant 0 : index
    %c0_38 = arith.constant 0 : index
    %43 = vector.load %arg5[%c0_35, %c3_36, %c0_37, %c0_38] : memref<2x15x1x32xf32, #tpu.memory_space<vmem>>, vector<1x1x1x32xf32>
    %44 = vector.shape_cast %43 : vector<1x1x1x32xf32> to vector<1x32xf32>
    %45 = vector.shape_cast %24 : vector<16x32xf32> to vector<2x8x4x8xf32>
    %46 = tpu.transpose %45, [0, 2, 1, 3] : vector<2x8x4x8xf32> -> vector<2x4x8x8xf32>
    %47 = vector.shape_cast %46 : vector<2x4x8x8xf32> to vector<8x8x8xf32>
    %48 = arith.truncf %47 : vector<8x8x8xf32> to vector<8x8x8xbf16>
    %49 = vector.shape_cast %32 : vector<16x32xf32> to vector<2x8x4x8xf32>
    %50 = tpu.transpose %49, [0, 2, 1, 3] : vector<2x8x4x8xf32> -> vector<2x4x8x8xf32>
    %51 = vector.shape_cast %50 : vector<2x4x8x8xf32> to vector<8x8x8xf32>
    %52 = arith.truncf %51 : vector<8x8x8xf32> to vector<8x8x8xbf16>
    %53 = vector.shape_cast %40 : vector<16x32xf32> to vector<2x8x4x8xf32>
    %54 = tpu.transpose %53, [0, 2, 1, 3] : vector<2x8x4x8xf32> -> vector<2x4x8x8xf32>
    %55 = vector.shape_cast %54 : vector<2x4x8x8xf32> to vector<8x8x8xf32>
    %56 = arith.truncf %55 : vector<8x8x8xf32> to vector<8x8x8xbf16>
    "tpu.trace_start"() <{level = 10 : i32, message = "gqd,gkd->gqk"}> : () -> ()
    %cst_39 = arith.constant dense<0.000000e+00> : vector<8x8x8xf32>
    %57 = tpu.matmul %48, %52, %cst_39 {dimension_numbers = #tpu.dot_dimension_numbers<[2], [2], [1], [1], [0, 0, 0, 1, 1, 1], [0], [0]>} : vector<8x8x8xbf16>, vector<8x8x8xbf16>, vector<8x8x8xf32> -> vector<8x8x8xf32>
    "tpu.trace_stop"() : () -> ()
    %58 = vector.shape_cast %57 : vector<8x8x8xf32> to vector<2x4x8x8xf32>
    %59 = vector.shape_cast %12 : vector<2x8x8xf32> to vector<2x1x8x8xf32>
    %60 = vector.broadcast %59 : vector<2x1x8x8xf32> to vector<2x4x8x8xf32>
    %61 = arith.addf %58, %60 : vector<2x4x8x8xf32>
    %cst_40 = arith.constant dense<0xFF800000> : vector<2x4x8xf32>
    %62 = vector.multi_reduction <maximumf>, %61, %cst_40 [3] : vector<2x4x8x8xf32> to vector<2x4x8xf32>
    %63 = vector.shape_cast %62 : vector<2x4x8xf32> to vector<2x4x8x1xf32>
    %64 = vector.broadcast %63 : vector<2x4x8x1xf32> to vector<2x4x8x8xf32>
    %65 = arith.subf %61, %64 : vector<2x4x8x8xf32>
    %66 = math.exp %65 : vector<2x4x8x8xf32>
    %cst_41 = arith.constant dense<0.000000e+00> : vector<2x4x8xf32>
    %67 = vector.multi_reduction <add>, %66, %cst_41 [3] : vector<2x4x8x8xf32> to vector<2x4x8xf32>
    %68 = vector.shape_cast %67 : vector<2x4x8xf32> to vector<2x4x8x1xf32>
    %69 = vector.broadcast %68 : vector<2x4x8x1xf32> to vector<2x4x8x8xf32>
    %70 = arith.divf %66, %69 : vector<2x4x8x8xf32>
    %71 = vector.shape_cast %70 : vector<2x4x8x8xf32> to vector<8x8x8xf32>
    %72 = arith.truncf %71 : vector<8x8x8xf32> to vector<8x8x8xbf16>
    "tpu.trace_start"() <{level = 10 : i32, message = "gqk,gkd->gqd"}> : () -> ()
    %cst_42 = arith.constant dense<0.000000e+00> : vector<8x8x8xf32>
    %73 = tpu.matmul %72, %56, %cst_42 {dimension_numbers = #tpu.dot_dimension_numbers<[2], [1], [1], [2], [0, 0, 0, 1, 1, 2], [0], [0]>} : vector<8x8x8xbf16>, vector<8x8x8xbf16>, vector<8x8x8xf32> -> vector<8x8x8xf32>
    "tpu.trace_stop"() : () -> ()
    %74 = vector.shape_cast %73 : vector<8x8x8xf32> to vector<2x4x8x8xf32>
    %75 = tpu.transpose %74, [0, 2, 1, 3] : vector<2x4x8x8xf32> -> vector<2x8x4x8xf32>
    %76 = vector.shape_cast %75 : vector<2x8x4x8xf32> to vector<16x32xf32>
    %77 = arith.truncf %76 : vector<16x32xf32> to vector<16x32xbf16>
    %cst_43 = arith.constant dense<0.000000e+00> : vector<16x32xf32>
    %78 = tpu.matmul %77, %42, %cst_43 {dimension_numbers = #tpu.dot_dimension_numbers<[1], [0], [0], [1], [0, 0, 1, 1], [], []>} : vector<16x32xbf16>, vector<32x32xbf16>, vector<16x32xf32> -> vector<16x32xf32>
    %79 = vector.broadcast %44 : vector<1x32xf32> to vector<16x32xf32>
    %80 = arith.addf %78, %79 : vector<16x32xf32>
    %81 = arith.addf %15, %80 : vector<16x32xf32>
    %c0_44 = arith.constant 0 : index
    %c9 = arith.constant 9 : index
    %c0_45 = arith.constant 0 : index
    %c0_46 = arith.constant 0 : index
    %82 = vector.load %arg5[%c0_44, %c9, %c0_45, %c0_46] : memref<2x15x1x32xf32, #tpu.memory_space<vmem>>, vector<1x1x1x32xf32>
    %83 = vector.shape_cast %82 : vector<1x1x1x32xf32> to vector<1x32xf32>
    %c0_47 = arith.constant 0 : index
    %c10 = arith.constant 10 : index
    %c0_48 = arith.constant 0 : index
    %c0_49 = arith.constant 0 : index
    %84 = vector.load %arg5[%c0_47, %c10, %c0_48, %c0_49] : memref<2x15x1x32xf32, #tpu.memory_space<vmem>>, vector<1x1x1x32xf32>
    %85 = vector.shape_cast %84 : vector<1x1x1x32xf32> to vector<1x32xf32>
    %cst_50 = arith.constant dense<0.000000e+00> : vector<16xf32>
    %86 = vector.multi_reduction <add>, %81, %cst_50 [1] : vector<16x32xf32> to vector<16xf32>
    %87 = vector.shape_cast %86 : vector<16xf32> to vector<16x1xf32>
    %cst_51 = arith.constant 3.200000e+01 : f32
    %88 = vector.broadcast %cst_51 : f32 to vector<16x1xf32>
    %89 = arith.divf %87, %88 : vector<16x1xf32>
    %90 = vector.broadcast %89 : vector<16x1xf32> to vector<16x32xf32>
    %91 = arith.subf %81, %90 : vector<16x32xf32>
    %92 = arith.mulf %91, %91 : vector<16x32xf32>
    %cst_52 = arith.constant dense<0.000000e+00> : vector<16xf32>
    %93 = vector.multi_reduction <add>, %92, %cst_52 [1] : vector<16x32xf32> to vector<16xf32>
    %94 = vector.shape_cast %93 : vector<16xf32> to vector<16x1xf32>
    %cst_53 = arith.constant 3.200000e+01 : f32
    %95 = vector.broadcast %cst_53 : f32 to vector<16x1xf32>
    %96 = arith.divf %94, %95 : vector<16x1xf32>
    %97 = vector.broadcast %89 : vector<16x1xf32> to vector<16x32xf32>
    %98 = arith.subf %81, %97 : vector<16x32xf32>
    %cst_54 = arith.constant 9.99999974E-6 : f32
    %99 = vector.broadcast %cst_54 : f32 to vector<16x1xf32>
    %100 = arith.addf %96, %99 : vector<16x1xf32>
    %101 = math.rsqrt %100 : vector<16x1xf32>
    %102 = vector.broadcast %101 : vector<16x1xf32> to vector<16x32xf32>
    %103 = arith.mulf %98, %102 : vector<16x32xf32>
    %104 = vector.broadcast %83 : vector<1x32xf32> to vector<16x32xf32>
    %105 = arith.mulf %103, %104 : vector<16x32xf32>
    %106 = vector.broadcast %85 : vector<1x32xf32> to vector<16x32xf32>
    %107 = arith.addf %105, %106 : vector<16x32xf32>
    %c0_55 = arith.constant 0 : index
    %c4 = arith.constant 4 : index
    %c0_56 = arith.constant 0 : index
    %c0_57 = arith.constant 0 : index
    %108 = vector.load %arg4[%c0_55, %c4, %c0_56, %c0_57] : memref<2x8x32x32xbf16, #tpu.memory_space<vmem>>, vector<1x1x32x32xbf16>
    %109 = vector.shape_cast %108 : vector<1x1x32x32xbf16> to vector<32x32xbf16>
    %110 = arith.truncf %107 : vector<16x32xf32> to vector<16x32xbf16>
    %cst_58 = arith.constant dense<0.000000e+00> : vector<16x32xf32>
    %111 = tpu.matmul %110, %109, %cst_58 {dimension_numbers = #tpu.dot_dimension_numbers<[1], [0], [0], [1], [0, 0, 1, 1], [], []>} : vector<16x32xbf16>, vector<32x32xbf16>, vector<16x32xf32> -> vector<16x32xf32>
    %c0_59 = arith.constant 0 : index
    %c4_60 = arith.constant 4 : index
    %c0_61 = arith.constant 0 : index
    %c0_62 = arith.constant 0 : index
    %112 = vector.load %arg5[%c0_59, %c4_60, %c0_61, %c0_62] : memref<2x15x1x32xf32, #tpu.memory_space<vmem>>, vector<1x1x1x32xf32>
    %113 = vector.shape_cast %112 : vector<1x1x1x32xf32> to vector<1x32xf32>
    %114 = vector.broadcast %113 : vector<1x32xf32> to vector<16x32xf32>
    %115 = arith.addf %111, %114 : vector<16x32xf32>
    %c0_63 = arith.constant 0 : index
    %c5 = arith.constant 5 : index
    %c0_64 = arith.constant 0 : index
    %c0_65 = arith.constant 0 : index
    %116 = vector.load %arg4[%c0_63, %c5, %c0_64, %c0_65] : memref<2x8x32x32xbf16, #tpu.memory_space<vmem>>, vector<1x1x32x32xbf16>
    %117 = vector.shape_cast %116 : vector<1x1x32x32xbf16> to vector<32x32xbf16>
    %118 = arith.truncf %16 : vector<16x32xf32> to vector<16x32xbf16>
    %cst_66 = arith.constant dense<0.000000e+00> : vector<16x32xf32>
    %119 = tpu.matmul %118, %117, %cst_66 {dimension_numbers = #tpu.dot_dimension_numbers<[1], [0], [0], [1], [0, 0, 1, 1], [], []>} : vector<16x32xbf16>, vector<32x32xbf16>, vector<16x32xf32> -> vector<16x32xf32>
    %c0_67 = arith.constant 0 : index
    %c5_68 = arith.constant 5 : index
    %c0_69 = arith.constant 0 : index
    %c0_70 = arith.constant 0 : index
    %120 = vector.load %arg5[%c0_67, %c5_68, %c0_69, %c0_70] : memref<2x15x1x32xf32, #tpu.memory_space<vmem>>, vector<1x1x1x32xf32>
    %121 = vector.shape_cast %120 : vector<1x1x1x32xf32> to vector<1x32xf32>
    %122 = vector.broadcast %121 : vector<1x32xf32> to vector<16x32xf32>
    %123 = arith.addf %119, %122 : vector<16x32xf32>
    %c0_71 = arith.constant 0 : index
    %c6 = arith.constant 6 : index
    %c0_72 = arith.constant 0 : index
    %c0_73 = arith.constant 0 : index
    %124 = vector.load %arg4[%c0_71, %c6, %c0_72, %c0_73] : memref<2x8x32x32xbf16, #tpu.memory_space<vmem>>, vector<1x1x32x32xbf16>
    %125 = vector.shape_cast %124 : vector<1x1x32x32xbf16> to vector<32x32xbf16>
    %126 = arith.truncf %16 : vector<16x32xf32> to vector<16x32xbf16>
    %cst_74 = arith.constant dense<0.000000e+00> : vector<16x32xf32>
    %127 = tpu.matmul %126, %125, %cst_74 {dimension_numbers = #tpu.dot_dimension_numbers<[1], [0], [0], [1], [0, 0, 1, 1], [], []>} : vector<16x32xbf16>, vector<32x32xbf16>, vector<16x32xf32> -> vector<16x32xf32>
    %c0_75 = arith.constant 0 : index
    %c6_76 = arith.constant 6 : index
    %c0_77 = arith.constant 0 : index
    %c0_78 = arith.constant 0 : index
    %128 = vector.load %arg5[%c0_75, %c6_76, %c0_77, %c0_78] : memref<2x15x1x32xf32, #tpu.memory_space<vmem>>, vector<1x1x1x32xf32>
    %129 = vector.shape_cast %128 : vector<1x1x1x32xf32> to vector<1x32xf32>
    %130 = vector.broadcast %129 : vector<1x32xf32> to vector<16x32xf32>
    %131 = arith.addf %127, %130 : vector<16x32xf32>
    %c0_79 = arith.constant 0 : index
    %c7 = arith.constant 7 : index
    %c0_80 = arith.constant 0 : index
    %c0_81 = arith.constant 0 : index
    %132 = vector.load %arg4[%c0_79, %c7, %c0_80, %c0_81] : memref<2x8x32x32xbf16, #tpu.memory_space<vmem>>, vector<1x1x32x32xbf16>
    %133 = vector.shape_cast %132 : vector<1x1x32x32xbf16> to vector<32x32xbf16>
    %c0_82 = arith.constant 0 : index
    %c7_83 = arith.constant 7 : index
    %c0_84 = arith.constant 0 : index
    %c0_85 = arith.constant 0 : index
    %134 = vector.load %arg5[%c0_82, %c7_83, %c0_84, %c0_85] : memref<2x15x1x32xf32, #tpu.memory_space<vmem>>, vector<1x1x1x32xf32>
    %135 = vector.shape_cast %134 : vector<1x1x1x32xf32> to vector<1x32xf32>
    %136 = vector.shape_cast %115 : vector<16x32xf32> to vector<2x8x4x8xf32>
    %137 = tpu.transpose %136, [0, 2, 1, 3] : vector<2x8x4x8xf32> -> vector<2x4x8x8xf32>
    %138 = vector.shape_cast %137 : vector<2x4x8x8xf32> to vector<8x8x8xf32>
    %139 = arith.truncf %138 : vector<8x8x8xf32> to vector<8x8x8xbf16>
    %140 = vector.shape_cast %123 : vector<16x32xf32> to vector<2x8x4x8xf32>
    %141 = tpu.transpose %140, [0, 2, 1, 3] : vector<2x8x4x8xf32> -> vector<2x4x8x8xf32>
    %142 = vector.shape_cast %141 : vector<2x4x8x8xf32> to vector<8x8x8xf32>
    %143 = arith.truncf %142 : vector<8x8x8xf32> to vector<8x8x8xbf16>
    %144 = vector.shape_cast %131 : vector<16x32xf32> to vector<2x8x4x8xf32>
    %145 = tpu.transpose %144, [0, 2, 1, 3] : vector<2x8x4x8xf32> -> vector<2x4x8x8xf32>
    %146 = vector.shape_cast %145 : vector<2x4x8x8xf32> to vector<8x8x8xf32>
    %147 = arith.truncf %146 : vector<8x8x8xf32> to vector<8x8x8xbf16>
    "tpu.trace_start"() <{level = 10 : i32, message = "gqd,gkd->gqk"}> : () -> ()
    %cst_86 = arith.constant dense<0.000000e+00> : vector<8x8x8xf32>
    %148 = tpu.matmul %139, %143, %cst_86 {dimension_numbers = #tpu.dot_dimension_numbers<[2], [2], [1], [1], [0, 0, 0, 1, 1, 1], [0], [0]>} : vector<8x8x8xbf16>, vector<8x8x8xbf16>, vector<8x8x8xf32> -> vector<8x8x8xf32>
    "tpu.trace_stop"() : () -> ()
    %149 = vector.shape_cast %148 : vector<8x8x8xf32> to vector<2x4x8x8xf32>
    %150 = vector.shape_cast %14 : vector<2x1x8xf32> to vector<2x1x1x8xf32>
    %151 = vector.broadcast %150 : vector<2x1x1x8xf32> to vector<2x4x8x8xf32>
    %152 = arith.addf %149, %151 : vector<2x4x8x8xf32>
    %cst_87 = arith.constant dense<0xFF800000> : vector<2x4x8xf32>
    %153 = vector.multi_reduction <maximumf>, %152, %cst_87 [3] : vector<2x4x8x8xf32> to vector<2x4x8xf32>
    %154 = vector.shape_cast %153 : vector<2x4x8xf32> to vector<2x4x8x1xf32>
    %155 = vector.broadcast %154 : vector<2x4x8x1xf32> to vector<2x4x8x8xf32>
    %156 = arith.subf %152, %155 : vector<2x4x8x8xf32>
    %157 = math.exp %156 : vector<2x4x8x8xf32>
    %cst_88 = arith.constant dense<0.000000e+00> : vector<2x4x8xf32>
    %158 = vector.multi_reduction <add>, %157, %cst_88 [3] : vector<2x4x8x8xf32> to vector<2x4x8xf32>
    %159 = vector.shape_cast %158 : vector<2x4x8xf32> to vector<2x4x8x1xf32>
    %160 = vector.broadcast %159 : vector<2x4x8x1xf32> to vector<2x4x8x8xf32>
    %161 = arith.divf %157, %160 : vector<2x4x8x8xf32>
    %162 = vector.shape_cast %161 : vector<2x4x8x8xf32> to vector<8x8x8xf32>
    %163 = arith.truncf %162 : vector<8x8x8xf32> to vector<8x8x8xbf16>
    "tpu.trace_start"() <{level = 10 : i32, message = "gqk,gkd->gqd"}> : () -> ()
    %cst_89 = arith.constant dense<0.000000e+00> : vector<8x8x8xf32>
    %164 = tpu.matmul %163, %147, %cst_89 {dimension_numbers = #tpu.dot_dimension_numbers<[2], [1], [1], [2], [0, 0, 0, 1, 1, 2], [0], [0]>} : vector<8x8x8xbf16>, vector<8x8x8xbf16>, vector<8x8x8xf32> -> vector<8x8x8xf32>
    "tpu.trace_stop"() : () -> ()
    %165 = vector.shape_cast %164 : vector<8x8x8xf32> to vector<2x4x8x8xf32>
    %166 = tpu.transpose %165, [0, 2, 1, 3] : vector<2x4x8x8xf32> -> vector<2x8x4x8xf32>
    %167 = vector.shape_cast %166 : vector<2x8x4x8xf32> to vector<16x32xf32>
    %168 = arith.truncf %167 : vector<16x32xf32> to vector<16x32xbf16>
    %cst_90 = arith.constant dense<0.000000e+00> : vector<16x32xf32>
    %169 = tpu.matmul %168, %133, %cst_90 {dimension_numbers = #tpu.dot_dimension_numbers<[1], [0], [0], [1], [0, 0, 1, 1], [], []>} : vector<16x32xbf16>, vector<32x32xbf16>, vector<16x32xf32> -> vector<16x32xf32>
    %170 = vector.broadcast %135 : vector<1x32xf32> to vector<16x32xf32>
    %171 = arith.addf %169, %170 : vector<16x32xf32>
    %172 = arith.addf %107, %171 : vector<16x32xf32>
    %c0_91 = arith.constant 0 : index
    %c11 = arith.constant 11 : index
    %c0_92 = arith.constant 0 : index
    %c0_93 = arith.constant 0 : index
    %173 = vector.load %arg5[%c0_91, %c11, %c0_92, %c0_93] : memref<2x15x1x32xf32, #tpu.memory_space<vmem>>, vector<1x1x1x32xf32>
    %174 = vector.shape_cast %173 : vector<1x1x1x32xf32> to vector<1x32xf32>
    %c0_94 = arith.constant 0 : index
    %c12 = arith.constant 12 : index
    %c0_95 = arith.constant 0 : index
    %c0_96 = arith.constant 0 : index
    %175 = vector.load %arg5[%c0_94, %c12, %c0_95, %c0_96] : memref<2x15x1x32xf32, #tpu.memory_space<vmem>>, vector<1x1x1x32xf32>
    %176 = vector.shape_cast %175 : vector<1x1x1x32xf32> to vector<1x32xf32>
    %cst_97 = arith.constant dense<0.000000e+00> : vector<16xf32>
    %177 = vector.multi_reduction <add>, %172, %cst_97 [1] : vector<16x32xf32> to vector<16xf32>
    %178 = vector.shape_cast %177 : vector<16xf32> to vector<16x1xf32>
    %cst_98 = arith.constant 3.200000e+01 : f32
    %179 = vector.broadcast %cst_98 : f32 to vector<16x1xf32>
    %180 = arith.divf %178, %179 : vector<16x1xf32>
    %181 = vector.broadcast %180 : vector<16x1xf32> to vector<16x32xf32>
    %182 = arith.subf %172, %181 : vector<16x32xf32>
    %183 = arith.mulf %182, %182 : vector<16x32xf32>
    %cst_99 = arith.constant dense<0.000000e+00> : vector<16xf32>
    %184 = vector.multi_reduction <add>, %183, %cst_99 [1] : vector<16x32xf32> to vector<16xf32>
    %185 = vector.shape_cast %184 : vector<16xf32> to vector<16x1xf32>
    %cst_100 = arith.constant 3.200000e+01 : f32
    %186 = vector.broadcast %cst_100 : f32 to vector<16x1xf32>
    %187 = arith.divf %185, %186 : vector<16x1xf32>
    %188 = vector.broadcast %180 : vector<16x1xf32> to vector<16x32xf32>
    %189 = arith.subf %172, %188 : vector<16x32xf32>
    %cst_101 = arith.constant 9.99999974E-6 : f32
    %190 = vector.broadcast %cst_101 : f32 to vector<16x1xf32>
    %191 = arith.addf %187, %190 : vector<16x1xf32>
    %192 = math.rsqrt %191 : vector<16x1xf32>
    %193 = vector.broadcast %192 : vector<16x1xf32> to vector<16x32xf32>
    %194 = arith.mulf %189, %193 : vector<16x32xf32>
    %195 = vector.broadcast %174 : vector<1x32xf32> to vector<16x32xf32>
    %196 = arith.mulf %194, %195 : vector<16x32xf32>
    %197 = vector.broadcast %176 : vector<1x32xf32> to vector<16x32xf32>
    %198 = arith.addf %196, %197 : vector<16x32xf32>
    %c0_102 = arith.constant 0 : index
    %c0_103 = arith.constant 0 : index
    %c0_104 = arith.constant 0 : index
    %199 = vector.load %arg6[%c0_102, %c0_103, %c0_104] : memref<2x32x2048xbf16, #tpu.memory_space<vmem>>, vector<1x32x2048xbf16>
    %200 = vector.shape_cast %199 : vector<1x32x2048xbf16> to vector<32x2048xbf16>
    %201 = arith.truncf %198 : vector<16x32xf32> to vector<16x32xbf16>
    %cst_105 = arith.constant dense<0.000000e+00> : vector<16x2048xf32>
    %202 = tpu.matmul %201, %200, %cst_105 {dimension_numbers = #tpu.dot_dimension_numbers<[1], [0], [0], [1], [0, 0, 1, 1], [], []>} : vector<16x32xbf16>, vector<32x2048xbf16>, vector<16x2048xf32> -> vector<16x2048xf32>
    %c0_106 = arith.constant 0 : index
    %c0_107 = arith.constant 0 : index
    %c0_108 = arith.constant 0 : index
    %203 = vector.load %arg7[%c0_106, %c0_107, %c0_108] : memref<2x1x2048xf32, #tpu.memory_space<vmem>>, vector<1x1x2048xf32>
    %204 = vector.shape_cast %203 : vector<1x1x2048xf32> to vector<1x2048xf32>
    %205 = vector.broadcast %204 : vector<1x2048xf32> to vector<16x2048xf32>
    %206 = arith.addf %202, %205 : vector<16x2048xf32>
    %cst_109 = arith.constant 5.000000e-01 : f32
    %207 = vector.broadcast %cst_109 : f32 to vector<16x2048xf32>
    %208 = arith.mulf %207, %206 : vector<16x2048xf32>
    %cst_110 = arith.constant 4.471500e-02 : f32
    %209 = vector.broadcast %cst_110 : f32 to vector<16x2048xf32>
    %210 = arith.mulf %209, %206 : vector<16x2048xf32>
    %211 = arith.mulf %210, %206 : vector<16x2048xf32>
    %212 = arith.mulf %211, %206 : vector<16x2048xf32>
    %213 = arith.addf %206, %212 : vector<16x2048xf32>
    %cst_111 = arith.constant 0.797884583 : f32
    %214 = vector.broadcast %cst_111 : f32 to vector<16x2048xf32>
    %215 = arith.mulf %214, %213 : vector<16x2048xf32>
    %216 = math.tanh %215 : vector<16x2048xf32>
    %cst_112 = arith.constant 1.000000e+00 : f32
    %217 = vector.broadcast %cst_112 : f32 to vector<16x2048xf32>
    %218 = arith.addf %217, %216 : vector<16x2048xf32>
    %219 = arith.mulf %208, %218 : vector<16x2048xf32>
    %c0_113 = arith.constant 0 : index
    %c0_114 = arith.constant 0 : index
    %c0_115 = arith.constant 0 : index
    %220 = vector.load %arg8[%c0_113, %c0_114, %c0_115] : memref<2x2048x32xbf16, #tpu.memory_space<vmem>>, vector<1x2048x32xbf16>
    %221 = vector.shape_cast %220 : vector<1x2048x32xbf16> to vector<2048x32xbf16>
    %222 = arith.truncf %219 : vector<16x2048xf32> to vector<16x2048xbf16>
    %cst_116 = arith.constant dense<0.000000e+00> : vector<16x32xf32>
    %223 = tpu.matmul %222, %221, %cst_116 {dimension_numbers = #tpu.dot_dimension_numbers<[1], [0], [0], [1], [0, 0, 1, 1], [], []>} : vector<16x2048xbf16>, vector<2048x32xbf16>, vector<16x32xf32> -> vector<16x32xf32>
    %c0_117 = arith.constant 0 : index
    %c8 = arith.constant 8 : index
    %c0_118 = arith.constant 0 : index
    %c0_119 = arith.constant 0 : index
    %224 = vector.load %arg5[%c0_117, %c8, %c0_118, %c0_119] : memref<2x15x1x32xf32, #tpu.memory_space<vmem>>, vector<1x1x1x32xf32>
    %225 = vector.shape_cast %224 : vector<1x1x1x32xf32> to vector<1x32xf32>
    %226 = vector.broadcast %225 : vector<1x32xf32> to vector<16x32xf32>
    %227 = arith.addf %223, %226 : vector<16x32xf32>
    %228 = arith.addf %198, %227 : vector<16x32xf32>
    %c0_120 = arith.constant 0 : index
    %c13 = arith.constant 13 : index
    %c0_121 = arith.constant 0 : index
    %c0_122 = arith.constant 0 : index
    %229 = vector.load %arg5[%c0_120, %c13, %c0_121, %c0_122] : memref<2x15x1x32xf32, #tpu.memory_space<vmem>>, vector<1x1x1x32xf32>
    %230 = vector.shape_cast %229 : vector<1x1x1x32xf32> to vector<1x32xf32>
    %c0_123 = arith.constant 0 : index
    %c14 = arith.constant 14 : index
    %c0_124 = arith.constant 0 : index
    %c0_125 = arith.constant 0 : index
    %231 = vector.load %arg5[%c0_123, %c14, %c0_124, %c0_125] : memref<2x15x1x32xf32, #tpu.memory_space<vmem>>, vector<1x1x1x32xf32>
    %232 = vector.shape_cast %231 : vector<1x1x1x32xf32> to vector<1x32xf32>
    %cst_126 = arith.constant dense<0.000000e+00> : vector<16xf32>
    %233 = vector.multi_reduction <add>, %228, %cst_126 [1] : vector<16x32xf32> to vector<16xf32>
    %234 = vector.shape_cast %233 : vector<16xf32> to vector<16x1xf32>
    %cst_127 = arith.constant 3.200000e+01 : f32
    %235 = vector.broadcast %cst_127 : f32 to vector<16x1xf32>
    %236 = arith.divf %234, %235 : vector<16x1xf32>
    %237 = vector.broadcast %236 : vector<16x1xf32> to vector<16x32xf32>
    %238 = arith.subf %228, %237 : vector<16x32xf32>
    %239 = arith.mulf %238, %238 : vector<16x32xf32>
    %cst_128 = arith.constant dense<0.000000e+00> : vector<16xf32>
    %240 = vector.multi_reduction <add>, %239, %cst_128 [1] : vector<16x32xf32> to vector<16xf32>
    %241 = vector.shape_cast %240 : vector<16xf32> to vector<16x1xf32>
    %cst_129 = arith.constant 3.200000e+01 : f32
    %242 = vector.broadcast %cst_129 : f32 to vector<16x1xf32>
    %243 = arith.divf %241, %242 : vector<16x1xf32>
    %244 = vector.broadcast %236 : vector<16x1xf32> to vector<16x32xf32>
    %245 = arith.subf %228, %244 : vector<16x32xf32>
    %cst_130 = arith.constant 9.99999974E-6 : f32
    %246 = vector.broadcast %cst_130 : f32 to vector<16x1xf32>
    %247 = arith.addf %243, %246 : vector<16x1xf32>
    %248 = math.rsqrt %247 : vector<16x1xf32>
    %249 = vector.broadcast %248 : vector<16x1xf32> to vector<16x32xf32>
    %250 = arith.mulf %245, %249 : vector<16x32xf32>
    %251 = vector.broadcast %230 : vector<1x32xf32> to vector<16x32xf32>
    %252 = arith.mulf %250, %251 : vector<16x32xf32>
    %253 = vector.broadcast %232 : vector<1x32xf32> to vector<16x32xf32>
    %254 = arith.addf %252, %253 : vector<16x32xf32>
    %c1_131 = arith.constant 1 : index
    %c0_132 = arith.constant 0 : index
    %c0_133 = arith.constant 0 : index
    %c0_134 = arith.constant 0 : index
    %255 = vector.load %arg4[%c1_131, %c0_132, %c0_133, %c0_134] : memref<2x8x32x32xbf16, #tpu.memory_space<vmem>>, vector<1x1x32x32xbf16>
    %256 = vector.shape_cast %255 : vector<1x1x32x32xbf16> to vector<32x32xbf16>
    %257 = arith.truncf %254 : vector<16x32xf32> to vector<16x32xbf16>
    %cst_135 = arith.constant dense<0.000000e+00> : vector<16x32xf32>
    %258 = tpu.matmul %257, %256, %cst_135 {dimension_numbers = #tpu.dot_dimension_numbers<[1], [0], [0], [1], [0, 0, 1, 1], [], []>} : vector<16x32xbf16>, vector<32x32xbf16>, vector<16x32xf32> -> vector<16x32xf32>
    %c1_136 = arith.constant 1 : index
    %c0_137 = arith.constant 0 : index
    %c0_138 = arith.constant 0 : index
    %c0_139 = arith.constant 0 : index
    %259 = vector.load %arg5[%c1_136, %c0_137, %c0_138, %c0_139] : memref<2x15x1x32xf32, #tpu.memory_space<vmem>>, vector<1x1x1x32xf32>
    %260 = vector.shape_cast %259 : vector<1x1x1x32xf32> to vector<1x32xf32>
    %261 = vector.broadcast %260 : vector<1x32xf32> to vector<16x32xf32>
    %262 = arith.addf %258, %261 : vector<16x32xf32>
    %c1_140 = arith.constant 1 : index
    %c1_141 = arith.constant 1 : index
    %c0_142 = arith.constant 0 : index
    %c0_143 = arith.constant 0 : index
    %263 = vector.load %arg4[%c1_140, %c1_141, %c0_142, %c0_143] : memref<2x8x32x32xbf16, #tpu.memory_space<vmem>>, vector<1x1x32x32xbf16>
    %264 = vector.shape_cast %263 : vector<1x1x32x32xbf16> to vector<32x32xbf16>
    %265 = arith.truncf %254 : vector<16x32xf32> to vector<16x32xbf16>
    %cst_144 = arith.constant dense<0.000000e+00> : vector<16x32xf32>
    %266 = tpu.matmul %265, %264, %cst_144 {dimension_numbers = #tpu.dot_dimension_numbers<[1], [0], [0], [1], [0, 0, 1, 1], [], []>} : vector<16x32xbf16>, vector<32x32xbf16>, vector<16x32xf32> -> vector<16x32xf32>
    %c1_145 = arith.constant 1 : index
    %c1_146 = arith.constant 1 : index
    %c0_147 = arith.constant 0 : index
    %c0_148 = arith.constant 0 : index
    %267 = vector.load %arg5[%c1_145, %c1_146, %c0_147, %c0_148] : memref<2x15x1x32xf32, #tpu.memory_space<vmem>>, vector<1x1x1x32xf32>
    %268 = vector.shape_cast %267 : vector<1x1x1x32xf32> to vector<1x32xf32>
    %269 = vector.broadcast %268 : vector<1x32xf32> to vector<16x32xf32>
    %270 = arith.addf %266, %269 : vector<16x32xf32>
    %c1_149 = arith.constant 1 : index
    %c2_150 = arith.constant 2 : index
    %c0_151 = arith.constant 0 : index
    %c0_152 = arith.constant 0 : index
    %271 = vector.load %arg4[%c1_149, %c2_150, %c0_151, %c0_152] : memref<2x8x32x32xbf16, #tpu.memory_space<vmem>>, vector<1x1x32x32xbf16>
    %272 = vector.shape_cast %271 : vector<1x1x32x32xbf16> to vector<32x32xbf16>
    %273 = arith.truncf %254 : vector<16x32xf32> to vector<16x32xbf16>
    %cst_153 = arith.constant dense<0.000000e+00> : vector<16x32xf32>
    %274 = tpu.matmul %273, %272, %cst_153 {dimension_numbers = #tpu.dot_dimension_numbers<[1], [0], [0], [1], [0, 0, 1, 1], [], []>} : vector<16x32xbf16>, vector<32x32xbf16>, vector<16x32xf32> -> vector<16x32xf32>
    %c1_154 = arith.constant 1 : index
    %c2_155 = arith.constant 2 : index
    %c0_156 = arith.constant 0 : index
    %c0_157 = arith.constant 0 : index
    %275 = vector.load %arg5[%c1_154, %c2_155, %c0_156, %c0_157] : memref<2x15x1x32xf32, #tpu.memory_space<vmem>>, vector<1x1x1x32xf32>
    %276 = vector.shape_cast %275 : vector<1x1x1x32xf32> to vector<1x32xf32>
    %277 = vector.broadcast %276 : vector<1x32xf32> to vector<16x32xf32>
    %278 = arith.addf %274, %277 : vector<16x32xf32>
    %c1_158 = arith.constant 1 : index
    %c3_159 = arith.constant 3 : index
    %c0_160 = arith.constant 0 : index
    %c0_161 = arith.constant 0 : index
    %279 = vector.load %arg4[%c1_158, %c3_159, %c0_160, %c0_161] : memref<2x8x32x32xbf16, #tpu.memory_space<vmem>>, vector<1x1x32x32xbf16>
    %280 = vector.shape_cast %279 : vector<1x1x32x32xbf16> to vector<32x32xbf16>
    %c1_162 = arith.constant 1 : index
    %c3_163 = arith.constant 3 : index
    %c0_164 = arith.constant 0 : index
    %c0_165 = arith.constant 0 : index
    %281 = vector.load %arg5[%c1_162, %c3_163, %c0_164, %c0_165] : memref<2x15x1x32xf32, #tpu.memory_space<vmem>>, vector<1x1x1x32xf32>
    %282 = vector.shape_cast %281 : vector<1x1x1x32xf32> to vector<1x32xf32>
    %283 = vector.shape_cast %262 : vector<16x32xf32> to vector<2x8x4x8xf32>
    %284 = tpu.transpose %283, [0, 2, 1, 3] : vector<2x8x4x8xf32> -> vector<2x4x8x8xf32>
    %285 = vector.shape_cast %284 : vector<2x4x8x8xf32> to vector<8x8x8xf32>
    %286 = arith.truncf %285 : vector<8x8x8xf32> to vector<8x8x8xbf16>
    %287 = vector.shape_cast %270 : vector<16x32xf32> to vector<2x8x4x8xf32>
    %288 = tpu.transpose %287, [0, 2, 1, 3] : vector<2x8x4x8xf32> -> vector<2x4x8x8xf32>
    %289 = vector.shape_cast %288 : vector<2x4x8x8xf32> to vector<8x8x8xf32>
    %290 = arith.truncf %289 : vector<8x8x8xf32> to vector<8x8x8xbf16>
    %291 = vector.shape_cast %278 : vector<16x32xf32> to vector<2x8x4x8xf32>
    %292 = tpu.transpose %291, [0, 2, 1, 3] : vector<2x8x4x8xf32> -> vector<2x4x8x8xf32>
    %293 = vector.shape_cast %292 : vector<2x4x8x8xf32> to vector<8x8x8xf32>
    %294 = arith.truncf %293 : vector<8x8x8xf32> to vector<8x8x8xbf16>
    "tpu.trace_start"() <{level = 10 : i32, message = "gqd,gkd->gqk"}> : () -> ()
    %cst_166 = arith.constant dense<0.000000e+00> : vector<8x8x8xf32>
    %295 = tpu.matmul %286, %290, %cst_166 {dimension_numbers = #tpu.dot_dimension_numbers<[2], [2], [1], [1], [0, 0, 0, 1, 1, 1], [0], [0]>} : vector<8x8x8xbf16>, vector<8x8x8xbf16>, vector<8x8x8xf32> -> vector<8x8x8xf32>
    "tpu.trace_stop"() : () -> ()
    %296 = vector.shape_cast %295 : vector<8x8x8xf32> to vector<2x4x8x8xf32>
    %297 = vector.shape_cast %12 : vector<2x8x8xf32> to vector<2x1x8x8xf32>
    %298 = vector.broadcast %297 : vector<2x1x8x8xf32> to vector<2x4x8x8xf32>
    %299 = arith.addf %296, %298 : vector<2x4x8x8xf32>
    %cst_167 = arith.constant dense<0xFF800000> : vector<2x4x8xf32>
    %300 = vector.multi_reduction <maximumf>, %299, %cst_167 [3] : vector<2x4x8x8xf32> to vector<2x4x8xf32>
    %301 = vector.shape_cast %300 : vector<2x4x8xf32> to vector<2x4x8x1xf32>
    %302 = vector.broadcast %301 : vector<2x4x8x1xf32> to vector<2x4x8x8xf32>
    %303 = arith.subf %299, %302 : vector<2x4x8x8xf32>
    %304 = math.exp %303 : vector<2x4x8x8xf32>
    %cst_168 = arith.constant dense<0.000000e+00> : vector<2x4x8xf32>
    %305 = vector.multi_reduction <add>, %304, %cst_168 [3] : vector<2x4x8x8xf32> to vector<2x4x8xf32>
    %306 = vector.shape_cast %305 : vector<2x4x8xf32> to vector<2x4x8x1xf32>
    %307 = vector.broadcast %306 : vector<2x4x8x1xf32> to vector<2x4x8x8xf32>
    %308 = arith.divf %304, %307 : vector<2x4x8x8xf32>
    %309 = vector.shape_cast %308 : vector<2x4x8x8xf32> to vector<8x8x8xf32>
    %310 = arith.truncf %309 : vector<8x8x8xf32> to vector<8x8x8xbf16>
    "tpu.trace_start"() <{level = 10 : i32, message = "gqk,gkd->gqd"}> : () -> ()
    %cst_169 = arith.constant dense<0.000000e+00> : vector<8x8x8xf32>
    %311 = tpu.matmul %310, %294, %cst_169 {dimension_numbers = #tpu.dot_dimension_numbers<[2], [1], [1], [2], [0, 0, 0, 1, 1, 2], [0], [0]>} : vector<8x8x8xbf16>, vector<8x8x8xbf16>, vector<8x8x8xf32> -> vector<8x8x8xf32>
    "tpu.trace_stop"() : () -> ()
    %312 = vector.shape_cast %311 : vector<8x8x8xf32> to vector<2x4x8x8xf32>
    %313 = tpu.transpose %312, [0, 2, 1, 3] : vector<2x4x8x8xf32> -> vector<2x8x4x8xf32>
    %314 = vector.shape_cast %313 : vector<2x8x4x8xf32> to vector<16x32xf32>
    %315 = arith.truncf %314 : vector<16x32xf32> to vector<16x32xbf16>
    %cst_170 = arith.constant dense<0.000000e+00> : vector<16x32xf32>
    %316 = tpu.matmul %315, %280, %cst_170 {dimension_numbers = #tpu.dot_dimension_numbers<[1], [0], [0], [1], [0, 0, 1, 1], [], []>} : vector<16x32xbf16>, vector<32x32xbf16>, vector<16x32xf32> -> vector<16x32xf32>
    %317 = vector.broadcast %282 : vector<1x32xf32> to vector<16x32xf32>
    %318 = arith.addf %316, %317 : vector<16x32xf32>
    %319 = arith.addf %254, %318 : vector<16x32xf32>
    %c1_171 = arith.constant 1 : index
    %c9_172 = arith.constant 9 : index
    %c0_173 = arith.constant 0 : index
    %c0_174 = arith.constant 0 : index
    %320 = vector.load %arg5[%c1_171, %c9_172, %c0_173, %c0_174] : memref<2x15x1x32xf32, #tpu.memory_space<vmem>>, vector<1x1x1x32xf32>
    %321 = vector.shape_cast %320 : vector<1x1x1x32xf32> to vector<1x32xf32>
    %c1_175 = arith.constant 1 : index
    %c10_176 = arith.constant 10 : index
    %c0_177 = arith.constant 0 : index
    %c0_178 = arith.constant 0 : index
    %322 = vector.load %arg5[%c1_175, %c10_176, %c0_177, %c0_178] : memref<2x15x1x32xf32, #tpu.memory_space<vmem>>, vector<1x1x1x32xf32>
    %323 = vector.shape_cast %322 : vector<1x1x1x32xf32> to vector<1x32xf32>
    %cst_179 = arith.constant dense<0.000000e+00> : vector<16xf32>
    %324 = vector.multi_reduction <add>, %319, %cst_179 [1] : vector<16x32xf32> to vector<16xf32>
    %325 = vector.shape_cast %324 : vector<16xf32> to vector<16x1xf32>
    %cst_180 = arith.constant 3.200000e+01 : f32
    %326 = vector.broadcast %cst_180 : f32 to vector<16x1xf32>
    %327 = arith.divf %325, %326 : vector<16x1xf32>
    %328 = vector.broadcast %327 : vector<16x1xf32> to vector<16x32xf32>
    %329 = arith.subf %319, %328 : vector<16x32xf32>
    %330 = arith.mulf %329, %329 : vector<16x32xf32>
    %cst_181 = arith.constant dense<0.000000e+00> : vector<16xf32>
    %331 = vector.multi_reduction <add>, %330, %cst_181 [1] : vector<16x32xf32> to vector<16xf32>
    %332 = vector.shape_cast %331 : vector<16xf32> to vector<16x1xf32>
    %cst_182 = arith.constant 3.200000e+01 : f32
    %333 = vector.broadcast %cst_182 : f32 to vector<16x1xf32>
    %334 = arith.divf %332, %333 : vector<16x1xf32>
    %335 = vector.broadcast %327 : vector<16x1xf32> to vector<16x32xf32>
    %336 = arith.subf %319, %335 : vector<16x32xf32>
    %cst_183 = arith.constant 9.99999974E-6 : f32
    %337 = vector.broadcast %cst_183 : f32 to vector<16x1xf32>
    %338 = arith.addf %334, %337 : vector<16x1xf32>
    %339 = math.rsqrt %338 : vector<16x1xf32>
    %340 = vector.broadcast %339 : vector<16x1xf32> to vector<16x32xf32>
    %341 = arith.mulf %336, %340 : vector<16x32xf32>
    %342 = vector.broadcast %321 : vector<1x32xf32> to vector<16x32xf32>
    %343 = arith.mulf %341, %342 : vector<16x32xf32>
    %344 = vector.broadcast %323 : vector<1x32xf32> to vector<16x32xf32>
    %345 = arith.addf %343, %344 : vector<16x32xf32>
    %c1_184 = arith.constant 1 : index
    %c4_185 = arith.constant 4 : index
    %c0_186 = arith.constant 0 : index
    %c0_187 = arith.constant 0 : index
    %346 = vector.load %arg4[%c1_184, %c4_185, %c0_186, %c0_187] : memref<2x8x32x32xbf16, #tpu.memory_space<vmem>>, vector<1x1x32x32xbf16>
    %347 = vector.shape_cast %346 : vector<1x1x32x32xbf16> to vector<32x32xbf16>
    %348 = arith.truncf %345 : vector<16x32xf32> to vector<16x32xbf16>
    %cst_188 = arith.constant dense<0.000000e+00> : vector<16x32xf32>
    %349 = tpu.matmul %348, %347, %cst_188 {dimension_numbers = #tpu.dot_dimension_numbers<[1], [0], [0], [1], [0, 0, 1, 1], [], []>} : vector<16x32xbf16>, vector<32x32xbf16>, vector<16x32xf32> -> vector<16x32xf32>
    %c1_189 = arith.constant 1 : index
    %c4_190 = arith.constant 4 : index
    %c0_191 = arith.constant 0 : index
    %c0_192 = arith.constant 0 : index
    %350 = vector.load %arg5[%c1_189, %c4_190, %c0_191, %c0_192] : memref<2x15x1x32xf32, #tpu.memory_space<vmem>>, vector<1x1x1x32xf32>
    %351 = vector.shape_cast %350 : vector<1x1x1x32xf32> to vector<1x32xf32>
    %352 = vector.broadcast %351 : vector<1x32xf32> to vector<16x32xf32>
    %353 = arith.addf %349, %352 : vector<16x32xf32>
    %c1_193 = arith.constant 1 : index
    %c5_194 = arith.constant 5 : index
    %c0_195 = arith.constant 0 : index
    %c0_196 = arith.constant 0 : index
    %354 = vector.load %arg4[%c1_193, %c5_194, %c0_195, %c0_196] : memref<2x8x32x32xbf16, #tpu.memory_space<vmem>>, vector<1x1x32x32xbf16>
    %355 = vector.shape_cast %354 : vector<1x1x32x32xbf16> to vector<32x32xbf16>
    %356 = arith.truncf %16 : vector<16x32xf32> to vector<16x32xbf16>
    %cst_197 = arith.constant dense<0.000000e+00> : vector<16x32xf32>
    %357 = tpu.matmul %356, %355, %cst_197 {dimension_numbers = #tpu.dot_dimension_numbers<[1], [0], [0], [1], [0, 0, 1, 1], [], []>} : vector<16x32xbf16>, vector<32x32xbf16>, vector<16x32xf32> -> vector<16x32xf32>
    %c1_198 = arith.constant 1 : index
    %c5_199 = arith.constant 5 : index
    %c0_200 = arith.constant 0 : index
    %c0_201 = arith.constant 0 : index
    %358 = vector.load %arg5[%c1_198, %c5_199, %c0_200, %c0_201] : memref<2x15x1x32xf32, #tpu.memory_space<vmem>>, vector<1x1x1x32xf32>
    %359 = vector.shape_cast %358 : vector<1x1x1x32xf32> to vector<1x32xf32>
    %360 = vector.broadcast %359 : vector<1x32xf32> to vector<16x32xf32>
    %361 = arith.addf %357, %360 : vector<16x32xf32>
    %c1_202 = arith.constant 1 : index
    %c6_203 = arith.constant 6 : index
    %c0_204 = arith.constant 0 : index
    %c0_205 = arith.constant 0 : index
    %362 = vector.load %arg4[%c1_202, %c6_203, %c0_204, %c0_205] : memref<2x8x32x32xbf16, #tpu.memory_space<vmem>>, vector<1x1x32x32xbf16>
    %363 = vector.shape_cast %362 : vector<1x1x32x32xbf16> to vector<32x32xbf16>
    %364 = arith.truncf %16 : vector<16x32xf32> to vector<16x32xbf16>
    %cst_206 = arith.constant dense<0.000000e+00> : vector<16x32xf32>
    %365 = tpu.matmul %364, %363, %cst_206 {dimension_numbers = #tpu.dot_dimension_numbers<[1], [0], [0], [1], [0, 0, 1, 1], [], []>} : vector<16x32xbf16>, vector<32x32xbf16>, vector<16x32xf32> -> vector<16x32xf32>
    %c1_207 = arith.constant 1 : index
    %c6_208 = arith.constant 6 : index
    %c0_209 = arith.constant 0 : index
    %c0_210 = arith.constant 0 : index
    %366 = vector.load %arg5[%c1_207, %c6_208, %c0_209, %c0_210] : memref<2x15x1x32xf32, #tpu.memory_space<vmem>>, vector<1x1x1x32xf32>
    %367 = vector.shape_cast %366 : vector<1x1x1x32xf32> to vector<1x32xf32>
    %368 = vector.broadcast %367 : vector<1x32xf32> to vector<16x32xf32>
    %369 = arith.addf %365, %368 : vector<16x32xf32>
    %c1_211 = arith.constant 1 : index
    %c7_212 = arith.constant 7 : index
    %c0_213 = arith.constant 0 : index
    %c0_214 = arith.constant 0 : index
    %370 = vector.load %arg4[%c1_211, %c7_212, %c0_213, %c0_214] : memref<2x8x32x32xbf16, #tpu.memory_space<vmem>>, vector<1x1x32x32xbf16>
    %371 = vector.shape_cast %370 : vector<1x1x32x32xbf16> to vector<32x32xbf16>
    %c1_215 = arith.constant 1 : index
    %c7_216 = arith.constant 7 : index
    %c0_217 = arith.constant 0 : index
    %c0_218 = arith.constant 0 : index
    %372 = vector.load %arg5[%c1_215, %c7_216, %c0_217, %c0_218] : memref<2x15x1x32xf32, #tpu.memory_space<vmem>>, vector<1x1x1x32xf32>
    %373 = vector.shape_cast %372 : vector<1x1x1x32xf32> to vector<1x32xf32>
    %374 = vector.shape_cast %353 : vector<16x32xf32> to vector<2x8x4x8xf32>
    %375 = tpu.transpose %374, [0, 2, 1, 3] : vector<2x8x4x8xf32> -> vector<2x4x8x8xf32>
    %376 = vector.shape_cast %375 : vector<2x4x8x8xf32> to vector<8x8x8xf32>
    %377 = arith.truncf %376 : vector<8x8x8xf32> to vector<8x8x8xbf16>
    %378 = vector.shape_cast %361 : vector<16x32xf32> to vector<2x8x4x8xf32>
    %379 = tpu.transpose %378, [0, 2, 1, 3] : vector<2x8x4x8xf32> -> vector<2x4x8x8xf32>
    %380 = vector.shape_cast %379 : vector<2x4x8x8xf32> to vector<8x8x8xf32>
    %381 = arith.truncf %380 : vector<8x8x8xf32> to vector<8x8x8xbf16>
    %382 = vector.shape_cast %369 : vector<16x32xf32> to vector<2x8x4x8xf32>
    %383 = tpu.transpose %382, [0, 2, 1, 3] : vector<2x8x4x8xf32> -> vector<2x4x8x8xf32>
    %384 = vector.shape_cast %383 : vector<2x4x8x8xf32> to vector<8x8x8xf32>
    %385 = arith.truncf %384 : vector<8x8x8xf32> to vector<8x8x8xbf16>
    "tpu.trace_start"() <{level = 10 : i32, message = "gqd,gkd->gqk"}> : () -> ()
    %cst_219 = arith.constant dense<0.000000e+00> : vector<8x8x8xf32>
    %386 = tpu.matmul %377, %381, %cst_219 {dimension_numbers = #tpu.dot_dimension_numbers<[2], [2], [1], [1], [0, 0, 0, 1, 1, 1], [0], [0]>} : vector<8x8x8xbf16>, vector<8x8x8xbf16>, vector<8x8x8xf32> -> vector<8x8x8xf32>
    "tpu.trace_stop"() : () -> ()
    %387 = vector.shape_cast %386 : vector<8x8x8xf32> to vector<2x4x8x8xf32>
    %388 = vector.shape_cast %14 : vector<2x1x8xf32> to vector<2x1x1x8xf32>
    %389 = vector.broadcast %388 : vector<2x1x1x8xf32> to vector<2x4x8x8xf32>
    %390 = arith.addf %387, %389 : vector<2x4x8x8xf32>
    %cst_220 = arith.constant dense<0xFF800000> : vector<2x4x8xf32>
    %391 = vector.multi_reduction <maximumf>, %390, %cst_220 [3] : vector<2x4x8x8xf32> to vector<2x4x8xf32>
    %392 = vector.shape_cast %391 : vector<2x4x8xf32> to vector<2x4x8x1xf32>
    %393 = vector.broadcast %392 : vector<2x4x8x1xf32> to vector<2x4x8x8xf32>
    %394 = arith.subf %390, %393 : vector<2x4x8x8xf32>
    %395 = math.exp %394 : vector<2x4x8x8xf32>
    %cst_221 = arith.constant dense<0.000000e+00> : vector<2x4x8xf32>
    %396 = vector.multi_reduction <add>, %395, %cst_221 [3] : vector<2x4x8x8xf32> to vector<2x4x8xf32>
    %397 = vector.shape_cast %396 : vector<2x4x8xf32> to vector<2x4x8x1xf32>
    %398 = vector.broadcast %397 : vector<2x4x8x1xf32> to vector<2x4x8x8xf32>
    %399 = arith.divf %395, %398 : vector<2x4x8x8xf32>
    %400 = vector.shape_cast %399 : vector<2x4x8x8xf32> to vector<8x8x8xf32>
    %401 = arith.truncf %400 : vector<8x8x8xf32> to vector<8x8x8xbf16>
    "tpu.trace_start"() <{level = 10 : i32, message = "gqk,gkd->gqd"}> : () -> ()
    %cst_222 = arith.constant dense<0.000000e+00> : vector<8x8x8xf32>
    %402 = tpu.matmul %401, %385, %cst_222 {dimension_numbers = #tpu.dot_dimension_numbers<[2], [1], [1], [2], [0, 0, 0, 1, 1, 2], [0], [0]>} : vector<8x8x8xbf16>, vector<8x8x8xbf16>, vector<8x8x8xf32> -> vector<8x8x8xf32>
    "tpu.trace_stop"() : () -> ()
    %403 = vector.shape_cast %402 : vector<8x8x8xf32> to vector<2x4x8x8xf32>
    %404 = tpu.transpose %403, [0, 2, 1, 3] : vector<2x4x8x8xf32> -> vector<2x8x4x8xf32>
    %405 = vector.shape_cast %404 : vector<2x8x4x8xf32> to vector<16x32xf32>
    %406 = arith.truncf %405 : vector<16x32xf32> to vector<16x32xbf16>
    %cst_223 = arith.constant dense<0.000000e+00> : vector<16x32xf32>
    %407 = tpu.matmul %406, %371, %cst_223 {dimension_numbers = #tpu.dot_dimension_numbers<[1], [0], [0], [1], [0, 0, 1, 1], [], []>} : vector<16x32xbf16>, vector<32x32xbf16>, vector<16x32xf32> -> vector<16x32xf32>
    %408 = vector.broadcast %373 : vector<1x32xf32> to vector<16x32xf32>
    %409 = arith.addf %407, %408 : vector<16x32xf32>
    %410 = arith.addf %345, %409 : vector<16x32xf32>
    %c1_224 = arith.constant 1 : index
    %c11_225 = arith.constant 11 : index
    %c0_226 = arith.constant 0 : index
    %c0_227 = arith.constant 0 : index
    %411 = vector.load %arg5[%c1_224, %c11_225, %c0_226, %c0_227] : memref<2x15x1x32xf32, #tpu.memory_space<vmem>>, vector<1x1x1x32xf32>
    %412 = vector.shape_cast %411 : vector<1x1x1x32xf32> to vector<1x32xf32>
    %c1_228 = arith.constant 1 : index
    %c12_229 = arith.constant 12 : index
    %c0_230 = arith.constant 0 : index
    %c0_231 = arith.constant 0 : index
    %413 = vector.load %arg5[%c1_228, %c12_229, %c0_230, %c0_231] : memref<2x15x1x32xf32, #tpu.memory_space<vmem>>, vector<1x1x1x32xf32>
    %414 = vector.shape_cast %413 : vector<1x1x1x32xf32> to vector<1x32xf32>
    %cst_232 = arith.constant dense<0.000000e+00> : vector<16xf32>
    %415 = vector.multi_reduction <add>, %410, %cst_232 [1] : vector<16x32xf32> to vector<16xf32>
    %416 = vector.shape_cast %415 : vector<16xf32> to vector<16x1xf32>
    %cst_233 = arith.constant 3.200000e+01 : f32
    %417 = vector.broadcast %cst_233 : f32 to vector<16x1xf32>
    %418 = arith.divf %416, %417 : vector<16x1xf32>
    %419 = vector.broadcast %418 : vector<16x1xf32> to vector<16x32xf32>
    %420 = arith.subf %410, %419 : vector<16x32xf32>
    %421 = arith.mulf %420, %420 : vector<16x32xf32>
    %cst_234 = arith.constant dense<0.000000e+00> : vector<16xf32>
    %422 = vector.multi_reduction <add>, %421, %cst_234 [1] : vector<16x32xf32> to vector<16xf32>
    %423 = vector.shape_cast %422 : vector<16xf32> to vector<16x1xf32>
    %cst_235 = arith.constant 3.200000e+01 : f32
    %424 = vector.broadcast %cst_235 : f32 to vector<16x1xf32>
    %425 = arith.divf %423, %424 : vector<16x1xf32>
    %426 = vector.broadcast %418 : vector<16x1xf32> to vector<16x32xf32>
    %427 = arith.subf %410, %426 : vector<16x32xf32>
    %cst_236 = arith.constant 9.99999974E-6 : f32
    %428 = vector.broadcast %cst_236 : f32 to vector<16x1xf32>
    %429 = arith.addf %425, %428 : vector<16x1xf32>
    %430 = math.rsqrt %429 : vector<16x1xf32>
    %431 = vector.broadcast %430 : vector<16x1xf32> to vector<16x32xf32>
    %432 = arith.mulf %427, %431 : vector<16x32xf32>
    %433 = vector.broadcast %412 : vector<1x32xf32> to vector<16x32xf32>
    %434 = arith.mulf %432, %433 : vector<16x32xf32>
    %435 = vector.broadcast %414 : vector<1x32xf32> to vector<16x32xf32>
    %436 = arith.addf %434, %435 : vector<16x32xf32>
    %c1_237 = arith.constant 1 : index
    %c0_238 = arith.constant 0 : index
    %c0_239 = arith.constant 0 : index
    %437 = vector.load %arg6[%c1_237, %c0_238, %c0_239] : memref<2x32x2048xbf16, #tpu.memory_space<vmem>>, vector<1x32x2048xbf16>
    %438 = vector.shape_cast %437 : vector<1x32x2048xbf16> to vector<32x2048xbf16>
    %439 = arith.truncf %436 : vector<16x32xf32> to vector<16x32xbf16>
    %cst_240 = arith.constant dense<0.000000e+00> : vector<16x2048xf32>
    %440 = tpu.matmul %439, %438, %cst_240 {dimension_numbers = #tpu.dot_dimension_numbers<[1], [0], [0], [1], [0, 0, 1, 1], [], []>} : vector<16x32xbf16>, vector<32x2048xbf16>, vector<16x2048xf32> -> vector<16x2048xf32>
    %c1_241 = arith.constant 1 : index
    %c0_242 = arith.constant 0 : index
    %c0_243 = arith.constant 0 : index
    %441 = vector.load %arg7[%c1_241, %c0_242, %c0_243] : memref<2x1x2048xf32, #tpu.memory_space<vmem>>, vector<1x1x2048xf32>
    %442 = vector.shape_cast %441 : vector<1x1x2048xf32> to vector<1x2048xf32>
    %443 = vector.broadcast %442 : vector<1x2048xf32> to vector<16x2048xf32>
    %444 = arith.addf %440, %443 : vector<16x2048xf32>
    %cst_244 = arith.constant 5.000000e-01 : f32
    %445 = vector.broadcast %cst_244 : f32 to vector<16x2048xf32>
    %446 = arith.mulf %445, %444 : vector<16x2048xf32>
    %cst_245 = arith.constant 4.471500e-02 : f32
    %447 = vector.broadcast %cst_245 : f32 to vector<16x2048xf32>
    %448 = arith.mulf %447, %444 : vector<16x2048xf32>
    %449 = arith.mulf %448, %444 : vector<16x2048xf32>
    %450 = arith.mulf %449, %444 : vector<16x2048xf32>
    %451 = arith.addf %444, %450 : vector<16x2048xf32>
    %cst_246 = arith.constant 0.797884583 : f32
    %452 = vector.broadcast %cst_246 : f32 to vector<16x2048xf32>
    %453 = arith.mulf %452, %451 : vector<16x2048xf32>
    %454 = math.tanh %453 : vector<16x2048xf32>
    %cst_247 = arith.constant 1.000000e+00 : f32
    %455 = vector.broadcast %cst_247 : f32 to vector<16x2048xf32>
    %456 = arith.addf %455, %454 : vector<16x2048xf32>
    %457 = arith.mulf %446, %456 : vector<16x2048xf32>
    %c1_248 = arith.constant 1 : index
    %c0_249 = arith.constant 0 : index
    %c0_250 = arith.constant 0 : index
    %458 = vector.load %arg8[%c1_248, %c0_249, %c0_250] : memref<2x2048x32xbf16, #tpu.memory_space<vmem>>, vector<1x2048x32xbf16>
    %459 = vector.shape_cast %458 : vector<1x2048x32xbf16> to vector<2048x32xbf16>
    %460 = arith.truncf %457 : vector<16x2048xf32> to vector<16x2048xbf16>
    %cst_251 = arith.constant dense<0.000000e+00> : vector<16x32xf32>
    %461 = tpu.matmul %460, %459, %cst_251 {dimension_numbers = #tpu.dot_dimension_numbers<[1], [0], [0], [1], [0, 0, 1, 1], [], []>} : vector<16x2048xbf16>, vector<2048x32xbf16>, vector<16x32xf32> -> vector<16x32xf32>
    %c1_252 = arith.constant 1 : index
    %c8_253 = arith.constant 8 : index
    %c0_254 = arith.constant 0 : index
    %c0_255 = arith.constant 0 : index
    %462 = vector.load %arg5[%c1_252, %c8_253, %c0_254, %c0_255] : memref<2x15x1x32xf32, #tpu.memory_space<vmem>>, vector<1x1x1x32xf32>
    %463 = vector.shape_cast %462 : vector<1x1x1x32xf32> to vector<1x32xf32>
    %464 = vector.broadcast %463 : vector<1x32xf32> to vector<16x32xf32>
    %465 = arith.addf %461, %464 : vector<16x32xf32>
    %466 = arith.addf %436, %465 : vector<16x32xf32>
    %c1_256 = arith.constant 1 : index
    %c13_257 = arith.constant 13 : index
    %c0_258 = arith.constant 0 : index
    %c0_259 = arith.constant 0 : index
    %467 = vector.load %arg5[%c1_256, %c13_257, %c0_258, %c0_259] : memref<2x15x1x32xf32, #tpu.memory_space<vmem>>, vector<1x1x1x32xf32>
    %468 = vector.shape_cast %467 : vector<1x1x1x32xf32> to vector<1x32xf32>
    %c1_260 = arith.constant 1 : index
    %c14_261 = arith.constant 14 : index
    %c0_262 = arith.constant 0 : index
    %c0_263 = arith.constant 0 : index
    %469 = vector.load %arg5[%c1_260, %c14_261, %c0_262, %c0_263] : memref<2x15x1x32xf32, #tpu.memory_space<vmem>>, vector<1x1x1x32xf32>
    %470 = vector.shape_cast %469 : vector<1x1x1x32xf32> to vector<1x32xf32>
    %cst_264 = arith.constant dense<0.000000e+00> : vector<16xf32>
    %471 = vector.multi_reduction <add>, %466, %cst_264 [1] : vector<16x32xf32> to vector<16xf32>
    %472 = vector.shape_cast %471 : vector<16xf32> to vector<16x1xf32>
    %cst_265 = arith.constant 3.200000e+01 : f32
    %473 = vector.broadcast %cst_265 : f32 to vector<16x1xf32>
    %474 = arith.divf %472, %473 : vector<16x1xf32>
    %475 = vector.broadcast %474 : vector<16x1xf32> to vector<16x32xf32>
    %476 = arith.subf %466, %475 : vector<16x32xf32>
    %477 = arith.mulf %476, %476 : vector<16x32xf32>
    %cst_266 = arith.constant dense<0.000000e+00> : vector<16xf32>
    %478 = vector.multi_reduction <add>, %477, %cst_266 [1] : vector<16x32xf32> to vector<16xf32>
    %479 = vector.shape_cast %478 : vector<16xf32> to vector<16x1xf32>
    %cst_267 = arith.constant 3.200000e+01 : f32
    %480 = vector.broadcast %cst_267 : f32 to vector<16x1xf32>
    %481 = arith.divf %479, %480 : vector<16x1xf32>
    %482 = vector.broadcast %474 : vector<16x1xf32> to vector<16x32xf32>
    %483 = arith.subf %466, %482 : vector<16x32xf32>
    %cst_268 = arith.constant 9.99999974E-6 : f32
    %484 = vector.broadcast %cst_268 : f32 to vector<16x1xf32>
    %485 = arith.addf %481, %484 : vector<16x1xf32>
    %486 = math.rsqrt %485 : vector<16x1xf32>
    %487 = vector.broadcast %486 : vector<16x1xf32> to vector<16x32xf32>
    %488 = arith.mulf %483, %487 : vector<16x32xf32>
    %489 = vector.broadcast %468 : vector<1x32xf32> to vector<16x32xf32>
    %490 = arith.mulf %488, %489 : vector<16x32xf32>
    %491 = vector.broadcast %470 : vector<1x32xf32> to vector<16x32xf32>
    %492 = arith.addf %490, %491 : vector<16x32xf32>
    %c0_269 = arith.constant 0 : index
    %c0_270 = arith.constant 0 : index
    %c0_271 = arith.constant 0 : index
    %493 = vector.load %arg9[%c0_269, %c0_270, %c0_271] : memref<4x1x32xf32, #tpu.memory_space<vmem>>, vector<1x1x32xf32>
    %494 = vector.shape_cast %493 : vector<1x1x32xf32> to vector<1x32xf32>
    %c1_272 = arith.constant 1 : index
    %c0_273 = arith.constant 0 : index
    %c0_274 = arith.constant 0 : index
    %495 = vector.load %arg9[%c1_272, %c0_273, %c0_274] : memref<4x1x32xf32, #tpu.memory_space<vmem>>, vector<1x1x32xf32>
    %496 = vector.shape_cast %495 : vector<1x1x32xf32> to vector<1x32xf32>
    %cst_275 = arith.constant dense<0.000000e+00> : vector<16xf32>
    %497 = vector.multi_reduction <add>, %492, %cst_275 [1] : vector<16x32xf32> to vector<16xf32>
    %498 = vector.shape_cast %497 : vector<16xf32> to vector<16x1xf32>
    %cst_276 = arith.constant 3.200000e+01 : f32
    %499 = vector.broadcast %cst_276 : f32 to vector<16x1xf32>
    %500 = arith.divf %498, %499 : vector<16x1xf32>
    %501 = vector.broadcast %500 : vector<16x1xf32> to vector<16x32xf32>
    %502 = arith.subf %492, %501 : vector<16x32xf32>
    %503 = arith.mulf %502, %502 : vector<16x32xf32>
    %cst_277 = arith.constant dense<0.000000e+00> : vector<16xf32>
    %504 = vector.multi_reduction <add>, %503, %cst_277 [1] : vector<16x32xf32> to vector<16xf32>
    %505 = vector.shape_cast %504 : vector<16xf32> to vector<16x1xf32>
    %cst_278 = arith.constant 3.200000e+01 : f32
    %506 = vector.broadcast %cst_278 : f32 to vector<16x1xf32>
    %507 = arith.divf %505, %506 : vector<16x1xf32>
    %508 = vector.broadcast %500 : vector<16x1xf32> to vector<16x32xf32>
    %509 = arith.subf %492, %508 : vector<16x32xf32>
    %cst_279 = arith.constant 9.99999974E-6 : f32
    %510 = vector.broadcast %cst_279 : f32 to vector<16x1xf32>
    %511 = arith.addf %507, %510 : vector<16x1xf32>
    %512 = math.rsqrt %511 : vector<16x1xf32>
    %513 = vector.broadcast %512 : vector<16x1xf32> to vector<16x32xf32>
    %514 = arith.mulf %509, %513 : vector<16x32xf32>
    %515 = vector.broadcast %494 : vector<1x32xf32> to vector<16x32xf32>
    %516 = arith.mulf %514, %515 : vector<16x32xf32>
    %517 = vector.broadcast %496 : vector<1x32xf32> to vector<16x32xf32>
    %518 = arith.addf %516, %517 : vector<16x32xf32>
    %c2_280 = arith.constant 2 : index
    %c0_281 = arith.constant 0 : index
    %c0_282 = arith.constant 0 : index
    %519 = vector.load %arg9[%c2_280, %c0_281, %c0_282] : memref<4x1x32xf32, #tpu.memory_space<vmem>>, vector<1x1x32xf32>
    %520 = vector.shape_cast %519 : vector<1x1x32xf32> to vector<1x32xf32>
    %c3_283 = arith.constant 3 : index
    %c0_284 = arith.constant 0 : index
    %c0_285 = arith.constant 0 : index
    %521 = vector.load %arg9[%c3_283, %c0_284, %c0_285] : memref<4x1x32xf32, #tpu.memory_space<vmem>>, vector<1x1x32xf32>
    %522 = vector.shape_cast %521 : vector<1x1x32xf32> to vector<1x32xf32>
    %cst_286 = arith.constant dense<0.000000e+00> : vector<16xf32>
    %523 = vector.multi_reduction <add>, %518, %cst_286 [1] : vector<16x32xf32> to vector<16xf32>
    %524 = vector.shape_cast %523 : vector<16xf32> to vector<16x1xf32>
    %cst_287 = arith.constant 3.200000e+01 : f32
    %525 = vector.broadcast %cst_287 : f32 to vector<16x1xf32>
    %526 = arith.divf %524, %525 : vector<16x1xf32>
    %527 = vector.broadcast %526 : vector<16x1xf32> to vector<16x32xf32>
    %528 = arith.subf %518, %527 : vector<16x32xf32>
    %529 = arith.mulf %528, %528 : vector<16x32xf32>
    %cst_288 = arith.constant dense<0.000000e+00> : vector<16xf32>
    %530 = vector.multi_reduction <add>, %529, %cst_288 [1] : vector<16x32xf32> to vector<16xf32>
    %531 = vector.shape_cast %530 : vector<16xf32> to vector<16x1xf32>
    %cst_289 = arith.constant 3.200000e+01 : f32
    %532 = vector.broadcast %cst_289 : f32 to vector<16x1xf32>
    %533 = arith.divf %531, %532 : vector<16x1xf32>
    %534 = vector.broadcast %526 : vector<16x1xf32> to vector<16x32xf32>
    %535 = arith.subf %518, %534 : vector<16x32xf32>
    %cst_290 = arith.constant 9.99999974E-6 : f32
    %536 = vector.broadcast %cst_290 : f32 to vector<16x1xf32>
    %537 = arith.addf %533, %536 : vector<16x1xf32>
    %538 = math.rsqrt %537 : vector<16x1xf32>
    %539 = vector.broadcast %538 : vector<16x1xf32> to vector<16x32xf32>
    %540 = arith.mulf %535, %539 : vector<16x32xf32>
    %541 = vector.broadcast %520 : vector<1x32xf32> to vector<16x32xf32>
    %542 = arith.mulf %540, %541 : vector<16x32xf32>
    %543 = vector.broadcast %522 : vector<1x32xf32> to vector<16x32xf32>
    %544 = arith.addf %542, %543 : vector<16x32xf32>
    %c0_291 = arith.constant 0 : index
    %c0_292 = arith.constant 0 : index
    %545 = vector.load %arg10[%c0_291, %c0_292] : memref<32x32xbf16, #tpu.memory_space<vmem>>, vector<32x32xbf16>
    %546 = arith.truncf %544 : vector<16x32xf32> to vector<16x32xbf16>
    %cst_293 = arith.constant dense<0.000000e+00> : vector<16x32xf32>
    %547 = tpu.matmul %546, %545, %cst_293 {dimension_numbers = #tpu.dot_dimension_numbers<[1], [0], [0], [1], [0, 0, 1, 1], [], []>} : vector<16x32xbf16>, vector<32x32xbf16>, vector<16x32xf32> -> vector<16x32xf32>
    %c0_294 = arith.constant 0 : index
    %c0_295 = arith.constant 0 : index
    %548 = vector.load %arg11[%c0_294, %c0_295] : memref<1x32xf32, #tpu.memory_space<vmem>>, vector<1x32xf32>
    %549 = vector.broadcast %548 : vector<1x32xf32> to vector<16x32xf32>
    %550 = arith.addf %547, %549 : vector<16x32xf32>
    %cst_296 = arith.constant 0.000000e+00 : f32
    %551 = vector.broadcast %cst_296 : f32 to vector<16x32xf32>
    %552 = arith.maximumf %550, %551 : vector<16x32xf32>
    %c0_297 = arith.constant 0 : index
    %c0_298 = arith.constant 0 : index
    %553 = vector.load %arg12[%c0_297, %c0_298] : memref<32x128xbf16, #tpu.memory_space<vmem>>, vector<32x128xbf16>
    %554 = arith.truncf %552 : vector<16x32xf32> to vector<16x32xbf16>
    %cst_299 = arith.constant dense<0.000000e+00> : vector<16x128xf32>
    %555 = tpu.matmul %554, %553, %cst_299 {dimension_numbers = #tpu.dot_dimension_numbers<[1], [0], [0], [1], [0, 0, 1, 1], [], []>} : vector<16x32xbf16>, vector<32x128xbf16>, vector<16x128xf32> -> vector<16x128xf32>
    %c0_300 = arith.constant 0 : index
    %c0_301 = arith.constant 0 : index
    %556 = vector.load %arg13[%c0_300, %c0_301] : memref<1x128xf32, #tpu.memory_space<vmem>>, vector<1x128xf32>
    %557 = vector.broadcast %556 : vector<1x128xf32> to vector<16x128xf32>
    %558 = arith.addf %555, %557 : vector<16x128xf32>
    %c0_302 = arith.constant 0 : index
    %c0_303 = arith.constant 0 : index
    %559 = vector.load %arg14[%c0_302, %c0_303] : memref<16x128xf32, #tpu.memory_space<vmem>>, vector<16x128xf32>
    tpu.vector_store %arg14[%c0_302, %c0_303], %558 {strides = array<i32>} : memref<16x128xf32, #tpu.memory_space<vmem>>, vector<16x128xf32>,
    return
  }
}

</mosaic_0001>

<bundles_post_ra>
// kernel: spell_corrector_forward.1
= control target key start
LH: loop header
LB: loop body
LE: loop exit
PB: predicated region body
PF: predicated region fallthrough
CT: control target
= control target key end

     0   :  { %vm91_vm0 = vcmask 261120   ;;  %s14066_s29 = smov 104   ;;  %s14067_s30 = smov 120   ;;  %v14069_v22 = vmov 1983009808   ;;  %vm209_vm1 = vcmask 1047556   ;;  %s18609_s4 = inlined_call_operand.vmem [shape: bf16[2,8,32,32], index: 4, kind: input, shape index: {}]   ;;  %s18610_s0 = inlined_call_operand.vmem [shape: f32[16,32], index: 0, kind: input, shape index: {}]   ;;  %s18611_s5 = inlined_call_operand.vmem [shape: f32[2,15,1,32], index: 5, kind: input, shape index: {}]   ;;  %s18612_s2 = inlined_call_operand.vmem [shape: f32[2,8], index: 2, kind: input, shape index: {}]   ;;  %s18613_s1 = inlined_call_operand.vmem [shape: f32[16,32], index: 1, kind: input, shape index: {}]   ;;  %s18614_s3 = inlined_call_operand.vmem [shape: f32[2,8], index: 3, kind: input, shape index: {}]   ;;  %s18615_s6 = inlined_call_operand.vmem [shape: bf16[2,32,2048], index: 6, kind: input, shape index: {}]   ;;  %s18616_s8 = inlined_call_operand.vmem [shape: bf16[2,2048,32], index: 8, kind: input, shape index: {}]   ;;  %s18617_s7 = inlined_call_operand.vmem [shape: f32[2,1,2048], index: 7, kind: input, shape index: {}]   ;;  %s18618_s9 = inlined_call_operand.vmem [shape: f32[4,1,32], index: 9, kind: input, shape index: {}]   ;;  %s18619_s11 = inlined_call_operand.vmem [shape: f32[1,32], index: 11, kind: input, shape index: {}]   ;;  %s18620_s10 = inlined_call_operand.vmem [shape: bf16[32,32], index: 10, kind: input, shape index: {}]   ;;  %s18621_s12 = inlined_call_operand.vmem [shape: bf16[32,128], index: 12, kind: input, shape index: {}]   ;;  %s18622_s13 = inlined_call_operand.vmem [shape: f32[1,128], index: 13, kind: input, shape index: {}]   ;;  %s18623_s14 = inlined_call_operand.vmem [shape: f32[16,128], index: 14, kind: output, shape index: {}]  }
   0x1   :  { %v13233_v0 = vld [vmem:[%s18609_s4 + $0x8] sm:$0xff]  ;;  %v13235_v1 = vld [vmem:[%s18609_s4 + $0x18] sm:$0xff]  ;;  %v13232_v2 = vld [vmem:[%s18609_s4] sm:$0xff]  ;;  %s14068_s15 = smov 112   ;;  %v214_v23 = vunpack.c.l.s4 %v14069_v22  ;;  %v14070_v31 = vmov 1934713408  }
   0x2   :  { %v13234_v3 = vld [vmem:[%s18609_s4 + $0x10] sm:$0xff]  ;;  %v66_v4 = vld [vmem:[%s18610_s0] sm:$0xff]  ;;  %101 = vmatpush.bf16.msra.mxu0 %v13233_v0  ;;  %137 = vmatpush.bf16.msra.mxu1 %v13235_v1  ;;  %v67_v5 = vld [vmem:[%s18610_s0 + $0x8] sm:$0xff]  ;;  %v238_v32 = vunpack.c.l.s4 %v14070_v31  ;;  %vm933_vm2 = vcmask 64512   ;;  %vm1297_vm4 = vcmask 1043456   ;;  %s14072_s23 = smov 24  }
   0x3   :  { %v74_v6 = vpack.c.bf16 %v67_v5, %v66_v4  ;;  %v13738_v7 = vld [vmem:[%s18611_s5] ss:$0 sm:$0xff]  ;;  %v13739_v8 = vld [vmem:[%s18611_s5 + $0x1] ss:$0 sm:$0xff]  ;;  %v13237_v19 = vld [vmem:[%s18609_s4 + $0x28] sm:$0xff]  ;;  %v14217_v27 = vunpack.c.0.s8 %v214_v23  ;;  %s14073_s24 = smov 16  }
   0x4   :  { %173 = vmatpush.bf16.msra.mxu2 %v13237_v19  ;;  %v13236_v20 = vld [vmem:[%s18609_s4 + $0x20] sm:$0xff]  ;;  %v14229_v44 = vunpack.c.0.s8 %v238_v32  ;;  %s14074_s25 = smov 8  }
   0x6   :  { %102 = vmatpush.bf16.msra.mxu0 %v13232_v2  ;;  %138 = vmatpush.bf16.msra.mxu1 %v13234_v3 }
   0x8   :  { %174 = vmatpush.bf16.msra.mxu2 %v13236_v20 }
   0x9   :  { %11320 = vmatmul.msk.bf16.vlgmr.msra.gmra.mxu0 %vm91_vm0, %v74_v6  ;;  %11334 = vmatmul.msk.bf16.vlgmr.msra.gmra.mxu1 %vm91_vm0, %v74_v6 }
   0xb   :  { %11348 = vmatmul.msk.bf16.vlgmr.msra.gmra.mxu2 %vm91_vm0, %v74_v6 }
  0x86   :  { %v104_v9 = vpop.f32.mrf.mxu0  ;;  %v140_v10 = vpop.f32.mrf.mxu1 }
  0x87   :  { %v14177_v11 = vadd.f32 %v13738_v7, %v104_v9  ;;  %v14179_v12 = vadd.f32 %v13739_v8, %v140_v10 }
  0x89   :  { %451 = vrot.lane.b32.xlu1 %v14179_v12, %s14066_s29  ;;  %202 = vrot.lane.b32.xlu2 %v14177_v11, %s14066_s29  ;;  %v13598_v13 = vpack.i.bf16 %v14177_v11, %v14179_v12  ;;  %v211_v37 = vrot.slane %v14177_v11, 4  ;;  %v459_v42 = vrot.slane %v14179_v12, 4 }
  0x8b   :  { %13599 = vrot.lane.b32.xlu0 %v13598_v13, %s14067_s30 }
  0x8e   :  { %v142_v14 = vpop.f32.mrf.mxu1  ;;  %v106_v16 = vpop.f32.mrf.mxu0 }
  0x8f   :  { %v14188_v15 = vadd.f32 %v13739_v8, %v142_v14  ;;  %v14196_v17 = vadd.f32 %v13738_v7, %v106_v16 }
  0x91   :  { %441 = vrot.lane.b32.xlu2 %v14188_v15, %s14067_s30  ;;  %196 = vrot.lane.b32.xlu1 %v14177_v11, %s14068_s15  ;;  %v515_v46 = vrot.slane %v14188_v15, 4  ;;  %v267_v47 = vrot.slane %v14196_v17, 4 }
  0x93   :  { %445 = vrot.lane.b32.xlu0 %v14179_v12, %s14068_s15 }
  0x99   :  { %192 = vrot.lane.b32.xlu2 %v14196_v17, %s14067_s30  ;;  %453 = vrot.lane.b32.xlu1 %v14188_v15, %s14066_s29 }
  0x9b   :  { %447 = vrot.lane.b32.xlu0 %v14188_v15, %s14068_s15 }
  0xa1   :  { %204 = vrot.lane.b32.xlu1 %v14196_v17, %s14066_s29 }
  0xa3   :  { %198 = vrot.lane.b32.xlu0 %v14196_v17, %s14068_s15 }
  0xe3   :  { %v203_v18 = vpop.permute.xlu2 %202 }
  0xe4   :  { %v221_v26 = vrot.slane %v203_v18, 4 }
  0xeb   :  { %v14214_v21 = vpop.permute.xlu2 %441 }
  0xec   :  { %v527_v52 = vrot.slane %v14214_v21, 4 }
  0xf3   :  { %v14222_v38 = vpop.permute.xlu2 %192 }
  0xf4   :  { %v279_v53 = vrot.slane %v14222_v38, 4 }
  0xfb   :  { %v452_v24 = vpop.permute.xlu1 %451 }
  0xfc   :  { %v469_v30 = vrot.slane %v452_v24, 4 }
  0xfd   :  { %v13600_v25 = vpop.permute.xlu0 %13599 }
  0xfe   :  { %v13602_v28 = vunpack.i.h.bf16 %v13600_v25  ;;  %v13601_v29 = vunpack.i.l.bf16 %v13600_v25 }
 0x100   :  { %v222_v33 = vsel %vm209_vm1, %v221_v26, %v13602_v28  ;;  %v223_v34 = vrot.slane %v13602_v28, 4  ;;  %v471_v35 = vrot.slane %v13601_v29, 4  ;;  %v470_v36 = vsel %vm209_vm1, %v469_v30, %v13601_v29 }
 0x101   :  { %v228_v40 = vperm.slane %v222_v33, %v14217_v27  ;;  %v476_v48 = vperm.slane %v470_v36, %v14217_v27 }
 0x102   :  { %v224_v39 = vsel %vm209_vm1, %v203_v18, %v223_v34  ;;  %v472_v41 = vsel %vm209_vm1, %v452_v24, %v471_v35 }
 0x103   :  { %v232_v43 = vperm.slane %v224_v39, %v14217_v27  ;;  %v197_v45 = vpop.permute.xlu1 %196  ;;  %v480_v49 = vperm.slane %v472_v41, %v14217_v27  ;;  %v233_v57 = vrot.slane %v228_v40, 4  ;;  %v481_v1 = vrot.slane %v476_v48, 4 }
 0x104   :  { %v208_v50 = vrot.slane %v197_v45, 4  ;;  %v212_v51 = vsel %vm209_vm1, %v197_v45, %v211_v37 }
 0x105   :  { %v245_v54 = vrot.slane %v232_v43, 4  ;;  %v220_v55 = vperm.slane %v212_v51, %v14217_v27  ;;  %v446_v56 = vpop.permute.xlu0 %445  ;;  %v493_v2 = vrot.slane %v480_v49, 4 }
 0x106   :  { %v210_v58 = vsel %vm209_vm1, %v208_v50, %v14177_v11  ;;  %v457_v59 = vrot.slane %v446_v56, 4  ;;  %v460_v60 = vsel %vm209_vm1, %v446_v56, %v459_v42 }
 0x107   :  { %v216_v61 = vperm.slane %v210_v58, %v14217_v27  ;;  %v246_v62 = vsel %vm209_vm1, %v245_v54, %v220_v55  ;;  %v247_v63 = vrot.slane %v220_v55, 4  ;;  %v468_v0 = vperm.slane %v460_v60, %v14217_v27 }
 0x108   :  { %v252_v3 = vperm.slane %v246_v62, %v14229_v44  ;;  %v458_v4 = vsel %vm209_vm1, %v457_v59, %v14179_v12 }
 0x109   :  { %v234_v5 = vsel %vm209_vm1, %v233_v57, %v216_v61  ;;  %v235_v6 = vrot.slane %v216_v61, 4  ;;  %v248_v7 = vsel %vm209_vm1, %v232_v43, %v247_v63  ;;  %v464_v8 = vperm.slane %v458_v4, %v14217_v27 }
 0x10a   :  { %v240_v9 = vperm.slane %v234_v5, %v14229_v44  ;;  %v256_v10 = vperm.slane %v248_v7, %v14229_v44  ;;  %v261_v11 = vrot.slane %v252_v3, 4  ;;  %v494_v13 = vsel %vm209_vm1, %v493_v2, %v468_v0 }
 0x10b   :  { %v236_v14 = vsel %vm209_vm1, %v228_v40, %v235_v6  ;;  %v482_v16 = vsel %vm209_vm1, %v481_v1, %v464_v8  ;;  %v483_v18 = vrot.slane %v464_v8, 4  ;;  %v495_v12 = vrot.slane %v468_v0, 4  ;;  %v454_v19 = vpop.permute.xlu1 %453 }
 0x10c   :  { %v244_v20 = vperm.slane %v236_v14, %v14229_v44  ;;  %v257_v22 = vrot.slane %v240_v9, 4  ;;  %v262_v23 = vsel %vm209_vm1, 0.0, %v261_v11  ;;  %v263_v24 = vrot.slane %v256_v10, 4 }
 0x10d   :  { %v484_v25 = vsel %vm209_vm1, %v476_v48, %v483_v18  ;;  %v14260_v26 = vperm.slane %v482_v16, %v14229_v44  ;;  %v496_v28 = vsel %vm209_vm1, %v480_v49, %v495_v12  ;;  %v500_v29 = vperm.slane %v494_v13, %v14229_v44  ;;  %v448_v30 = vpop.permute.xlu0 %447 }
 0x10e   :  { %v14265_v31 = vsel %vm209_vm1, 0.0, %v257_v22  ;;  %v259_v32 = vrot.slane %v244_v20, 4  ;;  %v264_v33 = vsel %vm209_vm1, 0.0, %v263_v24  ;;  %v332_v34 = vsel %vm209_vm1, %v263_v24, %v252_v3 }
 0x10f   :  { %v14270_v35 = vperm.slane %v332_v34, %v14217_v27  ;;  %v337_v36 = vrot.slane %v264_v33, 4  ;;  %v492_v37 = vperm.slane %v484_v25, %v14229_v44  ;;  %v504_v39 = vperm.slane %v496_v28, %v14229_v44 }
 0x110   :  { %v14275_v40 = vsel %vm209_vm1, 0.0, %v259_v32  ;;  %v14278_v41 = vsel %vm209_vm1, %v259_v32, %v240_v9  ;;  %v505_v42 = vrot.slane %v14260_v26, 4  ;;  %v509_v43 = vrot.slane %v500_v29, 4 }
 0x111   :  { %v326_v45 = vrot.slane %v14275_v40, 4  ;;  %v338_v48 = vsel %vm209_vm1, %v337_v36, %v262_v23  ;;  %v357_v49 = vrot.slane %v14270_v35, 4  ;;  %v14284_v50 = vrot.slane %v492_v37, 4 }
 0x112   :  { %v14287_v51 = vperm.slane %v338_v48, %v14217_v27  ;;  %v14290_v54 = vsel %vm209_vm1, 0.0, %v509_v43  ;;  %v511_v55 = vrot.slane %v504_v39, 4  ;;  %v525_v56 = vrot.slane %v454_v19, 4 }
 0x113   :  { %v528_v57 = vsel %vm209_vm1, %v454_v19, %v527_v52  ;;  %v513_v58 = vrot.slane %v448_v30, 4  ;;  %v516_v59 = vsel %vm209_vm1, %v448_v30, %v515_v46  ;;  %v205_v60 = vpop.permute.xlu1 %204  ;;  %v14297_v61 = vsel %vm209_vm1, 0.0, %v505_v42 }
 0x114   :  { %v14300_v62 = vsel %vm209_vm1, 0.0, %v511_v55  ;;  %v580_v63 = vsel %vm209_vm1, %v511_v55, %v500_v29  ;;  %v526_v0 = vsel %vm209_vm1, %v525_v56, %v14214_v21  ;;  %v536_v1 = vperm.slane %v528_v57, %v14217_v27 }
 0x115   :  { %v14307_v52 = vperm.slane %v580_v63, %v14217_v27  ;;  %v585_v2 = vrot.slane %v14300_v62, 4  ;;  %v532_v46 = vperm.slane %v526_v0, %v14217_v27  ;;  %v514_v3 = vsel %vm209_vm1, %v513_v58, %v14188_v15  ;;  %v199_v4 = vpop.permute.xlu0 %198 }
 0x116   :  { %v549_v5 = vrot.slane %v536_v1, 4  ;;  %v520_v6 = vperm.slane %v514_v3, %v14217_v27  ;;  %v524_v7 = vperm.slane %v516_v59, %v14217_v27  ;;  %v277_v8 = vrot.slane %v205_v60, 4 }
 0x117   :  { %v537_v21 = vrot.slane %v532_v46, 4  ;;  %v280_v9 = vsel %vm209_vm1, %v205_v60, %v279_v53  ;;  %v265_v10 = vrot.slane %v199_v4, 4  ;;  %v268_v11 = vsel %vm209_vm1, %v199_v4, %v267_v47 }
 0x118   :  { %v539_v13 = vrot.slane %v520_v6, 4  ;;  %v550_v15 = vsel %vm209_vm1, %v549_v5, %v524_v7  ;;  %v551_v14 = vrot.slane %v524_v7, 4  ;;  %v278_v16 = vsel %vm209_vm1, %v277_v8, %v14222_v38 }
 0x119   :  { %v538_v18 = vsel %vm209_vm1, %v537_v21, %v520_v6  ;;  %v556_v12 = vperm.slane %v550_v15, %v14229_v44  ;;  %v284_v19 = vperm.slane %v278_v16, %v14217_v27  ;;  %v288_v53 = vperm.slane %v280_v9, %v14217_v27 }
 0x11a   :  { %v540_v20 = vsel %vm209_vm1, %v532_v46, %v539_v13  ;;  %v14330_v22 = vperm.slane %v538_v18, %v14229_v44  ;;  %v552_v47 = vsel %vm209_vm1, %v536_v1, %v551_v14  ;;  %v266_v23 = vsel %vm209_vm1, %v265_v10, %v14196_v17 }
 0x11b   :  { %v548_v38 = vperm.slane %v540_v20, %v14229_v44  ;;  %v560_v24 = vperm.slane %v552_v47, %v14229_v44  ;;  %v565_v25 = vrot.slane %v556_v12, 4  ;;  %v289_v28 = vrot.slane %v284_v19, 4 }
 0x11c   :  { %v561_v29 = vrot.slane %v14330_v22, 4  ;;  %v301_v30 = vrot.slane %v288_v53, 4  ;;  %v272_v32 = vperm.slane %v266_v23, %v14217_v27  ;;  %v276_v33 = vperm.slane %v268_v11, %v14217_v27 }
 0x11d   :  { %v14340_v34 = vrot.slane %v548_v38, 4  ;;  %v566_v36 = vsel %vm209_vm1, 0.0, %v565_v25  ;;  %v567_v37 = vrot.slane %v560_v24, 4  ;;  %v508_v17 = vsel %vm209_vm1, 0.0, %v14284_v50 }
 0x11e   :  { %v14346_v39 = vsel %vm209_vm1, 0.0, %v561_v29  ;;  %v290_v42 = vsel %vm209_vm1, %v289_v28, %v272_v32  ;;  %v291_v43 = vrot.slane %v272_v32, 4  ;;  %v302_v48 = vsel %vm209_vm1, %v301_v30, %v276_v33 }
 0x11f   :  { %v14352_v55 = vsel %vm209_vm1, 0.0, %v14340_v34  ;;  %v568_v56 = vsel %vm209_vm1, 0.0, %v567_v37  ;;  %v634_v57 = vsel %vm209_vm1, %v567_v37, %v556_v12  ;;  %v296_v58 = vperm.slane %v290_v42, %v14229_v44 }
 0x120   :  { %v628_v59 = vrot.slane %v14352_v55, 4  ;;  %v14359_v60 = vperm.slane %v634_v57, %v14217_v27  ;;  %v639_v63 = vrot.slane %v568_v56, 4  ;;  %v292_v0 = vsel %vm209_vm1, %v284_v19, %v291_v43 }
 0x121   :  { %v300_v1 = vperm.slane %v292_v0, %v14229_v44  ;;  %v303_v46 = vrot.slane %v276_v33, 4  ;;  %v308_v3 = vperm.slane %v302_v48, %v14229_v44  ;;  %v313_v4 = vrot.slane %v296_v58, 4 }
 0x122   :  { %v640_v5 = vsel %vm209_vm1, %v639_v63, %v566_v36  ;;  %v659_v6 = vrot.slane %v14359_v60, 4  ;;  %v569_v7 = vsel %vm209_vm1, %v14284_v50, %v14260_v26  ;;  %v574_v8 = vrot.slane %v508_v17, 4 }
 0x123   :  { %v14370_v21 = vperm.slane %v640_v5, %v14217_v27  ;;  %v304_v9 = vsel %vm209_vm1, %v288_v53, %v303_v46  ;;  %v314_v10 = vsel %vm209_vm1, 0.0, %v313_v4  ;;  %v315_v11 = vrot.slane %v300_v1, 4 }
 0x124   :  { %v312_v13 = vperm.slane %v304_v9, %v14229_v44  ;;  %v317_v15 = vrot.slane %v308_v3, 4  ;;  %v573_v14 = vperm.slane %v569_v7, %v14217_v27  ;;  %v575_v16 = vsel %vm209_vm1, %v574_v8, %v14297_v61 }
 0x125   :  { %v316_v18 = vsel %vm209_vm1, 0.0, %v315_v11  ;;  %v375_v26 = vsel %vm209_vm1, %v315_v11, %v296_v58  ;;  %v579_v50 = vperm.slane %v575_v16, %v14217_v27  ;;  %v586_v12 = vsel %vm209_vm1, %v585_v2, %v14290_v54 }
 0x126   :  { %v318_v19 = vsel %vm209_vm1, 0.0, %v317_v15  ;;  %v319_v53 = vrot.slane %v312_v13, 4  ;;  %v14387_v20 = vperm.slane %v375_v26, %v14217_v27  ;;  %v380_v47 = vrot.slane %v316_v18, 4 }
 0x127   :  { %v590_v61 = vperm.slane %v586_v12, %v14217_v27  ;;  %v593_v23 = vrot.slane %v573_v14, 4  ;;  %v605_v38 = vrot.slane %v14307_v52, 4  ;;  %v591_v36 = vrot.slane %v579_v50, 4 }
 0x128   :  { %v320_v24 = vsel %vm209_vm1, 0.0, %v319_v53  ;;  %v381_v25 = vsel %vm209_vm1, %v380_v47, %v314_v10  ;;  %v386_v62 = vsel %vm209_vm1, %v319_v53, %v308_v3  ;;  %v399_v54 = vrot.slane %v14387_v20, 4 }
 0x129   :  { %v14396_v2 = vperm.slane %v381_v25, %v14217_v27  ;;  %v14399_v28 = vperm.slane %v386_v62, %v14217_v27  ;;  %v391_v29 = vrot.slane %v320_v24, 4  ;;  %v594_v30 = vsel %vm209_vm1, %v579_v50, %v593_v23 }
 0x12a   :  { %v602_v32 = vperm.slane %v594_v30, %v14229_v44  ;;  %v606_v33 = vsel %vm209_vm1, %v590_v61, %v605_v38  ;;  %v603_v37 = vrot.slane %v590_v61, 4  ;;  %v325_v48 = vperm.slane %v14278_v41, %v14217_v27 }
 0x12b   :  { %v392_v17 = vsel %vm209_vm1, %v391_v29, %v318_v19  ;;  %v411_v42 = vrot.slane %v14399_v28, 4  ;;  %v614_v43 = vperm.slane %v606_v33, %v14229_v44  ;;  %v592_v57 = vsel %vm209_vm1, %v591_v36, %v573_v14 }
 0x12c   :  { %v14410_v56 = vperm.slane %v392_v17, %v14217_v27  ;;  %v604_v58 = vsel %vm209_vm1, %v603_v37, %v14307_v52  ;;  %v621_v63 = vrot.slane %v602_v32, 4  ;;  %v598_v1 = vperm.slane %v592_v57, %v14229_v44 }
 0x12d   :  { %v619_v0 = vrot.slane %v614_v43, 4  ;;  %v610_v46 = vperm.slane %v604_v58, %v14229_v44  ;;  %v327_v3 = vsel %vm209_vm1, %v326_v45, %v14265_v31  ;;  %v345_v7 = vrot.slane %v325_v48, 4 }
 0x12e   :  { %v409_v41 = vrot.slane %v14410_v56, 4  ;;  %v622_v4 = vsel %vm209_vm1, %v614_v43, %v621_v63  ;;  %v331_v5 = vperm.slane %v327_v3, %v14217_v27  ;;  %v617_v10 = vrot.slane %v598_v1, 4 }
 0x12f   :  { %v620_v52 = vsel %vm209_vm1, %v619_v0, %v602_v32  ;;  %v615_v8 = vrot.slane %v610_v46, 4  ;;  %v680_v9 = vpack.c.bf16 %v622_v4, %v622_v4  ;;  %v358_v31 = vsel %vm209_vm1, %v14287_v51, %v357_v49 }
 0x130   :  { %v679_v11 = vpack.c.bf16 %v620_v52, %v620_v52  ;;  %v346_v13 = vsel %vm209_vm1, %v331_v5, %v345_v7  ;;  %v623_v40 = vsel %vm209_vm1, %v14340_v34, %v14330_v22  ;;  %v618_v14 = vsel %vm209_vm1, %v610_v46, %v617_v10 }
 0x131   :  { %v616_v45 = vsel %vm209_vm1, %v615_v8, %v598_v1  ;;  %v995_v15 = vsel %vm933_vm2, %v680_v9, 0  ;;  %v354_v16 = vperm.slane %v346_v13, %v14229_v44  ;;  %v678_v50 = vpack.c.bf16 %v618_v14, %v618_v14 }
 0x132   :  { %v976_v18 = vsel %vm933_vm2, %v679_v11, 0  ;;  %v677_v26 = vpack.c.bf16 %v616_v45, %v616_v45  ;;  %1004 = vmatpush.bf16.xpose.msrb.mxu2 %v995_v15  ;;  %v366_v12 = vperm.slane %v358_v31, %v14229_v44  ;;  %v627_v49 = vperm.slane %v623_v40, %v14217_v27 }
 0x133   :  { %985 = vmatpush.bf16.xpose.msrb.mxu1 %v976_v18  ;;  %v629_v22 = vsel %vm209_vm1, %v628_v59, %v14346_v39  ;;  %v660_v34 = vsel %vm209_vm1, %v14370_v21, %v659_v6  ;;  %v343_v19 = vrot.slane %v331_v5, 4  ;;  %v957_v47 = vsel %vm933_vm2, %v678_v50, 0 }
 0x134   :  { %v938_v53 = vsel %vm933_vm2, %v677_v26, 0  ;;  %v371_v61 = vrot.slane %v366_v12, 4  ;;  %v633_v23 = vperm.slane %v629_v22, %v14217_v27  ;;  %966 = vmatpush.bf16.xpose.msrb.mxu0 %v957_v47  ;;  %v647_v38 = vrot.slane %v627_v49, 4 }
 0x135   :  { %947 = vmatpush.bf16.xpose.msra.mxu3 %v938_v53  ;;  %v668_v55 = vperm.slane %v660_v34, %v14229_v44  ;;  %v344_v39 = vsel %vm209_vm1, %v343_v19, %v325_v48  ;;  %v355_v59 = vrot.slane %v14287_v51, 4  ;;  %v373_v25 = vrot.slane %v354_v16, 4 }
 0x136   :  { %v372_v24 = vsel %vm209_vm1, %v371_v61, %v354_v16  ;;  %v350_v6 = vperm.slane %v344_v39, %v14229_v44  ;;  %v645_v62 = vrot.slane %v633_v23, 4  ;;  %v648_v30 = vsel %vm209_vm1, %v633_v23, %v647_v38 }
 0x137   :  { %v431_v29 = vpack.c.bf16 %v372_v24, %v372_v24  ;;  %v673_v32 = vrot.slane %v668_v55, 4  ;;  %v356_v33 = vsel %vm209_vm1, %v355_v59, %v14270_v35  ;;  %v656_v36 = vperm.slane %v648_v30, %v14229_v44  ;;  %v176_v24 = vpop.f32.mrf.mxu2 }
 0x138   :  { %v362_v37 = vperm.slane %v356_v33, %v14229_v44  ;;  %v369_v17 = vrot.slane %v350_v6, 4  ;;  %v374_v51 = vsel %vm209_vm1, %v366_v12, %v373_v25  ;;  %v646_v48 = vsel %vm209_vm1, %v645_v62, %v627_v49  ;;  %v56_v62 = vld [vmem:[%s18612_s2] sm:$0x3] }
 0x139   :  { %v432_v43 = vpack.c.bf16 %v374_v51, %v374_v51  ;;  %v657_v57 = vrot.slane %v14370_v21, 4  ;;  %v400_v58 = vsel %vm209_vm1, %v14396_v2, %v399_v54  ;;  %v674_v35 = vsel %vm209_vm1, %v673_v32, %v656_v36 }
 0x13a   :  { %11356 = vmatmul.msk.bf16.vlgmr.msrb.gmra.mxu1 %vm933_vm2, %v431_v29  ;;  %v367_v63 = vrot.slane %v362_v37, 4  ;;  %v652_v0 = vperm.slane %v646_v48, %v14229_v44  ;;  %v675_v1 = vrot.slane %v656_v36, 4  ;;  %v683_v46 = vpack.c.bf16 %v674_v35, %v674_v35 }
 0x13b   :  { %11357 = vmatmul.msk.bf16.vlgmr.msrb.gmra.mxu2 %vm933_vm2, %v432_v43  ;;  %v658_v3 = vsel %vm209_vm1, %v657_v57, %v14359_v60  ;;  %v370_v21 = vsel %vm209_vm1, %v362_v37, %v369_v17  ;;  %v408_v4 = vperm.slane %v400_v58, %v14229_v44  ;;  %v412_v31 = vsel %vm209_vm1, %v14410_v56, %v411_v42 }
 0x13c   :  { %v368_v54 = vsel %vm209_vm1, %v367_v63, %v350_v6  ;;  %v664_v5 = vperm.slane %v658_v3, %v14229_v44  ;;  %v671_v7 = vrot.slane %v652_v0, 4  ;;  %v676_v52 = vsel %vm209_vm1, %v668_v55, %v675_v1 }
 0x13d   :  { %v1052_v8 = vsel %vm933_vm2, %v683_v46, 0  ;;  %v429_v9 = vpack.c.bf16 %v368_v54, %v368_v54  ;;  %v684_v10 = vpack.c.bf16 %v676_v52, %v676_v52  ;;  %v430_v11 = vpack.c.bf16 %v370_v21, %v370_v21 }
 0x13e   :  { %1061 = vmatpush.bf16.xpose.msra.mxu1 %v1052_v8  ;;  %v669_v13 = vrot.slane %v664_v5, 4  ;;  %v672_v60 = vsel %vm209_vm1, %v664_v5, %v671_v7  ;;  %v397_v40 = vrot.slane %v14396_v2, 4  ;;  %v420_v14 = vperm.slane %v412_v31, %v14229_v44 }
 0x13f   :  { %11354 = vmatmul.msk.bf16.vlgmr.msra.gmra.mxu3 %vm933_vm2, %v429_v9  ;;  %v1071_v45 = vsel %vm933_vm2, %v684_v10, 0  ;;  %11355 = vmatmul.msk.bf16.vlgmr.msrb.gmra.mxu0 %vm933_vm2, %v430_v11  ;;  %v682_v15 = vpack.c.bf16 %v672_v60, %v672_v60  ;;  %v410_v16 = vsel %vm209_vm1, %v409_v41, %v14399_v28  ;;  %v427_v22 = vrot.slane %v408_v4, 4  ;;  %v178_v33 = vpop.f32.mrf.mxu2 }
 0x140   :  { %v670_v18 = vsel %vm209_vm1, %v669_v13, %v652_v0  ;;  %1080 = vmatpush.bf16.xpose.msra.mxu2 %v1071_v45  ;;  %v398_v2 = vsel %vm209_vm1, %v397_v40, %v14387_v20  ;;  %v425_v50 = vrot.slane %v420_v14, 4  ;;  %v416_v49 = vperm.slane %v410_v16, %v14229_v44 }
 0x141   :  { %v681_v42 = vpack.c.bf16 %v670_v18, %v670_v18  ;;  %v1033_v26 = vsel %vm933_vm2, %v682_v15, 0  ;;  %v404_v12 = vperm.slane %v398_v2, %v14229_v44  ;;  %v428_v19 = vsel %vm209_vm1, %v420_v14, %v427_v22 }
 0x142   :  { %1042 = vmatpush.bf16.xpose.msra.mxu0 %v1033_v26  ;;  %v426_v28 = vsel %vm209_vm1, %v425_v50, %v408_v4  ;;  %v421_v41 = vrot.slane %v416_v49, 4  ;;  %v436_v53 = vpack.c.bf16 %v428_v19, %v428_v19  ;;  %v48_v55 = vlaneseq }
 0x143   :  { %v1014_v56 = vsel %vm933_vm2, %v681_v42, 0  ;;  %v423_v34 = vrot.slane %v404_v12, 4  ;;  %v435_v20 = vpack.c.bf16 %v426_v28, %v426_v28  ;;  %v14071_v6 = vmov 0.0   ;;  %v13740_v42 = vld [vmem:[%s18611_s5 + $0x2] ss:$0 sm:$0xff] }
 0x144   :  { %1023 = vmatpush.bf16.xpose.msrb.mxu3 %v1014_v56  ;;  %v422_v47 = vsel %vm209_vm1, %v421_v41, %v404_v12  ;;  %v49_v39 = vshrl.u32 %v48_v55, 7  ;;  %v51_v59 = vand.u32 127, %v48_v55  ;;  %v59_v30 = vperm.slane %v56_v62, 0 }
 0x145   :  { %v424_v61 = vsel %vm209_vm1, %v416_v49, %v423_v34  ;;  %v433_v23 = vpack.c.bf16 %v422_v47, %v422_v47  ;;  %v58_v43 = vrot.slane %v56_v62, 1  ;;  %v14541_v50 = vadd.f32 %v13740_v42, %v176_v24 }
 0x146   :  { %v434_v38 = vpack.c.bf16 %v424_v61, %v424_v61  ;;  %vm52_vm3 = vcmp.gt.s32.totalorder %v51_v59, %v49_v39  ;;  %v14543_v12 = vadd.f32 %v13740_v42, %v178_v33 }
 0x147   :  { %v11311_v25 = vsel %vm52_vm3, 1.0, %v14071_v6  ;;  %v60_v0 = vperm.slane %v58_v43, 0 }
 0x148   :  { %v55_v29 = vmul.f32 -1e+30, %v11311_v25  ;;  %v13608_v49 = vpack.i.bf16 %v14543_v12, %v14541_v50 }
 0x14a   :  { %11360 = vmatmul.msk.bf16.vlgmr.msra.gmra.mxu1 %vm933_vm2, %v435_v20  ;;  %v14512_v32 = vadd.f32 %v59_v30, %v55_v29  ;;  %v14524_v4 = vadd.f32 %v60_v0, %v55_v29 }
 0x14b   :  { %11361 = vmatmul.msk.bf16.vlgmr.msra.gmra.mxu2 %vm933_vm2, %v436_v53 }
 0x14f   :  { %11358 = vmatmul.msk.bf16.vlgmr.msrb.gmra.mxu3 %vm933_vm2, %v433_v23  ;;  %11359 = vmatmul.msk.bf16.vlgmr.msra.gmra.mxu0 %vm933_vm2, %v434_v38 }
 0x1b7   :  { %v987_v36 = vpop.f32.mrf.mxu1 }
 0x1b8   :  { %v1088_v37 = vadd.f32 %v987_v36, %v14512_v32 }
 0x1ba   :  { %v1100_v17 = vsel %vm933_vm2, %v1088_v37, -inf }
 0x1bb   :  { %1101 = vmax.xlane.f32.xlu1 %v1100_v17 }
 0x1bc   :  { %v968_v51 = vpop.f32.mrf.mxu0 }
 0x1bd   :  { %v14517_v48 = vadd.f32 %v968_v51, %v14512_v32 }
 0x1be   :  { %v1006_v57 = vpop.f32.mrf.mxu2 }
 0x1bf   :  { %v989_v58 = vpop.f32.mrf.mxu1  ;;  %v1089_v35 = vadd.f32 %v1006_v57, %v14512_v32  ;;  %v1097_v63 = vsel %vm933_vm2, %v14517_v48, -inf }
 0x1c0   :  { %1098 = vmax.xlane.f32.xlu2 %v1097_v63 }
 0x1c1   :  { %v1103_v1 = vsel %vm933_vm2, %v1089_v35, -inf }
 0x1c2   :  { %v949_v46 = vpop.f32.mrf.mxu3  ;;  %1104 = vmax.xlane.f32.xlu0 %v1103_v1 }
 0x1c3   :  { %v1086_v3 = vadd.f32 %v949_v46, %v14512_v32 }
 0x1c4   :  { %v970_v21 = vpop.f32.mrf.mxu0 }
 0x1c5   :  { %v1094_v7 = vsel %vm933_vm2, %v1086_v3, -inf  ;;  %v707_v21 = vrot.slane %v14541_v50, 4 }
 0x1c6   :  { %v1008_v54 = vpop.f32.mrf.mxu2 }
 0x1c7   :  { %v1063_v5 = vpop.f32.mrf.mxu1 }
 0x1c8   :  { %v1092_v52 = vadd.f32 %v1063_v5, %v14524_v4  ;;  %1095 = vmax.xlane.f32.xlu2 %v1094_v7  ;;  %v763_v7 = vrot.slane %v14543_v12, 4 }
 0x1ca   :  { %v951_v8 = vpop.f32.mrf.mxu3  ;;  %v1112_v9 = vsel %vm933_vm2, %v1092_v52, -inf }
 0x1cb   :  { %1113 = vmax.xlane.f32.xlu1 %v1112_v9 }
 0x1cc   :  { %v1044_v10 = vpop.f32.mrf.mxu0 }
 0x1cd   :  { %v14530_v11 = vadd.f32 %v1044_v10, %v14524_v4 }
 0x1ce   :  { %v1082_v13 = vpop.f32.mrf.mxu2 }
 0x1cf   :  { %v1065_v60 = vpop.f32.mrf.mxu1  ;;  %v1093_v31 = vadd.f32 %v1082_v13, %v14524_v4  ;;  %v1109_v40 = vsel %vm933_vm2, %v14530_v11, -inf }
 0x1d0   :  { %1110 = vmax.xlane.f32.xlu2 %v1109_v40 }
 0x1d1   :  { %v1115_v45 = vsel %vm933_vm2, %v1093_v31, -inf }
 0x1d2   :  { %v1025_v15 = vpop.f32.mrf.mxu3  ;;  %1116 = vmax.xlane.f32.xlu0 %v1115_v45 }
 0x1d3   :  { %v1090_v14 = vadd.f32 %v1025_v15, %v14524_v4 }
 0x1d4   :  { %v1046_v16 = vpop.f32.mrf.mxu0 }
 0x1d5   :  { %v1106_v2 = vsel %vm933_vm2, %v1090_v14, -inf }
 0x1d6   :  { %v1084_v18 = vpop.f32.mrf.mxu2 }
 0x1d8   :  { %1107 = vmax.xlane.f32.xlu2 %v1106_v2 }
 0x1da   :  { %v1027_v26 = vpop.f32.mrf.mxu3 }
 0x1e4   :  { %13609 = vrot.lane.b32.xlu1 %v13608_v49, %s14068_s15 }
 0x1e6   :  { %13604 = vrot.lane.b32.xlu0 %v13608_v49, %s14067_s30 }
 0x1f0   :  { %13614 = vrot.lane.b32.xlu2 %v13608_v49, %s14066_s29 }
 0x22e   :  { %v1102_v22 = vpop.xlane.xlu1 %1101 }
 0x22f   :  { %v1120_v56 = vsub.f32 %v1088_v37, %v1102_v22 }
 0x231   :  { %v1130_v28 = vmul.f32 1.442695, %v1120_v56 }
 0x233   :  { %13774 = vpow2.f32 %v1130_v28  ;;  %v1099_v41 = vpop.xlane.xlu2 %1098 }
 0x234   :  { %v1119_v38 = vsub.f32 %v14517_v48, %v1099_v41 }
 0x235   :  { %v1105_v34 = vpop.xlane.xlu0 %1104 }
 0x236   :  { %v1121_v19 = vsub.f32 %v1089_v35, %v1105_v34  ;;  %v1128_v62 = vmul.f32 1.442695, %v1119_v38 }
 0x238   :  { %v1132_v20 = vmul.f32 1.442695, %v1121_v19 }
 0x239   :  { %v14550_v53 = vpop.eup %13774 }
 0x23a   :  { %13776 = vpow2.f32 %v1132_v20  ;;  %v1148_v47 = vsel %vm933_vm2, %v14550_v53, 0.0 }
 0x23b   :  { %v1096_v61 = vpop.xlane.xlu2 %1095  ;;  %1149 = vadd.xlane.f32.xlu2 %v1148_v47 }
 0x23c   :  { %v1118_v23 = vsub.f32 %v1086_v3, %v1096_v61 }
 0x23e   :  { %v1126_v55 = vmul.f32 1.442695, %v1118_v23  ;;  %v1114_v39 = vpop.xlane.xlu1 %1113 }
 0x23f   :  { %v1124_v59 = vsub.f32 %v1092_v52, %v1114_v39 }
 0x240   :  { %v14555_v24 = vpop.eup %13776  ;;  %13778 = vpow2.f32 %v1126_v55 }
 0x241   :  { %v1138_v6 = vmul.f32 1.442695, %v1124_v59  ;;  %v1151_v25 = vsel %vm933_vm2, %v14555_v24, 0.0 }
 0x242   :  { %1152 = vadd.xlane.f32.xlu1 %v1151_v25 }
 0x243   :  { %13780 = vpow2.f32 %v1138_v6  ;;  %v1111_v29 = vpop.xlane.xlu2 %1110 }
 0x244   :  { %13782 = vpow2.f32 %v1128_v62  ;;  %v1123_v35 = vsub.f32 %v14530_v11, %v1111_v29 }
 0x245   :  { %v1117_v30 = vpop.xlane.xlu0 %1116 }
 0x246   :  { %v14559_v33 = vpop.eup %13778  ;;  %v1125_v36 = vsub.f32 %v1093_v31, %v1117_v30  ;;  %v1136_v1 = vmul.f32 1.442695, %v1123_v35 }
 0x247   :  { %v1142_v37 = vsel %vm933_vm2, %v14559_v33, 0.0 }
 0x248   :  { %1143 = vadd.xlane.f32.xlu0 %v1142_v37  ;;  %v1140_v51 = vmul.f32 1.442695, %v1125_v36 }
 0x249   :  { %v14563_v17 = vpop.eup %13780 }
 0x24a   :  { %v1160_v43 = vsel %vm933_vm2, %v14563_v17, 0.0  ;;  %v14567_v57 = vpop.eup %13782  ;;  %13784 = vpow2.f32 %v1140_v51 }
 0x24b   :  { %v1108_v48 = vpop.xlane.xlu2 %1107  ;;  %1161 = vadd.xlane.f32.xlu2 %v1160_v43  ;;  %v1145_v0 = vsel %vm933_vm2, %v14567_v57, 0.0 }
 0x24c   :  { %v1122_v58 = vsub.f32 %v1090_v14, %v1108_v48 }
 0x24e   :  { %v1134_v63 = vmul.f32 1.442695, %v1122_v58 }
 0x250   :  { %13786 = vpow2.f32 %v1134_v63  ;;  %1146 = vadd.xlane.f32.xlu0 %v1145_v0  ;;  %v14572_v46 = vpop.eup %13784 }
 0x251   :  { %13788 = vpow2.f32 %v1136_v1  ;;  %v1163_v8 = vsel %vm933_vm2, %v14572_v46, 0.0 }
 0x253   :  { %v13615_v3 = vpop.permute.xlu2 %13614 }
 0x254   :  { %v13617_v5 = vunpack.i.h.bf16 %v13615_v3  ;;  %v13616_v9 = vunpack.i.l.bf16 %v13615_v3 }
 0x256   :  { %v14575_v54 = vpop.eup %13786  ;;  %v13610_v52 = vpop.permute.xlu1 %13609  ;;  %v773_v14 = vrot.slane %v13617_v5, 4  ;;  %v717_v2 = vrot.slane %v13616_v9, 4 }
 0x257   :  { %v13612_v10 = vunpack.i.h.bf16 %v13610_v52  ;;  %v13611_v11 = vunpack.i.l.bf16 %v13610_v52  ;;  %v1154_v13 = vsel %vm933_vm2, %v14575_v54, 0.0  ;;  %v14589_v22 = vpop.eup %13788 }
 0x258   :  { %1164 = vadd.xlane.f32.xlu0 %v1163_v8  ;;  %1155 = vadd.xlane.f32.xlu1 %v1154_v13  ;;  %v13605_v60 = vpop.permute.xlu0 %13604  ;;  %v1157_v59 = vsel %vm933_vm2, %v14589_v22, 0.0 }
 0x259   :  { %v761_v31 = vrot.slane %v13612_v10, 4  ;;  %v764_v40 = vsel %vm209_vm1, %v13612_v10, %v763_v7  ;;  %v705_v45 = vrot.slane %v13611_v11, 4  ;;  %v708_v15 = vsel %vm209_vm1, %v13611_v11, %v707_v21 }
 0x25a   :  { %v13607_v16 = vunpack.i.h.bf16 %v13605_v60  ;;  %v13606_v18 = vunpack.i.l.bf16 %v13605_v60  ;;  %v716_v49 = vperm.slane %v708_v15, %v14217_v27  ;;  %v772_v28 = vperm.slane %v764_v40, %v14217_v27 }
 0x25b   :  { %v762_v42 = vsel %vm209_vm1, %v761_v31, %v14543_v12  ;;  %v706_v26 = vsel %vm209_vm1, %v705_v45, %v14541_v50 }
 0x25c   :  { %v768_v56 = vperm.slane %v762_v42, %v14217_v27  ;;  %v712_v41 = vperm.slane %v706_v26, %v14217_v27  ;;  %v775_v34 = vrot.slane %v13607_v16, 4  ;;  %v718_v19 = vsel %vm209_vm1, %v717_v2, %v13606_v18 }
 0x25d   :  { %v719_v20 = vrot.slane %v13606_v18, 4  ;;  %v774_v47 = vsel %vm209_vm1, %v773_v14, %v13607_v16  ;;  %v724_v50 = vperm.slane %v718_v19, %v14217_v27  ;;  %v743_v38 = vrot.slane %v716_v49, 4 }
 0x25e   :  { %v787_v12 = vrot.slane %v768_v56, 4  ;;  %v731_v61 = vrot.slane %v712_v41, 4  ;;  %v780_v23 = vperm.slane %v774_v47, %v14217_v27  ;;  %v776_v39 = vsel %vm209_vm1, %v13617_v5, %v775_v34 }
 0x25f   :  { %v720_v55 = vsel %vm209_vm1, %v13616_v9, %v719_v20  ;;  %v729_v25 = vrot.slane %v724_v50, 4  ;;  %v784_v29 = vperm.slane %v776_v39, %v14217_v27  ;;  %v799_v30 = vrot.slane %v772_v28, 4 }
 0x260   :  { %v728_v6 = vperm.slane %v720_v55, %v14217_v27  ;;  %v732_v62 = vsel %vm209_vm1, %v724_v50, %v731_v61  ;;  %1158 = vadd.xlane.f32.xlu1 %v1157_v59  ;;  %v785_v37 = vrot.slane %v780_v23, 4  ;;  %v788_v51 = vsel %vm209_vm1, %v780_v23, %v787_v12 }
 0x261   :  { %v740_v36 = vperm.slane %v732_v62, %v14229_v44  ;;  %v730_v43 = vsel %vm209_vm1, %v729_v25, %v712_v41  ;;  %v796_v35 = vperm.slane %v788_v51, %v14229_v44  ;;  %v797_v7 = vrot.slane %v784_v29, 4 }
 0x262   :  { %v741_v48 = vrot.slane %v728_v6, 4  ;;  %v744_v58 = vsel %vm209_vm1, %v728_v6, %v743_v38  ;;  %v736_v63 = vperm.slane %v730_v43, %v14229_v44  ;;  %v786_v3 = vsel %vm209_vm1, %v785_v37, %v768_v56 }
 0x263   :  { %v752_v0 = vperm.slane %v744_v58, %v14229_v44  ;;  %v755_v1 = vrot.slane %v740_v36, 4  ;;  %v792_v5 = vperm.slane %v786_v3, %v14229_v44  ;;  %v800_v52 = vsel %vm209_vm1, %v784_v29, %v799_v30 }
 0x264   :  { %v742_v21 = vsel %vm209_vm1, %v741_v48, %v716_v49  ;;  %v753_v9 = vrot.slane %v736_v63, 4  ;;  %v798_v13 = vsel %vm209_vm1, %v797_v7, %v772_v28  ;;  %v808_v60 = vperm.slane %v800_v52, %v14229_v44 }
 0x265   :  { %v748_v8 = vperm.slane %v742_v21, %v14229_v44  ;;  %v756_v10 = vsel %vm209_vm1, 0.0, %v755_v1  ;;  %v759_v11 = vrot.slane %v752_v0, 4  ;;  %v809_v31 = vrot.slane %v792_v5, 4 }
 0x266   :  { %v811_v40 = vrot.slane %v796_v35, 4  ;;  %v754_v45 = vsel %vm209_vm1, 0.0, %v753_v9  ;;  %v804_v16 = vperm.slane %v798_v13, %v14229_v44  ;;  %v815_v42 = vrot.slane %v808_v60, 4 }
 0x267   :  { %v757_v15 = vrot.slane %v748_v8, 4  ;;  %v760_v14 = vsel %vm209_vm1, 0.0, %v759_v11  ;;  %v810_v18 = vsel %vm209_vm1, 0.0, %v809_v31  ;;  %v817_v26 = vsel %vm209_vm1, %v755_v1, %v736_v63 }
 0x268   :  { %v812_v2 = vsel %vm209_vm1, 0.0, %v811_v40  ;;  %v813_v49 = vrot.slane %v804_v16, 4  ;;  %v822_v56 = vrot.slane %v756_v10, 4  ;;  %v833_v28 = vrot.slane %v760_v14, 4 }
 0x269   :  { %v871_v41 = vsel %vm209_vm1, %v811_v40, %v792_v5  ;;  %v816_v34 = vsel %vm209_vm1, 0.0, %v815_v42  ;;  %v876_v19 = vrot.slane %v812_v2, 4  ;;  %v758_v20 = vsel %vm209_vm1, 0.0, %v757_v15 }
 0x26a   :  { %v821_v47 = vperm.slane %v817_v26, %v14217_v27  ;;  %v887_v12 = vrot.slane %v816_v34, 4  ;;  %v823_v61 = vsel %vm209_vm1, %v822_v56, %v754_v45  ;;  %v828_v50 = vsel %vm209_vm1, %v759_v11, %v748_v8 }
 0x26b   :  { %v834_v23 = vsel %vm209_vm1, %v833_v28, %v758_v20  ;;  %v827_v38 = vperm.slane %v823_v61, %v14217_v27  ;;  %v832_v55 = vperm.slane %v828_v50, %v14217_v27  ;;  %v814_v6 = vsel %vm209_vm1, 0.0, %v813_v49 }
 0x26c   :  { %v838_v39 = vperm.slane %v834_v23, %v14217_v27  ;;  %v841_v59 = vrot.slane %v821_v47, 4  ;;  %v875_v25 = vperm.slane %v871_v41, %v14217_v27  ;;  %v877_v62 = vsel %vm209_vm1, %v876_v19, %v810_v18 }
 0x26d   :  { %v882_v29 = vsel %vm209_vm1, %v815_v42, %v804_v16  ;;  %v853_v36 = vrot.slane %v832_v55, 4  ;;  %v881_v37 = vperm.slane %v877_v62, %v14217_v27  ;;  %v888_v48 = vsel %vm209_vm1, %v887_v12, %v814_v6 }
 0x26e   :  { %v842_v30 = vsel %vm209_vm1, %v827_v38, %v841_v59  ;;  %v886_v51 = vperm.slane %v882_v29, %v14217_v27  ;;  %v895_v58 = vrot.slane %v875_v25, 4  ;;  %v839_v35 = vrot.slane %v827_v38, 4 }
 0x26f   :  { %v850_v43 = vperm.slane %v842_v30, %v14229_v44  ;;  %v854_v63 = vsel %vm209_vm1, %v838_v39, %v853_v36  ;;  %v892_v0 = vperm.slane %v888_v48, %v14217_v27  ;;  %v851_v3 = vrot.slane %v838_v39, 4 }
 0x270   :  { %v907_v1 = vrot.slane %v886_v51, 4  ;;  %v862_v21 = vperm.slane %v854_v63, %v14229_v44  ;;  %v896_v7 = vsel %vm209_vm1, %v881_v37, %v895_v58  ;;  %v840_v52 = vsel %vm209_vm1, %v839_v35, %v821_v47 }
 0x271   :  { %v869_v5 = vrot.slane %v850_v43, 4  ;;  %v904_v8 = vperm.slane %v896_v7, %v14229_v44  ;;  %v846_v10 = vperm.slane %v840_v52, %v14229_v44  ;;  %v852_v11 = vsel %vm209_vm1, %v851_v3, %v832_v55 }
 0x272   :  { %v908_v9 = vsel %vm209_vm1, %v892_v0, %v907_v1  ;;  %v867_v60 = vrot.slane %v862_v21, 4  ;;  %v858_v40 = vperm.slane %v852_v11, %v14229_v44  ;;  %v893_v16 = vrot.slane %v881_v37, 4 }
 0x273   :  { %v870_v13 = vsel %vm209_vm1, %v862_v21, %v869_v5  ;;  %v916_v31 = vperm.slane %v908_v9, %v14229_v44  ;;  %v923_v15 = vrot.slane %v904_v8, 4  ;;  %v865_v14 = vrot.slane %v846_v10, 4 }
 0x274   :  { %v928_v45 = vpack.c.bf16 %v870_v13, %v870_v13  ;;  %v868_v18 = vsel %vm209_vm1, %v867_v60, %v850_v43  ;;  %v863_v42 = vrot.slane %v858_v40, 4  ;;  %v905_v26 = vrot.slane %v892_v0, 4 }
 0x275   :  { %v921_v2 = vrot.slane %v916_v31, 4  ;;  %v927_v56 = vpack.c.bf16 %v868_v18, %v868_v18  ;;  %v924_v28 = vsel %vm209_vm1, %v916_v31, %v923_v15  ;;  %v866_v41 = vsel %vm209_vm1, %v858_v40, %v865_v14 }
 0x276   :  { %v1356_v49 = vsel %vm1297_vm4, %v928_v45, 0  ;;  %v932_v34 = vpack.c.bf16 %v924_v28, %v924_v28  ;;  %v926_v19 = vpack.c.bf16 %v866_v41, %v866_v41  ;;  %v864_v47 = vsel %vm209_vm1, %v863_v42, %v846_v10 }
 0x277   :  { %1365 = vmatpush.bf16.msrb.mxu2 %v1356_v49  ;;  %v922_v20 = vsel %vm209_vm1, %v921_v2, %v904_v8  ;;  %v1337_v12 = vsel %vm1297_vm4, %v927_v56, 0  ;;  %v925_v50 = vpack.c.bf16 %v864_v47, %v864_v47  ;;  %v894_v23 = vsel %vm209_vm1, %v893_v16, %v875_v25 }
 0x278   :  { %v931_v61 = vpack.c.bf16 %v922_v20, %v922_v20  ;;  %1346 = vmatpush.bf16.msrb.mxu1 %v1337_v12  ;;  %v1432_v38 = vsel %vm1297_vm4, %v932_v34, 0  ;;  %v1318_v55 = vsel %vm1297_vm4, %v926_v19, 0  ;;  %v900_v39 = vperm.slane %v894_v23, %v14229_v44 }
 0x279   :  { %v906_v59 = vsel %vm209_vm1, %v905_v26, %v886_v51  ;;  %1327 = vmatpush.bf16.msrb.mxu0 %v1318_v55  ;;  %v1299_v62 = vsel %vm1297_vm4, %v925_v50, 0 }
 0x27a   :  { %v1413_v6 = vsel %vm1297_vm4, %v931_v61, 0  ;;  %v912_v29 = vperm.slane %v906_v59, %v14229_v44  ;;  %1308 = vmatpush.bf16.msra.mxu3 %v1299_v62  ;;  %v919_v25 = vrot.slane %v900_v39, 4 }
 0x27b   :  { %1441 = vmatpush.bf16.msra.mxu2 %v1432_v38 }
 0x27c   :  { %1422 = vmatpush.bf16.msra.mxu1 %v1413_v6  ;;  %v917_v30 = vrot.slane %v912_v29, 4  ;;  %v920_v36 = vsel %vm209_vm1, %v912_v29, %v919_v25 }
 0x27d   :  { %v930_v37 = vpack.c.bf16 %v920_v36, %v920_v36 }
 0x27e   :  { %v918_v43 = vsel %vm209_vm1, %v917_v30, %v900_v39 }
 0x27f   :  { %v929_v48 = vpack.c.bf16 %v918_v43, %v918_v43  ;;  %v1394_v51 = vsel %vm1297_vm4, %v930_v37, 0 }
 0x280   :  { %1403 = vmatpush.bf16.msra.mxu0 %v1394_v51 }
 0x281   :  { %v1375_v58 = vsel %vm1297_vm4, %v929_v48, 0 }
 0x282   :  { %1384 = vmatpush.bf16.msrb.mxu3 %v1375_v58 }
 0x2ae   :  { %v1150_v35 = vpop.xlane.xlu2 %1149 }
 0x2af   :  { %13790 = vrcp.f32 %v1150_v35  ;;  %v1207_v21 = vand.u32 2147483648, %v1150_v35  ;;  %v1205_v7 = vand.u32 2147483647, %v1150_v35  ;;  %vm1201_vm6 = vweird.f32 %v1150_v35 }
 0x2b1   :  { %v1208_v10 = vor.u32 1.1754944e-38, %v1207_v21  ;;  %vm1206_vm8 = vcmp.eq.f32.partialorder %v1205_v7, 8.507059e+37 }
 0x2b5   :  { %v13791_v63 = vpop.eup %13790  ;;  %v1153_v0 = vpop.xlane.xlu1 %1152 }
 0x2b6   :  { %v1197_v1 = vmul.f32 %v13791_v63, %v1150_v35  ;;  %13792 = vrcp.f32 %v1153_v0  ;;  %vm1202_vm5 = vweird.f32 %v13791_v63  ;;  %v1222_v15 = vand.u32 2147483648, %v1153_v0 }
 0x2b7   :  { %vm1203_vm7 = vmor %vm1201_vm6, %vm1202_vm5  ;;  %v1220_v16 = vand.u32 2147483647, %v1153_v0  ;;  %vm1216_vm10 = vweird.f32 %v1153_v0 }
 0x2b8   :  { %v1198_v3 = vsub.f32 1.0, %v1197_v1  ;;  %v1223_v56 = vor.u32 1.1754944e-38, %v1222_v15 }
 0x2b9   :  { %vm1221_vm12 = vcmp.eq.f32.partialorder %v1220_v16, 8.507059e+37 }
 0x2ba   :  { %v1199_v5 = vmul.f32 %v13791_v63, %v1198_v3 }
 0x2bb   :  { %v14676_v52 = vpop.xlane.xlu0 %1143 }
 0x2bc   :  { %v13793_v8 = vpop.eup %13792  ;;  %v1200_v9 = vadd.f32 %v13791_v63, %v1199_v5  ;;  %13794 = vrcp.f32 %v14676_v52  ;;  %vm1171_vm13 = vweird.f32 %v14676_v52  ;;  %v1177_v50 = vand.u32 2147483648, %v14676_v52 }
 0x2bd   :  { %v1212_v11 = vmul.f32 %v13793_v8, %v1153_v0  ;;  %vm1217_vm9 = vweird.f32 %v13793_v8  ;;  %v1175_v39 = vand.u32 2147483647, %v14676_v52 }
 0x2be   :  { %v1204_v13 = vsel %vm1203_vm7, %v13791_v63, %v1200_v9  ;;  %v1162_v60 = vpop.xlane.xlu2 %1161  ;;  %vm1218_vm11 = vmor %vm1216_vm10, %vm1217_vm9  ;;  %v1178_v37 = vor.u32 1.1754944e-38, %v1177_v50 }
 0x2bf   :  { %v1209_v31 = vsel %vm1206_vm8, %v1208_v10, %v1204_v13  ;;  %v1213_v40 = vsub.f32 1.0, %v1212_v11  ;;  %13796 = vrcp.f32 %v1162_v60  ;;  %v1267_v23 = vand.u32 2147483648, %v1162_v60 }
 0x2c0   :  { %v1210_v45 = vmul.f32 %v14550_v53, %v1209_v31  ;;  %v1265_v6 = vand.u32 2147483647, %v1162_v60  ;;  %vm1261_vm5 = vweird.f32 %v1162_v60  ;;  %vm1176_vm7 = vcmp.eq.f32.partialorder %v1175_v39, 8.507059e+37 }
 0x2c1   :  { %v1214_v14 = vmul.f32 %v13793_v8, %v1213_v40  ;;  %v1268_v43 = vor.u32 1.1754944e-38, %v1267_v23 }
 0x2c2   :  { %v13795_v18 = vpop.eup %13794  ;;  %v1288_v2 = vpack.c.bf16 %v1210_v45, %v1210_v45  ;;  %vm1266_vm8 = vcmp.eq.f32.partialorder %v1265_v6, 8.507059e+37 }
 0x2c3   :  { %v1215_v42 = vadd.f32 %v13793_v8, %v1214_v14  ;;  %v1167_v26 = vmul.f32 %v13795_v18, %v14676_v52  ;;  %v1147_v49 = vpop.xlane.xlu0 %1146  ;;  %vm1172_vm14 = vweird.f32 %v13795_v18 }
 0x2c4   :  { %13798 = vrcp.f32 %v1147_v49  ;;  %11364 = vmatmul.msk.bf16.vlgmr.msrb.gmra.mxu1 %vm933_vm2, %v1288_v2  ;;  %vm14686_vm3 = vmor %vm1171_vm13, %vm1172_vm14  ;;  %v1192_v58 = vand.u32 2147483648, %v1147_v49  ;;  %v1190_v3 = vand.u32 2147483647, %v1147_v49  ;;  %vm1186_vm10 = vweird.f32 %v1147_v49 }
 0x2c5   :  { %v13797_v28 = vpop.eup %13796  ;;  %v1219_v41 = vsel %vm1218_vm11, %v13793_v8, %v1215_v42  ;;  %v1168_v53 = vsub.f32 1.0, %v1167_v26 }
 0x2c6   :  { %v1224_v34 = vsel %vm1221_vm12, %v1223_v56, %v1219_v41  ;;  %v1257_v19 = vmul.f32 %v13797_v28, %v1162_v60  ;;  %vm1262_vm15 = vweird.f32 %v13797_v28  ;;  %v1193_v11 = vor.u32 1.1754944e-38, %v1192_v58 }
 0x2c7   :  { %v1225_v20 = vmul.f32 %v14555_v24, %v1224_v34  ;;  %v1169_v47 = vmul.f32 %v13795_v18, %v1168_v53  ;;  %vm1263_vm6 = vmor %vm1261_vm5, %vm1262_vm15  ;;  %vm1191_vm12 = vcmp.eq.f32.partialorder %v1190_v3, 8.507059e+37 }
 0x2c8   :  { %v1258_v12 = vsub.f32 1.0, %v1257_v19 }
 0x2c9   :  { %v1170_v61 = vadd.f32 %v13795_v18, %v1169_v47  ;;  %v1289_v38 = vpack.c.bf16 %v1225_v20, %v1225_v20 }
 0x2ca   :  { %v13799_v55 = vpop.eup %13798  ;;  %v1259_v59 = vmul.f32 %v13797_v28, %v1258_v12 }
 0x2cb   :  { %v1182_v24 = vmul.f32 %v13799_v55, %v1147_v49  ;;  %v1165_v29 = vpop.xlane.xlu0 %1164  ;;  %v14690_v25 = vpop.xlane.xlu1 %1155  ;;  %11365 = vmatmul.msk.bf16.vlgmr.msrb.gmra.mxu2 %vm933_vm2, %v1289_v38  ;;  %v1174_v30 = vsel %vm14686_vm3, %v13795_v18, %v1170_v61  ;;  %vm1187_vm9 = vweird.f32 %v13799_v55 }
 0x2cc   :  { %v1260_v36 = vadd.f32 %v13797_v28, %v1259_v59  ;;  %13800 = vrcp.f32 %v1165_v29  ;;  %v1179_v0 = vsel %vm1176_vm7, %v1178_v37, %v1174_v30  ;;  %vm1188_vm11 = vmor %vm1186_vm10, %vm1187_vm9  ;;  %v1282_v40 = vand.u32 2147483648, %v1165_v29 }
 0x2cd   :  { %v1183_v48 = vsub.f32 1.0, %v1182_v24  ;;  %13802 = vrcp.f32 %v14690_v25  ;;  %v1180_v21 = vmul.f32 %v14559_v33, %v1179_v0  ;;  %v1280_v16 = vand.u32 2147483647, %v1165_v29 }
 0x2ce   :  { %v1264_v51 = vsel %vm1263_vm6, %v13797_v28, %v1260_v36  ;;  %v1237_v18 = vand.u32 2147483648, %v14690_v25  ;;  %v1235_v42 = vand.u32 2147483647, %v14690_v25  ;;  %vm1276_vm15 = vweird.f32 %v1165_v29 }
 0x2cf   :  { %v1269_v35 = vsel %vm1266_vm8, %v1268_v43, %v1264_v51  ;;  %v1184_v63 = vmul.f32 %v13799_v55, %v1183_v48  ;;  %v1286_v52 = vpack.c.bf16 %v1180_v21, %v1180_v21  ;;  %v1283_v28 = vor.u32 1.1754944e-38, %v1282_v40 }
 0x2d0   :  { %v1270_v1 = vmul.f32 %v14563_v17, %v1269_v35  ;;  %vm1231_vm5 = vweird.f32 %v14690_v25  ;;  %vm1281_vm6 = vcmp.eq.f32.partialorder %v1280_v16, 8.507059e+37  ;;  %v1238_v53 = vor.u32 1.1754944e-38, %v1237_v18 }
 0x2d1   :  { %v1185_v5 = vadd.f32 %v13799_v55, %v1184_v63  ;;  %11362 = vmatmul.msk.bf16.vlgmr.msra.gmra.mxu3 %vm933_vm2, %v1286_v52  ;;  %vm1236_vm8 = vcmp.eq.f32.partialorder %v1235_v42, 8.507059e+37 }
 0x2d2   :  { %v13801_v7 = vpop.eup %13800  ;;  %v1292_v8 = vpack.c.bf16 %v1270_v1, %v1270_v1 }
 0x2d3   :  { %v13803_v9 = vpop.eup %13802  ;;  %v1189_v10 = vsel %vm1188_vm11, %v13799_v55, %v1185_v5  ;;  %v1272_v13 = vmul.f32 %v13801_v7, %v1165_v29  ;;  %v1159_v60 = vpop.xlane.xlu1 %1158  ;;  %vm1277_vm13 = vweird.f32 %v13801_v7 }
 0x2d4   :  { %v1227_v31 = vmul.f32 %v13803_v9, %v14690_v25  ;;  %13804 = vrcp.f32 %v1159_v60  ;;  %11368 = vmatmul.msk.bf16.vlgmr.msra.gmra.mxu1 %vm933_vm2, %v1292_v8  ;;  %v1194_v17 = vsel %vm1191_vm12, %v1193_v11, %v1189_v10  ;;  %vm1232_vm14 = vweird.f32 %v13803_v9  ;;  %vm1278_vm3 = vmor %vm1276_vm15, %vm1277_vm13 }
 0x2d5   :  { %v1273_v33 = vsub.f32 1.0, %v1272_v13  ;;  %v1195_v15 = vmul.f32 %v14567_v57, %v1194_v17  ;;  %vm1233_vm7 = vmor %vm1231_vm5, %vm1232_vm14  ;;  %v1252_v23 = vand.u32 2147483648, %v1159_v60  ;;  %v1250_v55 = vand.u32 2147483647, %v1159_v60 }
 0x2d6   :  { %v1228_v45 = vsub.f32 1.0, %v1227_v31  ;;  %vm1246_vm10 = vweird.f32 %v1159_v60  ;;  %vm1693_vm13 = vcmask 130048   ;;  %vm1696_vm14 = vcmask 195584  }
 0x2d7   :  { %v1274_v14 = vmul.f32 %v13801_v7, %v1273_v33  ;;  %v1287_v26 = vpack.c.bf16 %v1195_v15, %v1195_v15  ;;  %v1253_v62 = vor.u32 1.1754944e-38, %v1252_v23  ;;  %vm1251_vm12 = vcmp.eq.f32.partialorder %v1250_v55, 8.507059e+37 }
 0x2d8   :  { %v1229_v2 = vmul.f32 %v13803_v9, %v1228_v45 }
 0x2d9   :  { %v1275_v49 = vadd.f32 %v13801_v7, %v1274_v14  ;;  %11363 = vmatmul.msk.bf16.vlgmr.msrb.gmra.mxu0 %vm933_vm2, %v1287_v26 }
 0x2da   :  { %v13805_v56 = vpop.eup %13804  ;;  %v1230_v41 = vadd.f32 %v13803_v9, %v1229_v2 }
 0x2db   :  { %v1279_v57 = vsel %vm1278_vm3, %v13801_v7, %v1275_v49  ;;  %v1242_v34 = vmul.f32 %v13805_v56, %v1159_v60  ;;  %vm1247_vm9 = vweird.f32 %v13805_v56 }
 0x2dc   :  { %v1284_v19 = vsel %vm1281_vm6, %v1283_v28, %v1279_v57  ;;  %v1234_v20 = vsel %vm1233_vm7, %v13803_v9, %v1230_v41  ;;  %vm1248_vm11 = vmor %vm1246_vm10, %vm1247_vm9 }
 0x2dd   :  { %v1285_v47 = vmul.f32 %v14572_v46, %v1284_v19  ;;  %v1239_v12 = vsel %vm1236_vm8, %v1238_v53, %v1234_v20  ;;  %v1243_v61 = vsub.f32 1.0, %v1242_v34 }
 0x2de   :  { %v1240_v50 = vmul.f32 %v14575_v54, %v1239_v12 }
 0x2df   :  { %v1244_v38 = vmul.f32 %v13805_v56, %v1243_v61  ;;  %v1293_v39 = vpack.c.bf16 %v1285_v47, %v1285_v47 }
 0x2e0   :  { %v1290_v59 = vpack.c.bf16 %v1240_v50, %v1240_v50 }
 0x2e1   :  { %v1245_v6 = vadd.f32 %v13805_v56, %v1244_v38  ;;  %11369 = vmatmul.msk.bf16.vlgmr.msra.gmra.mxu2 %vm933_vm2, %v1293_v39 }
 0x2e2   :  { %11366 = vmatmul.msk.bf16.vlgmr.msrb.gmra.mxu3 %vm933_vm2, %v1290_v59 }
 0x2e3   :  { %v1249_v24 = vsel %vm1248_vm11, %v13805_v56, %v1245_v6 }
 0x2e4   :  { %v1254_v29 = vsel %vm1251_vm12, %v1253_v62, %v1249_v24 }
 0x2e5   :  { %v1255_v46 = vmul.f32 %v14589_v22, %v1254_v29 }
 0x2e7   :  { %v1291_v54 = vpack.c.bf16 %v1255_v46, %v1255_v46 }
 0x2e9   :  { %11367 = vmatmul.msk.bf16.vlgmr.msra.gmra.mxu0 %vm933_vm2, %v1291_v54 }
 0x341   :  { %v1348_v25 = vpop.f32.mrf.mxu1 }
 0x342   :  { %v1447_v43 = vrot.slane %v1348_v25, 4 }
 0x349   :  { %v1350_v30 = vpop.f32.mrf.mxu1 }
 0x34e   :  { %v1367_v36 = vpop.f32.mrf.mxu2 }
 0x34f   :  { %v1459_v48 = vrot.slane %v1367_v36, 4 }
 0x351   :  { %v1424_v37 = vpop.f32.mrf.mxu1 }
 0x352   :  { %v1503_v23 = vrot.slane %v1424_v37, 4 }
 0x354   :  { %v1310_v58 = vpop.f32.mrf.mxu3 }
 0x355   :  { %v1448_v63 = vsel %vm209_vm1, %v1447_v43, %v1310_v58  ;;  %v1449_v0 = vrot.slane %v1310_v58, 4 }
 0x356   :  { %v1369_v51 = vpop.f32.mrf.mxu2  ;;  %v1329_v35 = vpop.f32.mrf.mxu0  ;;  %v1454_v22 = vperm.slane %v1448_v63, %v14217_v27 }
 0x357   :  { %v1460_v1 = vsel %vm209_vm1, %v1459_v48, %v1329_v35  ;;  %v1461_v3 = vrot.slane %v1329_v35, 4  ;;  %v1450_v7 = vsel %vm209_vm1, %v1348_v25, %v1449_v0 }
 0x358   :  { %v1466_v21 = vperm.slane %v1460_v1, %v14217_v27  ;;  %v1458_v8 = vperm.slane %v1450_v7, %v14217_v27  ;;  %v1473_v9 = vrot.slane %v1454_v22, 4 }
 0x359   :  { %v1426_v5 = vpop.f32.mrf.mxu1  ;;  %v1462_v52 = vsel %vm209_vm1, %v1367_v36, %v1461_v3 }
 0x35a   :  { %v1470_v10 = vperm.slane %v1462_v52, %v14217_v27  ;;  %v1471_v11 = vrot.slane %v1466_v21, 4  ;;  %v1485_v13 = vrot.slane %v1458_v8, 4  ;;  %v1474_v31 = vsel %vm209_vm1, %v1466_v21, %v1473_v9 }
 0x35b   :  { %v1482_v40 = vperm.slane %v1474_v31, %v14229_v44 }
 0x35c   :  { %v1472_v60 = vsel %vm209_vm1, %v1471_v11, %v1454_v22  ;;  %v1483_v33 = vrot.slane %v1470_v10, 4  ;;  %v1486_v15 = vsel %vm209_vm1, %v1470_v10, %v1485_v13  ;;  %v1312_v14 = vpop.f32.mrf.mxu3 }
 0x35d   :  { %v1478_v17 = vperm.slane %v1472_v60, %v14229_v44  ;;  %v1494_v2 = vperm.slane %v1486_v15, %v14229_v44  ;;  %v1497_v26 = vrot.slane %v1482_v40, 4 }
 0x35e   :  { %v1484_v45 = vsel %vm209_vm1, %v1483_v33, %v1458_v8  ;;  %v1331_v16 = vpop.f32.mrf.mxu0 }
 0x35f   :  { %v1490_v18 = vperm.slane %v1484_v45, %v14229_v44  ;;  %v1495_v42 = vrot.slane %v1478_v17, 4  ;;  %v1498_v56 = vsel %vm209_vm1, 0.0, %v1497_v26  ;;  %v1501_v41 = vrot.slane %v1494_v2, 4 }
 0x360   :  { %v1559_v57 = vsel %vm209_vm1, %v1497_v26, %v1478_v17  ;;  %v1564_v53 = vrot.slane %v1498_v56, 4 }
 0x361   :  { %v1496_v49 = vsel %vm209_vm1, 0.0, %v1495_v42  ;;  %v1499_v28 = vrot.slane %v1490_v18, 4  ;;  %v1502_v34 = vsel %vm209_vm1, 0.0, %v1501_v41  ;;  %v1570_v19 = vsel %vm209_vm1, %v1501_v41, %v1490_v18 }
 0x362   :  { %v1565_v12 = vsel %vm209_vm1, %v1564_v53, %v1496_v49  ;;  %v1575_v61 = vrot.slane %v1502_v34, 4  ;;  %v1563_v38 = vperm.slane %v1559_v57, %v14217_v27  ;;  %v1574_v6 = vperm.slane %v1570_v19, %v14217_v27 }
 0x363   :  { %v1500_v47 = vsel %vm209_vm1, 0.0, %v1499_v28  ;;  %v1569_v55 = vperm.slane %v1565_v12, %v14217_v27 }
 0x364   :  { %v1443_v20 = vpop.f32.mrf.mxu2  ;;  %v1576_v62 = vsel %vm209_vm1, %v1575_v61, %v1500_v47  ;;  %v1583_v43 = vrot.slane %v1563_v38, 4  ;;  %v1595_v22 = vrot.slane %v1574_v6, 4 }
 0x365   :  { %v1515_v50 = vrot.slane %v1443_v20, 4  ;;  %v1386_v39 = vpop.f32.mrf.mxu3  ;;  %v1580_v36 = vperm.slane %v1576_v62, %v14217_v27  ;;  %v1581_v58 = vrot.slane %v1569_v55, 4 }
 0x366   :  { %v1405_v59 = vpop.f32.mrf.mxu0  ;;  %v1504_v24 = vsel %vm209_vm1, %v1503_v23, %v1386_v39  ;;  %v1505_v29 = vrot.slane %v1386_v39, 4  ;;  %v1584_v10 = vsel %vm209_vm1, %v1569_v55, %v1583_v43 }
 0x367   :  { %v1516_v46 = vsel %vm209_vm1, %v1515_v50, %v1405_v59  ;;  %v1517_v54 = vrot.slane %v1405_v59, 4  ;;  %v1510_v25 = vperm.slane %v1504_v24, %v14217_v27  ;;  %v1593_v21 = vrot.slane %v1580_v36, 4 }
 0x368   :  { %v1522_v30 = vperm.slane %v1516_v46, %v14217_v27  ;;  %v1506_v48 = vsel %vm209_vm1, %v1424_v37, %v1505_v29  ;;  %v1582_v33 = vsel %vm209_vm1, %v1581_v58, %v1563_v38  ;;  %v1592_v16 = vperm.slane %v1584_v10, %v14229_v44 }
 0x369   :  { %v1518_v51 = vsel %vm209_vm1, %v1443_v20, %v1517_v54  ;;  %v1514_v35 = vperm.slane %v1506_v48, %v14217_v27  ;;  %v1529_v63 = vrot.slane %v1510_v25, 4  ;;  %v1594_v17 = vsel %vm209_vm1, %v1593_v21, %v1574_v6 }
 0x36a   :  { %v1526_v0 = vperm.slane %v1518_v51, %v14217_v27  ;;  %v1527_v1 = vrot.slane %v1522_v30, 4  ;;  %v1596_v18 = vsel %vm209_vm1, %v1580_v36, %v1595_v22  ;;  %v1600_v2 = vperm.slane %v1594_v17, %v14229_v44 }
 0x36b   :  { %v1541_v5 = vrot.slane %v1514_v35, 4  ;;  %v1530_v52 = vsel %vm209_vm1, %v1522_v30, %v1529_v63  ;;  %v1588_v57 = vperm.slane %v1582_v33, %v14229_v44  ;;  %v1604_v55 = vperm.slane %v1596_v18, %v14229_v44 }
 0x36c   :  { %v1445_v3 = vpop.f32.mrf.mxu2  ;;  %v1528_v7 = vsel %vm209_vm1, %v1527_v1, %v1510_v25  ;;  %v1539_v8 = vrot.slane %v1526_v0, 4  ;;  %v1538_v9 = vperm.slane %v1530_v52, %v14229_v44  ;;  %v1605_v53 = vrot.slane %v1600_v2, 4 }
 0x36d   :  { %v1534_v37 = vperm.slane %v1528_v7, %v14229_v44  ;;  %v1542_v13 = vsel %vm209_vm1, %v1526_v0, %v1541_v5  ;;  %v1388_v60 = vpop.f32.mrf.mxu3  ;;  %v1611_v62 = vrot.slane %v1592_v16, 4  ;;  %v1609_v30 = vrot.slane %v1604_v55, 4 }
 0x36e   :  { %v1540_v11 = vsel %vm209_vm1, %v1539_v8, %v1514_v35  ;;  %v1407_v31 = vpop.f32.mrf.mxu0  ;;  %v1550_v45 = vperm.slane %v1542_v13, %v14229_v44  ;;  %v1553_v14 = vrot.slane %v1538_v9, 4  ;;  %v1606_v39 = vsel %vm209_vm1, %v1605_v53, %v1588_v57  ;;  %v13239_v60 = vld [vmem:[%s18609_s4 + $0x38] sm:$0xff]  ;;  %v13741_v53 = vld [vmem:[%s18611_s5 + $0x3] ss:$0 sm:$0xff] }
 0x36f   :  { %v1546_v40 = vperm.slane %v1540_v11, %v14229_v44  ;;  %v1551_v15 = vrot.slane %v1534_v37, 4  ;;  %v1607_v58 = vrot.slane %v1588_v57, 4  ;;  %v1612_v63 = vsel %vm209_vm1, %v1604_v55, %v1611_v62  ;;  %1724 = vmatpush.bf16.msra.mxu3 %v13239_v60  ;;  %v13238_v31 = vld [vmem:[%s18609_s4 + $0x30] sm:$0xff]  ;;  %v13243_v62 = vld [vmem:[%s18609_s4 + $0x58] sm:$0xff] }
 0x370   :  { %v1554_v26 = vsel %vm209_vm1, 0.0, %v1553_v14  ;;  %v1557_v56 = vrot.slane %v1550_v45, 4  ;;  %v1613_v28 = vsel %vm209_vm1, %v1553_v14, %v1534_v37  ;;  %v1610_v7 = vsel %vm209_vm1, %v1609_v30, %v1592_v16  ;;  %1871 = vmatpush.bf16.msrb.mxu1 %v13243_v62 }
 0x371   :  { %v1552_v42 = vsel %vm209_vm1, 0.0, %v1551_v15  ;;  %v1555_v49 = vrot.slane %v1546_v40, 4  ;;  %v1618_v41 = vrot.slane %v1554_v26, 4  ;;  %v1617_v19 = vperm.slane %v1613_v28, %v14217_v27 }
 0x372   :  { %v1558_v34 = vsel %vm209_vm1, 0.0, %v1557_v56  ;;  %v1624_v20 = vsel %vm209_vm1, %v1557_v56, %v1546_v40  ;;  %v1608_v8 = vsel %vm209_vm1, %v1600_v2, %v1607_v58 }
 0x373   :  { %v1556_v47 = vsel %vm209_vm1, 0.0, %v1555_v49  ;;  %v1619_v12 = vsel %vm209_vm1, %v1618_v41, %v1552_v42  ;;  %v1629_v61 = vrot.slane %v1558_v34, 4  ;;  %v1628_v50 = vperm.slane %v1624_v20, %v14217_v27  ;;  %1725 = vmatpush.bf16.msra.mxu3 %v13238_v31  ;;  %v14064_v20 = vld [vmem:[%s18610_s0] sm:$0xff] }
 0x374   :  { %v1623_v23 = vperm.slane %v1619_v12, %v14217_v27  ;;  %v1637_v38 = vrot.slane %v1617_v19, 4 }
 0x375   :  { %v1630_v59 = vsel %vm209_vm1, %v1629_v61, %v1556_v47  ;;  %v1649_v6 = vrot.slane %v1628_v50, 4 }
 0x376   :  { %v1634_v24 = vperm.slane %v1630_v59, %v14217_v27  ;;  %v1638_v29 = vsel %vm209_vm1, %v1623_v23, %v1637_v38  ;;  %v1635_v46 = vrot.slane %v1623_v23, 4  ;;  %v14065_v23 = vld [vmem:[%s18610_s0 + $0x8] sm:$0xff] }
 0x377   :  { %v1646_v54 = vperm.slane %v1638_v29, %v14229_v44  ;;  %v13242_v29 = vld [vmem:[%s18609_s4 + $0x50] sm:$0xff] }
 0x378   :  { %v1650_v25 = vsel %vm209_vm1, %v1634_v24, %v1649_v6  ;;  %v1636_v36 = vsel %vm209_vm1, %v1635_v46, %v1617_v19  ;;  %v1647_v43 = vrot.slane %v1634_v24, 4  ;;  %v68_v46 = vld [vmem:[%s18613_s1] sm:$0xff]  ;;  %1872 = vmatpush.bf16.msrb.mxu1 %v13242_v29  ;;  %v13245_v29 = vld [vmem:[%s18609_s4 + $0x68] sm:$0xff] }
 0x379   :  { %v1658_v48 = vperm.slane %v1650_v25, %v14229_v44  ;;  %v1665_v51 = vrot.slane %v1646_v54, 4  ;;  %v1642_v35 = vperm.slane %v1636_v36, %v14229_v44  ;;  %1907 = vmatpush.bf16.msrb.mxu2 %v13245_v29 }
 0x37a   :  { %v1648_v0 = vsel %vm209_vm1, %v1647_v43, %v1628_v50 }
 0x37b   :  { %v1666_v1 = vsel %vm209_vm1, %v1658_v48, %v1665_v51  ;;  %v1663_v3 = vrot.slane %v1658_v48, 4  ;;  %v1654_v22 = vperm.slane %v1648_v0, %v14229_v44  ;;  %v1661_v21 = vrot.slane %v1642_v35, 4 }
 0x37c   :  { %v13628_v5 = vpack.i.bf16 %v1666_v1, %v1612_v63 }
 0x37d   :  { %v1664_v52 = vsel %vm209_vm1, %v1663_v3, %v1646_v54  ;;  %v1659_v37 = vrot.slane %v1654_v22, 4  ;;  %v1662_v9 = vsel %vm209_vm1, %v1654_v22, %v1661_v21  ;;  %v69_v54 = vld [vmem:[%s18613_s1 + $0x8] sm:$0xff] }
 0x37e   :  { %13629 = vrot.lane.b32.xlu1 %v13628_v5, %s14072_s23  ;;  %v13623_v10 = vpack.i.bf16 %v1664_v52, %v1610_v7  ;;  %v13618_v11 = vpack.i.bf16 %v1662_v9, %v1608_v8  ;;  %v14831_v25 = vpack.c.bf16 %v69_v54, %v68_v46  ;;  %v13241_v8 = vld [vmem:[%s18609_s4 + $0x48] sm:$0xff]  ;;  %v13744_v9 = vld [vmem:[%s18611_s5 + $0x5] ss:$0 sm:$0xff] }
 0x37f   :  { %v1660_v13 = vsel %vm209_vm1, %v1659_v37, %v1642_v35  ;;  %1831 = vmatpush.bf16.msrb.mxu0 %v13241_v8  ;;  %v13240_v37 = vld [vmem:[%s18609_s4 + $0x40] sm:$0xff] }
 0x380   :  { %13624 = vrot.lane.b32.xlu2 %v13623_v10, %s14073_s24  ;;  %13619 = vrot.lane.b32.xlu0 %v13618_v11, %s14074_s25 }
 0x381   :  { %11408 = vmatmul.msk.bf16.vlgmr.msrb.gmra.mxu1 %vm91_vm0, %v14831_v25 }
 0x383   :  { %1832 = vmatpush.bf16.msrb.mxu0 %v13240_v37 }
 0x3da   :  { %v13625_v33 = vpop.permute.xlu2 %13624 }
 0x3db   :  { %v13627_v14 = vunpack.i.h.bf16 %v13625_v33  ;;  %v13626_v16 = vunpack.i.l.bf16 %v13625_v33 }
 0x3f0   :  { %v13630_v17 = vpop.permute.xlu1 %13629 }
 0x3f1   :  { %v13632_v18 = vunpack.i.h.bf16 %v13630_v17  ;;  %v13631_v2 = vunpack.i.l.bf16 %v13630_v17 }
 0x3f2   :  { %v13620_v40 = vpop.permute.xlu0 %13619 }
 0x3f3   :  { %v13622_v45 = vunpack.i.h.bf16 %v13620_v40  ;;  %v13621_v15 = vunpack.i.l.bf16 %v13620_v40 }
 0x3f5   :  { %v1691_v42 = vsel %vm933_vm2, %v1606_v39, %v13621_v15  ;;  %v1692_v26 = vsel %vm933_vm2, %v1660_v13, %v13622_v45  ;;  %v14075_v39 = vmov 32.0  }
 0x3f6   :  { %v1694_v49 = vsel %vm1693_vm13, %v1691_v42, %v13626_v16  ;;  %v1695_v56 = vsel %vm1693_vm13, %v1692_v26, %v13627_v14  ;;  %13806 = vrcp.f32 %v14075_v39 }
 0x3f7   :  { %v1697_v28 = vsel %vm1696_vm14, %v1694_v49, %v13631_v2  ;;  %v1698_v41 = vsel %vm1696_vm14, %v1695_v56, %v13632_v18 }
 0x3f8   :  { %v1699_v57 = vpack.c.bf16 %v1698_v41, %v1697_v28  ;;  %v13742_v41 = vld [vmem:[%s18611_s5 + $0x9] ss:$0 sm:$0xff] }
 0x3fa   :  { %11378 = vmatmul.msk.bf16.vlgmr.msra.gmra.mxu3 %vm91_vm0, %v1699_v57 }
 0x3fc   :  { %v13807_v59 = vpop.eup %13806 }
 0x3fd   :  { %v1745_v6 = vmul.f32 32.0, %v13807_v59  ;;  %vm1749_vm15 = vweird.f32 %v13807_v59 }
 0x3fe   :  { %v1874_v10 = vpop.f32.mrf.mxu1 }
 0x3ff   :  { %v1746_v24 = vsub.f32 1.0, %v1745_v6  ;;  %v1875_v60 = vadd.f32 %v13744_v9, %v1874_v10 }
 0x401   :  { %v1747_v30 = vmul.f32 %v13807_v59, %v1746_v24  ;;  %v2192_v54 = vrot.slane %v1875_v60, 4 }
 0x403   :  { %v1748_v36 = vadd.f32 %v13807_v59, %v1747_v30 }
 0x405   :  { %v14835_v43 = vsel %vm1749_vm15, %v13807_v59, %v1748_v36 }
 0x406   :  { %v1876_v45 = vpop.f32.mrf.mxu1 }
 0x407   :  { %v14854_v14 = vadd.f32 %v13744_v9, %v1876_v45 }
 0x47d   :  { %v1727_v34 = vpop.f32.mrf.mxu3 }
 0x47e   :  { %v1728_v19 = vadd.f32 %v13741_v53, %v1727_v34 }
 0x480   :  { %v1732_v47 = vadd.f32 %v14064_v20, %v1728_v19  ;;  %v13743_v19 = vld [vmem:[%s18611_s5 + $0xa] ss:$0 sm:$0xff] }
 0x482   :  { %v1738_v12 = vsel %vm91_vm0, %v1732_v47, 0.0 }
 0x483   :  { %1739 = vadd.xlane.f32.xlu0 %v1738_v12 }
 0x485   :  { %v1729_v61 = vpop.f32.mrf.mxu3 }
 0x486   :  { %v1730_v50 = vadd.f32 %v13741_v53, %v1729_v61 }
 0x488   :  { %v1733_v38 = vadd.f32 %v14065_v23, %v1730_v50 }
 0x48a   :  { %v1741_v55 = vsel %vm91_vm0, %v1733_v38, 0.0 }
 0x48b   :  { %1742 = vadd.xlane.f32.xlu2 %v1741_v55 }
 0x4f6   :  { %v1740_v48 = vpop.xlane.xlu0 %1739 }
 0x4f7   :  { %v1751_v51 = vmul.f32 %v14835_v43, %v1740_v48 }
 0x4f9   :  { %v1753_v58 = vsub.f32 %v1732_v47, %v1751_v51 }
 0x4fb   :  { %v1755_v35 = vmul.f32 %v1753_v58, %v1753_v58 }
 0x4fd   :  { %v1757_v63 = vsel %vm91_vm0, %v1755_v35, 0.0 }
 0x4fe   :  { %v1743_v0 = vpop.xlane.xlu2 %1742  ;;  %1758 = vadd.xlane.f32.xlu1 %v1757_v63  ;;  %v13244_v63 = vld [vmem:[%s18609_s4 + $0x60] sm:$0xff] }
 0x4ff   :  { %v1752_v1 = vmul.f32 %v14835_v43, %v1743_v0  ;;  %1908 = vmatpush.bf16.msrb.mxu2 %v13244_v63 }
 0x501   :  { %v1754_v3 = vsub.f32 %v1733_v38, %v1752_v1  ;;  %v13745_v38 = vld [vmem:[%s18611_s5 + $0x4] ss:$0 sm:$0xff] }
 0x502   :  { %11422 = vmatmul.msk.bf16.vlgmr.msrb.gmra.mxu2 %vm91_vm0, %v14831_v25 }
 0x503   :  { %v1756_v22 = vmul.f32 %v1754_v3, %v1754_v3 }
 0x505   :  { %v1760_v21 = vsel %vm91_vm0, %v1756_v22, 0.0 }
 0x506   :  { %1761 = vadd.xlane.f32.xlu0 %v1760_v21 }
 0x517   :  { %2184 = vrot.lane.b32.xlu1 %v1875_v60, %s14066_s29 }
 0x51a   :  { %2178 = vrot.lane.b32.xlu0 %v1875_v60, %s14068_s15 }
 0x51f   :  { %2174 = vrot.lane.b32.xlu1 %v14854_v14, %s14067_s30 }
 0x571   :  { %v1759_v5 = vpop.xlane.xlu1 %1758 }
 0x572   :  { %v1763_v7 = vmul.f32 %v1759_v5, %v14835_v43 }
 0x574   :  { %v1765_v52 = vadd.f32 1e-05, %v1763_v7 }
 0x576   :  { %13808 = vrsqrt.f32 %v1765_v52  ;;  %vm1773_vm5 = vweird.f32 %v1765_v52 }
 0x579   :  { %v1762_v11 = vpop.xlane.xlu0 %1761 }
 0x57a   :  { %v1764_v13 = vmul.f32 %v1762_v11, %v14835_v43 }
 0x57c   :  { %v13809_v31 = vpop.eup %13808  ;;  %v1766_v33 = vadd.f32 1e-05, %v1764_v13 }
 0x57d   :  { %v1768_v17 = vmul.f32 %v13809_v31, %v1765_v52  ;;  %vm1774_vm3 = vweird.f32 %v13809_v31 }
 0x57e   :  { %13810 = vrsqrt.f32 %v1766_v33  ;;  %vm1775_vm6 = vmor %vm1773_vm5, %vm1774_vm3  ;;  %vm1783_vm8 = vweird.f32 %v1766_v33 }
 0x57f   :  { %v1769_v40 = vmul.f32 %v13809_v31, %v1768_v17 }
 0x581   :  { %v1770_v15 = vmul.f32 0.5, %v1769_v40 }
 0x583   :  { %v1771_v16 = vsub.f32 1.5, %v1770_v15 }
 0x584   :  { %v13811_v18 = vpop.eup %13810 }
 0x585   :  { %v1772_v2 = vmul.f32 %v13809_v31, %v1771_v16  ;;  %v1778_v42 = vmul.f32 %v13811_v18, %v1766_v33  ;;  %vm1784_vm7 = vweird.f32 %v13811_v18 }
 0x586   :  { %vm1785_vm9 = vmor %vm1783_vm8, %vm1784_vm7 }
 0x587   :  { %v1779_v26 = vmul.f32 %v13811_v18, %v1778_v42  ;;  %v1776_v49 = vsel %vm1775_vm6, %v13809_v31, %v1772_v2 }
 0x588   :  { %v1787_v57 = vmul.f32 %v1776_v49, %v1753_v58 }
 0x589   :  { %v1780_v56 = vmul.f32 0.5, %v1779_v26  ;;  %v2185_v30 = vpop.permute.xlu1 %2184 }
 0x58a   :  { %v1792_v20 = vmul.f32 %v13742_v41, %v1787_v57  ;;  %v2202_v51 = vrot.slane %v2185_v30, 4 }
 0x58b   :  { %v1781_v28 = vsub.f32 1.5, %v1780_v56 }
 0x58c   :  { %v14864_v61 = vadd.f32 %v13743_v19, %v1792_v20  ;;  %v2179_v24 = vpop.permute.xlu0 %2178 }
 0x58d   :  { %v1782_v53 = vmul.f32 %v13811_v18, %v1781_v28  ;;  %v2190_v46 = vrot.slane %v2179_v24, 4  ;;  %v2193_v48 = vsel %vm209_vm1, %v2179_v24, %v2192_v54 }
 0x58e   :  { %v2201_v0 = vperm.slane %v2193_v48, %v14217_v27 }
 0x58f   :  { %v1786_v34 = vsel %vm1785_vm9, %v13811_v18, %v1782_v53  ;;  %v2191_v36 = vsel %vm209_vm1, %v2190_v46, %v1875_v60 }
 0x590   :  { %v1788_v47 = vmul.f32 %v1786_v34, %v1754_v3  ;;  %v2197_v58 = vperm.slane %v2191_v36, %v14217_v27  ;;  %v2228_v7 = vrot.slane %v2201_v0, 4 }
 0x591   :  { %v2175_v15 = vpop.permute.xlu1 %2174 }
 0x592   :  { %v1793_v12 = vmul.f32 %v13742_v41, %v1788_v47  ;;  %v2216_v21 = vrot.slane %v2197_v58, 4  ;;  %v2260_v53 = vrot.slane %v2175_v15, 4 }
 0x594   :  { %v14866_v50 = vadd.f32 %v13743_v19, %v1793_v12 }
 0x596   :  { %v1804_v23 = vpack.c.bf16 %v14866_v50, %v14864_v61 }
 0x598   :  { %11394 = vmatmul.msk.bf16.vlgmr.msrb.gmra.mxu0 %vm91_vm0, %v1804_v23 }
 0x615   :  { %v1834_v55 = vpop.f32.mrf.mxu0 }
 0x616   :  { %v14874_v39 = vadd.f32 %v13745_v38, %v1834_v55 }
 0x618   :  { %1930 = vrot.lane.b32.xlu0 %v14874_v39, %s14068_s15  ;;  %v13633_v59 = vpack.i.bf16 %v14874_v39, %v1875_v60 }
 0x61a   :  { %13634 = vrot.lane.b32.xlu2 %v13633_v59, %s14067_s30 }
 0x61d   :  { %v1836_v6 = vpop.f32.mrf.mxu0 }
 0x61e   :  { %v14880_v62 = vadd.f32 %v13745_v38, %v1836_v6 }
 0x620   :  { %1926 = vrot.lane.b32.xlu1 %v14880_v62, %s14067_s30  ;;  %2180 = vrot.lane.b32.xlu0 %v14854_v14, %s14068_s15 }
 0x622   :  { %1936 = vrot.lane.b32.xlu2 %v14874_v39, %s14066_s29 }
 0x628   :  { %1932 = vrot.lane.b32.xlu0 %v14880_v62, %s14068_s15 }
 0x62a   :  { %2186 = vrot.lane.b32.xlu2 %v14854_v14, %s14066_s29 }
 0x632   :  { %1938 = vrot.lane.b32.xlu2 %v14880_v62, %s14066_s29 }
 0x674   :  { %v13635_v35 = vpop.permute.xlu2 %13634 }
 0x675   :  { %v13636_v1 = vunpack.i.l.bf16 %v13635_v35  ;;  %v13637_v8 = vunpack.i.h.bf16 %v13635_v35 }
 0x677   :  { %v2203_v3 = vsel %vm209_vm1, %v2202_v51, %v13636_v1  ;;  %v2204_v22 = vrot.slane %v13636_v1, 4  ;;  %v1956_v16 = vrot.slane %v13637_v8, 4 }
 0x678   :  { %v2209_v5 = vperm.slane %v2203_v3, %v14217_v27 }
 0x679   :  { %v2205_v52 = vsel %vm209_vm1, %v2185_v30, %v2204_v22  ;;  %v1944_v22 = vrot.slane %v14874_v39, 4 }
 0x67a   :  { %v2213_v37 = vperm.slane %v2205_v52, %v14217_v27  ;;  %v2214_v9 = vrot.slane %v2209_v5, 4  ;;  %v2217_v10 = vsel %vm209_vm1, %v2209_v5, %v2216_v21  ;;  %v2248_v5 = vrot.slane %v14854_v14, 4 }
 0x67b   :  { %v2225_v11 = vperm.slane %v2217_v10, %v14229_v44 }
 0x67c   :  { %v2215_v13 = vsel %vm209_vm1, %v2214_v9, %v2197_v58  ;;  %v2226_v60 = vrot.slane %v2213_v37, 4  ;;  %v2229_v31 = vsel %vm209_vm1, %v2213_v37, %v2228_v7  ;;  %v1937_v33 = vpop.permute.xlu2 %1936  ;;  %v2000_v37 = vrot.slane %v14880_v62, 4 }
 0x67d   :  { %v2221_v17 = vperm.slane %v2215_v13, %v14229_v44  ;;  %v2237_v40 = vperm.slane %v2229_v31, %v14229_v44  ;;  %v2240_v45 = vrot.slane %v2225_v11, 4  ;;  %v1954_v2 = vrot.slane %v1937_v33, 4 }
 0x67e   :  { %v2227_v18 = vsel %vm209_vm1, %v2226_v60, %v2201_v0  ;;  %v1957_v57 = vsel %vm209_vm1, %v1937_v33, %v1956_v16 }
 0x67f   :  { %v2233_v42 = vperm.slane %v2227_v18, %v14229_v44  ;;  %v2238_v26 = vrot.slane %v2221_v17, 4  ;;  %v2241_v49 = vsel %vm209_vm1, 0.0, %v2240_v45  ;;  %v2244_v56 = vrot.slane %v2237_v40, 4 }
 0x680   :  { %v2302_v28 = vsel %vm209_vm1, %v2240_v45, %v2221_v17  ;;  %v2307_v41 = vrot.slane %v2241_v49, 4  ;;  %v1955_v23 = vsel %vm209_vm1, %v1954_v2, %v13637_v8  ;;  %v1965_v29 = vperm.slane %v1957_v57, %v14217_v27 }
 0x681   :  { %v2239_v34 = vsel %vm209_vm1, 0.0, %v2238_v26  ;;  %v2242_v19 = vrot.slane %v2233_v42, 4  ;;  %v2245_v20 = vsel %vm209_vm1, 0.0, %v2244_v56  ;;  %v2306_v47 = vperm.slane %v2302_v28, %v14217_v27 }
 0x682   :  { %v2318_v12 = vrot.slane %v2245_v20, 4  ;;  %v2308_v38 = vsel %vm209_vm1, %v2307_v41, %v2239_v34  ;;  %v2313_v6 = vsel %vm209_vm1, %v2244_v56, %v2233_v42  ;;  %v1961_v35 = vperm.slane %v1955_v23, %v14217_v27 }
 0x683   :  { %v2243_v55 = vsel %vm209_vm1, 0.0, %v2242_v19  ;;  %v2312_v59 = vperm.slane %v2308_v38, %v14217_v27  ;;  %v2326_v24 = vrot.slane %v2306_v47, 4  ;;  %v2317_v54 = vperm.slane %v2313_v6, %v14217_v27 }
 0x684   :  { %v2187_v46 = vpop.permute.xlu2 %2186  ;;  %v2319_v30 = vsel %vm209_vm1, %v2318_v12, %v2243_v55  ;;  %v1966_v60 = vrot.slane %v1961_v35, 4  ;;  %v1978_v31 = vrot.slane %v1965_v29, 4 }
 0x685   :  { %v2258_v36 = vrot.slane %v2187_v46, 4  ;;  %v2261_v48 = vsel %vm209_vm1, %v2187_v46, %v2260_v53  ;;  %v2323_v51 = vperm.slane %v2319_v30, %v14217_v27  ;;  %v2327_v58 = vsel %vm209_vm1, %v2312_v59, %v2326_v24 }
 0x686   :  { %v2335_v63 = vperm.slane %v2327_v58, %v14229_v44  ;;  %v2338_v0 = vrot.slane %v2317_v54, 4  ;;  %v2324_v1 = vrot.slane %v2312_v59, 4  ;;  %v14941_v7 = vperm.slane %v2261_v48, %v14217_v27 }
 0x687   :  { %v2259_v3 = vsel %vm209_vm1, %v2258_v36, %v2175_v15  ;;  %v2336_v21 = vrot.slane %v2323_v51, 4 }
 0x688   :  { %v2339_v52 = vsel %vm209_vm1, %v2323_v51, %v2338_v0  ;;  %v2354_v8 = vrot.slane %v2335_v63, 4  ;;  %v14946_v9 = vperm.slane %v2259_v3, %v14217_v27  ;;  %v2325_v11 = vsel %vm209_vm1, %v2324_v1, %v2306_v47 }
 0x689   :  { %v2347_v10 = vperm.slane %v2339_v52, %v14229_v44  ;;  %v2337_v13 = vsel %vm209_vm1, %v2336_v21, %v2317_v54  ;;  %v2331_v17 = vperm.slane %v2325_v11, %v14229_v44  ;;  %v2282_v28 = vrot.slane %v14941_v7, 4 }
 0x68a   :  { %v1931_v33 = vpop.permute.xlu0 %1930  ;;  %v2343_v40 = vperm.slane %v2337_v13, %v14229_v44  ;;  %v2270_v56 = vrot.slane %v14946_v9, 4 }
 0x68b   :  { %v1942_v45 = vrot.slane %v1931_v33, 4  ;;  %v1945_v15 = vsel %vm209_vm1, %v1931_v33, %v1944_v22  ;;  %v2355_v16 = vsel %vm209_vm1, %v2347_v10, %v2354_v8  ;;  %v2352_v18 = vrot.slane %v2347_v10, 4 }
 0x68c   :  { %v1953_v2 = vperm.slane %v1945_v15, %v14217_v27  ;;  %v2413_v42 = vpack.c.bf16 %v2355_v16, %v2355_v16  ;;  %v2350_v26 = vrot.slane %v2331_v17, 4  ;;  %v2348_v49 = vrot.slane %v2343_v40, 4  ;;  %v1939_v12 = vpop.permute.xlu2 %1938 }
 0x68d   :  { %v1943_v41 = vsel %vm209_vm1, %v1942_v45, %v14874_v39  ;;  %v2353_v57 = vsel %vm209_vm1, %v2352_v18, %v2335_v63  ;;  %v2010_v51 = vrot.slane %v1939_v12, 4 }
 0x68e   :  { %v1949_v53 = vperm.slane %v1943_v41, %v14217_v27  ;;  %v1979_v34 = vsel %vm209_vm1, %v1978_v31, %v1953_v2  ;;  %v1980_v19 = vrot.slane %v1953_v2, 4  ;;  %v2727_v20 = vsel %vm933_vm2, %v2413_v42, 0 }
 0x68f   :  { %v1985_v47 = vperm.slane %v1979_v34, %v14229_v44  ;;  %2736 = vmatpush.bf16.xpose.msra.mxu2 %v2727_v20  ;;  %v2351_v23 = vsel %vm209_vm1, %v2343_v40, %v2350_v26  ;;  %v2412_v38 = vpack.c.bf16 %v2353_v57, %v2353_v57  ;;  %v2349_v55 = vsel %vm209_vm1, %v2348_v49, %v2331_v17 }
 0x690   :  { %v1967_v39 = vsel %vm209_vm1, %v1966_v60, %v1949_v53  ;;  %v1968_v59 = vrot.slane %v1949_v53, 4  ;;  %v1981_v6 = vsel %vm209_vm1, %v1965_v29, %v1980_v19  ;;  %v2411_v24 = vpack.c.bf16 %v2351_v23, %v2351_v23 }
 0x691   :  { %v1973_v46 = vperm.slane %v1967_v39, %v14229_v44  ;;  %v1989_v54 = vperm.slane %v1981_v6, %v14229_v44  ;;  %v1994_v30 = vrot.slane %v1985_v47, 4  ;;  %v2708_v36 = vsel %vm933_vm2, %v2412_v38, 0 }
 0x692   :  { %v1969_v48 = vsel %vm209_vm1, %v1961_v35, %v1968_v59  ;;  %v2689_v58 = vsel %vm933_vm2, %v2411_v24, 0  ;;  %2717 = vmatpush.bf16.xpose.msra.mxu1 %v2708_v36  ;;  %v1927_v63 = vpop.permute.xlu1 %1926  ;;  %v2410_v0 = vpack.c.bf16 %v2349_v55, %v2349_v55  ;;  %v2181_v1 = vpop.permute.xlu0 %2180 }
 0x693   :  { %v1977_v3 = vperm.slane %v1969_v48, %v14229_v44  ;;  %v1990_v29 = vrot.slane %v1973_v46, 4  ;;  %v1995_v22 = vsel %vm209_vm1, 0.0, %v1994_v30  ;;  %v1996_v21 = vrot.slane %v1989_v54, 4  ;;  %2698 = vmatpush.bf16.xpose.msra.mxu0 %v2689_v58 }
 0x694   :  { %v2011_v52 = vsel %vm209_vm1, %v2010_v51, %v1927_v63  ;;  %v2012_v8 = vrot.slane %v1927_v63, 4  ;;  %v2670_v10 = vsel %vm933_vm2, %v2410_v0, 0  ;;  %v2246_v35 = vrot.slane %v2181_v1, 4 }
 0x695   :  { %v1991_v11 = vsel %vm209_vm1, 0.0, %v1990_v29  ;;  %v1992_v13 = vrot.slane %v1977_v3, 4  ;;  %v1997_v60 = vsel %vm209_vm1, 0.0, %v1996_v21  ;;  %v2065_v31 = vsel %vm209_vm1, %v1996_v21, %v1985_v47  ;;  %2679 = vmatpush.bf16.xpose.msrb.mxu3 %v2670_v10 }
 0x696   :  { %v14982_v33 = vperm.slane %v2065_v31, %v14217_v27  ;;  %v2070_v17 = vrot.slane %v1997_v60, 4  ;;  %v2013_v40 = vsel %vm209_vm1, %v1939_v12, %v2012_v8  ;;  %v2017_v45 = vperm.slane %v2011_v52, %v14217_v27 }
 0x697   :  { %v1993_v15 = vsel %vm209_vm1, 0.0, %v1992_v13  ;;  %v2054_v16 = vsel %vm209_vm1, %v1992_v13, %v1973_v46  ;;  %v2021_v18 = vperm.slane %v2013_v40, %v14217_v27  ;;  %v2247_v2 = vsel %vm209_vm1, %v2246_v35, %v14854_v14 }
 0x698   :  { %v14992_v42 = vperm.slane %v2054_v16, %v14217_v27  ;;  %v2059_v26 = vrot.slane %v1993_v15, 4  ;;  %v2071_v49 = vsel %vm209_vm1, %v2070_v17, %v1995_v22  ;;  %v2090_v41 = vrot.slane %v14982_v33, 4 }
 0x699   :  { %v2075_v57 = vperm.slane %v2071_v49, %v14217_v27  ;;  %v2022_v53 = vrot.slane %v2017_v45, 4  ;;  %v2034_v34 = vrot.slane %v2021_v18, 4  ;;  %v2249_v19 = vsel %vm209_vm1, %v2181_v1, %v2248_v5 }
 0x69a   :  { %v2060_v20 = vsel %vm209_vm1, %v2059_v26, %v1991_v11  ;;  %v2078_v47 = vrot.slane %v14992_v42, 4  ;;  %v2253_v12 = vperm.slane %v2247_v2, %v14217_v27  ;;  %v2257_v23 = vperm.slane %v2249_v19, %v14217_v27  ;;  %v1933_v38 = vpop.permute.xlu0 %1932 }
 0x69b   :  { %v2064_v55 = vperm.slane %v2060_v20, %v14217_v27  ;;  %v2088_v39 = vrot.slane %v2075_v57, 4  ;;  %v1998_v59 = vrot.slane %v1933_v38, 4  ;;  %v2001_v6 = vsel %vm209_vm1, %v1933_v38, %v2000_v37 }
 0x69c   :  { %v2271_v14 = vsel %vm209_vm1, %v2270_v56, %v2253_v12  ;;  %v2272_v5 = vrot.slane %v2253_v12, 4  ;;  %v2283_v24 = vsel %vm209_vm1, %v2282_v28, %v2257_v23  ;;  %v2284_v46 = vrot.slane %v2257_v23, 4 }
 0x69d   :  { %v2076_v54 = vrot.slane %v2064_v55, 4  ;;  %v2089_v30 = vsel %vm209_vm1, %v2088_v39, %v14982_v33  ;;  %v2277_v36 = vperm.slane %v2271_v14, %v14229_v44  ;;  %v2289_v48 = vperm.slane %v2283_v24, %v14229_v44 }
 0x69e   :  { %v2273_v37 = vsel %vm209_vm1, %v14946_v9, %v2272_v5  ;;  %v2285_v56 = vsel %vm209_vm1, %v14941_v7, %v2284_v46  ;;  %v1999_v51 = vsel %vm209_vm1, %v1998_v59, %v14880_v62  ;;  %v2009_v28 = vperm.slane %v2001_v6, %v14217_v27 }
 0x69f   :  { %v2281_v58 = vperm.slane %v2273_v37, %v14229_v44  ;;  %v2293_v63 = vperm.slane %v2285_v56, %v14229_v44  ;;  %v2294_v0 = vrot.slane %v2277_v36, 4  ;;  %v2298_v1 = vrot.slane %v2289_v48, 4 }
 0x6a0   :  { %v2005_v3 = vperm.slane %v1999_v51, %v14217_v27  ;;  %v2035_v29 = vsel %vm209_vm1, %v2034_v34, %v2009_v28  ;;  %v2036_v22 = vrot.slane %v2009_v28, 4  ;;  %v2079_v9 = vsel %vm209_vm1, %v2064_v55, %v2078_v47 }
 0x6a1   :  { %v15031_v7 = vsel %vm209_vm1, 0.0, %v2294_v0  ;;  %v2296_v21 = vrot.slane %v2281_v58, 4  ;;  %v2299_v62 = vsel %vm209_vm1, 0.0, %v2298_v1  ;;  %v2300_v52 = vrot.slane %v2293_v63, 4 }
 0x6a2   :  { %v2023_v8 = vsel %vm209_vm1, %v2022_v53, %v2005_v3  ;;  %v2024_v10 = vrot.slane %v2005_v3, 4  ;;  %v2037_v35 = vsel %vm209_vm1, %v2021_v18, %v2036_v22  ;;  %v2041_v11 = vperm.slane %v2035_v29, %v14229_v44 }
 0x6a3   :  { %v2297_v13 = vsel %vm209_vm1, 0.0, %v2296_v21  ;;  %v2301_v60 = vsel %vm209_vm1, 0.0, %v2300_v52  ;;  %v2356_v31 = vsel %vm209_vm1, %v2296_v21, %v2277_v36  ;;  %v2367_v33 = vsel %vm209_vm1, %v2300_v52, %v2289_v48 }
 0x6a4   :  { %v2361_v17 = vrot.slane %v2297_v13, 4  ;;  %v2371_v40 = vperm.slane %v2367_v33, %v14217_v27  ;;  %v2372_v15 = vrot.slane %v2301_v60, 4  ;;  %v2025_v16 = vsel %vm209_vm1, %v2017_v45, %v2024_v10 }
 0x6a5   :  { %v2029_v2 = vperm.slane %v2023_v8, %v14229_v44  ;;  %v2033_v18 = vperm.slane %v2025_v16, %v14229_v44  ;;  %v2045_v26 = vperm.slane %v2037_v35, %v14229_v44  ;;  %v2050_v49 = vrot.slane %v2041_v11, 4 }
 0x6a6   :  { %v2373_v53 = vsel %vm209_vm1, %v2372_v15, %v2299_v62  ;;  %v2392_v34 = vrot.slane %v2371_v40, 4  ;;  %v2087_v19 = vperm.slane %v2079_v9, %v14229_v44  ;;  %v2091_v20 = vsel %vm209_vm1, %v2075_v57, %v2090_v41 }
 0x6a7   :  { %v2377_v47 = vperm.slane %v2373_v53, %v14217_v27  ;;  %v2046_v12 = vrot.slane %v2029_v2, 4  ;;  %v2048_v23 = vrot.slane %v2033_v18, 4  ;;  %v2051_v45 = vsel %vm209_vm1, 0.0, %v2050_v49 }
 0x6a8   :  { %v2052_v38 = vrot.slane %v2045_v26, 4  ;;  %v2099_v55 = vperm.slane %v2091_v20, %v14229_v44  ;;  %v2077_v39 = vsel %vm209_vm1, %v2076_v54, %v14992_v42  ;;  %v2095_v59 = vperm.slane %v2089_v30, %v14229_v44 }
 0x6a9   :  { %v2390_v6 = vrot.slane %v2377_v47, 4  ;;  %v2047_v14 = vsel %vm209_vm1, 0.0, %v2046_v12  ;;  %v2049_v5 = vsel %vm209_vm1, 0.0, %v2048_v23  ;;  %v2108_v41 = vsel %vm209_vm1, %v2048_v23, %v2029_v2 }
 0x6aa   :  { %v2053_v57 = vsel %vm209_vm1, 0.0, %v2052_v38  ;;  %v2112_v24 = vperm.slane %v2108_v41, %v14217_v27  ;;  %v2113_v46 = vrot.slane %v2049_v5, 4  ;;  %v2119_v36 = vsel %vm209_vm1, %v2052_v38, %v2041_v11 }
 0x6ab   :  { %v2123_v48 = vperm.slane %v2119_v36, %v14217_v27  ;;  %v2124_v37 = vrot.slane %v2053_v57, 4  ;;  %v2104_v42 = vrot.slane %v2099_v55, 4  ;;  %v2083_v54 = vperm.slane %v2077_v39, %v14229_v44 }
 0x6ac   :  { %v2114_v30 = vsel %vm209_vm1, %v2113_v46, %v2047_v14  ;;  %v2132_v56 = vrot.slane %v2112_v24, 4  ;;  %v2100_v51 = vrot.slane %v2095_v59, 4  ;;  %v2106_v28 = vrot.slane %v2087_v19, 4 }
 0x6ad   :  { %v2118_v58 = vperm.slane %v2114_v30, %v14217_v27  ;;  %v2125_v63 = vsel %vm209_vm1, %v2124_v37, %v2051_v45  ;;  %v2144_v0 = vrot.slane %v2123_v48, 4  ;;  %v2105_v1 = vsel %vm209_vm1, %v2104_v42, %v2087_v19 }
 0x6ae   :  { %v2129_v3 = vperm.slane %v2125_v63, %v14217_v27  ;;  %v2164_v29 = vpack.c.bf16 %v2105_v1, %v2105_v1  ;;  %v2101_v22 = vsel %vm209_vm1, %v2100_v51, %v2083_v54  ;;  %v2107_v9 = vsel %vm209_vm1, %v2099_v55, %v2106_v28 }
 0x6af   :  { %v2130_v21 = vrot.slane %v2118_v58, 4  ;;  %v2162_v62 = vpack.c.bf16 %v2101_v22, %v2101_v22  ;;  %v2165_v52 = vpack.c.bf16 %v2107_v9, %v2107_v9  ;;  %v2102_v8 = vrot.slane %v2083_v54, 4 }
 0x6b0   :  { %v2142_v10 = vrot.slane %v2129_v3, 4  ;;  %11430 = vmatmul.msk.bf16.vlgmr.msra.gmra.mxu1 %vm933_vm2, %v2164_v29  ;;  %v2360_v35 = vperm.slane %v2356_v31, %v14217_v27  ;;  %v2362_v11 = vsel %vm209_vm1, %v2361_v17, %v15031_v7  ;;  %v2393_v13 = vsel %vm209_vm1, %v2377_v47, %v2392_v34 }
 0x6b1   :  { %11428 = vmatmul.msk.bf16.vlgmr.msrb.gmra.mxu3 %vm933_vm2, %v2162_v62  ;;  %11431 = vmatmul.msk.bf16.vlgmr.msra.gmra.mxu2 %vm933_vm2, %v2165_v52  ;;  %v2103_v60 = vsel %vm209_vm1, %v2095_v59, %v2102_v8  ;;  %v2366_v33 = vperm.slane %v2362_v11, %v14217_v27  ;;  %v2401_v15 = vperm.slane %v2393_v13, %v14229_v44  ;;  %v65_v62 = vld [vmem:[%s18614_s3] sm:$0x3] }
 0x6b2   :  { %v2143_v16 = vsel %vm209_vm1, %v2142_v10, %v2123_v48  ;;  %v2163_v2 = vpack.c.bf16 %v2103_v60, %v2103_v60  ;;  %v2380_v18 = vrot.slane %v2360_v35, 4  ;;  %v2391_v31 = vsel %vm209_vm1, %v2390_v6, %v2371_v40 }
 0x6b3   :  { %v2406_v26 = vrot.slane %v2401_v15, 4  ;;  %v2378_v7 = vrot.slane %v2366_v33, 4  ;;  %v2397_v17 = vperm.slane %v2391_v31, %v14229_v44  ;;  %v2133_v49 = vsel %vm209_vm1, %v2118_v58, %v2132_v56 }
 0x6b4   :  { %11429 = vmatmul.msk.bf16.vlgmr.msra.gmra.mxu0 %vm933_vm2, %v2163_v2  ;;  %v2381_v53 = vsel %vm209_vm1, %v2366_v33, %v2380_v18  ;;  %v2141_v34 = vperm.slane %v2133_v49, %v14229_v44  ;;  %v2145_v19 = vsel %vm209_vm1, %v2129_v3, %v2144_v0  ;;  %v2131_v20 = vsel %vm209_vm1, %v2130_v21, %v2112_v24  ;;  %v1910_v21 = vpop.f32.mrf.mxu2 }
 0x6b5   :  { %v2389_v47 = vperm.slane %v2381_v53, %v14229_v44  ;;  %v2379_v40 = vsel %vm209_vm1, %v2378_v7, %v2360_v35  ;;  %v2402_v12 = vrot.slane %v2397_v17, 4  ;;  %v2153_v23 = vperm.slane %v2145_v19, %v14229_v44 }
 0x6b6   :  { %v2385_v45 = vperm.slane %v2379_v40, %v14229_v44  ;;  %v2149_v38 = vperm.slane %v2143_v16, %v14229_v44  ;;  %v2137_v6 = vperm.slane %v2131_v20, %v14229_v44  ;;  %v2160_v36 = vrot.slane %v2141_v34, 4 }
 0x6b7   :  { %v2407_v55 = vsel %vm209_vm1, %v2406_v26, %v2389_v47  ;;  %v2408_v39 = vrot.slane %v2389_v47, 4  ;;  %v2158_v59 = vrot.slane %v2153_v23, 4  ;;  %v15114_v52 = vperm.slane %v65_v62, 0 }
 0x6b8   :  { %v2416_v14 = vpack.c.bf16 %v2407_v55, %v2407_v55  ;;  %v2403_v5 = vsel %vm209_vm1, %v2402_v12, %v2385_v45  ;;  %v2404_v41 = vrot.slane %v2385_v45, 4  ;;  %v2154_v57 = vrot.slane %v2149_v38, 4 }
 0x6b9   :  { %v2414_v24 = vpack.c.bf16 %v2403_v5, %v2403_v5  ;;  %v2409_v46 = vsel %vm209_vm1, %v2401_v15, %v2408_v39  ;;  %v2159_v56 = vsel %vm209_vm1, %v2158_v59, %v2141_v34  ;;  %v2156_v58 = vrot.slane %v2137_v6, 4 }
 0x6ba   :  { %v2784_v48 = vsel %vm933_vm2, %v2416_v14, 0  ;;  %v2417_v37 = vpack.c.bf16 %v2409_v46, %v2409_v46  ;;  %v2405_v42 = vsel %vm209_vm1, %v2397_v17, %v2404_v41  ;;  %v2155_v28 = vsel %vm209_vm1, %v2154_v57, %v2137_v6  ;;  %v13746_v46 = vld [vmem:[%s18611_s5 + $0x6] ss:$0 sm:$0xff] }
 0x6bb   :  { %2793 = vmatpush.bf16.xpose.msrb.mxu1 %v2784_v48  ;;  %v2746_v54 = vsel %vm933_vm2, %v2414_v24, 0  ;;  %v2415_v30 = vpack.c.bf16 %v2405_v42, %v2405_v42  ;;  %v2161_v0 = vsel %vm209_vm1, %v2153_v23, %v2160_v36  ;;  %v2168_v1 = vpack.c.bf16 %v2159_v56, %v2159_v56 }
 0x6bc   :  { %2755 = vmatpush.bf16.xpose.msra.mxu3 %v2746_v54  ;;  %v2803_v51 = vsel %vm933_vm2, %v2417_v37, 0  ;;  %v2157_v3 = vsel %vm209_vm1, %v2149_v38, %v2156_v58  ;;  %v2166_v29 = vpack.c.bf16 %v2155_v28, %v2155_v28  ;;  %v2169_v22 = vpack.c.bf16 %v2161_v0, %v2161_v0  ;;  %v1912_v8 = vpop.f32.mrf.mxu2 }
 0x6bd   :  { %2812 = vmatpush.bf16.xpose.msrb.mxu2 %v2803_v51  ;;  %v2765_v63 = vsel %vm933_vm2, %v2415_v30, 0  ;;  %v2167_v9 = vpack.c.bf16 %v2157_v3, %v2157_v3  ;;  %v2819_v7 = vrot.slane %v65_v62, 1  ;;  %v15140_v36 = vadd.f32 %v13746_v46, %v1910_v21 }
 0x6be   :  { %2774 = vmatpush.bf16.xpose.msrb.mxu0 %v2765_v63  ;;  %v15142_v48 = vadd.f32 %v13746_v46, %v1912_v8 }
 0x6bf   :  { %v15124_v19 = vperm.slane %v2819_v7, 0 }
 0x6c0   :  { %v13643_v37 = vpack.i.bf16 %v15142_v48, %v15140_v36 }
 0x6c2   :  { %11434 = vmatmul.msk.bf16.vlgmr.msrb.gmra.mxu1 %vm933_vm2, %v2168_v1 }
 0x6c3   :  { %11432 = vmatmul.msk.bf16.vlgmr.msra.gmra.mxu3 %vm933_vm2, %v2166_v29 }
 0x6c4   :  { %11435 = vmatmul.msk.bf16.vlgmr.msrb.gmra.mxu2 %vm933_vm2, %v2169_v22 }
 0x6c5   :  { %11433 = vmatmul.msk.bf16.vlgmr.msrb.gmra.mxu0 %vm933_vm2, %v2167_v9 }
 0x72d   :  { %v2719_v10 = vpop.f32.mrf.mxu1 }
 0x72e   :  { %v2826_v35 = vadd.f32 %v15114_v52, %v2719_v10 }
 0x730   :  { %v2838_v11 = vsel %vm933_vm2, %v2826_v35, -inf }
 0x731   :  { %2839 = vmax.xlane.f32.xlu2 %v2838_v11  ;;  %v2700_v13 = vpop.f32.mrf.mxu0 }
 0x732   :  { %v2825_v60 = vadd.f32 %v15114_v52, %v2700_v13 }
 0x734   :  { %v2738_v33 = vpop.f32.mrf.mxu2  ;;  %v2835_v15 = vsel %vm933_vm2, %v2825_v60, -inf  ;;  %v2681_v16 = vpop.f32.mrf.mxu3 }
 0x735   :  { %v2721_v2 = vpop.f32.mrf.mxu1  ;;  %v2827_v18 = vadd.f32 %v15114_v52, %v2738_v33  ;;  %2836 = vmax.xlane.f32.xlu1 %v2835_v15  ;;  %v2824_v26 = vadd.f32 %v15114_v52, %v2681_v16 }
 0x737   :  { %v2841_v31 = vsel %vm933_vm2, %v2827_v18, -inf  ;;  %v2832_v53 = vsel %vm933_vm2, %v2824_v26, -inf }
 0x738   :  { %2842 = vmax.xlane.f32.xlu0 %v2841_v31 }
 0x739   :  { %v2702_v17 = vpop.f32.mrf.mxu0 }
 0x73c   :  { %v2740_v49 = vpop.f32.mrf.mxu2  ;;  %v2683_v34 = vpop.f32.mrf.mxu3 }
 0x73d   :  { %2833 = vmax.xlane.f32.xlu1 %v2832_v53 }
 0x73f   :  { %v2795_v20 = vpop.f32.mrf.mxu1 }
 0x740   :  { %v2830_v47 = vadd.f32 %v15124_v19, %v2795_v20 }
 0x742   :  { %v2776_v40 = vpop.f32.mrf.mxu0  ;;  %v2850_v23 = vsel %vm933_vm2, %v2830_v47, -inf }
 0x743   :  { %v15128_v12 = vadd.f32 %v15124_v19, %v2776_v40 }
 0x745   :  { %2851 = vmax.xlane.f32.xlu1 %v2850_v23  ;;  %v2847_v45 = vsel %vm933_vm2, %v15128_v12, -inf }
 0x746   :  { %2848 = vmax.xlane.f32.xlu0 %v2847_v45  ;;  %v2757_v38 = vpop.f32.mrf.mxu3 }
 0x747   :  { %v2814_v55 = vpop.f32.mrf.mxu2  ;;  %v2797_v39 = vpop.f32.mrf.mxu1  ;;  %v2828_v6 = vadd.f32 %v15124_v19, %v2757_v38 }
 0x748   :  { %v2831_v59 = vadd.f32 %v15124_v19, %v2814_v55 }
 0x749   :  { %v2844_v41 = vsel %vm933_vm2, %v2828_v6, -inf }
 0x74a   :  { %v2853_v14 = vsel %vm933_vm2, %v2831_v59, -inf  ;;  %v2778_v5 = vpop.f32.mrf.mxu0 }
 0x74b   :  { %2854 = vmax.xlane.f32.xlu2 %v2853_v14 }
 0x74e   :  { %2845 = vmax.xlane.f32.xlu0 %v2844_v41  ;;  %v2759_v57 = vpop.f32.mrf.mxu3 }
 0x74f   :  { %v2816_v24 = vpop.f32.mrf.mxu2 }
 0x75e   :  { %13644 = vrot.lane.b32.xlu1 %v13643_v37, %s14068_s15 }
 0x762   :  { %13649 = vrot.lane.b32.xlu0 %v13643_v37, %s14066_s29 }
 0x763   :  { %13639 = vrot.lane.b32.xlu2 %v13643_v37, %s14067_s30 }
 0x7a4   :  { %v2840_v42 = vpop.xlane.xlu2 %2839 }
 0x7a5   :  { %v2858_v54 = vsub.f32 %v2826_v35, %v2840_v42 }
 0x7a7   :  { %v2868_v30 = vmul.f32 1.442695, %v2858_v54 }
 0x7a8   :  { %v2837_v56 = vpop.xlane.xlu1 %2836 }
 0x7a9   :  { %13812 = vpow2.f32 %v2868_v30  ;;  %v2857_v29 = vsub.f32 %v2825_v60, %v2837_v56 }
 0x7ab   :  { %v2843_v51 = vpop.xlane.xlu0 %2842  ;;  %v2866_v21 = vmul.f32 1.442695, %v2857_v29 }
 0x7ac   :  { %v2859_v28 = vsub.f32 %v2827_v18, %v2843_v51 }
 0x7ae   :  { %v2870_v58 = vmul.f32 1.442695, %v2859_v28 }
 0x7af   :  { %v15149_v63 = vpop.eup %13812 }
 0x7b0   :  { %13814 = vpow2.f32 %v2870_v58  ;;  %v2834_v0 = vpop.xlane.xlu1 %2833  ;;  %v2886_v1 = vsel %vm933_vm2, %v15149_v63, 0.0 }
 0x7b1   :  { %v2856_v3 = vsub.f32 %v2824_v26, %v2834_v0  ;;  %2887 = vadd.xlane.f32.xlu1 %v2886_v1 }
 0x7b3   :  { %v2864_v22 = vmul.f32 1.442695, %v2856_v3 }
 0x7b5   :  { %13816 = vpow2.f32 %v2864_v22 }
 0x7b6   :  { %v15153_v9 = vpop.eup %13814  ;;  %13818 = vpow2.f32 %v2866_v21 }
 0x7b7   :  { %v2889_v62 = vsel %vm933_vm2, %v15153_v9, 0.0 }
 0x7b8   :  { %v2852_v8 = vpop.xlane.xlu1 %2851  ;;  %2890 = vadd.xlane.f32.xlu0 %v2889_v62 }
 0x7b9   :  { %v2862_v10 = vsub.f32 %v2830_v47, %v2852_v8  ;;  %v2849_v35 = vpop.xlane.xlu0 %2848 }
 0x7ba   :  { %v2861_v2 = vsub.f32 %v15128_v12, %v2849_v35 }
 0x7bb   :  { %v15157_v11 = vpop.eup %13816  ;;  %v2876_v13 = vmul.f32 1.442695, %v2862_v10 }
 0x7bc   :  { %v2880_v33 = vsel %vm933_vm2, %v15157_v11, 0.0  ;;  %v15161_v16 = vpop.eup %13818  ;;  %v2874_v34 = vmul.f32 1.442695, %v2861_v2 }
 0x7bd   :  { %13820 = vpow2.f32 %v2876_v13  ;;  %2881 = vadd.xlane.f32.xlu2 %v2880_v33  ;;  %v2883_v49 = vsel %vm933_vm2, %v15161_v16, 0.0 }
 0x7be   :  { %v2855_v60 = vpop.xlane.xlu2 %2854 }
 0x7bf   :  { %v2863_v15 = vsub.f32 %v2831_v59, %v2855_v60  ;;  %v2440_v59 = vrot.slane %v15140_v36, 4 }
 0x7c1   :  { %v2878_v18 = vmul.f32 1.442695, %v2863_v15  ;;  %v2846_v31 = vpop.xlane.xlu0 %2845 }
 0x7c2   :  { %v2860_v26 = vsub.f32 %v2828_v6, %v2846_v31  ;;  %v2496_v6 = vrot.slane %v15142_v48, 4 }
 0x7c3   :  { %v15164_v7 = vpop.eup %13820  ;;  %13822 = vpow2.f32 %v2878_v18 }
 0x7c4   :  { %v2872_v17 = vmul.f32 1.442695, %v2860_v26  ;;  %v2898_v53 = vsel %vm933_vm2, %v15164_v7, 0.0 }
 0x7c5   :  { %2884 = vadd.xlane.f32.xlu2 %v2883_v49  ;;  %2899 = vadd.xlane.f32.xlu1 %v2898_v53 }
 0x7c6   :  { %13824 = vpow2.f32 %v2872_v17  ;;  %v13640_v12 = vpop.permute.xlu2 %13639 }
 0x7c7   :  { %13826 = vpow2.f32 %v2874_v34  ;;  %v13642_v38 = vunpack.i.h.bf16 %v13640_v12  ;;  %v13641_v55 = vunpack.i.l.bf16 %v13640_v12 }
 0x7c9   :  { %v15170_v20 = vpop.eup %13822  ;;  %v2508_v42 = vrot.slane %v13642_v38, 4  ;;  %v2452_v54 = vrot.slane %v13641_v55, 4 }
 0x7ca   :  { %v2901_v40 = vsel %vm933_vm2, %v15170_v20, 0.0 }
 0x7cc   :  { %v15172_v47 = vpop.eup %13824 }
 0x7cd   :  { %2902 = vadd.xlane.f32.xlu2 %v2901_v40  ;;  %v2892_v23 = vsel %vm933_vm2, %v15172_v47, 0.0  ;;  %v15178_v45 = vpop.eup %13826 }
 0x7ce   :  { %2893 = vadd.xlane.f32.xlu0 %v2892_v23  ;;  %v2895_v41 = vsel %vm933_vm2, %v15178_v45, 0.0 }
 0x7d0   :  { %v13645_v39 = vpop.permute.xlu1 %13644 }
 0x7d1   :  { %v13647_v14 = vunpack.i.h.bf16 %v13645_v39  ;;  %v13646_v5 = vunpack.i.l.bf16 %v13645_v39 }
 0x7d3   :  { %v2494_v57 = vrot.slane %v13647_v14, 4  ;;  %v2497_v24 = vsel %vm209_vm1, %v13647_v14, %v2496_v6  ;;  %v2438_v46 = vrot.slane %v13646_v5, 4  ;;  %v2441_v37 = vsel %vm209_vm1, %v13646_v5, %v2440_v59 }
 0x7d4   :  { %v2505_v30 = vperm.slane %v2497_v24, %v14217_v27  ;;  %v2449_v56 = vperm.slane %v2441_v37, %v14217_v27  ;;  %v13650_v51 = vpop.permute.xlu0 %13649 }
 0x7d5   :  { %v2495_v28 = vsel %vm209_vm1, %v2494_v57, %v15142_v48  ;;  %v2439_v58 = vsel %vm209_vm1, %v2438_v46, %v15140_v36  ;;  %v13652_v0 = vunpack.i.h.bf16 %v13650_v51  ;;  %v13651_v1 = vunpack.i.l.bf16 %v13650_v51 }
 0x7d6   :  { %v2501_v3 = vperm.slane %v2495_v28, %v14217_v27  ;;  %v2532_v29 = vrot.slane %v2505_v30, 4  ;;  %v2445_v22 = vperm.slane %v2439_v58, %v14217_v27  ;;  %v2476_v21 = vrot.slane %v2449_v56, 4  ;;  %2896 = vadd.xlane.f32.xlu0 %v2895_v41 }
 0x7d7   :  { %v2506_v62 = vrot.slane %v13652_v0, 4  ;;  %v2509_v8 = vsel %vm209_vm1, %v13652_v0, %v2508_v42  ;;  %v2450_v10 = vrot.slane %v13651_v1, 4  ;;  %v2453_v35 = vsel %vm209_vm1, %v13651_v1, %v2452_v54 }
 0x7d8   :  { %v2520_v13 = vrot.slane %v2501_v3, 4  ;;  %v2517_v48 = vperm.slane %v2509_v8, %v14217_v27  ;;  %v2461_v36 = vperm.slane %v2453_v35, %v14217_v27  ;;  %v2464_v33 = vrot.slane %v2445_v22, 4 }
 0x7d9   :  { %v2507_v60 = vsel %vm209_vm1, %v2506_v62, %v13642_v38  ;;  %v2451_v15 = vsel %vm209_vm1, %v2450_v10, %v13641_v55 }
 0x7da   :  { %v2513_v2 = vperm.slane %v2507_v60, %v14217_v27  ;;  %v2530_v18 = vrot.slane %v2517_v48, 4  ;;  %v2533_v31 = vsel %vm209_vm1, %v2517_v48, %v2532_v29  ;;  %v2457_v26 = vperm.slane %v2451_v15, %v14217_v27 }
 0x7db   :  { %v2541_v17 = vperm.slane %v2533_v31, %v14229_v44  ;;  %v2474_v49 = vrot.slane %v2461_v36, 4  ;;  %v2477_v53 = vsel %vm209_vm1, %v2461_v36, %v2476_v21 }
 0x7dc   :  { %v2518_v34 = vrot.slane %v2513_v2, 4  ;;  %v2521_v40 = vsel %vm209_vm1, %v2513_v2, %v2520_v13  ;;  %v2531_v12 = vsel %vm209_vm1, %v2530_v18, %v2505_v30  ;;  %v2462_v23 = vrot.slane %v2457_v26, 4 }
 0x7dd   :  { %v2529_v38 = vperm.slane %v2521_v40, %v14229_v44  ;;  %v2537_v55 = vperm.slane %v2531_v12, %v14229_v44  ;;  %v2548_v39 = vrot.slane %v2541_v17, 4  ;;  %v2465_v59 = vsel %vm209_vm1, %v2457_v26, %v2464_v33 }
 0x7de   :  { %v2519_v6 = vsel %vm209_vm1, %v2518_v34, %v2501_v3  ;;  %v2463_v14 = vsel %vm209_vm1, %v2462_v23, %v2445_v22  ;;  %v2473_v5 = vperm.slane %v2465_v59, %v14229_v44  ;;  %v2475_v41 = vsel %vm209_vm1, %v2474_v49, %v2449_v56 }
 0x7df   :  { %v2525_v57 = vperm.slane %v2519_v6, %v14229_v44  ;;  %v2544_v24 = vrot.slane %v2529_v38, 4  ;;  %v2546_v46 = vrot.slane %v2537_v55, 4  ;;  %v2549_v37 = vsel %vm209_vm1, 0.0, %v2548_v39 }
 0x7e0   :  { %v2615_v42 = vsel %vm209_vm1, %v2548_v39, %v2537_v55  ;;  %v2620_v54 = vrot.slane %v2549_v37, 4  ;;  %v2469_v30 = vperm.slane %v2463_v14, %v14229_v44  ;;  %v2481_v51 = vperm.slane %v2475_v41, %v14229_v44 }
 0x7e1   :  { %v2542_v28 = vrot.slane %v2525_v57, 4  ;;  %v2545_v58 = vsel %vm209_vm1, 0.0, %v2544_v24  ;;  %v2547_v0 = vsel %vm209_vm1, 0.0, %v2546_v46  ;;  %v2619_v56 = vperm.slane %v2615_v42, %v14217_v27 }
 0x7e2   :  { %v2609_v1 = vrot.slane %v2545_v58, 4  ;;  %v2485_v3 = vperm.slane %v2477_v53, %v14229_v44  ;;  %v2486_v29 = vrot.slane %v2469_v30, 4  ;;  %v2488_v22 = vrot.slane %v2473_v5, 4 }
 0x7e3   :  { %v2490_v21 = vrot.slane %v2481_v51, 4  ;;  %v2543_v62 = vsel %vm209_vm1, 0.0, %v2542_v28  ;;  %v2604_v8 = vsel %vm209_vm1, %v2544_v24, %v2525_v57  ;;  %v2621_v10 = vsel %vm209_vm1, %v2620_v54, %v2547_v0 }
 0x7e4   :  { %v2489_v35 = vsel %vm209_vm1, 0.0, %v2488_v22  ;;  %v2492_v13 = vrot.slane %v2485_v3, 4  ;;  %v2487_v48 = vsel %vm209_vm1, 0.0, %v2486_v29  ;;  %v2550_v36 = vsel %vm209_vm1, %v2488_v22, %v2469_v30 }
 0x7e5   :  { %v2491_v33 = vsel %vm209_vm1, 0.0, %v2490_v21  ;;  %v2555_v60 = vrot.slane %v2489_v35, 4  ;;  %v2554_v15 = vperm.slane %v2550_v36, %v14217_v27  ;;  %v2608_v2 = vperm.slane %v2604_v8, %v14217_v27 }
 0x7e6   :  { %v2493_v18 = vsel %vm209_vm1, 0.0, %v2492_v13  ;;  %v2561_v31 = vsel %vm209_vm1, %v2492_v13, %v2481_v51  ;;  %v2610_v26 = vsel %vm209_vm1, %v2609_v1, %v2543_v62  ;;  %v2625_v17 = vperm.slane %v2621_v10, %v14217_v27 }
 0x7e7   :  { %v2565_v49 = vperm.slane %v2561_v31, %v14217_v27  ;;  %v2566_v53 = vrot.slane %v2493_v18, 4  ;;  %v2556_v34 = vsel %vm209_vm1, %v2555_v60, %v2487_v48  ;;  %v2574_v40 = vrot.slane %v2554_v15, 4 }
 0x7e8   :  { %v2560_v12 = vperm.slane %v2556_v34, %v14217_v27  ;;  %v2614_v23 = vperm.slane %v2610_v26, %v14217_v27  ;;  %v2628_v38 = vrot.slane %v2608_v2, 4  ;;  %v2640_v55 = vrot.slane %v2619_v56, 4 }
 0x7e9   :  { %v2567_v39 = vsel %vm209_vm1, %v2566_v53, %v2491_v33  ;;  %v2586_v59 = vrot.slane %v2565_v49, 4  ;;  %v2638_v6 = vrot.slane %v2625_v17, 4 }
 0x7ea   :  { %v2571_v14 = vperm.slane %v2567_v39, %v14217_v27  ;;  %v2575_v5 = vsel %vm209_vm1, %v2560_v12, %v2574_v40  ;;  %v2629_v41 = vsel %vm209_vm1, %v2614_v23, %v2628_v38  ;;  %v2641_v57 = vsel %vm209_vm1, %v2625_v17, %v2640_v55 }
 0x7eb   :  { %v2583_v24 = vperm.slane %v2575_v5, %v14229_v44  ;;  %v2637_v46 = vperm.slane %v2629_v41, %v14229_v44  ;;  %v2649_v37 = vperm.slane %v2641_v57, %v14229_v44  ;;  %v2572_v42 = vrot.slane %v2560_v12, 4 }
 0x7ec   :  { %v2587_v54 = vsel %vm209_vm1, %v2571_v14, %v2586_v59  ;;  %v2584_v30 = vrot.slane %v2571_v14, 4  ;;  %v2626_v51 = vrot.slane %v2614_v23, 4  ;;  %v2639_v28 = vsel %vm209_vm1, %v2638_v6, %v2619_v56 }
 0x7ed   :  { %v2595_v58 = vperm.slane %v2587_v54, %v14229_v44  ;;  %v2654_v0 = vrot.slane %v2649_v37, 4  ;;  %v2573_v1 = vsel %vm209_vm1, %v2572_v42, %v2554_v15  ;;  %v2602_v3 = vrot.slane %v2583_v24, 4 }
 0x7ee   :  { %v2579_v29 = vperm.slane %v2573_v1, %v14229_v44  ;;  %v2585_v22 = vsel %vm209_vm1, %v2584_v30, %v2565_v49  ;;  %v2627_v21 = vsel %vm209_vm1, %v2626_v51, %v2608_v2  ;;  %v2645_v62 = vperm.slane %v2639_v28, %v14229_v44 }
 0x7ef   :  { %v2600_v8 = vrot.slane %v2595_v58, 4  ;;  %v2655_v10 = vsel %vm209_vm1, %v2654_v0, %v2637_v46  ;;  %v2591_v35 = vperm.slane %v2585_v22, %v14229_v44  ;;  %v2603_v56 = vsel %vm209_vm1, %v2595_v58, %v2602_v3 }
 0x7f0   :  { %v2664_v13 = vpack.c.bf16 %v2655_v10, %v2655_v10  ;;  %v2661_v48 = vpack.c.bf16 %v2603_v56, %v2603_v56  ;;  %v2633_v36 = vperm.slane %v2627_v21, %v14229_v44  ;;  %v2650_v33 = vrot.slane %v2645_v62, 4 }
 0x7f1   :  { %v2601_v60 = vsel %vm209_vm1, %v2600_v8, %v2583_v24  ;;  %v2596_v15 = vrot.slane %v2591_v35, 4  ;;  %v2656_v18 = vrot.slane %v2637_v46, 4  ;;  %v2598_v31 = vrot.slane %v2579_v29, 4 }
 0x7f2   :  { %v2660_v2 = vpack.c.bf16 %v2601_v60, %v2601_v60  ;;  %v3150_v26 = vsel %vm1297_vm4, %v2664_v13, 0  ;;  %v3093_v17 = vsel %vm1297_vm4, %v2661_v48, 0  ;;  %v2651_v49 = vsel %vm209_vm1, %v2650_v33, %v2633_v36 }
 0x7f3   :  { %v2597_v53 = vsel %vm209_vm1, %v2596_v15, %v2579_v29  ;;  %3102 = vmatpush.bf16.msra.mxu2 %v3093_v17  ;;  %v2662_v34 = vpack.c.bf16 %v2651_v49, %v2651_v49  ;;  %v2657_v40 = vsel %vm209_vm1, %v2649_v37, %v2656_v18  ;;  %v2599_v12 = vsel %vm209_vm1, %v2591_v35, %v2598_v31 }
 0x7f4   :  { %v3074_v23 = vsel %vm1297_vm4, %v2660_v2, 0  ;;  %v2658_v38 = vpack.c.bf16 %v2597_v53, %v2597_v53  ;;  %v2665_v55 = vpack.c.bf16 %v2657_v40, %v2657_v40  ;;  %v2659_v39 = vpack.c.bf16 %v2599_v12, %v2599_v12 }
 0x7f5   :  { %3083 = vmatpush.bf16.msra.mxu1 %v3074_v23  ;;  %v3112_v59 = vsel %vm1297_vm4, %v2662_v34, 0  ;;  %v2652_v6 = vrot.slane %v2633_v36, 4 }
 0x7f6   :  { %v3036_v14 = vsel %vm1297_vm4, %v2658_v38, 0  ;;  %v3169_v5 = vsel %vm1297_vm4, %v2665_v55, 0  ;;  %v3055_v41 = vsel %vm1297_vm4, %v2659_v39, 0 }
 0x7f7   :  { %3045 = vmatpush.bf16.msrb.mxu3 %v3036_v14  ;;  %3178 = vmatpush.bf16.msrb.mxu2 %v3169_v5  ;;  %v2653_v57 = vsel %vm209_vm1, %v2645_v62, %v2652_v6 }
 0x7f8   :  { %3064 = vmatpush.bf16.msra.mxu0 %v3055_v41  ;;  %v2663_v24 = vpack.c.bf16 %v2653_v57, %v2653_v57 }
 0x7f9   :  { %3159 = vmatpush.bf16.msrb.mxu1 %v3150_v26 }
 0x7fa   :  { %v3131_v46 = vsel %vm1297_vm4, %v2663_v24, 0 }
 0x7fb   :  { %3121 = vmatpush.bf16.msra.mxu3 %v3112_v59 }
 0x7fc   :  { %3140 = vmatpush.bf16.msrb.mxu0 %v3131_v46 }
 0x824   :  { %v2888_v37 = vpop.xlane.xlu1 %2887 }
 0x825   :  { %13828 = vrcp.f32 %v2888_v37  ;;  %v2945_v28 = vand.u32 2147483648, %v2888_v37  ;;  %v2943_v0 = vand.u32 2147483647, %v2888_v37  ;;  %vm2939_vm11 = vweird.f32 %v2888_v37 }
 0x827   :  { %v2946_v22 = vor.u32 1.1754944e-38, %v2945_v28  ;;  %vm2944_vm15 = vcmp.eq.f32.partialorder %v2943_v0, 8.507059e+37 }
 0x82b   :  { %v13829_v42 = vpop.eup %13828  ;;  %v2891_v54 = vpop.xlane.xlu0 %2890 }
 0x82c   :  { %v2935_v30 = vmul.f32 %v13829_v42, %v2888_v37  ;;  %13830 = vrcp.f32 %v2891_v54  ;;  %vm2940_vm10 = vweird.f32 %v13829_v42  ;;  %v2960_v56 = vand.u32 2147483648, %v2891_v54 }
 0x82d   :  { %vm2941_vm12 = vmor %vm2939_vm11, %vm2940_vm10  ;;  %v2958_v36 = vand.u32 2147483647, %v2891_v54  ;;  %vm2954_vm5 = vweird.f32 %v2891_v54 }
 0x82e   :  { %v2936_v51 = vsub.f32 1.0, %v2935_v30  ;;  %v2961_v2 = vor.u32 1.1754944e-38, %v2960_v56 }
 0x82f   :  { %vm2959_vm7 = vcmp.eq.f32.partialorder %v2958_v36, 8.507059e+37 }
 0x830   :  { %v2937_v58 = vmul.f32 %v13829_v42, %v2936_v51  ;;  %v2882_v1 = vpop.xlane.xlu2 %2881 }
 0x831   :  { %13832 = vrcp.f32 %v2882_v1  ;;  %v2915_v17 = vand.u32 2147483648, %v2882_v1  ;;  %v2913_v34 = vand.u32 2147483647, %v2882_v1  ;;  %vm2909_vm9 = vweird.f32 %v2882_v1 }
 0x832   :  { %v13831_v3 = vpop.eup %13830  ;;  %v2938_v29 = vadd.f32 %v13829_v42, %v2937_v58 }
 0x833   :  { %v2950_v21 = vmul.f32 %v13831_v3, %v2891_v54  ;;  %vm2955_vm3 = vweird.f32 %v13831_v3  ;;  %v2916_v38 = vor.u32 1.1754944e-38, %v2915_v17  ;;  %vm2914_vm11 = vcmp.eq.f32.partialorder %v2913_v34, 8.507059e+37 }
 0x834   :  { %v2942_v62 = vsel %vm2941_vm12, %v13829_v42, %v2938_v29  ;;  %vm2956_vm6 = vmor %vm2954_vm5, %vm2955_vm3 }
 0x835   :  { %v2947_v8 = vsel %vm2944_vm15, %v2946_v22, %v2942_v62  ;;  %v2951_v10 = vsub.f32 1.0, %v2950_v21 }
 0x836   :  { %v2948_v35 = vmul.f32 %v15149_v63, %v2947_v8 }
 0x837   :  { %v13833_v13 = vpop.eup %13832  ;;  %v2952_v48 = vmul.f32 %v13831_v3, %v2951_v10 }
 0x838   :  { %v2905_v33 = vmul.f32 %v13833_v13, %v2882_v1  ;;  %v2885_v60 = vpop.xlane.xlu2 %2884  ;;  %v15275_v15 = vpop.xlane.xlu1 %2899  ;;  %v3026_v18 = vpack.c.bf16 %v2948_v35, %v2948_v35  ;;  %vm2910_vm8 = vweird.f32 %v13833_v13 }
 0x839   :  { %v2953_v31 = vadd.f32 %v13831_v3, %v2952_v48  ;;  %13834 = vrcp.f32 %v2885_v60  ;;  %vm2911_vm10 = vmor %vm2909_vm9, %vm2910_vm8  ;;  %v2930_v46 = vand.u32 2147483648, %v2885_v60  ;;  %v2928_v54 = vand.u32 2147483647, %v2885_v60 }
 0x83a   :  { %v2906_v26 = vsub.f32 1.0, %v2905_v33  ;;  %13836 = vrcp.f32 %v15275_v15  ;;  %11438 = vmatmul.msk.bf16.vlgmr.msra.gmra.mxu1 %vm933_vm2, %v3026_v18  ;;  %v3005_v30 = vand.u32 2147483648, %v15275_v15  ;;  %v3003_v28 = vand.u32 2147483647, %v15275_v15 }
 0x83b   :  { %v2957_v63 = vsel %vm2956_vm6, %v13831_v3, %v2953_v31  ;;  %vm2924_vm3 = vweird.f32 %v2885_v60  ;;  %vm2999_vm6 = vweird.f32 %v15275_v15 }
 0x83c   :  { %v2962_v49 = vsel %vm2959_vm7, %v2961_v2, %v2957_v63  ;;  %v2907_v53 = vmul.f32 %v13833_v13, %v2906_v26  ;;  %vm2929_vm7 = vcmp.eq.f32.partialorder %v2928_v54, 8.507059e+37  ;;  %v3006_v22 = vor.u32 1.1754944e-38, %v3005_v30 }
 0x83d   :  { %v2963_v40 = vmul.f32 %v15153_v9, %v2962_v49  ;;  %vm3004_vm9 = vcmp.eq.f32.partialorder %v3003_v28, 8.507059e+37 }
 0x83e   :  { %v2908_v12 = vadd.f32 %v13833_v13, %v2907_v53 }
 0x83f   :  { %v13835_v23 = vpop.eup %13834  ;;  %v3027_v55 = vpack.c.bf16 %v2963_v40, %v2963_v40 }
 0x840   :  { %v13837_v39 = vpop.eup %13836  ;;  %v2912_v59 = vsel %vm2911_vm10, %v13833_v13, %v2908_v12  ;;  %v2920_v6 = vmul.f32 %v13835_v23, %v2885_v60  ;;  %v2903_v14 = vpop.xlane.xlu2 %2902  ;;  %vm2925_vm12 = vweird.f32 %v13835_v23 }
 0x841   :  { %v2917_v5 = vsel %vm2914_vm11, %v2916_v38, %v2912_v59  ;;  %v2995_v41 = vmul.f32 %v13837_v39, %v15275_v15  ;;  %13838 = vrcp.f32 %v2903_v14  ;;  %v15281_v57 = vpop.xlane.xlu0 %2893  ;;  %11439 = vmatmul.msk.bf16.vlgmr.msra.gmra.mxu2 %vm933_vm2, %v3027_v55  ;;  %vm3000_vm15 = vweird.f32 %v13837_v39  ;;  %vm2926_vm5 = vmor %vm2924_vm3, %vm2925_vm12 }
 0x842   :  { %v2918_v9 = vmul.f32 %v15157_v11, %v2917_v5  ;;  %v2921_v24 = vsub.f32 1.0, %v2920_v6  ;;  %13840 = vrcp.f32 %v15281_v57  ;;  %v2931_v11 = vor.u32 1.1754944e-38, %v2930_v46  ;;  %vm3001_vm8 = vmor %vm2999_vm6, %vm3000_vm15 }
 0x843   :  { %v2996_v37 = vsub.f32 1.0, %v2995_v41  ;;  %v3020_v60 = vand.u32 2147483648, %v2903_v14  ;;  %v3018_v18 = vand.u32 2147483647, %v2903_v14  ;;  %vm3014_vm11 = vweird.f32 %v2903_v14 }
 0x844   :  { %v2922_v42 = vmul.f32 %v13835_v23, %v2921_v24  ;;  %v3024_v58 = vpack.c.bf16 %v2918_v9, %v2918_v9  ;;  %v2975_v2 = vand.u32 2147483648, %v15281_v57 }
 0x845   :  { %v2997_v51 = vmul.f32 %v13837_v39, %v2996_v37  ;;  %v3021_v53 = vor.u32 1.1754944e-38, %v3020_v60  ;;  %vm3019_vm3 = vcmp.eq.f32.partialorder %v3018_v18, 8.507059e+37 }
 0x846   :  { %v2923_v0 = vadd.f32 %v13835_v23, %v2922_v42  ;;  %11436 = vmatmul.msk.bf16.vlgmr.msrb.gmra.mxu3 %vm933_vm2, %v3024_v58 }
 0x847   :  { %v13839_v1 = vpop.eup %13838  ;;  %v2998_v3 = vadd.f32 %v13837_v39, %v2997_v51 }
 0x848   :  { %v2927_v29 = vsel %vm2926_vm5, %v13835_v23, %v2923_v0  ;;  %v3010_v21 = vmul.f32 %v13839_v1, %v2903_v14  ;;  %v13841_v62 = vpop.eup %13840  ;;  %vm3015_vm10 = vweird.f32 %v13839_v1  ;;  %vm2969_vm5 = vweird.f32 %v15281_v57 }
 0x849   :  { %v2932_v8 = vsel %vm2929_vm7, %v2931_v11, %v2927_v29  ;;  %v3002_v10 = vsel %vm3001_vm8, %v13837_v39, %v2998_v3  ;;  %v2897_v35 = vpop.xlane.xlu0 %2896  ;;  %v2965_v36 = vmul.f32 %v13841_v62, %v15281_v57  ;;  %vm2970_vm12 = vweird.f32 %v13841_v62  ;;  %vm3016_vm15 = vmor %vm3014_vm11, %vm3015_vm10 }
 0x84a   :  { %v2933_v56 = vmul.f32 %v15161_v16, %v2932_v8  ;;  %v3007_v13 = vsel %vm3004_vm9, %v3006_v22, %v3002_v10  ;;  %v3011_v48 = vsub.f32 1.0, %v3010_v21  ;;  %13842 = vrcp.f32 %v2897_v35  ;;  %vm2971_vm6 = vmor %vm2969_vm5, %vm2970_vm12 }
 0x84b   :  { %v3008_v33 = vmul.f32 %v15164_v7, %v3007_v13  ;;  %v2966_v31 = vsub.f32 1.0, %v2965_v36  ;;  %v2973_v16 = vand.u32 2147483647, %v15281_v57  ;;  %v2976_v23 = vor.u32 1.1754944e-38, %v2975_v2 }
 0x84c   :  { %v3012_v15 = vmul.f32 %v13839_v1, %v3011_v48  ;;  %v3025_v26 = vpack.c.bf16 %v2933_v56, %v2933_v56  ;;  %v2990_v41 = vand.u32 2147483648, %v2897_v35  ;;  %v2988_v24 = vand.u32 2147483647, %v2897_v35 }
 0x84d   :  { %v3030_v63 = vpack.c.bf16 %v3008_v33, %v3008_v33  ;;  %v2967_v49 = vmul.f32 %v13841_v62, %v2966_v31  ;;  %vm2974_vm7 = vcmp.eq.f32.partialorder %v2973_v16, 8.507059e+37  ;;  %vm2984_vm9 = vweird.f32 %v2897_v35 }
 0x84e   :  { %v3013_v17 = vadd.f32 %v13839_v1, %v3012_v15  ;;  %11437 = vmatmul.msk.bf16.vlgmr.msra.gmra.mxu0 %vm933_vm2, %v3025_v26  ;;  %vm2989_vm11 = vcmp.eq.f32.partialorder %v2988_v24, 8.507059e+37 }
 0x84f   :  { %11442 = vmatmul.msk.bf16.vlgmr.msrb.gmra.mxu1 %vm933_vm2, %v3030_v63  ;;  %v2968_v34 = vadd.f32 %v13841_v62, %v2967_v49 }
 0x850   :  { %v3017_v7 = vsel %vm3016_vm15, %v13839_v1, %v3013_v17  ;;  %v13843_v40 = vpop.eup %13842 }
 0x851   :  { %v3022_v12 = vsel %vm3019_vm3, %v3021_v53, %v3017_v7  ;;  %v2972_v55 = vsel %vm2971_vm6, %v13841_v62, %v2968_v34  ;;  %v2980_v39 = vmul.f32 %v13843_v40, %v2897_v35  ;;  %vm2985_vm8 = vweird.f32 %v13843_v40 }
 0x852   :  { %v3023_v38 = vmul.f32 %v15170_v20, %v3022_v12  ;;  %v2977_v59 = vsel %vm2974_vm7, %v2976_v23, %v2972_v55  ;;  %vm2986_vm10 = vmor %vm2984_vm9, %vm2985_vm8  ;;  %v2991_v20 = vor.u32 1.1754944e-38, %v2990_v41 }
 0x853   :  { %v2978_v6 = vmul.f32 %v15172_v47, %v2977_v59  ;;  %v2981_v14 = vsub.f32 1.0, %v2980_v39 }
 0x854   :  { %v3031_v5 = vpack.c.bf16 %v3023_v38, %v3023_v38 }
 0x855   :  { %v2982_v9 = vmul.f32 %v13843_v40, %v2981_v14  ;;  %v3028_v46 = vpack.c.bf16 %v2978_v6, %v2978_v6 }
 0x856   :  { %11443 = vmatmul.msk.bf16.vlgmr.msrb.gmra.mxu2 %vm933_vm2, %v3031_v5 }
 0x857   :  { %v2983_v57 = vadd.f32 %v13843_v40, %v2982_v9  ;;  %11440 = vmatmul.msk.bf16.vlgmr.msra.gmra.mxu3 %vm933_vm2, %v3028_v46 }
 0x859   :  { %v2987_v37 = vsel %vm2986_vm10, %v13843_v40, %v2983_v57 }
 0x85a   :  { %v2992_v42 = vsel %vm2989_vm11, %v2991_v20, %v2987_v37 }
 0x85b   :  { %v2993_v47 = vmul.f32 %v15178_v45, %v2992_v42 }
 0x85d   :  { %v3029_v54 = vpack.c.bf16 %v2993_v47, %v2993_v47 }
 0x85f   :  { %11441 = vmatmul.msk.bf16.vlgmr.msrb.gmra.mxu0 %vm933_vm2, %v3029_v54 }
 0x8b7   :  { %v3085_v30 = vpop.f32.mrf.mxu1 }
 0x8b8   :  { %v3184_v58 = vrot.slane %v3085_v30, 4 }
 0x8bf   :  { %v3087_v51 = vpop.f32.mrf.mxu1 }
 0x8c4   :  { %v3104_v28 = vpop.f32.mrf.mxu2 }
 0x8c5   :  { %v3196_v1 = vrot.slane %v3104_v28, 4 }
 0x8c9   :  { %v3047_v0 = vpop.f32.mrf.mxu3 }
 0x8ca   :  { %v3185_v11 = vsel %vm209_vm1, %v3184_v58, %v3047_v0  ;;  %v3186_v3 = vrot.slane %v3047_v0, 4 }
 0x8cb   :  { %v3191_v29 = vperm.slane %v3185_v11, %v14217_v27  ;;  %v3066_v22 = vpop.f32.mrf.mxu0 }
 0x8cc   :  { %v3161_v21 = vpop.f32.mrf.mxu1  ;;  %v3187_v62 = vsel %vm209_vm1, %v3085_v30, %v3186_v3  ;;  %v3197_v45 = vsel %vm209_vm1, %v3196_v1, %v3066_v22  ;;  %v3198_v8 = vrot.slane %v3066_v22, 4  ;;  %v3106_v10 = vpop.f32.mrf.mxu2 }
 0x8cd   :  { %v3195_v35 = vperm.slane %v3187_v62, %v14217_v27  ;;  %v3210_v56 = vrot.slane %v3191_v29, 4  ;;  %v3203_v13 = vperm.slane %v3197_v45, %v14217_v27  ;;  %v3240_v20 = vrot.slane %v3161_v21, 4 }
 0x8ce   :  { %v3199_v48 = vsel %vm209_vm1, %v3104_v28, %v3198_v8 }
 0x8cf   :  { %v3222_v36 = vrot.slane %v3195_v35, 4  ;;  %v3207_v33 = vperm.slane %v3199_v48, %v14217_v27  ;;  %v3208_v60 = vrot.slane %v3203_v13, 4  ;;  %v3211_v15 = vsel %vm209_vm1, %v3203_v13, %v3210_v56 }
 0x8d0   :  { %v3219_v18 = vperm.slane %v3211_v15, %v14229_v44 }
 0x8d1   :  { %v3209_v31 = vsel %vm209_vm1, %v3208_v60, %v3191_v29  ;;  %v3220_v2 = vrot.slane %v3207_v33, 4  ;;  %v3223_v26 = vsel %vm209_vm1, %v3207_v33, %v3222_v36  ;;  %v3049_v63 = vpop.f32.mrf.mxu3 }
 0x8d2   :  { %v3215_v17 = vperm.slane %v3209_v31, %v14229_v44  ;;  %v3231_v49 = vperm.slane %v3223_v26, %v14229_v44  ;;  %v3234_v16 = vrot.slane %v3219_v18, 4 }
 0x8d3   :  { %v3221_v53 = vsel %vm209_vm1, %v3220_v2, %v3195_v35  ;;  %v3068_v7 = vpop.f32.mrf.mxu0 }
 0x8d4   :  { %v3163_v34 = vpop.f32.mrf.mxu1  ;;  %v3227_v40 = vperm.slane %v3221_v53, %v14229_v44  ;;  %v3232_v12 = vrot.slane %v3215_v17, 4  ;;  %v3235_v23 = vsel %vm209_vm1, 0.0, %v3234_v16  ;;  %v3238_v38 = vrot.slane %v3231_v49, 4 }
 0x8d5   :  { %v3301_v55 = vrot.slane %v3235_v23, 4  ;;  %v3296_v14 = vsel %vm209_vm1, %v3234_v16, %v3215_v17 }
 0x8d6   :  { %v3233_v39 = vsel %vm209_vm1, 0.0, %v3232_v12  ;;  %v3236_v59 = vrot.slane %v3227_v40, 4  ;;  %v3239_v6 = vsel %vm209_vm1, 0.0, %v3238_v38  ;;  %v3307_v9 = vsel %vm209_vm1, %v3238_v38, %v3227_v40 }
 0x8d7   :  { %v3302_v5 = vsel %vm209_vm1, %v3301_v55, %v3233_v39  ;;  %v3312_v41 = vrot.slane %v3239_v6, 4  ;;  %v3300_v47 = vperm.slane %v3296_v14, %v14217_v27  ;;  %v3311_v58 = vperm.slane %v3307_v9, %v14217_v27 }
 0x8d8   :  { %v3237_v46 = vsel %vm209_vm1, 0.0, %v3236_v59  ;;  %v3306_v57 = vperm.slane %v3302_v5, %v14217_v27 }
 0x8d9   :  { %v3180_v24 = vpop.f32.mrf.mxu2  ;;  %v3313_v42 = vsel %vm209_vm1, %v3312_v41, %v3237_v46  ;;  %v3320_v45 = vrot.slane %v3300_v47, 4  ;;  %v3332_v13 = vrot.slane %v3311_v58, 4 }
 0x8da   :  { %v3252_v37 = vrot.slane %v3180_v24, 4  ;;  %v3123_v54 = vpop.f32.mrf.mxu3  ;;  %v3317_v30 = vperm.slane %v3313_v42, %v14217_v27  ;;  %v3318_v62 = vrot.slane %v3306_v57, 4 }
 0x8db   :  { %v3241_v51 = vsel %vm209_vm1, %v3240_v20, %v3123_v54  ;;  %v3242_v28 = vrot.slane %v3123_v54, 4  ;;  %v3321_v16 = vsel %vm209_vm1, %v3306_v57, %v3320_v45 }
 0x8dc   :  { %v3247_v0 = vperm.slane %v3241_v51, %v14217_v27  ;;  %v3142_v1 = vpop.f32.mrf.mxu0  ;;  %v3330_v11 = vrot.slane %v3317_v30, 4  ;;  %v3319_v31 = vsel %vm209_vm1, %v3318_v62, %v3300_v47  ;;  %v3333_v38 = vsel %vm209_vm1, %v3317_v30, %v3332_v13 }
 0x8dd   :  { %v3243_v3 = vsel %vm209_vm1, %v3161_v21, %v3242_v28  ;;  %v3253_v29 = vsel %vm209_vm1, %v3252_v37, %v3142_v1  ;;  %v3254_v22 = vrot.slane %v3142_v1, 4  ;;  %v3325_v55 = vperm.slane %v3319_v31, %v14229_v44 }
 0x8de   :  { %v3251_v8 = vperm.slane %v3243_v3, %v14217_v27  ;;  %v3266_v10 = vrot.slane %v3247_v0, 4  ;;  %v3259_v35 = vperm.slane %v3253_v29, %v14217_v27  ;;  %v3331_v48 = vsel %vm209_vm1, %v3330_v11, %v3311_v58 }
 0x8df   :  { %v3255_v56 = vsel %vm209_vm1, %v3180_v24, %v3254_v22  ;;  %v3337_v2 = vperm.slane %v3331_v48, %v14229_v44  ;;  %v3329_v9 = vperm.slane %v3321_v16, %v14229_v44  ;;  %v3341_v30 = vperm.slane %v3333_v38, %v14229_v44 }
 0x8e0   :  { %v3278_v36 = vrot.slane %v3251_v8, 4  ;;  %v3263_v33 = vperm.slane %v3255_v56, %v14217_v27  ;;  %v3264_v60 = vrot.slane %v3259_v35, 4  ;;  %v3267_v21 = vsel %vm209_vm1, %v3259_v35, %v3266_v10 }
 0x8e1   :  { %v3182_v15 = vpop.f32.mrf.mxu2  ;;  %v3275_v18 = vperm.slane %v3267_v21, %v14229_v44  ;;  %v3342_v40 = vrot.slane %v3337_v2, 4  ;;  %v3348_v1 = vrot.slane %v3329_v9, 4  ;;  %v3346_v10 = vrot.slane %v3341_v30, 4 }
 0x8e2   :  { %v3265_v26 = vsel %vm209_vm1, %v3264_v60, %v3247_v0  ;;  %v3276_v63 = vrot.slane %v3263_v33, 4  ;;  %v3279_v17 = vsel %vm209_vm1, %v3263_v33, %v3278_v36  ;;  %v3125_v49 = vpop.f32.mrf.mxu3  ;;  %v3344_v36 = vrot.slane %v3325_v55, 4 }
 0x8e3   :  { %v3271_v53 = vperm.slane %v3265_v26, %v14229_v44  ;;  %v3287_v7 = vperm.slane %v3279_v17, %v14229_v44  ;;  %v3290_v34 = vrot.slane %v3275_v18, 4  ;;  %v3343_v24 = vsel %vm209_vm1, %v3342_v40, %v3325_v55 }
 0x8e4   :  { %v3277_v12 = vsel %vm209_vm1, %v3276_v63, %v3251_v8  ;;  %v3144_v23 = vpop.f32.mrf.mxu0  ;;  %v3349_v60 = vsel %vm209_vm1, %v3341_v30, %v3348_v1  ;;  %v3347_v17 = vsel %vm209_vm1, %v3346_v10, %v3329_v9  ;;  %v3345_v16 = vsel %vm209_vm1, %v3337_v2, %v3344_v36  ;;  %v13246_v2 = vld [vmem:[%s18609_s4 + $0x70] sm:$0xff]  ;;  %v13747_v30 = vld [vmem:[%s18611_s5 + $0x7] ss:$0 sm:$0xff] }
 0x8e5   :  { %v3283_v39 = vperm.slane %v3277_v12, %v14229_v44  ;;  %v3288_v59 = vrot.slane %v3271_v53, 4  ;;  %v3291_v6 = vsel %vm209_vm1, 0.0, %v3290_v34  ;;  %v3294_v14 = vrot.slane %v3287_v7, 4  ;;  %v13247_v23 = vld [vmem:[%s18609_s4 + $0x78] sm:$0xff] }
 0x8e6   :  { %v3350_v5 = vsel %vm209_vm1, %v3290_v34, %v3271_v53  ;;  %v3355_v41 = vrot.slane %v3291_v6, 4  ;;  %3459 = vmatpush.bf16.msrb.mxu3 %v13247_v23  ;;  %v11459_v23 = vld [vmem:[%s18615_s6 + $0x40] sm:$0xf0] }
 0x8e7   :  { %v3289_v46 = vsel %vm209_vm1, 0.0, %v3288_v59  ;;  %v3292_v57 = vrot.slane %v3283_v39, 4  ;;  %v3295_v20 = vsel %vm209_vm1, 0.0, %v3294_v14  ;;  %v3354_v37 = vperm.slane %v3350_v5, %v14217_v27 }
 0x8e8   :  { %v3356_v42 = vsel %vm209_vm1, %v3355_v41, %v3289_v46  ;;  %v3361_v47 = vsel %vm209_vm1, %v3294_v14, %v3283_v39  ;;  %v3366_v54 = vrot.slane %v3295_v20, 4 }
 0x8e9   :  { %v3360_v51 = vperm.slane %v3356_v42, %v14217_v27  ;;  %v3374_v28 = vrot.slane %v3354_v37, 4  ;;  %v3293_v58 = vsel %vm209_vm1, 0.0, %v3292_v57  ;;  %v3365_v0 = vperm.slane %v3361_v47, %v14217_v27 }
 0x8ea   :  { %v3367_v11 = vsel %vm209_vm1, %v3366_v54, %v3293_v58  ;;  %3460 = vmatpush.bf16.msrb.mxu3 %v13246_v2 }
 0x8eb   :  { %v3371_v3 = vperm.slane %v3367_v11, %v14217_v27  ;;  %v3375_v29 = vsel %vm209_vm1, %v3360_v51, %v3374_v28  ;;  %v3386_v22 = vrot.slane %v3365_v0, 4  ;;  %v3372_v62 = vrot.slane %v3360_v51, 4 }
 0x8ec   :  { %v3383_v45 = vperm.slane %v3375_v29, %v14229_v44 }
 0x8ed   :  { %v3387_v8 = vsel %vm209_vm1, %v3371_v3, %v3386_v22  ;;  %v3373_v35 = vsel %vm209_vm1, %v3372_v62, %v3354_v37  ;;  %v3384_v56 = vrot.slane %v3371_v3, 4 }
 0x8ee   :  { %v3395_v13 = vperm.slane %v3387_v8, %v14229_v44  ;;  %v3402_v48 = vrot.slane %v3383_v45, 4  ;;  %v3379_v33 = vperm.slane %v3373_v35, %v14229_v44 }
 0x8ef   :  { %v3385_v21 = vsel %vm209_vm1, %v3384_v56, %v3365_v0 }
 0x8f0   :  { %v3403_v15 = vsel %vm209_vm1, %v3395_v13, %v3402_v48  ;;  %v3400_v18 = vrot.slane %v3395_v13, 4  ;;  %v3391_v31 = vperm.slane %v3385_v21, %v14229_v44  ;;  %v3398_v26 = vrot.slane %v3379_v33, 4  ;;  %v13264_v21 = vld [vmem:[%s18615_s6 + $0x84] sm:$0xf] }
 0x8f1   :  { %v13663_v63 = vpack.i.bf16 %v3403_v15, %v3349_v60  ;;  %v13272_v60 = vld [vmem:[%s18615_s6 + $0xbc] sm:$0xf0] }
 0x8f2   :  { %v3401_v49 = vsel %vm209_vm1, %v3400_v18, %v3383_v45  ;;  %v3396_v53 = vrot.slane %v3391_v31, 4  ;;  %v3399_v7 = vsel %vm209_vm1, %v3391_v31, %v3398_v26  ;;  %v11523_v18 = vld [vmem:[%s18615_s6 + $0xc0] sm:$0xf0]  ;;  %v11529_v31 = vld [vmem:[%s18615_s6 + $0x88] sm:$0xf] }
 0x8f3   :  { %13664 = vrot.lane.b32.xlu0 %v13663_v63, %s14072_s23  ;;  %v13658_v34 = vpack.i.bf16 %v3401_v49, %v3347_v17  ;;  %v13653_v40 = vpack.i.bf16 %v3399_v7, %v3345_v16  ;;  %v13273_v26 = vld [vmem:[%s18615_s6 + $0xc4] sm:$0xf0]  ;;  %v11526_v63 = vor.u32 %v13264_v21, %v11523_v18  ;;  %v13265_v49 = vld [vmem:[%s18615_s6 + $0x8c] sm:$0xf] }
 0x8f4   :  { %v3397_v12 = vsel %vm209_vm1, %v3396_v53, %v3379_v33  ;;  %v11521_v33 = vld [vmem:[%s18615_s6 + $0x80] sm:$0xf]  ;;  %v11530_v17 = vor.u32 %v13273_v26, %v11529_v31  ;;  %v11531_v16 = vld [vmem:[%s18615_s6 + $0xc8] sm:$0xf0] }
 0x8f5   :  { %13659 = vrot.lane.b32.xlu1 %v13658_v34, %s14073_s24  ;;  %13654 = vrot.lane.b32.xlu2 %v13653_v40, %s14074_s25  ;;  %v11522_v15 = vor.u32 %v13272_v60, %v11521_v33  ;;  %v11457_v53 = vld [vmem:[%s18615_s6] sm:$0xf]  ;;  %v11534_v34 = vor.u32 %v13265_v49, %v11531_v16  ;;  %v11483_v33 = vld [vmem:[%s18615_s6 + $0x58] sm:$0xf0] }
 0x8f6   :  { %v13256_v40 = vld [vmem:[%s18615_s6 + $0x3c] sm:$0xf0]  ;;  %3779 = vmatpush.bf16.msra.mxu1 %v11526_v63  ;;  %3793 = vmatpush.bf16.msra.mxu2 %v11530_v17  ;;  %v13748_v16 = vld [vmem:[%s18611_s5 + $0xb] ss:$0 sm:$0xff] }
 0x8f7   :  { %3765 = vmatpush.bf16.msra.mxu0 %v11522_v15  ;;  %3807 = vmatpush.bf16.msra.mxu3 %v11534_v34 }
 0x94f   :  { %v13655_v38 = vpop.permute.xlu2 %13654 }
 0x950   :  { %v13657_v55 = vunpack.i.h.bf16 %v13655_v38  ;;  %v13656_v39 = vunpack.i.l.bf16 %v13655_v38  ;;  %v11458_v38 = vor.u32 %v13256_v40, %v11457_v53 }
 0x952   :  { %v3428_v41 = vsel %vm933_vm2, %v3343_v24, %v13656_v39  ;;  %v3429_v9 = vsel %vm933_vm2, %v3397_v12, %v13657_v55  ;;  %v13248_v12 = vld [vmem:[%s18615_s6 + $0x4] sm:$0xf]  ;;  %v11465_v39 = vld [vmem:[%s18615_s6 + $0x8] sm:$0xf]  ;;  %3766 = vmatpush.bf16.msra.mxu0 %v11458_v38 }
 0x953   :  { %v11462_v55 = vor.u32 %v13248_v12, %v11459_v23  ;;  %v13268_v38 = vld [vmem:[%s18615_s6 + $0xa4] sm:$0xf] }
 0x955   :  { %3780 = vmatpush.bf16.msra.mxu1 %v11462_v55  ;;  %v11555_v55 = vld [vmem:[%s18615_s6 + $0xe0] sm:$0xf0] }
 0x965   :  { %v13665_v59 = vpop.permute.xlu0 %13664 }
 0x966   :  { %v13667_v46 = vunpack.i.h.bf16 %v13665_v59  ;;  %v13666_v57 = vunpack.i.l.bf16 %v13665_v59  ;;  %v13257_v59 = vld [vmem:[%s18615_s6 + $0x44] sm:$0xf0] }
 0x967   :  { %v13660_v6 = vpop.permute.xlu1 %13659 }
 0x968   :  { %v13662_v14 = vunpack.i.h.bf16 %v13660_v6  ;;  %v13661_v5 = vunpack.i.l.bf16 %v13660_v6  ;;  %v13249_v6 = vld [vmem:[%s18615_s6 + $0xc] sm:$0xf] }
 0x96a   :  { %v3430_v20 = vsel %vm1693_vm13, %v3428_v41, %v13661_v5  ;;  %v3431_v37 = vsel %vm1693_vm13, %v3429_v9, %v13662_v14  ;;  %v11466_v14 = vor.u32 %v13257_v59, %v11465_v39  ;;  %v11467_v5 = vld [vmem:[%s18615_s6 + $0x48] sm:$0xf0]  ;;  %v11537_v41 = vld [vmem:[%s18615_s6 + $0x90] sm:$0xf] }
 0x96b   :  { %v3432_v42 = vsel %vm1696_vm14, %v3430_v20, %v13666_v57  ;;  %v3433_v47 = vsel %vm1696_vm14, %v3431_v37, %v13667_v46  ;;  %v13274_v9 = vld [vmem:[%s18615_s6 + $0xcc] sm:$0xf0]  ;;  %v11470_v20 = vor.u32 %v13249_v6, %v11467_v5  ;;  %v13277_v6 = vld [vmem:[%s18615_s6 + $0xe4] sm:$0xf0]  ;;  %v11563_v5 = vld [vmem:[%s18615_s6 + $0xe8] sm:$0xf0] }
 0x96c   :  { %v3434_v54 = vpack.c.bf16 %v3433_v47, %v3432_v42  ;;  %v11538_v37 = vor.u32 %v13274_v9, %v11537_v41  ;;  %v13266_v42 = vld [vmem:[%s18615_s6 + $0x94] sm:$0xf]  ;;  %3794 = vmatpush.bf16.msra.mxu2 %v11466_v14  ;;  %v13269_v14 = vld [vmem:[%s18615_s6 + $0xac] sm:$0xf] }
 0x96d   :  { %v11539_v47 = vld [vmem:[%s18615_s6 + $0xd0] sm:$0xf0]  ;;  %3808 = vmatpush.bf16.msra.mxu3 %v11470_v20  ;;  %v13260_v20 = vld [vmem:[%s18615_s6 + $0x5c] sm:$0xf0] }
 0x96e   :  { %11452 = vmatmul.msk.bf16.vlgmr.msrb.gmra.mxu3 %vm91_vm0, %v3434_v54  ;;  %3821 = vmatpush.bf16.msrb.mxu0 %v11538_v37 }
 0x9f1   :  { %v3462_v24 = vpop.f32.mrf.mxu3 }
 0x9f2   :  { %v3463_v51 = vadd.f32 %v13747_v30, %v3462_v24  ;;  %v11545_v24 = vld [vmem:[%s18615_s6 + $0x98] sm:$0xf] }
 0x9f4   :  { %v3467_v28 = vadd.f32 %v3463_v51, %v14864_v61  ;;  %v13275_v51 = vld [vmem:[%s18615_s6 + $0xd4] sm:$0xf0] }
 0x9f6   :  { %v3473_v58 = vsel %vm91_vm0, %v3467_v28, 0.0 }
 0x9f7   :  { %3474 = vadd.xlane.f32.xlu2 %v3473_v58  ;;  %v11546_v58 = vor.u32 %v13275_v51, %v11545_v24  ;;  %v13261_v24 = vld [vmem:[%s18615_s6 + $0x64] sm:$0xf0]  ;;  %v13253_v51 = vld [vmem:[%s18615_s6 + $0x2c] sm:$0xf] }
 0x9f9   :  { %v3464_v0 = vpop.f32.mrf.mxu3  ;;  %3849 = vmatpush.bf16.msrb.mxu2 %v11546_v58 }
 0x9fa   :  { %v3465_v1 = vadd.f32 %v13747_v30, %v3464_v0  ;;  %v11542_v30 = vor.u32 %v13266_v42, %v11539_v47  ;;  %v11547_v0 = vld [vmem:[%s18615_s6 + $0xd8] sm:$0xf0]  ;;  %v11566_v42 = vor.u32 %v13269_v14, %v11563_v5  ;;  %v13252_v47 = vld [vmem:[%s18615_s6 + $0x24] sm:$0xf]  ;;  %v13309_v14 = vld [vmem:[%s18616_s8 + $0xe8] sm:$0xff] }
 0x9fb   :  { %v13284_v5 = vld [vmem:[%s18616_s8 + $0x20] sm:$0xff] }
 0x9fc   :  { %v3468_v11 = vadd.f32 %v3465_v1, %v14866_v50  ;;  %v11473_v1 = vld [vmem:[%s18615_s6 + $0x10] sm:$0xf]  ;;  %3835 = vmatpush.bf16.msrb.mxu1 %v11542_v30  ;;  %v11497_v30 = vld [vmem:[%s18615_s6 + $0x28] sm:$0xf] }
 0x9fe   :  { %v3476_v3 = vsel %vm91_vm0, %v3468_v11, 0.0 }
 0x9ff   :  { %3477 = vadd.xlane.f32.xlu0 %v3476_v3 }
 0xa6a   :  { %v3475_v29 = vpop.xlane.xlu2 %3474 }
 0xa6b   :  { %v3479_v22 = vmul.f32 %v3475_v29, %v14835_v43  ;;  %v13258_v29 = vld [vmem:[%s18615_s6 + $0x4c] sm:$0xf0] }
 0xa6d   :  { %v15408_v62 = vsub.f32 %v3467_v28, %v3479_v22  ;;  %v13267_v28 = vld [vmem:[%s18615_s6 + $0x9c] sm:$0xf]  ;;  %v13250_v22 = vld [vmem:[%s18615_s6 + $0x14] sm:$0xf] }
 0xa6e   :  { %v11550_v3 = vor.u32 %v13267_v28, %v11547_v0  ;;  %v11499_v28 = vld [vmem:[%s18615_s6 + $0x68] sm:$0xf0] }
 0xa6f   :  { %v3483_v45 = vmul.f32 %v15408_v62, %v15408_v62 }
 0xa70   :  { %3863 = vmatpush.bf16.msrb.mxu3 %v11550_v3  ;;  %v11569_v3 = vld [vmem:[%s18615_s6 + $0xb0] sm:$0xf] }
 0xa71   :  { %v3485_v61 = vsel %vm91_vm0, %v3483_v45, 0.0  ;;  %v11475_v45 = vld [vmem:[%s18615_s6 + $0x50] sm:$0xf0] }
 0xa72   :  { %v3478_v8 = vpop.xlane.xlu0 %3477  ;;  %3486 = vadd.xlane.f32.xlu1 %v3485_v61  ;;  %v11474_v61 = vor.u32 %v13258_v29, %v11473_v1  ;;  %v11498_v1 = vor.u32 %v13261_v24, %v11497_v30  ;;  %v13278_v29 = vld [vmem:[%s18615_s6 + $0xec] sm:$0xf0]  ;;  %v13281_v24 = vld [vmem:[%s18616_s8 + $0x8] sm:$0xff] }
 0xa73   :  { %v3480_v10 = vmul.f32 %v3478_v8, %v14835_v43  ;;  %v11478_v8 = vor.u32 %v13250_v22, %v11475_v45  ;;  %v13270_v22 = vld [vmem:[%s18615_s6 + $0xb4] sm:$0xf] }
 0xa74   :  { %3822 = vmatpush.bf16.msrb.mxu0 %v11474_v61  ;;  %v11571_v45 = vld [vmem:[%s18615_s6 + $0xf0] sm:$0xf0]  ;;  %v11577_v61 = vld [vmem:[%s18615_s6 + $0xb8] sm:$0xf] }
 0xa75   :  { %v15414_v35 = vsub.f32 %v3468_v11, %v3480_v10  ;;  %v11481_v10 = vld [vmem:[%s18615_s6 + $0x18] sm:$0xf]  ;;  %3836 = vmatpush.bf16.msrb.mxu1 %v11478_v8  ;;  %v13290_v30 = vld [vmem:[%s18616_s8 + $0x50] sm:$0xff] }
 0xa76   :  { %v13279_v8 = vld [vmem:[%s18615_s6 + $0xf4] sm:$0xf0] }
 0xa77   :  { %v3484_v50 = vmul.f32 %v15414_v35, %v15414_v35 }
 0xa79   :  { %v3488_v56 = vsel %vm91_vm0, %v3484_v50, 0.0  ;;  %v13259_v50 = vld [vmem:[%s18615_s6 + $0x54] sm:$0xf0] }
 0xa7a   :  { %3489 = vadd.xlane.f32.xlu2 %v3488_v56  ;;  %v13251_v56 = vld [vmem:[%s18615_s6 + $0x1c] sm:$0xf] }
 0xa7b   :  { %v11486_v60 = vor.u32 %v13251_v56, %v11483_v33  ;;  %v11570_v56 = vor.u32 %v13278_v29, %v11569_v3  ;;  %v13262_v33 = vld [vmem:[%s18615_s6 + $0x6c] sm:$0xf0]  ;;  %v13297_v3 = vld [vmem:[%s18616_s8 + $0x88] sm:$0xff] }
 0xa7c   :  { %v13305_v29 = vld [vmem:[%s18616_s8 + $0xc8] sm:$0xff] }
 0xa7d   :  { %3864 = vmatpush.bf16.msrb.mxu3 %v11486_v60  ;;  %v11578_v60 = vor.u32 %v13279_v8, %v11577_v61  ;;  %v13296_v61 = vld [vmem:[%s18616_s8 + $0x80] sm:$0xff] }
 0xa7e   :  { %v13304_v8 = vld [vmem:[%s18616_s8 + $0xc0] sm:$0xff] }
 0xae5   :  { %v3487_v13 = vpop.xlane.xlu1 %3486 }
 0xae6   :  { %v3491_v48 = vmul.f32 %v3487_v13, %v14835_v43 }
 0xae8   :  { %v15420_v36 = vadd.f32 1e-05, %v3491_v48  ;;  %v11482_v48 = vor.u32 %v13259_v50, %v11481_v10  ;;  %v13271_v10 = vld [vmem:[%s18615_s6 + $0xbc] sm:$0xf] }
 0xae9   :  { %v11579_v50 = vld [vmem:[%s18615_s6 + $0xf8] sm:$0xf0] }
 0xaea   :  { %13844 = vrsqrt.f32 %v15420_v36  ;;  %3850 = vmatpush.bf16.msrb.mxu2 %v11482_v48  ;;  %vm3501_vm15 = vweird.f32 %v15420_v36  ;;  %v11505_v48 = vld [vmem:[%s18615_s6 + $0x30] sm:$0xf] }
 0xaed   :  { %v3490_v7 = vpop.xlane.xlu2 %3489 }
 0xaee   :  { %v3492_v2 = vmul.f32 %v3490_v7, %v14835_v43 }
 0xaf0   :  { %v13845_v46 = vpop.eup %13844  ;;  %v3494_v57 = vadd.f32 1e-05, %v3492_v2  ;;  %v11553_v2 = vld [vmem:[%s18615_s6 + $0xa0] sm:$0xf] }
 0xaf1   :  { %v3496_v54 = vmul.f32 %v13845_v46, %v15420_v36  ;;  %vm3502_vm12 = vweird.f32 %v13845_v46  ;;  %v13749_v36 = vld [vmem:[%s18611_s5 + $0xc] ss:$0 sm:$0xff] }
 0xaf2   :  { %13846 = vrsqrt.f32 %v3494_v57  ;;  %vm3503_vm3 = vmor %vm3501_vm15, %vm3502_vm12  ;;  %vm3511_vm6 = vweird.f32 %v3494_v57 }
 0xaf3   :  { %v3497_v11 = vmul.f32 %v13845_v46, %v3496_v54  ;;  %v11491_v54 = vld [vmem:[%s18615_s6 + $0x60] sm:$0xf0] }
 0xaf4   :  { %v11494_v0 = vor.u32 %v13252_v47, %v11491_v54  ;;  %v13307_v47 = vld [vmem:[%s18616_s8 + $0xd8] sm:$0xff]  ;;  %v13282_v54 = vld [vmem:[%s18616_s8 + $0x10] sm:$0xff] }
 0xaf5   :  { %v3498_v13 = vmul.f32 0.5, %v3497_v11  ;;  %v11502_v11 = vor.u32 %v13253_v51, %v11499_v28  ;;  %v13298_v51 = vld [vmem:[%s18616_s8 + $0x90] sm:$0xff] }
 0xaf6   :  { %v13306_v28 = vld [vmem:[%s18616_s8 + $0xd0] sm:$0xff] }
 0xaf7   :  { %v3499_v21 = vsub.f32 1.5, %v3498_v13  ;;  %v11574_v13 = vor.u32 %v13270_v22, %v11571_v45  ;;  %v13318_v22 = vld [vmem:[%s18616_s8 + $0x130] sm:$0xff] }
 0xaf8   :  { %v13847_v15 = vpop.eup %13846  ;;  %v13326_v45 = vld [vmem:[%s18616_s8 + $0x170] sm:$0xff] }
 0xaf9   :  { %v3500_v18 = vmul.f32 %v13845_v46, %v3499_v21  ;;  %v3506_v31 = vmul.f32 %v13847_v15, %v3494_v57  ;;  %vm3512_vm5 = vweird.f32 %v13847_v15  ;;  %v11489_v57 = vld [vmem:[%s18615_s6 + $0x20] sm:$0xf]  ;;  %v11582_v21 = vor.u32 %v13271_v10, %v11579_v50  ;;  %v13335_v10 = vld [vmem:[%s18616_s8 + $0x1b8] sm:$0xff] }
 0xafa   :  { %vm3513_vm7 = vmor %vm3511_vm6, %vm3512_vm5  ;;  %v11490_v58 = vor.u32 %v13260_v20, %v11489_v57  ;;  %v13308_v57 = vld [vmem:[%s18616_s8 + $0xe0] sm:$0xff]  ;;  %v13283_v20 = vld [vmem:[%s18616_s8 + $0x18] sm:$0xff] }
 0xafb   :  { %v3507_v26 = vmul.f32 %v13847_v15, %v3506_v31  ;;  %v3504_v63 = vsel %vm3503_vm3, %v13845_v46, %v3500_v18  ;;  %v11558_v46 = vor.u32 %v13268_v38, %v11555_v55  ;;  %v11507_v18 = vld [vmem:[%s18615_s6 + $0x70] sm:$0xf0]  ;;  %v11513_v31 = vld [vmem:[%s18615_s6 + $0x38] sm:$0xf]  ;;  %v13285_v55 = vld [vmem:[%s18616_s8 + $0x28] sm:$0xff] }
 0xafc   :  { %v3515_v53 = vmul.f32 %v3504_v63, %v15408_v62  ;;  %v13276_v62 = vld [vmem:[%s18615_s6 + $0xdc] sm:$0xf0]  ;;  %v13255_v63 = vld [vmem:[%s18615_s6 + $0x3c] sm:$0xf]  ;;  %v13310_v38 = vld [vmem:[%s18616_s8 + $0xf0] sm:$0xff] }
 0xafd   :  { %v3508_v17 = vmul.f32 0.5, %v3507_v26  ;;  %v11554_v9 = vor.u32 %v13276_v62, %v11553_v2  ;;  %v13263_v26 = vld [vmem:[%s18615_s6 + $0x74] sm:$0xf0]  ;;  %v13294_v2 = vld [vmem:[%s18616_s8 + $0x70] sm:$0xff] }
 0xafe   :  { %v3520_v40 = vmul.f32 %v13748_v16, %v3515_v53  ;;  %v11514_v53 = vor.u32 %v13263_v26, %v11513_v31  ;;  %v13302_v62 = vld [vmem:[%s18616_s8 + $0xb0] sm:$0xff]  ;;  %v13343_v50 = vld [vmem:[%s18616_s8 + $0x1f8] sm:$0xff]  ;;  %v15807_v31 = vld [vmem:[%s18617_s7] sm:$0xff] }
 0xaff   :  { %v3509_v49 = vsub.f32 1.5, %v3508_v17  ;;  %v11515_v17 = vld [vmem:[%s18615_s6 + $0x78] sm:$0xf0] }
 0xb00   :  { %v15545_v39 = vadd.f32 %v13749_v36, %v3520_v40  ;;  %v13303_v40 = vld [vmem:[%s18616_s8 + $0xb8] sm:$0xff] }
 0xb01   :  { %v3510_v7 = vmul.f32 %v13847_v15, %v3509_v49  ;;  %v11506_v49 = vor.u32 %v13262_v33, %v11505_v48  ;;  %v13334_v48 = vld [vmem:[%s18616_s8 + $0x1b0] sm:$0xff]  ;;  %v13315_v26 = vld [vmem:[%s18616_s8 + $0x118] sm:$0xff] }
 0xb02   :  { %v13342_v33 = vld [vmem:[%s18616_s8 + $0x1f0] sm:$0xff] }
 0xb03   :  { %v3514_v34 = vsel %vm3513_vm7, %v13847_v15, %v3510_v7  ;;  %v13254_v15 = vld [vmem:[%s18615_s6 + $0x34] sm:$0xf]  ;;  %v11518_v7 = vor.u32 %v13255_v63, %v11515_v17  ;;  %v13323_v63 = vld [vmem:[%s18616_s8 + $0x158] sm:$0xff]  ;;  %v3564_v17 = vperm.slane %v15807_v31, 0 }
 0xb04   :  { %v3516_v12 = vmul.f32 %v3514_v34, %v15414_v35  ;;  %v11561_v35 = vld [vmem:[%s18615_s6 + $0xa8] sm:$0xf]  ;;  %v13287_v34 = vld [vmem:[%s18616_s8 + $0x38] sm:$0xff] }
 0xb05   :  { %v11562_v37 = vor.u32 %v13277_v6, %v11561_v35  ;;  %v13293_v35 = vld [vmem:[%s18616_s8 + $0x68] sm:$0xff] }
 0xb06   :  { %v3521_v23 = vmul.f32 %v13748_v16, %v3516_v12  ;;  %v11510_v16 = vor.u32 %v13254_v15, %v11507_v18  ;;  %v13311_v12 = vld [vmem:[%s18616_s8 + $0xf8] sm:$0xff]  ;;  %v13301_v6 = vld [vmem:[%s18616_s8 + $0xa8] sm:$0xff] }
 0xb07   :  { %v13333_v15 = vld [vmem:[%s18616_s8 + $0x1a8] sm:$0xff] }
 0xb08   :  { %v15547_v59 = vadd.f32 %v13749_v36, %v3521_v23  ;;  %v13295_v36 = vld [vmem:[%s18616_s8 + $0x78] sm:$0xff]  ;;  %v13286_v23 = vld [vmem:[%s18616_s8 + $0x30] sm:$0xff]  ;;  %v13341_v18 = vld [vmem:[%s18616_s8 + $0x1e8] sm:$0xff] }
 0xb0a   :  { %v15560_v41 = vpack.c.bf16 %v15547_v59, %v15545_v39 }
 0xb0c   :  { %11583 = vmatmul.msk.bf16.vlgmr.msra.gmra.mxu0 %vm91_vm0, %v15560_v41  ;;  %11584 = vmatmul.msk.bf16.vlgmr.msra.gmra.mxu1 %vm91_vm0, %v15560_v41 }
 0xb0d   :  { %11585 = vmatmul.msk.bf16.vlgmr.msra.gmra.mxu2 %vm91_vm0, %v15560_v41  ;;  %11586 = vmatmul.msk.bf16.vlgmr.msra.gmra.mxu3 %vm91_vm0, %v15560_v41 }
 0xb0e   :  { %3877 = vmatpush.bf16.msra.mxu0 %v11554_v9  ;;  %3891 = vmatpush.bf16.msra.mxu1 %v11558_v46  ;;  %v13292_v9 = vld [vmem:[%s18616_s8 + $0x60] sm:$0xff] }
 0xb0f   :  { %3905 = vmatpush.bf16.msra.mxu2 %v11562_v37  ;;  %3919 = vmatpush.bf16.msra.mxu3 %v11566_v42  ;;  %v13300_v46 = vld [vmem:[%s18616_s8 + $0xa0] sm:$0xff]  ;;  %v13291_v37 = vld [vmem:[%s18616_s8 + $0x58] sm:$0xff] }
 0xb10   :  { %v13299_v42 = vld [vmem:[%s18616_s8 + $0x98] sm:$0xff] }
 0xb12   :  { %3878 = vmatpush.bf16.msra.mxu0 %v11490_v58  ;;  %3892 = vmatpush.bf16.msra.mxu1 %v11494_v0  ;;  %v13280_v58 = vld [vmem:[%s18616_s8] sm:$0xff] }
 0xb13   :  { %3906 = vmatpush.bf16.msra.mxu2 %v11498_v1  ;;  %3920 = vmatpush.bf16.msra.mxu3 %v11502_v11  ;;  %v13288_v0 = vld [vmem:[%s18616_s8 + $0x40] sm:$0xff]  ;;  %v13319_v1 = vld [vmem:[%s18616_s8 + $0x138] sm:$0xff] }
 0xb14   :  { %v13327_v11 = vld [vmem:[%s18616_s8 + $0x178] sm:$0xff] }
 0xb1c   :  { %11587 = vmatmul.msk.bf16.vlgmr.msrb.gmra.mxu0 %vm91_vm0, %v15560_v41  ;;  %11588 = vmatmul.msk.bf16.vlgmr.msrb.gmra.mxu1 %vm91_vm0, %v15560_v41 }
 0xb1d   :  { %11589 = vmatmul.msk.bf16.vlgmr.msrb.gmra.mxu2 %vm91_vm0, %v15560_v41  ;;  %11590 = vmatmul.msk.bf16.vlgmr.msrb.gmra.mxu3 %vm91_vm0, %v15560_v41 }
 0xb1e   :  { %3933 = vmatpush.bf16.msrb.mxu0 %v11570_v56  ;;  %3947 = vmatpush.bf16.msrb.mxu1 %v11574_v13  ;;  %v13317_v56 = vld [vmem:[%s18616_s8 + $0x128] sm:$0xff] }
 0xb1f   :  { %3961 = vmatpush.bf16.msrb.mxu2 %v11578_v60  ;;  %3975 = vmatpush.bf16.msrb.mxu3 %v11582_v21  ;;  %v13325_v13 = vld [vmem:[%s18616_s8 + $0x168] sm:$0xff]  ;;  %v13316_v60 = vld [vmem:[%s18616_s8 + $0x120] sm:$0xff] }
 0xb20   :  { %v13324_v21 = vld [vmem:[%s18616_s8 + $0x160] sm:$0xff] }
 0xb22   :  { %3934 = vmatpush.bf16.msrb.mxu0 %v11506_v49  ;;  %3948 = vmatpush.bf16.msrb.mxu1 %v11510_v16  ;;  %v13332_v49 = vld [vmem:[%s18616_s8 + $0x1a0] sm:$0xff] }
 0xb23   :  { %3962 = vmatpush.bf16.msrb.mxu2 %v11514_v53  ;;  %3976 = vmatpush.bf16.msrb.mxu3 %v11518_v7  ;;  %v13340_v16 = vld [vmem:[%s18616_s8 + $0x1e0] sm:$0xff]  ;;  %v3565_v53 = vperm.slane %v15807_v31, 1  ;;  %v13314_v7 = vld [vmem:[%s18616_s8 + $0x110] sm:$0xff] }
 0xb2c   :  { %11591 = vmatmul.msk.bf16.vlgmr.msra.gmra.mxu0 %vm91_vm0, %v15560_v41  ;;  %11592 = vmatmul.msk.bf16.vlgmr.msra.gmra.mxu1 %vm91_vm0, %v15560_v41 }
 0xb2d   :  { %11593 = vmatmul.msk.bf16.vlgmr.msra.gmra.mxu2 %vm91_vm0, %v15560_v41  ;;  %11594 = vmatmul.msk.bf16.vlgmr.msra.gmra.mxu3 %vm91_vm0, %v15560_v41 }
 0xb2e   :  { %5316 = vmatpush.bf16.msra.mxu0 %v13287_v34  ;;  %5330 = vmatpush.bf16.msra.mxu1 %v13295_v36  ;;  %v13322_v34 = vld [vmem:[%s18616_s8 + $0x150] sm:$0xff] }
 0xb2f   :  { %5344 = vmatpush.bf16.msra.mxu2 %v13303_v40  ;;  %5358 = vmatpush.bf16.msra.mxu3 %v13311_v12 }
 0xb32   :  { %5317 = vmatpush.bf16.msra.mxu0 %v13286_v23  ;;  %5331 = vmatpush.bf16.msra.mxu1 %v13294_v2  ;;  %v13331_v23 = vld [vmem:[%s18616_s8 + $0x198] sm:$0xff] }
 0xb33   :  { %5345 = vmatpush.bf16.msra.mxu2 %v13302_v62  ;;  %5359 = vmatpush.bf16.msra.mxu3 %v13310_v38  ;;  %v13339_v2 = vld [vmem:[%s18616_s8 + $0x1d8] sm:$0xff] }
 0xb36   :  { %5318 = vmatpush.bf16.msra.mxu0 %v13285_v55  ;;  %5332 = vmatpush.bf16.msra.mxu1 %v13293_v35  ;;  %v3566_v55 = vperm.slane %v15807_v31, 2  ;;  %v3567_v35 = vperm.slane %v15807_v31, 3 }
 0xb37   :  { %5346 = vmatpush.bf16.msra.mxu2 %v13301_v6  ;;  %5360 = vmatpush.bf16.msra.mxu3 %v13309_v14  ;;  %v13313_v6 = vld [vmem:[%s18616_s8 + $0x108] sm:$0xff] }
 0xb38   :  { %v13321_v14 = vld [vmem:[%s18616_s8 + $0x148] sm:$0xff] }
 0xb3a   :  { %5319 = vmatpush.bf16.msra.mxu0 %v13284_v5  ;;  %5333 = vmatpush.bf16.msra.mxu1 %v13292_v9  ;;  %v13330_v5 = vld [vmem:[%s18616_s8 + $0x190] sm:$0xff] }
 0xb3b   :  { %5347 = vmatpush.bf16.msra.mxu2 %v13300_v46  ;;  %5361 = vmatpush.bf16.msra.mxu3 %v13308_v57  ;;  %v13338_v9 = vld [vmem:[%s18616_s8 + $0x1d0] sm:$0xff] }
 0xb3c   :  { %11595 = vmatmul.msk.bf16.vlgmr.msrb.gmra.mxu0 %vm91_vm0, %v15560_v41  ;;  %11596 = vmatmul.msk.bf16.vlgmr.msrb.gmra.mxu1 %vm91_vm0, %v15560_v41 }
 0xb3d   :  { %11597 = vmatmul.msk.bf16.vlgmr.msrb.gmra.mxu2 %vm91_vm0, %v15560_v41  ;;  %11598 = vmatmul.msk.bf16.vlgmr.msrb.gmra.mxu3 %vm91_vm0, %v15560_v41  ;;  %v13289_v41 = vld [vmem:[%s18616_s8 + $0x48] sm:$0xff] }
 0xb3e   :  { %5320 = vmatpush.bf16.msra.mxu0 %v13283_v20  ;;  %5334 = vmatpush.bf16.msra.mxu1 %v13291_v37  ;;  %v13312_v37 = vld [vmem:[%s18616_s8 + $0x100] sm:$0xff] }
 0xb3f   :  { %5348 = vmatpush.bf16.msra.mxu2 %v13299_v42  ;;  %5362 = vmatpush.bf16.msra.mxu3 %v13307_v47  ;;  %v13320_v42 = vld [vmem:[%s18616_s8 + $0x140] sm:$0xff] }
 0xb42   :  { %5321 = vmatpush.bf16.msra.mxu0 %v13282_v54  ;;  %5335 = vmatpush.bf16.msra.mxu1 %v13290_v30 }
 0xb43   :  { %5349 = vmatpush.bf16.msra.mxu2 %v13298_v51  ;;  %5363 = vmatpush.bf16.msra.mxu3 %v13306_v28 }
 0xb46   :  { %5322 = vmatpush.bf16.msra.mxu0 %v13281_v24  ;;  %5336 = vmatpush.bf16.msra.mxu1 %v13289_v41 }
 0xb47   :  { %5350 = vmatpush.bf16.msra.mxu2 %v13297_v3  ;;  %5364 = vmatpush.bf16.msra.mxu3 %v13305_v29 }
 0xb4a   :  { %5323 = vmatpush.bf16.msra.mxu0 %v13280_v58  ;;  %5337 = vmatpush.bf16.msra.mxu1 %v13288_v0 }
 0xb4b   :  { %5351 = vmatpush.bf16.msra.mxu2 %v13296_v61  ;;  %5365 = vmatpush.bf16.msra.mxu3 %v13304_v8 }
 0xb4e   :  { %5372 = vmatpush.bf16.msrb.mxu0 %v13319_v1  ;;  %5386 = vmatpush.bf16.msrb.mxu1 %v13327_v11 }
 0xb4f   :  { %5400 = vmatpush.bf16.msrb.mxu2 %v13335_v10  ;;  %5414 = vmatpush.bf16.msrb.mxu3 %v13343_v50 }
 0xb52   :  { %5373 = vmatpush.bf16.msrb.mxu0 %v13318_v22  ;;  %5387 = vmatpush.bf16.msrb.mxu1 %v13326_v45 }
 0xb53   :  { %5401 = vmatpush.bf16.msrb.mxu2 %v13334_v48  ;;  %5415 = vmatpush.bf16.msrb.mxu3 %v13342_v33 }
 0xb56   :  { %5374 = vmatpush.bf16.msrb.mxu0 %v13317_v56  ;;  %5388 = vmatpush.bf16.msrb.mxu1 %v13325_v13 }
 0xb57   :  { %5402 = vmatpush.bf16.msrb.mxu2 %v13333_v15  ;;  %5416 = vmatpush.bf16.msrb.mxu3 %v13341_v18 }
 0xb5a   :  { %5375 = vmatpush.bf16.msrb.mxu0 %v13316_v60  ;;  %5389 = vmatpush.bf16.msrb.mxu1 %v13324_v21 }
 0xb5b   :  { %5403 = vmatpush.bf16.msrb.mxu2 %v13332_v49  ;;  %5417 = vmatpush.bf16.msrb.mxu3 %v13340_v16  ;;  %v3569_v49 = vperm.slane %v15807_v31, 5 }
 0xb5e   :  { %5376 = vmatpush.bf16.msrb.mxu0 %v13315_v26  ;;  %5390 = vmatpush.bf16.msrb.mxu1 %v13323_v63  ;;  %v3568_v26 = vperm.slane %v15807_v31, 4 }
 0xb5f   :  { %5404 = vmatpush.bf16.msrb.mxu2 %v13331_v23  ;;  %5418 = vmatpush.bf16.msrb.mxu3 %v13339_v2  ;;  %v13329_v2 = vld [vmem:[%s18616_s8 + $0x188] sm:$0xff] }
 0xb62   :  { %5377 = vmatpush.bf16.msrb.mxu0 %v13314_v7  ;;  %5391 = vmatpush.bf16.msrb.mxu1 %v13322_v34 }
 0xb63   :  { %5405 = vmatpush.bf16.msrb.mxu2 %v13330_v5  ;;  %5419 = vmatpush.bf16.msrb.mxu3 %v13338_v9 }
 0xb66   :  { %5378 = vmatpush.bf16.msrb.mxu0 %v13313_v6  ;;  %5392 = vmatpush.bf16.msrb.mxu1 %v13321_v14 }
 0xb67   :  { %5406 = vmatpush.bf16.msrb.mxu2 %v13329_v2 }
 0xb6a   :  { %5379 = vmatpush.bf16.msrb.mxu0 %v13312_v37  ;;  %5393 = vmatpush.bf16.msrb.mxu1 %v13320_v42 }
 0xb89   :  { %v3768_v36 = vpop.f32.mrf.mxu0  ;;  %v3782_v40 = vpop.f32.mrf.mxu1 }
 0xb8a   :  { %v15829_v12 = vadd.f32 %v3768_v36, %v3564_v17  ;;  %v15837_v62 = vadd.f32 %v3782_v40, %v3565_v53 }
 0xb8c   :  { %v4015_v38 = vmul.f32 0.044715, %v15829_v12  ;;  %v4016_v46 = vmul.f32 0.044715, %v15837_v62 }
 0xb8e   :  { %v4047_v47 = vmul.f32 %v4015_v38, %v15829_v12  ;;  %v4048_v58 = vmul.f32 %v4016_v46, %v15837_v62  ;;  %v13337_v38 = vld [vmem:[%s18616_s8 + $0x1c8] sm:$0xff]  ;;  %v3570_v46 = vperm.slane %v15807_v31, 6 }
 0xb8f   :  { %5420 = vmatpush.bf16.msrb.mxu3 %v13337_v38 }
 0xb90   :  { %v3796_v57 = vpop.f32.mrf.mxu2  ;;  %v3810_v20 = vpop.f32.mrf.mxu3  ;;  %v4079_v11 = vmul.f32 %v4047_v47, %v15829_v12  ;;  %v4080_v22 = vmul.f32 %v4048_v58, %v15837_v62  ;;  %v3571_v47 = vperm.slane %v15807_v31, 7 }
 0xb91   :  { %v15862_v54 = vadd.f32 %v3796_v57, %v3566_v55  ;;  %v15864_v30 = vadd.f32 %v3810_v20, %v3567_v35  ;;  %v3770_v24 = vpop.f32.mrf.mxu0  ;;  %v3784_v41 = vpop.f32.mrf.mxu1  ;;  %v15911_v20 = vmul.f32 0.5, %v15829_v12 }
 0xb92   :  { %v15866_v51 = vadd.f32 %v3770_v24, %v3564_v17  ;;  %v15868_v28 = vadd.f32 %v3784_v41, %v3565_v53  ;;  %v4111_v50 = vadd.f32 %v4079_v11, %v15829_v12  ;;  %v4112_v15 = vadd.f32 %v4080_v22, %v15837_v62  ;;  %v15919_v41 = vld [vmem:[%s18617_s7 + $0x8] sm:$0xff]  ;;  %v13328_v12 = vld [vmem:[%s18616_s8 + $0x180] sm:$0xff] }
 0xb93   :  { %v4017_v0 = vmul.f32 0.044715, %v15862_v54  ;;  %v4018_v1 = vmul.f32 0.044715, %v15864_v30  ;;  %5407 = vmatpush.bf16.msrb.mxu2 %v13328_v12 }
 0xb94   :  { %v4031_v3 = vmul.f32 0.044715, %v15866_v51  ;;  %v4032_v29 = vmul.f32 0.044715, %v15868_v28  ;;  %v4143_v16 = vmul.f32 0.7978846, %v4111_v50 }
 0xb95   :  { %v4049_v45 = vmul.f32 %v4017_v0, %v15862_v54  ;;  %v4050_v61 = vmul.f32 %v4018_v1, %v15864_v30  ;;  %v4144_v36 = vmul.f32 0.7978846, %v4112_v15  ;;  %v13336_v1 = vld [vmem:[%s18616_s8 + $0x1c0] sm:$0xff]  ;;  %v15943_v15 = vmul.f32 0.5, %v15862_v54 }
 0xb96   :  { %v4063_v56 = vmul.f32 %v4031_v3, %v15866_v51  ;;  %v4064_v60 = vmul.f32 %v4032_v29, %v15868_v28  ;;  %13848 = vtanh.f32 %v4143_v16  ;;  %5421 = vmatpush.bf16.msrb.mxu3 %v13336_v1  ;;  %v4000_v38 = vmul.f32 0.5, %v15868_v28 }
 0xb97   :  { %v4081_v18 = vmul.f32 %v4049_v45, %v15862_v54  ;;  %v4082_v63 = vmul.f32 %v4050_v61, %v15864_v30  ;;  %13850 = vtanh.f32 %v4144_v36  ;;  %v15933_v45 = vmul.f32 0.5, %v15837_v62 }
 0xb98   :  { %v3798_v8 = vpop.f32.mrf.mxu2  ;;  %v3812_v10 = vpop.f32.mrf.mxu3  ;;  %v4095_v53 = vmul.f32 %v4063_v56, %v15866_v51  ;;  %v4096_v7 = vmul.f32 %v4064_v60, %v15868_v28 }
 0xb99   :  { %v15881_v13 = vadd.f32 %v3798_v8, %v3566_v55  ;;  %v3824_v48 = vpop.f32.mrf.mxu0  ;;  %v3838_v33 = vpop.f32.mrf.mxu1  ;;  %v15884_v21 = vadd.f32 %v3812_v10, %v3567_v35  ;;  %v4113_v40 = vadd.f32 %v4081_v18, %v15862_v54  ;;  %v4114_v55 = vadd.f32 %v4082_v63, %v15864_v30 }
 0xb9a   :  { %v15896_v23 = vadd.f32 %v3824_v48, %v3568_v26  ;;  %v15906_v6 = vadd.f32 %v3838_v33, %v3569_v49  ;;  %v4127_v9 = vadd.f32 %v4095_v53, %v15866_v51  ;;  %v4128_v37 = vadd.f32 %v4096_v7, %v15868_v28 }
 0xb9b   :  { %v4033_v17 = vmul.f32 0.044715, %v15881_v13  ;;  %v4034_v34 = vmul.f32 0.044715, %v15884_v21  ;;  %v4145_v58 = vmul.f32 0.7978846, %v4113_v40 }
 0xb9c   :  { %v4019_v0 = vmul.f32 0.044715, %v15896_v23  ;;  %v4146_v11 = vmul.f32 0.7978846, %v4114_v55  ;;  %v4020_v29 = vmul.f32 0.044715, %v15906_v6  ;;  %v13849_v60 = vpop.eup %13848 }
 0xb9d   :  { %v4065_v35 = vmul.f32 %v4033_v17, %v15881_v13  ;;  %v4066_v42 = vmul.f32 %v4034_v34, %v15884_v21  ;;  %v4159_v61 = vmul.f32 0.7978846, %v4127_v9  ;;  %v3572_v10 = vperm.slane %v15919_v41, 0  ;;  %v13851_v16 = vpop.eup %13850 }
 0xb9e   :  { %v4160_v50 = vmul.f32 0.7978846, %v4128_v37  ;;  %v3573_v33 = vperm.slane %v15919_v41, 1  ;;  %13852 = vtanh.f32 %v4145_v58  ;;  %v4051_v62 = vmul.f32 %v4019_v0, %v15896_v23 }
 0xb9f   :  { %v4097_v3 = vmul.f32 %v4065_v35, %v15881_v13  ;;  %v4098_v56 = vmul.f32 %v4066_v42, %v15884_v21  ;;  %13854 = vtanh.f32 %v4146_v11  ;;  %v4052_v63 = vmul.f32 %v4020_v29, %v15906_v6 }
 0xba0   :  { %v3852_v14 = vpop.f32.mrf.mxu2  ;;  %v3866_v5 = vpop.f32.mrf.mxu3  ;;  %v15954_v53 = vmul.f32 0.5, %v15864_v30  ;;  %v3999_v54 = vmul.f32 0.5, %v15866_v51  ;;  %13856 = vtanh.f32 %v4159_v61  ;;  %v4207_v36 = vadd.f32 1.0, %v13849_v60 }
 0xba1   :  { %v3826_v57 = vpop.f32.mrf.mxu0  ;;  %v3840_v24 = vpop.f32.mrf.mxu1  ;;  %v15935_v8 = vadd.f32 %v3852_v14, %v3570_v46  ;;  %v15948_v18 = vadd.f32 %v3866_v5, %v3571_v47  ;;  %13858 = vtanh.f32 %v4160_v50  ;;  %v4130_v40 = vadd.f32 %v4098_v56, %v15884_v21 }
 0xba2   :  { %v15930_v22 = vadd.f32 %v3826_v57, %v3568_v26  ;;  %v15939_v48 = vadd.f32 %v3840_v24, %v3569_v49  ;;  %v4129_v26 = vadd.f32 %v4097_v3, %v15881_v13  ;;  %v15962_v55 = vmul.f32 0.5, %v15881_v13 }
 0xba3   :  { %v4021_v7 = vmul.f32 0.044715, %v15935_v8  ;;  %v4083_v30 = vmul.f32 %v4051_v62, %v15896_v23  ;;  %v4022_v35 = vmul.f32 0.044715, %v15948_v18  ;;  %v4084_v5 = vmul.f32 %v4052_v63, %v15906_v6 }
 0xba4   :  { %v4035_v17 = vmul.f32 0.044715, %v15930_v22  ;;  %v4036_v2 = vmul.f32 0.044715, %v15939_v48  ;;  %v4161_v14 = vmul.f32 0.7978846, %v4129_v26  ;;  %v13853_v42 = vpop.eup %13852 }
 0xba5   :  { %v4208_v24 = vadd.f32 1.0, %v13851_v16  ;;  %v15971_v28 = vmul.f32 0.5, %v15884_v21  ;;  %v15974_v13 = vmul.f32 0.5, %v15896_v23  ;;  %v4053_v58 = vmul.f32 %v4021_v7, %v15935_v8  ;;  %v13855_v0 = vpop.eup %13854 }
 0xba6   :  { %v4067_v9 = vmul.f32 %v4035_v17, %v15930_v22  ;;  %v4162_v12 = vmul.f32 0.7978846, %v4130_v40  ;;  %v15978_v1 = vmul.f32 0.5, %v15906_v6  ;;  %v4068_v11 = vmul.f32 %v4036_v2, %v15939_v48  ;;  %v13857_v3 = vpop.eup %13856 }
 0xba7   :  { %v4115_v29 = vadd.f32 %v4083_v30, %v15896_v23  ;;  %v15984_v21 = vmul.f32 0.5, %v15935_v8  ;;  %v4054_v61 = vmul.f32 %v4022_v35, %v15948_v18  ;;  %v13859_v56 = vpop.eup %13858  ;;  %13860 = vtanh.f32 %v4161_v14 }
 0xba8   :  { %v3854_v49 = vpop.f32.mrf.mxu2  ;;  %v3868_v34 = vpop.f32.mrf.mxu3  ;;  %v4116_v60 = vadd.f32 %v4084_v5, %v15906_v6  ;;  %v4099_v62 = vmul.f32 %v4067_v9, %v15930_v22  ;;  %v4209_v26 = vadd.f32 1.0, %v13853_v42  ;;  %v15994_v63 = vadd.f32 1.0, %v13855_v0 }
 0xba9   :  { %v3880_v51 = vpop.f32.mrf.mxu0  ;;  %v15968_v57 = vadd.f32 %v3854_v49, %v3570_v46  ;;  %v3894_v37 = vpop.f32.mrf.mxu1  ;;  %v4239_v46 = vmul.f32 %v4207_v36, %v15911_v20  ;;  %v15989_v50 = vadd.f32 %v3868_v34, %v3571_v47  ;;  %v4085_v23 = vmul.f32 %v4053_v58, %v15935_v8 }
 0xbaa   :  { %v15998_v17 = vmul.f32 0.5, %v15948_v18  ;;  %13862 = vtanh.f32 %v4162_v12  ;;  %v16001_v31 = vmul.f32 0.5, %v15930_v22  ;;  %v4100_v47 = vmul.f32 %v4068_v11, %v15939_v48 }
 0xbab   :  { %v4037_v20 = vmul.f32 0.044715, %v15968_v57  ;;  %v16006_v6 = vadd.f32 %v3880_v51, %v3572_v10  ;;  %v4086_v16 = vmul.f32 %v4054_v61, %v15948_v18  ;;  %v4038_v7 = vmul.f32 0.044715, %v15989_v50 }
 0xbac   :  { %v4223_v34 = vadd.f32 1.0, %v13857_v3  ;;  %v4224_v36 = vadd.f32 1.0, %v13859_v56  ;;  %v4147_v2 = vmul.f32 0.7978846, %v4115_v29  ;;  %v4148_v30 = vmul.f32 0.7978846, %v4116_v60 }
 0xbad   :  { %v4131_v35 = vadd.f32 %v4099_v62, %v15930_v22  ;;  %v4069_v14 = vmul.f32 %v4037_v20, %v15968_v57  ;;  %v4117_v5 = vadd.f32 %v4085_v23, %v15935_v8  ;;  %v4240_v51 = vmul.f32 %v4208_v24, %v15933_v45  ;;  %v13861_v0 = vpop.eup %13860  ;;  %v13351_v22 = vld [vmem:[%s18616_s8 + $0x238] sm:$0xff] }
 0xbae   :  { %v4255_v9 = vmul.f32 %v4223_v34, %v3999_v54  ;;  %v4256_v42 = vmul.f32 %v4224_v36, %v4000_v38  ;;  %v4132_v12 = vadd.f32 %v4100_v47, %v15939_v48  ;;  %v4023_v11 = vmul.f32 0.044715, %v16006_v6  ;;  %v13359_v8 = vld [vmem:[%s18616_s8 + $0x278] sm:$0xff] }
 0xbaf   :  { %v16018_v3 = vadd.f32 %v3894_v37, %v3573_v33  ;;  %v3574_v45 = vperm.slane %v15919_v41, 2  ;;  %v4118_v38 = vadd.f32 %v4086_v16, %v15948_v18  ;;  %v4070_v24 = vmul.f32 %v4038_v7, %v15989_v50 }
 0xbb0   :  { %v3908_v49 = vpop.f32.mrf.mxu2  ;;  %v3922_v40 = vpop.f32.mrf.mxu3  ;;  %v4527_v29 = vpack.c.bf16 %v4255_v9, %v4239_v46  ;;  %v4528_v61 = vpack.c.bf16 %v4256_v42, %v4240_v51  ;;  %13864 = vtanh.f32 %v4147_v2  ;;  %v4163_v37 = vmul.f32 0.7978846, %v4131_v35 }
 0xbb1   :  { %v3882_v58 = vpop.f32.mrf.mxu0  ;;  %v3896_v54 = vpop.f32.mrf.mxu1  ;;  %v4101_v60 = vmul.f32 %v4069_v14, %v15968_v57  ;;  %v16034_v20 = vadd.f32 %v3908_v49, %v3574_v45  ;;  %v3575_v23 = vperm.slane %v15919_v41, 3  ;;  %v4225_v46 = vadd.f32 1.0, %v13861_v0  ;;  %v13358_v49 = vld [vmem:[%s18616_s8 + $0x270] sm:$0xff]  ;;  %v13367_v0 = vld [vmem:[%s18616_s8 + $0x2b8] sm:$0xff] }
 0xbb2   :  { %v13863_v56 = vpop.eup %13862  ;;  %v16032_v62 = vadd.f32 %v3882_v58, %v3572_v10  ;;  %5324 = vmatmul.bf16.vlgmr.msra.gmra.mxu0 %v4527_v29  ;;  %5338 = vmatmul.bf16.vlgmr.msra.gmra.mxu1 %v4528_v61  ;;  %v16039_v18 = vadd.f32 %v3896_v54, %v3573_v33  ;;  %13866 = vtanh.f32 %v4148_v30  ;;  %v4164_v47 = vmul.f32 0.7978846, %v4132_v12  ;;  %v13350_v10 = vld [vmem:[%s18616_s8 + $0x230] sm:$0xff] }
 0xbb3   :  { %v4055_v16 = vmul.f32 %v4023_v11, %v16006_v6  ;;  %v4024_v7 = vmul.f32 0.044715, %v16018_v3  ;;  %5428 = vmatpush.bf16.msra.mxu0 %v13351_v22  ;;  %5442 = vmatpush.bf16.msra.mxu1 %v13359_v8  ;;  %v4149_v34 = vmul.f32 0.7978846, %v4117_v5  ;;  %v4150_v33 = vmul.f32 0.7978846, %v4118_v38 }
 0xbb4   :  { %v4102_v36 = vmul.f32 %v4070_v24, %v15989_v50  ;;  %v4039_v2 = vmul.f32 0.044715, %v16032_v62  ;;  %13868 = vtanh.f32 %v4163_v37  ;;  %v4133_v30 = vadd.f32 %v4101_v60, %v15968_v57  ;;  %v13375_v60 = vld [vmem:[%s18616_s8 + $0x2f8] sm:$0xff] }
 0xbb5   :  { %v4241_v35 = vmul.f32 %v4209_v26, %v15943_v15  ;;  %v4257_v14 = vmul.f32 %v4225_v46, %v15962_v55  ;;  %v4025_v51 = vmul.f32 0.044715, %v16034_v20  ;;  %v16055_v42 = vadd.f32 %v3922_v40, %v3575_v23  ;;  %v13349_v26 = vld [vmem:[%s18616_s8 + $0x228] sm:$0xff] }
 0xbb6   :  { %v4040_v58 = vmul.f32 0.044715, %v16039_v18  ;;  %v4226_v5 = vadd.f32 1.0, %v13863_v56  ;;  %v13865_v11 = vpop.eup %13864  ;;  %13870 = vtanh.f32 %v4164_v47  ;;  %v4087_v22 = vmul.f32 %v4055_v16, %v16006_v6  ;;  %v13357_v40 = vld [vmem:[%s18616_s8 + $0x268] sm:$0xff] }
 0xbb7   :  { %v4056_v15 = vmul.f32 %v4024_v7, %v16018_v3  ;;  %5429 = vmatpush.bf16.msra.mxu0 %v13350_v10  ;;  %5443 = vmatpush.bf16.msra.mxu1 %v13358_v49  ;;  %v4529_v55 = vpack.c.bf16 %v4257_v14, %v4241_v35  ;;  %v4071_v8 = vmul.f32 %v4039_v2, %v16032_v62  ;;  %v16076_v61 = vmul.f32 0.5, %v15939_v48  ;;  %v13366_v48 = vld [vmem:[%s18616_s8 + $0x2b0] sm:$0xff]  ;;  %v13348_v49 = vld [vmem:[%s18616_s8 + $0x220] sm:$0xff] }
 0xbb8   :  { %v3910_v9 = vpop.f32.mrf.mxu2  ;;  %v3924_v12 = vpop.f32.mrf.mxu3  ;;  %v4242_v54 = vmul.f32 %v15994_v63, %v15954_v53  ;;  %v4258_v38 = vmul.f32 %v4226_v5, %v15971_v28  ;;  %v16079_v56 = vmul.f32 0.5, %v15968_v57  ;;  %v4165_v37 = vmul.f32 0.7978846, %v4133_v30  ;;  %v13356_v2 = vld [vmem:[%s18616_s8 + $0x260] sm:$0xff]  ;;  %v13374_v14 = vld [vmem:[%s18616_s8 + $0x2f0] sm:$0xff] }
 0xbb9   :  { %v16073_v24 = vadd.f32 %v3910_v9, %v3574_v45  ;;  %v13867_v29 = vpop.eup %13866  ;;  %5352 = vmatmul.bf16.vlgmr.msra.gmra.mxu2 %v4529_v55  ;;  %v16084_v46 = vadd.f32 %v3924_v12, %v3575_v23  ;;  %v4057_v53 = vmul.f32 %v4025_v51, %v16034_v20  ;;  %v4026_v28 = vmul.f32 0.044715, %v16055_v42  ;;  %v3936_v57 = vpop.f32.mrf.mxu0  ;;  %v13365_v12 = vld [vmem:[%s18616_s8 + $0x2a8] sm:$0xff] }
 0xbba   :  { %v4072_v63 = vmul.f32 %v4040_v58, %v16039_v18  ;;  %v4530_v45 = vpack.c.bf16 %v4258_v38, %v4242_v54  ;;  %5456 = vmatpush.bf16.msra.mxu2 %v13367_v0  ;;  %v16092_v47 = vpop.f32.mrf.mxu1  ;;  %v13869_v16 = vpop.eup %13868  ;;  %13872 = vtanh.f32 %v4149_v34  ;;  %v16095_v23 = vmul.f32 0.5, %v15989_v50 }
 0xbbb   :  { %v4134_v7 = vadd.f32 %v4102_v36, %v15989_v50  ;;  %5430 = vmatpush.bf16.msra.mxu0 %v13349_v26  ;;  %5444 = vmatpush.bf16.msra.mxu1 %v13357_v40  ;;  %v4041_v10 = vmul.f32 0.044715, %v16073_v24  ;;  %13874 = vtanh.f32 %v4150_v33  ;;  %v4119_v34 = vadd.f32 %v4087_v22, %v16006_v6  ;;  %v13347_v26 = vld [vmem:[%s18616_s8 + $0x218] sm:$0xff] }
 0xbbc   :  { %v4088_v30 = vmul.f32 %v4056_v15, %v16018_v3  ;;  %v4103_v35 = vmul.f32 %v4071_v8, %v16032_v62  ;;  %5366 = vmatmul.bf16.vlgmr.msra.gmra.mxu3 %v4530_v45  ;;  %v13871_v50 = vpop.eup %13870  ;;  %v4211_v36 = vadd.f32 1.0, %v13865_v11  ;;  %13876 = vtanh.f32 %v4165_v37  ;;  %v13355_v40 = vld [vmem:[%s18616_s8 + $0x258] sm:$0xff] }
 0xbbd   :  { %5470 = vmatpush.bf16.msra.mxu3 %v13375_v60  ;;  %v4073_v9 = vmul.f32 %v4041_v10, %v16073_v24  ;;  %v4042_v51 = vmul.f32 0.044715, %v16084_v46  ;;  %v4089_v33 = vmul.f32 %v4057_v53, %v16034_v20  ;;  %v4058_v58 = vmul.f32 %v4026_v28, %v16055_v42  ;;  %v13373_v53 = vld [vmem:[%s18616_s8 + $0x2e8] sm:$0xff] }
 0xbbe   :  { %v4104_v5 = vmul.f32 %v4072_v63, %v16039_v18  ;;  %5457 = vmatpush.bf16.msra.mxu2 %v13366_v48  ;;  %v3576_v0 = vperm.slane %v15919_v41, 4  ;;  %v4212_v11 = vadd.f32 1.0, %v13867_v29  ;;  %v4166_v22 = vmul.f32 0.7978846, %v4134_v7 }
 0xbbf   :  { %v4074_v15 = vmul.f32 %v4042_v51, %v16084_v46  ;;  %5431 = vmatpush.bf16.msra.mxu0 %v13348_v49  ;;  %5445 = vmatpush.bf16.msra.mxu1 %v13356_v2  ;;  %v4227_v55 = vadd.f32 1.0, %v13869_v16  ;;  %v4151_v8 = vmul.f32 0.7978846, %v4119_v34  ;;  %v4120_v54 = vadd.f32 %v4088_v30, %v16018_v3  ;;  %v13364_v34 = vld [vmem:[%s18616_s8 + $0x2a0] sm:$0xff] }
 0xbc0   :  { %v4135_v38 = vadd.f32 %v4103_v35, %v16032_v62  ;;  %v4105_v29 = vmul.f32 %v4073_v9, %v16073_v24  ;;  %v13873_v37 = vpop.eup %13872  ;;  %v4243_v28 = vmul.f32 %v4211_v36, %v15974_v13  ;;  %v4228_v45 = vadd.f32 1.0, %v13871_v50  ;;  %v16136_v48 = vpop.f32.mrf.mxu2 }
 0xbc1   :  { %5471 = vmatpush.bf16.msra.mxu3 %v13374_v14  ;;  %v4106_v60 = vmul.f32 %v4074_v15, %v16084_v46  ;;  %v4259_v63 = vmul.f32 %v4227_v55, %v16001_v31  ;;  %v13875_v16 = vpop.eup %13874  ;;  %v4121_v7 = vadd.f32 %v4089_v33, %v16034_v20  ;;  %v4090_v10 = vmul.f32 %v4058_v58, %v16055_v42  ;;  %v16146_v13 = vpop.f32.mrf.mxu3 }
 0xbc2   :  { %v4136_v49 = vadd.f32 %v4104_v5, %v16039_v18  ;;  %v16141_v2 = vadd.f32 %v3936_v57, %v3576_v0  ;;  %5458 = vmatpush.bf16.msra.mxu2 %v13365_v12  ;;  %v13877_v31 = vpop.eup %13876  ;;  %13878 = vtanh.f32 %v4166_v22  ;;  %v4244_v35 = vmul.f32 %v4212_v11, %v15978_v1  ;;  %v13346_v57 = vld [vmem:[%s18616_s8 + $0x210] sm:$0xff]  ;;  %v3938_v33 = vpop.f32.mrf.mxu0 }
 0xbc3   :  { %v4531_v30 = vpack.c.bf16 %v4259_v63, %v4243_v28  ;;  %v4260_v50 = vmul.f32 %v4228_v45, %v16076_v61  ;;  %5432 = vmatpush.bf16.msra.mxu0 %v13347_v26  ;;  %5446 = vmatpush.bf16.msra.mxu1 %v13355_v40  ;;  %v16154_v36 = vmul.f32 0.5, %v16006_v6  ;;  %v4152_v14 = vmul.f32 0.7978846, %v4120_v54  ;;  %v13354_v1 = vld [vmem:[%s18616_s8 + $0x250] sm:$0xff]  ;;  %v3952_v61 = vpop.f32.mrf.mxu1  ;;  %v13372_v6 = vld [vmem:[%s18616_s8 + $0x2e0] sm:$0xff]  ;;  %v13363_v26 = vld [vmem:[%s18616_s8 + $0x298] sm:$0xff] }
 0xbc4   :  { %v4137_v9 = vadd.f32 %v4105_v29, %v16073_v24  ;;  %v3577_v51 = vperm.slane %v15919_v41, 5  ;;  %v4213_v58 = vadd.f32 1.0, %v13873_v37  ;;  %v4167_v5 = vmul.f32 0.7978846, %v4135_v38 }
 0xbc5   :  { %v4138_v12 = vadd.f32 %v4106_v60, %v16084_v46  ;;  %5472 = vmatpush.bf16.msra.mxu3 %v13373_v53  ;;  %5380 = vmatmul.bf16.vlgmr.msrb.gmra.mxu0 %v4531_v30  ;;  %v4532_v11 = vpack.c.bf16 %v4260_v50, %v4244_v35  ;;  %13880 = vtanh.f32 %v4151_v8  ;;  %v4153_v22 = vmul.f32 0.7978846, %v4121_v7  ;;  %v13345_v8 = vld [vmem:[%s18616_s8 + $0x208] sm:$0xff] }
 0xbc6   :  { %v4122_v15 = vadd.f32 %v4090_v10, %v16055_v42  ;;  %v4168_v55 = vmul.f32 0.7978846, %v4136_v49  ;;  %5459 = vmatpush.bf16.msra.mxu2 %v13364_v34  ;;  %v4027_v40 = vmul.f32 0.044715, %v16141_v2  ;;  %v16170_v54 = vadd.f32 %v3938_v33, %v3576_v0  ;;  %v13353_v0 = vld [vmem:[%s18616_s8 + $0x248] sm:$0xff] }
 0xbc7   :  { %5394 = vmatmul.bf16.vlgmr.msrb.gmra.mxu1 %v4532_v11  ;;  %5433 = vmatpush.bf16.msra.mxu0 %v13346_v57  ;;  %v16172_v38 = vadd.f32 %v3952_v61, %v3577_v51  ;;  %v4229_v29 = vadd.f32 1.0, %v13877_v31  ;;  %13882 = vtanh.f32 %v4152_v14  ;;  %v4169_v37 = vmul.f32 0.7978846, %v4137_v9 }
 0xbc8   :  { %v16178_v60 = vadd.f32 %v16092_v47, %v3577_v51  ;;  %v3578_v53 = vperm.slane %v15919_v41, 6  ;;  %5447 = vmatpush.bf16.msra.mxu1 %v13354_v1  ;;  %v13879_v28 = vpop.eup %13878  ;;  %v16185_v63 = vmul.f32 0.5, %v16018_v3  ;;  %13884 = vtanh.f32 %v4167_v5  ;;  %v13371_v47 = vld [vmem:[%s18616_s8 + $0x2d8] sm:$0xff]  ;;  %v13362_v3 = vld [vmem:[%s18616_s8 + $0x290] sm:$0xff]  ;;  %v3966_v50 = vpop.f32.mrf.mxu2 }
 0xbc9   :  { %v4170_v45 = vmul.f32 0.7978846, %v4138_v12  ;;  %5473 = vmatpush.bf16.msra.mxu3 %v13372_v6  ;;  %v4043_v7 = vmul.f32 0.044715, %v16170_v54  ;;  %v4214_v10 = vadd.f32 1.0, %v13875_v16  ;;  %13886 = vtanh.f32 %v4153_v22  ;;  %v13344_v16 = vld [vmem:[%s18616_s8 + $0x200] sm:$0xff]  ;;  %v3980_v1 = vpop.f32.mrf.mxu3 }
 0xbca   :  { %v4154_v49 = vmul.f32 0.7978846, %v4122_v15  ;;  %v4044_v34 = vmul.f32 0.044715, %v16172_v38  ;;  %5460 = vmatpush.bf16.msra.mxu2 %v13363_v26  ;;  %13888 = vtanh.f32 %v4168_v55  ;;  %v4059_v31 = vmul.f32 %v4027_v40, %v16141_v2  ;;  %v13391_v5 = vld [vmem:[%s18616_s8 + $0x378] sm:$0xff]  ;;  %v13361_v15 = vld [vmem:[%s18616_s8 + $0x288] sm:$0xff] }
 0xbcb   :  { %v4245_v30 = vmul.f32 %v4213_v58, %v15984_v21  ;;  %v4261_v35 = vmul.f32 %v4229_v29, %v16079_v56  ;;  %5434 = vmatpush.bf16.msra.mxu0 %v13345_v8  ;;  %v13881_v57 = vpop.eup %13880  ;;  %13890 = vtanh.f32 %v4169_v37  ;;  %v4028_v14 = vmul.f32 0.044715, %v16178_v60  ;;  %v13352_v21 = vld [vmem:[%s18616_s8 + $0x240] sm:$0xff]  ;;  %v13383_v56 = vld [vmem:[%s18616_s8 + $0x338] sm:$0xff] }
 0xbcc   :  { %v16203_v9 = vadd.f32 %v16136_v48, %v3578_v53  ;;  %v4230_v51 = vadd.f32 1.0, %v13879_v28  ;;  %5448 = vmatpush.bf16.msra.mxu1 %v13353_v0  ;;  %13892 = vtanh.f32 %v4170_v45  ;;  %v3579_v33 = vperm.slane %v15919_v41, 7  ;;  %v13370_v48 = vld [vmem:[%s18616_s8 + $0x2d0] sm:$0xff] }
 0xbcd   :  { %v4075_v61 = vmul.f32 %v4043_v7, %v16170_v54  ;;  %v4533_v58 = vpack.c.bf16 %v4261_v35, %v4245_v30  ;;  %5474 = vmatpush.bf16.msra.mxu3 %v13371_v47  ;;  %v13883_v12 = vpop.eup %13882  ;;  %v4076_v11 = vmul.f32 %v4044_v34, %v16172_v38  ;;  %v4246_v6 = vmul.f32 %v4214_v10, %v15998_v17  ;;  %v13369_v7 = vld [vmem:[%s18616_s8 + $0x2c8] sm:$0xff]  ;;  %v13390_v47 = vld [vmem:[%s18616_s8 + $0x370] sm:$0xff] }
 0xbce   :  { %v4262_v22 = vmul.f32 %v4230_v51, %v16095_v23  ;;  %5461 = vmatpush.bf16.msra.mxu2 %v13362_v3  ;;  %v16222_v41 = vadd.f32 %v3966_v50, %v3578_v53  ;;  %v13885_v55 = vpop.eup %13884  ;;  %v16228_v26 = vmul.f32 0.5, %v16034_v20  ;;  %13894 = vtanh.f32 %v4154_v49  ;;  %v13382_v20 = vld [vmem:[%s18616_s8 + $0x330] sm:$0xff] }
 0xbcf   :  { %v4007_v40 = vmul.f32 0.5, %v16032_v62  ;;  %5408 = vmatmul.bf16.vlgmr.msrb.gmra.mxu2 %v4533_v58  ;;  %v16231_v29 = vadd.f32 %v3980_v1, %v3579_v33  ;;  %5435 = vmatpush.bf16.msra.mxu0 %v13344_v16  ;;  %v13887_v17 = vpop.eup %13886  ;;  %v4215_v23 = vadd.f32 1.0, %v13881_v57  ;;  %v4008_v8 = vmul.f32 0.5, %v16039_v18 }
 0xbd0   :  { %v4060_v37 = vmul.f32 %v4028_v14, %v16178_v60  ;;  %v4534_v53 = vpack.c.bf16 %v4262_v22, %v4246_v6  ;;  %5449 = vmatpush.bf16.msra.mxu1 %v13352_v21  ;;  %v13889_v0 = vpop.eup %13888  ;;  %v4091_v62 = vmul.f32 %v4059_v31, %v16141_v2  ;;  %v16240_v28 = vadd.f32 %v16146_v13, %v3579_v33  ;;  %v13360_v31 = vld [vmem:[%s18616_s8 + $0x280] sm:$0xff]  ;;  %v13407_v6 = vld [vmem:[%s18616_s8 + $0x3f8] sm:$0xff]  ;;  %v13389_v22 = vld [vmem:[%s18616_s8 + $0x368] sm:$0xff] }
 0xbd1   :  { %v4107_v45 = vmul.f32 %v4075_v61, %v16170_v54  ;;  %5475 = vmatpush.bf16.msra.mxu3 %v13370_v48  ;;  %v4045_v18 = vmul.f32 0.044715, %v16222_v41  ;;  %v13891_v10 = vpop.eup %13890  ;;  %v4009_v49 = vmul.f32 0.5, %v16073_v24  ;;  %v4029_v13 = vmul.f32 0.044715, %v16203_v9  ;;  %v13399_v24 = vld [vmem:[%s18616_s8 + $0x3b8] sm:$0xff] }
 0xbd2   :  { %v4108_v34 = vmul.f32 %v4076_v11, %v16172_v38  ;;  %5422 = vmatmul.bf16.vlgmr.msrb.gmra.mxu3 %v4534_v53  ;;  %5462 = vmatpush.bf16.msra.mxu2 %v13361_v15  ;;  %v4231_v3 = vadd.f32 1.0, %v13885_v55  ;;  %v13893_v30 = vpop.eup %13892  ;;  %v4216_v35 = vadd.f32 1.0, %v13883_v12  ;;  %v4217_v50 = vadd.f32 1.0, %v13887_v17  ;;  %v13368_v48 = vld [vmem:[%s18616_s8 + $0x2c0] sm:$0xff] }
 0xbd3   :  { %5484 = vmatpush.bf16.msrb.mxu0 %v13383_v56  ;;  %v4010_v16 = vmul.f32 0.5, %v16084_v46  ;;  %v4046_v57 = vmul.f32 0.044715, %v16231_v29  ;;  %v4092_v14 = vmul.f32 %v4060_v37, %v16178_v60  ;;  %v4077_v51 = vmul.f32 %v4045_v18, %v16222_v41  ;;  %v13398_v37 = vld [vmem:[%s18616_s8 + $0x3b0] sm:$0xff] }
 0xbd4   :  { %5498 = vmatpush.bf16.msrb.mxu1 %v13391_v5  ;;  %v4247_v1 = vmul.f32 %v4215_v23, %v16154_v36  ;;  %v4263_v21 = vmul.f32 %v4231_v3, %v4007_v40  ;;  %v13895_v56 = vpop.eup %13894  ;;  %v4123_v33 = vadd.f32 %v4091_v62, %v16141_v2  ;;  %v4030_v61 = vmul.f32 0.044715, %v16240_v28  ;;  %v13381_v36 = vld [vmem:[%s18616_s8 + $0x328] sm:$0xff] }
 0xbd5   :  { %v4139_v46 = vadd.f32 %v4107_v45, %v16170_v54  ;;  %5476 = vmatpush.bf16.msra.mxu3 %v13369_v7  ;;  %v4232_v58 = vadd.f32 1.0, %v13889_v0  ;;  %v4061_v5 = vmul.f32 %v4029_v13, %v16203_v9  ;;  %v4140_v12 = vadd.f32 %v4108_v34, %v16172_v38  ;;  %v13406_v34 = vld [vmem:[%s18616_s8 + $0x3f0] sm:$0xff] }
 0xbd6   :  { %v4535_v11 = vpack.c.bf16 %v4263_v21, %v4247_v1  ;;  %5463 = vmatpush.bf16.msra.mxu2 %v13360_v31  ;;  %v4233_v15 = vadd.f32 1.0, %v13891_v10  ;;  %v4078_v55 = vmul.f32 %v4046_v57, %v16231_v29  ;;  %v4248_v40 = vmul.f32 %v4216_v35, %v16185_v63  ;;  %v13387_v1 = vld [vmem:[%s18616_s8 + $0x358] sm:$0xff] }
 0xbd7   :  { %5485 = vmatpush.bf16.msrb.mxu0 %v13382_v20  ;;  %v4264_v17 = vmul.f32 %v4232_v58, %v4008_v8  ;;  %v4234_v23 = vadd.f32 1.0, %v13893_v30  ;;  %v4218_v53 = vadd.f32 1.0, %v13895_v56  ;;  %v4124_v20 = vadd.f32 %v4092_v14, %v16178_v60  ;;  %v13380_v8 = vld [vmem:[%s18616_s8 + $0x320] sm:$0xff]  ;;  %v13405_v56 = vld [vmem:[%s18616_s8 + $0x3e8] sm:$0xff]  ;;  %v13378_v58 = vld [vmem:[%s18616_s8 + $0x310] sm:$0xff] }
 0xbd8   :  { %5499 = vmatpush.bf16.msrb.mxu1 %v13390_v47  ;;  %v4109_v0 = vmul.f32 %v4077_v51, %v16222_v41  ;;  %5436 = vmatmul.bf16.vlgmr.msra.gmra.mxu0 %v4535_v11  ;;  %v4265_v62 = vmul.f32 %v4233_v15, %v4009_v49  ;;  %v4062_v45 = vmul.f32 %v4030_v61, %v16240_v28  ;;  %v4171_v18 = vmul.f32 0.7978846, %v4139_v46  ;;  %v13396_v61 = vld [vmem:[%s18616_s8 + $0x3a0] sm:$0xff] }
 0xbd9   :  { %v4536_v7 = vpack.c.bf16 %v4264_v17, %v4248_v40  ;;  %5477 = vmatpush.bf16.msra.mxu3 %v13368_v48  ;;  %v4249_v63 = vmul.f32 %v4217_v50, %v16228_v26  ;;  %v3994_v47 = vmul.f32 0.5, %v16055_v42  ;;  %v4093_v10 = vmul.f32 %v4061_v5, %v16203_v9  ;;  %v13388_v26 = vld [vmem:[%s18616_s8 + $0x360] sm:$0xff]  ;;  %v13377_v40 = vld [vmem:[%s18616_s8 + $0x308] sm:$0xff] }
 0xbda   :  { %5512 = vmatpush.bf16.msrb.mxu2 %v13399_v24  ;;  %v4172_v13 = vmul.f32 0.7978846, %v4140_v12  ;;  %v4266_v49 = vmul.f32 %v4234_v23, %v4010_v16  ;;  %v4155_v3 = vmul.f32 0.7978846, %v4123_v33  ;;  %v4110_v31 = vmul.f32 %v4078_v55, %v16231_v29  ;;  %v13397_v16 = vld [vmem:[%s18616_s8 + $0x3a8] sm:$0xff]  ;;  %v13379_v24 = vld [vmem:[%s18616_s8 + $0x318] sm:$0xff] }
 0xbdb   :  { %5486 = vmatpush.bf16.msrb.mxu0 %v13381_v36  ;;  %5450 = vmatmul.bf16.vlgmr.msra.gmra.mxu1 %v4536_v7  ;;  %v4537_v30 = vpack.c.bf16 %v4265_v62, %v4249_v63  ;;  %v4156_v42 = vmul.f32 0.7978846, %v4124_v20  ;;  %v4141_v35 = vadd.f32 %v4109_v0, %v16222_v41  ;;  %v4250_v50 = vmul.f32 %v4218_v53, %v3994_v47  ;;  %v13386_v36 = vld [vmem:[%s18616_s8 + $0x350] sm:$0xff]  ;;  %v13404_v11 = vld [vmem:[%s18616_s8 + $0x3e0] sm:$0xff]  ;;  %v13385_v23 = vld [vmem:[%s18616_s8 + $0x348] sm:$0xff] }
 0xbdc   :  { %5500 = vmatpush.bf16.msrb.mxu1 %v13389_v22  ;;  %v4094_v57 = vmul.f32 %v4062_v45, %v16240_v28  ;;  %13896 = vtanh.f32 %v4171_v18  ;;  %v4125_v14 = vadd.f32 %v4093_v10, %v16203_v9  ;;  %v4142_v21 = vadd.f32 %v4110_v31, %v16231_v29  ;;  %v13395_v22 = vld [vmem:[%s18616_s8 + $0x398] sm:$0xff]  ;;  %v13394_v45 = vld [vmem:[%s18616_s8 + $0x390] sm:$0xff]  ;;  %v13376_v63 = vld [vmem:[%s18616_s8 + $0x300] sm:$0xff] }
 0xbdd   :  { %5526 = vmatpush.bf16.msrb.mxu3 %v13407_v6  ;;  %13898 = vtanh.f32 %v4172_v13  ;;  %v4538_v51 = vpack.c.bf16 %v4266_v49, %v4250_v50  ;;  %v4173_v33 = vmul.f32 0.7978846, %v4141_v35  ;;  %v13403_v53 = vld [vmem:[%s18616_s8 + $0x3d8] sm:$0xff]  ;;  %v4011_v62 = vmul.f32 0.5, %v16170_v54  ;;  %v13384_v54 = vld [vmem:[%s18616_s8 + $0x340] sm:$0xff] }
 0xbde   :  { %5513 = vmatpush.bf16.msrb.mxu2 %v13398_v37  ;;  %13900 = vtanh.f32 %v4155_v3  ;;  %v4126_v46 = vadd.f32 %v4094_v57, %v16240_v28  ;;  %v4157_v48 = vmul.f32 0.7978846, %v4125_v14  ;;  %v4174_v12 = vmul.f32 0.7978846, %v4142_v21 }
 0xbdf   :  { %5487 = vmatpush.bf16.msrb.mxu0 %v13380_v8  ;;  %5464 = vmatmul.bf16.vlgmr.msra.gmra.mxu2 %v4537_v30  ;;  %13902 = vtanh.f32 %v4156_v42  ;;  %v4012_v7 = vmul.f32 0.5, %v16172_v38  ;;  %v3995_v47 = vmul.f32 0.5, %v16141_v2  ;;  %v3996_v13 = vmul.f32 0.5, %v16178_v60  ;;  %v13402_v38 = vld [vmem:[%s18616_s8 + $0x3d0] sm:$0xff]  ;;  %v13393_v2 = vld [vmem:[%s18616_s8 + $0x388] sm:$0xff] }
 0xbe0   :  { %5501 = vmatpush.bf16.msrb.mxu1 %v13388_v26  ;;  %13904 = vtanh.f32 %v4173_v33  ;;  %v4158_v55 = vmul.f32 0.7978846, %v4126_v46  ;;  %v4013_v50 = vmul.f32 0.5, %v16222_v41  ;;  %v4014_v41 = vmul.f32 0.5, %v16231_v29 }
 0xbe1   :  { %5527 = vmatpush.bf16.msrb.mxu3 %v13406_v34  ;;  %13906 = vtanh.f32 %v4157_v48 }
 0xbe2   :  { %5514 = vmatpush.bf16.msrb.mxu2 %v13397_v16  ;;  %5478 = vmatmul.bf16.vlgmr.msra.gmra.mxu3 %v4538_v51  ;;  %v13897_v5 = vpop.eup %13896  ;;  %13908 = vtanh.f32 %v4174_v12  ;;  %v13401_v16 = vld [vmem:[%s18616_s8 + $0x3c8] sm:$0xff]  ;;  %v3997_v51 = vmul.f32 0.5, %v16203_v9 }
 0xbe3   :  { %5488 = vmatpush.bf16.msrb.mxu0 %v13379_v24  ;;  %v13899_v6 = vpop.eup %13898  ;;  %v4235_v37 = vadd.f32 1.0, %v13897_v5  ;;  %13910 = vtanh.f32 %v4158_v55  ;;  %v13392_v24 = vld [vmem:[%s18616_s8 + $0x380] sm:$0xff] }
 0xbe4   :  { %5502 = vmatpush.bf16.msrb.mxu1 %v13387_v1  ;;  %v13901_v15 = vpop.eup %13900  ;;  %v4236_v20 = vadd.f32 1.0, %v13899_v6 }
 0xbe5   :  { %5528 = vmatpush.bf16.msrb.mxu3 %v13405_v56  ;;  %v13903_v17 = vpop.eup %13902  ;;  %v4219_v0 = vadd.f32 1.0, %v13901_v15  ;;  %v4267_v10 = vmul.f32 %v4235_v37, %v4011_v62  ;;  %v13400_v56 = vld [vmem:[%s18616_s8 + $0x3c0] sm:$0xff] }
 0xbe6   :  { %5515 = vmatpush.bf16.msrb.mxu2 %v13396_v61  ;;  %v4220_v18 = vadd.f32 1.0, %v13903_v17  ;;  %v13905_v8 = vpop.eup %13904  ;;  %v4268_v49 = vmul.f32 %v4236_v20, %v4012_v7  ;;  %v3998_v61 = vmul.f32 0.5, %v16240_v28 }
 0xbe7   :  { %5489 = vmatpush.bf16.msrb.mxu0 %v13378_v58  ;;  %v13907_v34 = vpop.eup %13906  ;;  %v4251_v26 = vmul.f32 %v4219_v0, %v3995_v47  ;;  %v4237_v30 = vadd.f32 1.0, %v13905_v8 }
 0xbe8   :  { %5503 = vmatpush.bf16.msrb.mxu1 %v13386_v36  ;;  %v13909_v3 = vpop.eup %13908  ;;  %v4252_v31 = vmul.f32 %v4220_v18, %v3996_v13  ;;  %v4221_v35 = vadd.f32 1.0, %v13907_v34 }
 0xbe9   :  { %5529 = vmatpush.bf16.msrb.mxu3 %v13404_v11  ;;  %v4539_v42 = vpack.c.bf16 %v4267_v10, %v4251_v26  ;;  %v13911_v60 = vpop.eup %13910  ;;  %v4238_v14 = vadd.f32 1.0, %v13909_v3  ;;  %v4269_v1 = vmul.f32 %v4237_v30, %v4013_v50 }
 0xbea   :  { %5516 = vmatpush.bf16.msrb.mxu2 %v13395_v22  ;;  %v4540_v57 = vpack.c.bf16 %v4268_v49, %v4252_v31  ;;  %v4222_v21 = vadd.f32 1.0, %v13911_v60  ;;  %v4253_v33 = vmul.f32 %v4221_v35, %v3997_v51  ;;  %v13750_v22 = vld [vmem:[%s18611_s5 + $0x8] ss:$0 sm:$0xff] }
 0xbeb   :  { %5490 = vmatpush.bf16.msrb.mxu0 %v13377_v40  ;;  %v4270_v46 = vmul.f32 %v4238_v14, %v4014_v41 }
 0xbec   :  { %5504 = vmatpush.bf16.msrb.mxu1 %v13385_v23  ;;  %v4541_v58 = vpack.c.bf16 %v4269_v1, %v4253_v33  ;;  %v4254_v48 = vmul.f32 %v4222_v21, %v3998_v61 }
 0xbed   :  { %5530 = vmatpush.bf16.msrb.mxu3 %v13403_v53 }
 0xbee   :  { %5517 = vmatpush.bf16.msrb.mxu2 %v13394_v45  ;;  %v4542_v9 = vpack.c.bf16 %v4270_v46, %v4254_v48 }
 0xbef   :  { %5491 = vmatpush.bf16.msrb.mxu0 %v13376_v63 }
 0xbf0   :  { %5505 = vmatpush.bf16.msrb.mxu1 %v13384_v54 }
 0xbf1   :  { %5531 = vmatpush.bf16.msrb.mxu3 %v13402_v38 }
 0xbf2   :  { %5518 = vmatpush.bf16.msrb.mxu2 %v13393_v2  ;;  %5492 = vmatmul.bf16.vlgmr.msrb.gmra.mxu0 %v4539_v42 }
 0xbf3   :  { %5506 = vmatmul.bf16.vlgmr.msrb.gmra.mxu1 %v4540_v57 }
 0xbf5   :  { %5532 = vmatpush.bf16.msrb.mxu3 %v13401_v16 }
 0xbf6   :  { %5519 = vmatpush.bf16.msrb.mxu2 %v13392_v24 }
 0xbf9   :  { %5533 = vmatpush.bf16.msrb.mxu3 %v13400_v56  ;;  %5520 = vmatmul.bf16.vlgmr.msrb.gmra.mxu2 %v4541_v58 }
 0xbfc   :  { %5534 = vmatmul.bf16.vlgmr.msrb.gmra.mxu3 %v4542_v9 }
 0xc2f   :  { %v5325_v36 = vpop.f32.mrf.mxu0  ;;  %v5339_v5 = vpop.f32.mrf.mxu1 }
 0xc30   :  { %v5326_v55 = vadd.f32 %v13750_v22, %v5325_v36 }
 0xc32   :  { %v5340_v23 = vadd.f32 %v5339_v5, %v5326_v55 }
 0xc37   :  { %v5327_v12 = vpop.f32.mrf.mxu0  ;;  %v5341_v6 = vpop.f32.mrf.mxu1 }
 0xc38   :  { %v5328_v0 = vadd.f32 %v13750_v22, %v5327_v12 }
 0xc3a   :  { %v5342_v18 = vadd.f32 %v5341_v6, %v5328_v0 }
 0xc3c   :  { %v5353_v29 = vpop.f32.mrf.mxu2 }
 0xc3d   :  { %v5354_v37 = vadd.f32 %v5353_v29, %v5340_v23 }
 0xc3f   :  { %v5367_v11 = vpop.f32.mrf.mxu3 }
 0xc40   :  { %v5368_v62 = vadd.f32 %v5367_v11, %v5354_v37 }
 0xc42   :  { %v5381_v15 = vpop.f32.mrf.mxu0 }
 0xc43   :  { %v5382_v63 = vadd.f32 %v5381_v15, %v5368_v62 }
 0xc44   :  { %v5355_v28 = vpop.f32.mrf.mxu2  ;;  %v5395_v17 = vpop.f32.mrf.mxu1 }
 0xc45   :  { %v5356_v8 = vadd.f32 %v5355_v28, %v5342_v18  ;;  %v5396_v10 = vadd.f32 %v5395_v17, %v5382_v63 }
 0xc47   :  { %v5369_v40 = vpop.f32.mrf.mxu3 }
 0xc48   :  { %v5370_v13 = vadd.f32 %v5369_v40, %v5356_v8 }
 0xc4a   :  { %v5383_v53 = vpop.f32.mrf.mxu0 }
 0xc4b   :  { %v5384_v34 = vadd.f32 %v5383_v53, %v5370_v13  ;;  %v13409_v13 = vld [vmem:[%s18609_s4 + $0x88] sm:$0xff] }
 0xc4c   :  { %v5397_v7 = vpop.f32.mrf.mxu1  ;;  %5632 = vmatpush.bf16.msra.mxu0 %v13409_v13 }
 0xc4d   :  { %v5398_v3 = vadd.f32 %v5397_v7, %v5384_v34  ;;  %v13408_v34 = vld [vmem:[%s18609_s4 + $0x80] sm:$0xff] }
 0xc50   :  { %5633 = vmatpush.bf16.msra.mxu0 %v13408_v34 }
 0xc52   :  { %v5409_v20 = vpop.f32.mrf.mxu2 }
 0xc53   :  { %v5410_v38 = vadd.f32 %v5409_v20, %v5396_v10 }
 0xc55   :  { %v5423_v45 = vpop.f32.mrf.mxu3  ;;  %v5437_v47 = vpop.f32.mrf.mxu0 }
 0xc56   :  { %v5424_v26 = vadd.f32 %v5423_v45, %v5410_v38  ;;  %v13411_v38 = vld [vmem:[%s18609_s4 + $0x98] sm:$0xff] }
 0xc57   :  { %5668 = vmatpush.bf16.msra.mxu1 %v13411_v38 }
 0xc58   :  { %v5451_v2 = vpop.f32.mrf.mxu1  ;;  %v5438_v42 = vadd.f32 %v5437_v47, %v5424_v26 }
 0xc5a   :  { %v5411_v54 = vpop.f32.mrf.mxu2  ;;  %v5452_v50 = vadd.f32 %v5451_v2, %v5438_v42  ;;  %v13410_v2 = vld [vmem:[%s18609_s4 + $0x90] sm:$0xff] }
 0xc5b   :  { %v5412_v60 = vadd.f32 %v5411_v54, %v5398_v3  ;;  %v13412_v3 = vld [vmem:[%s18609_s4 + $0xa0] sm:$0xff]  ;;  %5669 = vmatpush.bf16.msra.mxu1 %v13410_v2 }
 0xc5d   :  { %v5425_v49 = vpop.f32.mrf.mxu3  ;;  %v5439_v31 = vpop.f32.mrf.mxu0 }
 0xc5e   :  { %v5426_v16 = vadd.f32 %v5425_v49, %v5412_v60  ;;  %v13413_v49 = vld [vmem:[%s18609_s4 + $0xa8] sm:$0xff] }
 0xc5f   :  { %5704 = vmatpush.bf16.msra.mxu2 %v13413_v49 }
 0xc60   :  { %v5453_v57 = vpop.f32.mrf.mxu1  ;;  %v5440_v51 = vadd.f32 %v5439_v31, %v5426_v16 }
 0xc62   :  { %v5465_v30 = vpop.f32.mrf.mxu2  ;;  %v5454_v41 = vadd.f32 %v5453_v57, %v5440_v51 }
 0xc63   :  { %v5466_v24 = vadd.f32 %v5465_v30, %v5452_v50  ;;  %5705 = vmatpush.bf16.msra.mxu2 %v13412_v3 }
 0xc65   :  { %v5479_v35 = vpop.f32.mrf.mxu3 }
 0xc66   :  { %v5480_v21 = vadd.f32 %v5479_v35, %v5466_v24 }
 0xc6a   :  { %v5467_v1 = vpop.f32.mrf.mxu2 }
 0xc6b   :  { %v5468_v46 = vadd.f32 %v5467_v1, %v5454_v41 }
 0xc6d   :  { %v5481_v56 = vpop.f32.mrf.mxu3 }
 0xc6e   :  { %v5482_v36 = vadd.f32 %v5481_v56, %v5468_v46  ;;  %v13751_v56 = vld [vmem:[%s18611_s5 + $0xd] ss:$0 sm:$0xff] }
 0xc6f   :  { %v5493_v14 = vpop.f32.mrf.mxu0 }
 0xc70   :  { %v5494_v33 = vadd.f32 %v5493_v14, %v5480_v21  ;;  %v5507_v61 = vpop.f32.mrf.mxu1 }
 0xc72   :  { %v5508_v58 = vadd.f32 %v5507_v61, %v5494_v33 }
 0xc77   :  { %v5495_v48 = vpop.f32.mrf.mxu0 }
 0xc78   :  { %v5496_v12 = vadd.f32 %v5495_v48, %v5482_v36  ;;  %v5509_v6 = vpop.f32.mrf.mxu1 }
 0xc7a   :  { %v5510_v15 = vadd.f32 %v5509_v6, %v5496_v12  ;;  %v13754_v6 = vld [vmem:[%s18611_s5 + $0x10] ss:$0 sm:$0xff] }
 0xc7c   :  { %v5521_v9 = vpop.f32.mrf.mxu2 }
 0xc7d   :  { %v5522_v5 = vadd.f32 %v5521_v9, %v5508_v58  ;;  %v13752_v58 = vld [vmem:[%s18611_s5 + $0xe] ss:$0 sm:$0xff] }
 0xc7f   :  { %v5535_v29 = vpop.f32.mrf.mxu3 }
 0xc80   :  { %v5536_v11 = vadd.f32 %v5535_v29, %v5522_v5 }
 0xc82   :  { %v5540_v22 = vadd.f32 %v5536_v11, %v15545_v39  ;;  %v13753_v11 = vld [vmem:[%s18611_s5 + $0xf] ss:$0 sm:$0xff] }
 0xc84   :  { %v5523_v28 = vpop.f32.mrf.mxu2  ;;  %v5546_v55 = vsel %vm91_vm0, %v5540_v22, 0.0 }
 0xc85   :  { %v5524_v40 = vadd.f32 %v5523_v28, %v5510_v15  ;;  %5547 = vadd.xlane.f32.xlu0 %v5546_v55 }
 0xc87   :  { %v5537_v17 = vpop.f32.mrf.mxu3 }
 0xc88   :  { %v5538_v23 = vadd.f32 %v5537_v17, %v5524_v40 }
 0xc8a   :  { %v5541_v37 = vadd.f32 %v5538_v23, %v15547_v59 }
 0xc8c   :  { %v5549_v53 = vsel %vm91_vm0, %v5541_v37, 0.0 }
 0xc8d   :  { %5550 = vadd.xlane.f32.xlu1 %v5549_v53 }
 0xcf8   :  { %v5548_v20 = vpop.xlane.xlu0 %5547 }
 0xcf9   :  { %v5552_v0 = vmul.f32 %v5548_v20, %v14835_v43 }
 0xcfb   :  { %v5554_v62 = vsub.f32 %v5540_v22, %v5552_v0 }
 0xcfd   :  { %v5556_v45 = vmul.f32 %v5554_v62, %v5554_v62 }
 0xcff   :  { %v5558_v39 = vsel %vm91_vm0, %v5556_v45, 0.0 }
 0xd00   :  { %v5551_v18 = vpop.xlane.xlu1 %5550  ;;  %5559 = vadd.xlane.f32.xlu2 %v5558_v39 }
 0xd01   :  { %v5553_v7 = vmul.f32 %v5551_v18, %v14835_v43 }
 0xd03   :  { %v5555_v63 = vsub.f32 %v5541_v37, %v5553_v7 }
 0xd05   :  { %v5557_v8 = vmul.f32 %v5555_v63, %v5555_v63 }
 0xd07   :  { %v5561_v47 = vsel %vm91_vm0, %v5557_v8, 0.0 }
 0xd08   :  { %5562 = vadd.xlane.f32.xlu0 %v5561_v47 }
 0xd73   :  { %v5560_v59 = vpop.xlane.xlu2 %5559 }
 0xd74   :  { %v5564_v54 = vmul.f32 %v5560_v59, %v14835_v43 }
 0xd76   :  { %v5566_v10 = vadd.f32 1e-05, %v5564_v54 }
 0xd78   :  { %13912 = vrsqrt.f32 %v5566_v10  ;;  %vm5574_vm9 = vweird.f32 %v5566_v10 }
 0xd7b   :  { %v5563_v26 = vpop.xlane.xlu0 %5562 }
 0xd7c   :  { %v5565_v31 = vmul.f32 %v5563_v26, %v14835_v43 }
 0xd7e   :  { %v13913_v30 = vpop.eup %13912  ;;  %v5567_v42 = vadd.f32 1e-05, %v5565_v31 }
 0xd7f   :  { %v5569_v60 = vmul.f32 %v13913_v30, %v5566_v10  ;;  %vm5575_vm8 = vweird.f32 %v13913_v30 }
 0xd80   :  { %13914 = vrsqrt.f32 %v5567_v42  ;;  %vm5576_vm10 = vmor %vm5574_vm9, %vm5575_vm8  ;;  %vm5584_vm12 = vweird.f32 %v5567_v42 }
 0xd81   :  { %v5570_v35 = vmul.f32 %v13913_v30, %v5569_v60 }
 0xd83   :  { %v5571_v50 = vmul.f32 0.5, %v5570_v35 }
 0xd85   :  { %v5572_v16 = vsub.f32 1.5, %v5571_v50 }
 0xd86   :  { %v13915_v57 = vpop.eup %13914 }
 0xd87   :  { %v5573_v24 = vmul.f32 %v13913_v30, %v5572_v16  ;;  %v5579_v14 = vmul.f32 %v13915_v57, %v5567_v42  ;;  %vm5585_vm11 = vweird.f32 %v13915_v57 }
 0xd88   :  { %vm5586_vm15 = vmor %vm5584_vm12, %vm5585_vm11 }
 0xd89   :  { %v5580_v51 = vmul.f32 %v13915_v57, %v5579_v14  ;;  %v5577_v1 = vsel %vm5576_vm10, %v13913_v30, %v5573_v24 }
 0xd8a   :  { %v5588_v33 = vmul.f32 %v5577_v1, %v5554_v62 }
 0xd8b   :  { %v5581_v21 = vmul.f32 0.5, %v5580_v51 }
 0xd8c   :  { %v5593_v48 = vmul.f32 %v13751_v56, %v5588_v33 }
 0xd8d   :  { %v5582_v41 = vsub.f32 1.5, %v5581_v21 }
 0xd8e   :  { %v16412_v5 = vadd.f32 %v13752_v58, %v5593_v48 }
 0xd8f   :  { %v5583_v61 = vmul.f32 %v13915_v57, %v5582_v41 }
 0xd91   :  { %v5587_v46 = vsel %vm5586_vm15, %v13915_v57, %v5583_v61 }
 0xd92   :  { %v5589_v9 = vmul.f32 %v5587_v46, %v5555_v63 }
 0xd94   :  { %v5594_v36 = vmul.f32 %v13751_v56, %v5589_v9 }
 0xd96   :  { %v16414_v12 = vadd.f32 %v13752_v58, %v5594_v36 }
 0xd98   :  { %v5605_v29 = vpack.c.bf16 %v16414_v12, %v16412_v5 }
 0xd9a   :  { %12127 = vmatmul.msk.bf16.vlgmr.msra.gmra.mxu0 %vm91_vm0, %v5605_v29  ;;  %12141 = vmatmul.msk.bf16.vlgmr.msra.gmra.mxu1 %vm91_vm0, %v5605_v29 }
 0xd9b   :  { %12155 = vmatmul.msk.bf16.vlgmr.msra.gmra.mxu2 %vm91_vm0, %v5605_v29 }
 0xe17   :  { %v5635_v22 = vpop.f32.mrf.mxu0  ;;  %v5671_v15 = vpop.f32.mrf.mxu1 }
 0xe18   :  { %v16427_v28 = vadd.f32 %v13753_v11, %v5635_v22  ;;  %v5672_v55 = vadd.f32 %v13754_v6, %v5671_v15 }
 0xe1a   :  { %5981 = vrot.lane.b32.xlu0 %v5672_v55, %s14066_s29  ;;  %5975 = vrot.lane.b32.xlu2 %v5672_v55, %s14068_s15  ;;  %v13668_v40 = vpack.i.bf16 %v16427_v28, %v5672_v55  ;;  %v5989_v45 = vrot.slane %v5672_v55, 4  ;;  %v5741_v29 = vrot.slane %v16427_v28, 4 }
 0xe1c   :  { %13669 = vrot.lane.b32.xlu1 %v13668_v40, %s14067_s30 }
 0xe1f   :  { %v5673_v17 = vpop.f32.mrf.mxu1  ;;  %v5637_v37 = vpop.f32.mrf.mxu0 }
 0xe20   :  { %v16433_v23 = vadd.f32 %v13754_v6, %v5673_v17  ;;  %v16441_v53 = vadd.f32 %v13753_v11, %v5637_v37 }
 0xe22   :  { %5971 = vrot.lane.b32.xlu2 %v16433_v23, %s14067_s30  ;;  %5733 = vrot.lane.b32.xlu0 %v16427_v28, %s14066_s29  ;;  %v6045_v11 = vrot.slane %v16433_v23, 4 }
 0xe24   :  { %5727 = vrot.lane.b32.xlu1 %v16427_v28, %s14068_s15 }
 0xe2a   :  { %5723 = vrot.lane.b32.xlu2 %v16441_v53, %s14067_s30  ;;  %5983 = vrot.lane.b32.xlu0 %v16433_v23, %s14066_s29 }
 0xe2c   :  { %5977 = vrot.lane.b32.xlu1 %v16433_v23, %s14068_s15 }
 0xe32   :  { %5735 = vrot.lane.b32.xlu0 %v16441_v53, %s14066_s29 }
 0xe34   :  { %5729 = vrot.lane.b32.xlu1 %v16441_v53, %s14068_s15 }
 0xe74   :  { %v5976_v20 = vpop.permute.xlu2 %5975 }
 0xe75   :  { %v5987_v0 = vrot.slane %v5976_v20, 4  ;;  %v5990_v18 = vsel %vm209_vm1, %v5976_v20, %v5989_v45 }
 0xe76   :  { %v5998_v10 = vperm.slane %v5990_v18, %v14217_v27 }
 0xe77   :  { %v5988_v62 = vsel %vm209_vm1, %v5987_v0, %v5672_v55  ;;  %v5797_v55 = vrot.slane %v16441_v53, 4 }
 0xe78   :  { %v5994_v7 = vperm.slane %v5988_v62, %v14217_v27  ;;  %v6025_v3 = vrot.slane %v5998_v10, 4 }
 0xe7a   :  { %v6013_v49 = vrot.slane %v5994_v7, 4 }
 0xe7c   :  { %v16456_v63 = vpop.permute.xlu2 %5971 }
 0xe7d   :  { %v6057_v40 = vrot.slane %v16456_v63, 4 }
 0xe84   :  { %v16472_v61 = vpop.permute.xlu2 %5723 }
 0xe85   :  { %v5809_v17 = vrot.slane %v16472_v61, 4 }
 0xe8c   :  { %v5982_v39 = vpop.permute.xlu0 %5981 }
 0xe8d   :  { %v5999_v47 = vrot.slane %v5982_v39, 4 }
 0xe8e   :  { %v13670_v8 = vpop.permute.xlu1 %13669 }
 0xe8f   :  { %v13672_v59 = vunpack.i.h.bf16 %v13670_v8  ;;  %v13671_v54 = vunpack.i.l.bf16 %v13670_v8 }
 0xe91   :  { %v6000_v13 = vsel %vm209_vm1, %v5999_v47, %v13671_v54  ;;  %v6001_v38 = vrot.slane %v13671_v54, 4  ;;  %v5753_v2 = vrot.slane %v13672_v59, 4 }
 0xe92   :  { %v6006_v34 = vperm.slane %v6000_v13, %v14217_v27 }
 0xe93   :  { %v6002_v26 = vsel %vm209_vm1, %v5982_v39, %v6001_v38 }
 0xe94   :  { %v6010_v31 = vperm.slane %v6002_v26, %v14217_v27  ;;  %v6011_v30 = vrot.slane %v6006_v34, 4  ;;  %v6014_v42 = vsel %vm209_vm1, %v6006_v34, %v6013_v49  ;;  %v5734_v60 = vpop.permute.xlu0 %5733 }
 0xe95   :  { %v6022_v35 = vperm.slane %v6014_v42, %v14229_v44  ;;  %v5751_v50 = vrot.slane %v5734_v60, 4  ;;  %v5754_v16 = vsel %vm209_vm1, %v5734_v60, %v5753_v2 }
 0xe96   :  { %v6012_v57 = vsel %vm209_vm1, %v6011_v30, %v5994_v7  ;;  %v6023_v24 = vrot.slane %v6010_v31, 4  ;;  %v6026_v14 = vsel %vm209_vm1, %v6010_v31, %v6025_v3  ;;  %v5762_v51 = vperm.slane %v5754_v16, %v14217_v27  ;;  %v5728_v1 = vpop.permute.xlu1 %5727 }
 0xe97   :  { %v6018_v21 = vperm.slane %v6012_v57, %v14229_v44  ;;  %v6034_v41 = vperm.slane %v6026_v14, %v14229_v44  ;;  %v6037_v56 = vrot.slane %v6022_v35, 4  ;;  %v5752_v33 = vsel %vm209_vm1, %v5751_v50, %v13672_v59 }
 0xe98   :  { %v6024_v46 = vsel %vm209_vm1, %v6023_v24, %v5998_v10  ;;  %v5758_v58 = vperm.slane %v5752_v33, %v14217_v27  ;;  %v5739_v48 = vrot.slane %v5728_v1, 4  ;;  %v5775_v20 = vrot.slane %v5762_v51, 4 }
 0xe99   :  { %v6035_v9 = vrot.slane %v6018_v21, 4  ;;  %v6038_v36 = vsel %vm209_vm1, 0.0, %v6037_v56  ;;  %v16480_v6 = vperm.slane %v6024_v46, %v14229_v44  ;;  %v16487_v37 = vrot.slane %v6034_v41, 4 }
 0xe9a   :  { %v5763_v22 = vrot.slane %v5758_v58, 4  ;;  %v5740_v15 = vsel %vm209_vm1, %v5739_v48, %v16427_v28  ;;  %v16490_v0 = vsel %vm209_vm1, %v6037_v56, %v6018_v21  ;;  %v6104_v62 = vrot.slane %v6038_v36, 4 }
 0xe9b   :  { %v5742_v45 = vsel %vm209_vm1, %v5728_v1, %v5741_v29  ;;  %v5746_v39 = vperm.slane %v5740_v15, %v14217_v27  ;;  %v6036_v28 = vsel %vm209_vm1, 0.0, %v6035_v9  ;;  %v6039_v59 = vrot.slane %v16480_v6, 4 }
 0xe9c   :  { %v5984_v18 = vpop.permute.xlu0 %5983  ;;  %v5750_v7 = vperm.slane %v5742_v45, %v14217_v27  ;;  %v16506_v3 = vsel %vm209_vm1, 0.0, %v16487_v37 }
 0xe9d   :  { %v6055_v8 = vrot.slane %v5984_v18, 4  ;;  %v6058_v47 = vsel %vm209_vm1, %v5984_v18, %v6057_v40  ;;  %v5764_v54 = vsel %vm209_vm1, %v5763_v22, %v5746_v39  ;;  %v5765_v10 = vrot.slane %v5746_v39, 4 }
 0xe9e   :  { %v6066_v13 = vperm.slane %v6058_v47, %v14217_v27  ;;  %v5978_v38 = vpop.permute.xlu1 %5977  ;;  %v5770_v49 = vperm.slane %v5764_v54, %v14229_v44  ;;  %v5776_v34 = vsel %vm209_vm1, %v5775_v20, %v5750_v7  ;;  %v5777_v2 = vrot.slane %v5750_v7, 4 }
 0xe9f   :  { %v6056_v26 = vsel %vm209_vm1, %v6055_v8, %v16456_v63  ;;  %v5766_v31 = vsel %vm209_vm1, %v5758_v58, %v5765_v10  ;;  %v5782_v30 = vperm.slane %v5776_v34, %v14229_v44  ;;  %v6043_v16 = vrot.slane %v5978_v38, 4 }
 0xea0   :  { %v6062_v42 = vperm.slane %v6056_v26, %v14217_v27  ;;  %v5774_v60 = vperm.slane %v5766_v31, %v14229_v44  ;;  %v5778_v35 = vsel %vm209_vm1, %v5762_v51, %v5777_v2  ;;  %v5787_v50 = vrot.slane %v5770_v49, 4 }
 0xea1   :  { %v5786_v57 = vperm.slane %v5778_v35, %v14229_v44  ;;  %v5791_v24 = vrot.slane %v5782_v30, 4  ;;  %v6079_v63 = vrot.slane %v6066_v13, 4  ;;  %v6046_v14 = vsel %vm209_vm1, %v5978_v38, %v6045_v11 }
 0xea2   :  { %v5789_v1 = vrot.slane %v5774_v60, 4  ;;  %v6067_v21 = vrot.slane %v6062_v42, 4  ;;  %v6044_v41 = vsel %vm209_vm1, %v6043_v16, %v16433_v23  ;;  %v6054_v56 = vperm.slane %v6046_v14, %v14217_v27 }
 0xea3   :  { %v5788_v33 = vsel %vm209_vm1, 0.0, %v5787_v50  ;;  %v5793_v46 = vrot.slane %v5786_v57, 4  ;;  %v6050_v51 = vperm.slane %v6044_v41, %v14217_v27  ;;  %v6105_v58 = vsel %vm209_vm1, %v6104_v62, %v6036_v28 }
 0xea4   :  { %v5790_v48 = vsel %vm209_vm1, 0.0, %v5789_v1  ;;  %v5792_v9 = vsel %vm209_vm1, 0.0, %v5791_v24  ;;  %v5851_v36 = vsel %vm209_vm1, %v5789_v1, %v5770_v49  ;;  %v6081_v29 = vrot.slane %v6054_v56, 4  ;;  %v5736_v8 = vpop.permute.xlu0 %5735 }
 0xea5   :  { %v5794_v11 = vsel %vm209_vm1, 0.0, %v5793_v46  ;;  %v5856_v22 = vrot.slane %v5790_v48, 4  ;;  %v5862_v23 = vsel %vm209_vm1, %v5793_v46, %v5782_v30  ;;  %v6080_v15 = vsel %vm209_vm1, %v6079_v63, %v6054_v56 }
 0xea6   :  { %v5866_v40 = vperm.slane %v5862_v23, %v14217_v27  ;;  %v5867_v20 = vrot.slane %v5794_v11, 4  ;;  %v6068_v45 = vsel %vm209_vm1, %v6067_v21, %v6050_v51  ;;  %v6069_v62 = vrot.slane %v6050_v51, 4  ;;  %v5730_v41 = vpop.permute.xlu1 %5729 }
 0xea7   :  { %v16530_v39 = vperm.slane %v5851_v36, %v14217_v27  ;;  %v5857_v18 = vsel %vm209_vm1, %v5856_v22, %v5788_v33  ;;  %v6074_v28 = vperm.slane %v6068_v45, %v14229_v44  ;;  %v6082_v7 = vsel %vm209_vm1, %v6066_v13, %v6081_v29 }
 0xea8   :  { %v16536_v47 = vperm.slane %v5857_v18, %v14217_v27  ;;  %v5868_v54 = vsel %vm209_vm1, %v5867_v20, %v5792_v9  ;;  %v5887_v10 = vrot.slane %v5866_v40, 4  ;;  %v6070_v38 = vsel %vm209_vm1, %v6062_v42, %v6069_v62 }
 0xea9   :  { %v5872_v49 = vperm.slane %v5868_v54, %v14217_v27  ;;  %v6078_v34 = vperm.slane %v6070_v38, %v14229_v44  ;;  %v6086_v2 = vperm.slane %v6080_v15, %v14229_v44  ;;  %v6090_v26 = vperm.slane %v6082_v7, %v14229_v44 }
 0xeaa   :  { %v16546_v13 = vperm.slane %v16490_v0, %v14217_v27  ;;  %v5873_v31 = vrot.slane %v16536_v47, 4  ;;  %v6091_v30 = vrot.slane %v6074_v28, 4  ;;  %v5807_v60 = vrot.slane %v5736_v8, 4 }
 0xeab   :  { %v5885_v35 = vrot.slane %v5872_v49, 4  ;;  %v5888_v50 = vsel %vm209_vm1, %v5872_v49, %v5887_v10  ;;  %v6093_v42 = vrot.slane %v6078_v34, 4  ;;  %v6095_v16 = vrot.slane %v6086_v2, 4 }
 0xeac   :  { %v6115_v57 = vrot.slane %v16506_v3, 4  ;;  %v5810_v24 = vsel %vm209_vm1, %v5736_v8, %v5809_v17  ;;  %v6040_v0 = vsel %vm209_vm1, 0.0, %v6039_v59  ;;  %v6109_v63 = vperm.slane %v6105_v58, %v14217_v27 }
 0xead   :  { %v5875_v14 = vrot.slane %v16530_v39, 4  ;;  %v5886_v1 = vsel %vm209_vm1, %v5885_v35, %v5866_v40  ;;  %v6097_v21 = vrot.slane %v6090_v26, 4  ;;  %v6110_v3 = vsel %vm209_vm1, %v16487_v37, %v16480_v6 }
 0xeae   :  { %v16565_v56 = vsel %vm209_vm1, %v5873_v31, %v16530_v39  ;;  %v16568_v17 = vperm.slane %v5888_v50, %v14229_v44  ;;  %v16571_v59 = vsel %vm209_vm1, 0.0, %v6091_v30  ;;  %v16574_v33 = vsel %vm209_vm1, 0.0, %v6093_v42 }
 0xeaf   :  { %v6096_v46 = vsel %vm209_vm1, 0.0, %v6095_v16  ;;  %v16578_v51 = vsel %vm209_vm1, %v6093_v42, %v6074_v28  ;;  %v5808_v6 = vsel %vm209_vm1, %v5807_v60, %v16472_v61  ;;  %v5818_v37 = vperm.slane %v5810_v24, %v14217_v27 }
 0xeb0   :  { %v16584_v58 = vperm.slane %v5886_v1, %v14229_v44  ;;  %v5814_v48 = vperm.slane %v5808_v6, %v14217_v27  ;;  %v5795_v9 = vrot.slane %v5730_v41, 4  ;;  %v5798_v36 = vsel %vm209_vm1, %v5730_v41, %v5797_v55 }
 0xeb1   :  { %v6098_v29 = vsel %vm209_vm1, 0.0, %v6097_v21  ;;  %v6164_v11 = vsel %vm209_vm1, %v6097_v21, %v6086_v2  ;;  %v5831_v22 = vrot.slane %v5818_v37, 4  ;;  %v5806_v23 = vperm.slane %v5798_v36, %v14217_v27 }
 0xeb2   :  { %v6158_v61 = vrot.slane %v16574_v33, 4  ;;  %v5819_v15 = vrot.slane %v5814_v48, 4  ;;  %v5796_v40 = vsel %vm209_vm1, %v5795_v9, %v16441_v53  ;;  %v6114_v20 = vperm.slane %v6110_v3, %v14217_v27 }
 0xeb3   :  { %v5802_v45 = vperm.slane %v5796_v40, %v14217_v27  ;;  %v5832_v62 = vsel %vm209_vm1, %v5831_v22, %v5806_v23  ;;  %v5833_v55 = vrot.slane %v5806_v23, 4  ;;  %v6116_v18 = vsel %vm209_vm1, %v6115_v57, %v6040_v0 }
 0xeb4   :  { %v16601_v28 = vperm.slane %v6164_v11, %v14217_v27  ;;  %v5838_v7 = vperm.slane %v5832_v62, %v14229_v44  ;;  %v6120_v8 = vperm.slane %v6116_v18, %v14217_v27  ;;  %v6123_v54 = vrot.slane %v16546_v13, 4 }
 0xeb5   :  { %v5820_v53 = vsel %vm209_vm1, %v5819_v15, %v5802_v45  ;;  %v5821_v10 = vrot.slane %v5802_v45, 4  ;;  %v5834_v38 = vsel %vm209_vm1, %v5818_v37, %v5833_v55  ;;  %v6135_v49 = vrot.slane %v6114_v20, 4 }
 0xeb6   :  { %v6169_v34 = vrot.slane %v6098_v29, 4  ;;  %v5826_v2 = vperm.slane %v5820_v53, %v14229_v44  ;;  %v5842_v26 = vperm.slane %v5834_v38, %v14229_v44  ;;  %v6124_v31 = vsel %vm209_vm1, %v6109_v63, %v6123_v54 }
 0xeb7   :  { %v5822_v30 = vsel %vm209_vm1, %v5814_v48, %v5821_v10  ;;  %v6132_v60 = vperm.slane %v6124_v31, %v14229_v44  ;;  %v6136_v35 = vsel %vm209_vm1, %v6120_v8, %v6135_v49  ;;  %v6121_v50 = vrot.slane %v6109_v63, 4 }
 0xeb8   :  { %v5830_v42 = vperm.slane %v5822_v30, %v14229_v44  ;;  %v5843_v16 = vrot.slane %v5826_v2, 4  ;;  %v5847_v57 = vrot.slane %v5838_v7, 4  ;;  %v5849_v24 = vrot.slane %v5842_v26, 4 }
 0xeb9   :  { %v6144_v0 = vperm.slane %v6136_v35, %v14229_v44  ;;  %v6151_v1 = vrot.slane %v6132_v60, 4  ;;  %v6122_v21 = vsel %vm209_vm1, %v6121_v50, %v16546_v13  ;;  %v6133_v41 = vrot.slane %v6120_v8, 4 }
 0xeba   :  { %v5897_v3 = vrot.slane %v16584_v58, 4  ;;  %v5845_v6 = vrot.slane %v5830_v42, 4  ;;  %v5850_v37 = vsel %vm209_vm1, 0.0, %v5849_v24  ;;  %v5916_v48 = vsel %vm209_vm1, %v5849_v24, %v5838_v7 }
 0xebb   :  { %v6170_v63 = vsel %vm209_vm1, %v6169_v34, %v6096_v46  ;;  %v5921_v9 = vrot.slane %v5850_v37, 4  ;;  %v6152_v36 = vsel %vm209_vm1, %v6144_v0, %v6151_v1  ;;  %v6128_v29 = vperm.slane %v6122_v21, %v14229_v44 }
 0xebc   :  { %v5846_v11 = vsel %vm209_vm1, 0.0, %v5845_v6  ;;  %v16626_v22 = vperm.slane %v5916_v48, %v14217_v27  ;;  %v6210_v13 = vpack.c.bf16 %v6152_v36, %v6152_v36  ;;  %v6134_v23 = vsel %vm209_vm1, %v6133_v41, %v6114_v20 }
 0xebd   :  { %v5844_v15 = vsel %vm209_vm1, 0.0, %v5843_v16  ;;  %v5848_v40 = vsel %vm209_vm1, 0.0, %v5847_v57  ;;  %v5905_v45 = vsel %vm209_vm1, %v5845_v6, %v5826_v2  ;;  %v5910_v46 = vrot.slane %v5846_v11, 4 }
 0xebe   :  { %v5922_v62 = vsel %vm209_vm1, %v5921_v9, %v5848_v40  ;;  %v6524_v55 = vsel %vm933_vm2, %v6210_v13, 0  ;;  %v6140_v18 = vperm.slane %v6134_v23, %v14229_v44  ;;  %v6147_v7 = vrot.slane %v6128_v29, 4 }
 0xebf   :  { %v6174_v8 = vperm.slane %v6170_v63, %v14217_v27  ;;  %v5911_v54 = vsel %vm209_vm1, %v5910_v46, %v5844_v15  ;;  %6533 = vmatpush.bf16.xpose.msrb.mxu2 %v6524_v55  ;;  %v6149_v20 = vrot.slane %v6144_v0, 4  ;;  %v5876_v53 = vsel %vm209_vm1, %v16536_v47, %v5875_v14 }
 0xec0   :  { %v5909_v10 = vperm.slane %v5905_v45, %v14217_v27  ;;  %v5915_v38 = vperm.slane %v5911_v54, %v14217_v27  ;;  %v5941_v49 = vrot.slane %v16626_v22, 4  ;;  %v6148_v34 = vsel %vm209_vm1, %v6140_v18, %v6147_v7 }
 0xec1   :  { %v5926_v2 = vperm.slane %v5922_v62, %v14217_v27  ;;  %v6208_v26 = vpack.c.bf16 %v6148_v34, %v6148_v34  ;;  %v6150_v31 = vsel %vm209_vm1, %v6149_v20, %v6132_v60  ;;  %v6145_v30 = vrot.slane %v6140_v18, 4 }
 0xec2   :  { %v6189_v35 = vrot.slane %v16601_v28, 4  ;;  %v5927_v39 = vrot.slane %v5915_v38, 4  ;;  %v6209_v50 = vpack.c.bf16 %v6150_v31, %v6150_v31  ;;  %v5884_v47 = vperm.slane %v5876_v53, %v14229_v44 }
 0xec3   :  { %v6187_v14 = vrot.slane %v6174_v8, 4  ;;  %v6486_v42 = vsel %vm933_vm2, %v6208_v26, 0  ;;  %v6146_v16 = vsel %vm209_vm1, %v6145_v30, %v6128_v29  ;;  %v5901_v57 = vrot.slane %v16568_v17, 4 }
 0xec4   :  { %v5929_v24 = vrot.slane %v5909_v10, 4  ;;  %6495 = vmatpush.bf16.xpose.msrb.mxu0 %v6486_v42  ;;  %v6505_v0 = vsel %vm933_vm2, %v6209_v50, 0  ;;  %v6207_v1 = vpack.c.bf16 %v6146_v16, %v6146_v16  ;;  %v5903_v60 = vrot.slane %v5884_v47, 4 }
 0xec5   :  { %v5939_v21 = vrot.slane %v5926_v2, 4  ;;  %v5942_v41 = vsel %vm209_vm1, %v5926_v2, %v5941_v49  ;;  %6514 = vmatpush.bf16.xpose.msrb.mxu1 %v6505_v0  ;;  %v5880_v6 = vperm.slane %v16565_v56, %v14229_v44  ;;  %v6157_v37 = vperm.slane %v16578_v51, %v14217_v27 }
 0xec6   :  { %v5928_v48 = vsel %vm209_vm1, %v5927_v39, %v5909_v10  ;;  %v6467_v63 = vsel %vm933_vm2, %v6207_v1, 0  ;;  %v5904_v9 = vsel %vm209_vm1, %v16568_v17, %v5903_v60  ;;  %v6159_v36 = vsel %vm209_vm1, %v6158_v61, %v16571_v59 }
 0xec7   :  { %6476 = vmatpush.bf16.xpose.msra.mxu3 %v6467_v63  ;;  %v5902_v29 = vsel %vm209_vm1, %v5901_v57, %v5884_v47  ;;  %v5962_v11 = vpack.c.bf16 %v5904_v9, %v5904_v9  ;;  %v5899_v56 = vrot.slane %v5880_v6, 4  ;;  %v6163_v13 = vperm.slane %v6159_v36, %v14217_v27  ;;  %v5707_v36 = vpop.f32.mrf.mxu2 }
 0xec8   :  { %v5898_v51 = vsel %vm209_vm1, %v5897_v3, %v5880_v6  ;;  %v6177_v23 = vrot.slane %v6157_v37, 4  ;;  %v6190_v15 = vsel %vm209_vm1, %v6174_v8, %v6189_v35  ;;  %v6188_v17 = vsel %vm209_vm1, %v6187_v14, %v16601_v28 }
 0xec9   :  { %12164 = vmatmul.msk.bf16.vlgmr.msrb.gmra.mxu2 %vm933_vm2, %v5962_v11  ;;  %v5900_v59 = vsel %vm209_vm1, %v16584_v58, %v5899_v56  ;;  %v6198_v33 = vperm.slane %v6190_v15, %v14229_v44  ;;  %v6175_v61 = vrot.slane %v6163_v13, 4  ;;  %v6194_v40 = vperm.slane %v6188_v17, %v14229_v44 }
 0xeca   :  { %v5961_v45 = vpack.c.bf16 %v5902_v29, %v5902_v29  ;;  %v5960_v46 = vpack.c.bf16 %v5900_v59, %v5900_v59  ;;  %v6178_v3 = vsel %vm209_vm1, %v6163_v13, %v6177_v23  ;;  %v5930_v62 = vsel %vm209_vm1, %v5915_v38, %v5929_v24 }
 0xecb   :  { %v6186_v55 = vperm.slane %v6178_v3, %v14229_v44  ;;  %v6203_v18 = vrot.slane %v6198_v33, 4  ;;  %v6176_v28 = vsel %vm209_vm1, %v6175_v61, %v6157_v37  ;;  %v6199_v7 = vrot.slane %v6194_v40, 4 }
 0xecc   :  { %12163 = vmatmul.msk.bf16.vlgmr.msrb.gmra.mxu1 %vm933_vm2, %v5961_v45  ;;  %v5959_v58 = vpack.c.bf16 %v5898_v51, %v5898_v51  ;;  %12162 = vmatmul.msk.bf16.vlgmr.msrb.gmra.mxu0 %vm933_vm2, %v5960_v46  ;;  %v6182_v8 = vperm.slane %v6176_v28, %v14229_v44  ;;  %v5938_v54 = vperm.slane %v5930_v62, %v14229_v44 }
 0xecd   :  { %v5940_v20 = vsel %vm209_vm1, %v5939_v21, %v16626_v22  ;;  %v6204_v53 = vsel %vm209_vm1, %v6203_v18, %v6186_v55  ;;  %v6205_v10 = vrot.slane %v6186_v55, 4  ;;  %v5934_v2 = vperm.slane %v5928_v48, %v14229_v44 }
 0xece   :  { %12161 = vmatmul.msk.bf16.vlgmr.msra.gmra.mxu3 %vm933_vm2, %v5959_v58  ;;  %v6213_v38 = vpack.c.bf16 %v6204_v53, %v6204_v53  ;;  %v6200_v49 = vsel %vm209_vm1, %v6199_v7, %v6182_v8  ;;  %v6201_v34 = vrot.slane %v6182_v8, 4  ;;  %v5950_v26 = vperm.slane %v5942_v41, %v14229_v44 }
 0xecf   :  { %v6211_v31 = vpack.c.bf16 %v6200_v49, %v6200_v49  ;;  %v6206_v30 = vsel %vm209_vm1, %v6198_v33, %v6205_v10  ;;  %v5957_v35 = vrot.slane %v5938_v54, 4  ;;  %v5946_v47 = vperm.slane %v5940_v20, %v14229_v44  ;;  %v5709_v29 = vpop.f32.mrf.mxu2 }
 0xed0   :  { %v6581_v39 = vsel %vm933_vm2, %v6213_v38, 0  ;;  %v6214_v22 = vpack.c.bf16 %v6206_v30, %v6206_v30  ;;  %v6202_v50 = vsel %vm209_vm1, %v6194_v40, %v6201_v34  ;;  %v5953_v57 = vrot.slane %v5934_v2, 4  ;;  %v13755_v30 = vld [vmem:[%s18611_s5 + $0x11] ss:$0 sm:$0xff] }
 0xed1   :  { %6590 = vmatpush.bf16.xpose.msra.mxu1 %v6581_v39  ;;  %v6543_v14 = vsel %vm933_vm2, %v6211_v31, 0  ;;  %v6212_v42 = vpack.c.bf16 %v6202_v50, %v6202_v50  ;;  %v5955_v0 = vrot.slane %v5950_v26, 4  ;;  %v5958_v1 = vsel %vm209_vm1, %v5950_v26, %v5957_v35 }
 0xed2   :  { %6552 = vmatpush.bf16.xpose.msrb.mxu3 %v6543_v14  ;;  %v6600_v16 = vsel %vm933_vm2, %v6214_v22, 0  ;;  %v5951_v60 = vrot.slane %v5946_v47, 4  ;;  %v5954_v21 = vsel %vm209_vm1, %v5946_v47, %v5953_v57  ;;  %v5966_v41 = vpack.c.bf16 %v5958_v1, %v5958_v1 }
 0xed3   :  { %6609 = vmatpush.bf16.xpose.msra.mxu2 %v6600_v16  ;;  %v6562_v24 = vsel %vm933_vm2, %v6212_v42, 0  ;;  %v5956_v6 = vsel %vm209_vm1, %v5955_v0, %v5938_v54  ;;  %v5964_v37 = vpack.c.bf16 %v5954_v21, %v5954_v21  ;;  %v16729_v35 = vadd.f32 %v13755_v30, %v5709_v29 }
 0xed4   :  { %6571 = vmatpush.bf16.xpose.msra.mxu0 %v6562_v24  ;;  %v5952_v48 = vsel %vm209_vm1, %v5951_v60, %v5934_v2  ;;  %v5965_v63 = vpack.c.bf16 %v5956_v6, %v5956_v6  ;;  %v16731_v39 = vadd.f32 %v13755_v30, %v5707_v36 }
 0xed5   :  { %v5963_v9 = vpack.c.bf16 %v5952_v48, %v5952_v48 }
 0xed6   :  { %v13673_v22 = vpack.i.bf16 %v16729_v35, %v16731_v39 }
 0xeda   :  { %12168 = vmatmul.msk.bf16.vlgmr.msra.gmra.mxu2 %vm933_vm2, %v5966_v41 }
 0xedc   :  { %12167 = vmatmul.msk.bf16.vlgmr.msra.gmra.mxu1 %vm933_vm2, %v5965_v63  ;;  %12166 = vmatmul.msk.bf16.vlgmr.msra.gmra.mxu0 %vm933_vm2, %v5964_v37 }
 0xede   :  { %12165 = vmatmul.msk.bf16.vlgmr.msrb.gmra.mxu3 %vm933_vm2, %v5963_v9 }
 0xf49   :  { %v6516_v11 = vpop.f32.mrf.mxu1  ;;  %v6497_v56 = vpop.f32.mrf.mxu0 }
 0xf4a   :  { %v6617_v13 = vadd.f32 %v6516_v11, %v14512_v32  ;;  %v6616_v51 = vadd.f32 %v6497_v56, %v14512_v32 }
 0xf4c   :  { %v6629_v23 = vsel %vm933_vm2, %v6617_v13, -inf  ;;  %v6535_v15 = vpop.f32.mrf.mxu2  ;;  %v6626_v17 = vsel %vm933_vm2, %v6616_v51, -inf }
 0xf4d   :  { %6630 = vmax.xlane.f32.xlu0 %v6629_v23  ;;  %v6618_v59 = vadd.f32 %v6535_v15, %v14512_v32  ;;  %6627 = vmax.xlane.f32.xlu2 %v6626_v17 }
 0xf4f   :  { %v6632_v33 = vsel %vm933_vm2, %v6618_v59, -inf }
 0xf50   :  { %6633 = vmax.xlane.f32.xlu1 %v6632_v33 }
 0xf51   :  { %v6478_v61 = vpop.f32.mrf.mxu3  ;;  %v6518_v40 = vpop.f32.mrf.mxu1 }
 0xf52   :  { %v6615_v45 = vadd.f32 %v6478_v61, %v14512_v32  ;;  %v6499_v46 = vpop.f32.mrf.mxu0 }
 0xf54   :  { %v6537_v3 = vpop.f32.mrf.mxu2  ;;  %v6623_v62 = vsel %vm933_vm2, %v6615_v45, -inf }
 0xf55   :  { %6624 = vmax.xlane.f32.xlu2 %v6623_v62 }
 0xf59   :  { %v6480_v55 = vpop.f32.mrf.mxu3  ;;  %v6592_v18 = vpop.f32.mrf.mxu1 }
 0xf5a   :  { %v6621_v28 = vadd.f32 %v6592_v18, %v14524_v4  ;;  %v6573_v7 = vpop.f32.mrf.mxu0 }
 0xf5b   :  { %v16717_v58 = vadd.f32 %v6573_v7, %v14524_v4 }
 0xf5c   :  { %v6641_v8 = vsel %vm933_vm2, %v6621_v28, -inf }
 0xf5d   :  { %v6611_v54 = vpop.f32.mrf.mxu2  ;;  %v6638_v20 = vsel %vm933_vm2, %v16717_v58, -inf  ;;  %6642 = vmax.xlane.f32.xlu2 %v6641_v8 }
 0xf5e   :  { %v6622_v32 = vadd.f32 %v6611_v54, %v14524_v4  ;;  %6639 = vmax.xlane.f32.xlu1 %v6638_v20 }
 0xf60   :  { %v6644_v53 = vsel %vm933_vm2, %v6622_v32, -inf }
 0xf61   :  { %v6554_v10 = vpop.f32.mrf.mxu3  ;;  %v6594_v38 = vpop.f32.mrf.mxu1  ;;  %6645 = vmax.xlane.f32.xlu0 %v6644_v53  ;;  %v6293_v53 = vrot.slane %v16729_v35, 4 }
 0xf62   :  { %v6619_v49 = vadd.f32 %v6554_v10, %v14524_v4  ;;  %v6575_v34 = vpop.f32.mrf.mxu0 }
 0xf64   :  { %v6635_v26 = vsel %vm933_vm2, %v6619_v49, -inf }
 0xf65   :  { %v6613_v2 = vpop.f32.mrf.mxu2 }
 0xf66   :  { %6636 = vmax.xlane.f32.xlu1 %v6635_v26 }
 0xf69   :  { %v6556_v31 = vpop.f32.mrf.mxu3 }
 0xf75   :  { %13674 = vrot.lane.b32.xlu0 %v13673_v22, %s14067_s30  ;;  %13679 = vrot.lane.b32.xlu2 %v13673_v22, %s14068_s15 }
 0xf7f   :  { %13684 = vrot.lane.b32.xlu1 %v13673_v22, %s14066_s29 }
 0xfc0   :  { %v6631_v4 = vpop.xlane.xlu0 %6630  ;;  %v6628_v50 = vpop.xlane.xlu2 %6627 }
 0xfc1   :  { %v6649_v47 = vsub.f32 %v6617_v13, %v6631_v4  ;;  %v6648_v60 = vsub.f32 %v6616_v51, %v6628_v50 }
 0xfc3   :  { %v6659_v14 = vmul.f32 1.442695, %v6649_v47  ;;  %v6634_v42 = vpop.xlane.xlu1 %6633  ;;  %v6657_v37 = vmul.f32 1.442695, %v6648_v60 }
 0xfc4   :  { %v6650_v16 = vsub.f32 %v6618_v59, %v6634_v42 }
 0xfc5   :  { %13916 = vpow2.f32 %v6659_v14 }
 0xfc6   :  { %v6661_v57 = vmul.f32 1.442695, %v6650_v16 }
 0xfc8   :  { %13918 = vpow2.f32 %v6661_v57  ;;  %v6625_v24 = vpop.xlane.xlu2 %6624 }
 0xfc9   :  { %v6647_v0 = vsub.f32 %v6615_v45, %v6625_v24 }
 0xfcb   :  { %v16738_v1 = vpop.eup %13916  ;;  %v6655_v21 = vmul.f32 1.442695, %v6647_v0 }
 0xfcc   :  { %v6677_v41 = vsel %vm933_vm2, %v16738_v1, 0.0 }
 0xfcd   :  { %13920 = vpow2.f32 %v6655_v21  ;;  %6678 = vadd.xlane.f32.xlu1 %v6677_v41 }
 0xfce   :  { %v16742_v6 = vpop.eup %13918  ;;  %13922 = vpow2.f32 %v6657_v37 }
 0xfcf   :  { %v6680_v48 = vsel %vm933_vm2, %v16742_v6, 0.0 }
 0xfd0   :  { %v6643_v63 = vpop.xlane.xlu2 %6642  ;;  %6681 = vadd.xlane.f32.xlu2 %v6680_v48 }
 0xfd1   :  { %v6640_v9 = vpop.xlane.xlu1 %6639  ;;  %v6653_v36 = vsub.f32 %v6621_v28, %v6643_v63 }
 0xfd2   :  { %v6652_v46 = vsub.f32 %v16717_v58, %v6640_v9 }
 0xfd3   :  { %v16746_v29 = vpop.eup %13920  ;;  %v6667_v11 = vmul.f32 1.442695, %v6653_v36 }
 0xfd4   :  { %v6646_v56 = vpop.xlane.xlu0 %6645  ;;  %v6671_v13 = vsel %vm933_vm2, %v16746_v29, 0.0  ;;  %v16750_v15 = vpop.eup %13922  ;;  %v6665_v62 = vmul.f32 1.442695, %v6652_v46 }
 0xfd5   :  { %13924 = vpow2.f32 %v6667_v11  ;;  %v6654_v51 = vsub.f32 %v6622_v32, %v6646_v56  ;;  %6672 = vadd.xlane.f32.xlu0 %v6671_v13  ;;  %v6674_v40 = vsel %vm933_vm2, %v16750_v15, 0.0  ;;  %v6237_v32 = vrot.slane %v16731_v39, 4 }
 0xfd7   :  { %v6669_v23 = vmul.f32 1.442695, %v6654_v51 }
 0xfd8   :  { %v13680_v55 = vpop.permute.xlu2 %13679 }
 0xfd9   :  { %v6637_v17 = vpop.xlane.xlu1 %6636  ;;  %13926 = vpow2.f32 %v6669_v23  ;;  %v13682_v7 = vunpack.i.h.bf16 %v13680_v55  ;;  %v13681_v58 = vunpack.i.l.bf16 %v13680_v55 }
 0xfda   :  { %v6651_v59 = vsub.f32 %v6619_v49, %v6637_v17 }
 0xfdb   :  { %v16752_v33 = vpop.eup %13924  ;;  %v6291_v54 = vrot.slane %v13682_v7, 4  ;;  %v6235_v38 = vrot.slane %v13681_v58, 4  ;;  %v6294_v49 = vsel %vm209_vm1, %v13682_v7, %v6293_v53  ;;  %v6238_v34 = vsel %vm209_vm1, %v13681_v58, %v6237_v32 }
 0xfdc   :  { %v6663_v61 = vmul.f32 1.442695, %v6651_v59  ;;  %v6689_v45 = vsel %vm933_vm2, %v16752_v33, 0.0  ;;  %v6302_v50 = vperm.slane %v6294_v49, %v14217_v27  ;;  %v6246_v47 = vperm.slane %v6238_v34, %v14217_v27 }
 0xfdd   :  { %6675 = vadd.xlane.f32.xlu0 %v6674_v40  ;;  %6690 = vadd.xlane.f32.xlu1 %v6689_v45  ;;  %v6292_v2 = vsel %vm209_vm1, %v6291_v54, %v16729_v35  ;;  %v6236_v22 = vsel %vm209_vm1, %v6235_v38, %v16731_v39 }
 0xfde   :  { %13928 = vpow2.f32 %v6663_v61  ;;  %v6298_v4 = vperm.slane %v6292_v2, %v14217_v27  ;;  %v6242_v24 = vperm.slane %v6236_v22, %v14217_v27  ;;  %v6329_v39 = vrot.slane %v6302_v50, 4 }
 0xfdf   :  { %v16759_v3 = vpop.eup %13926  ;;  %13930 = vpow2.f32 %v6665_v62  ;;  %v6273_v9 = vrot.slane %v6246_v47, 4 }
 0xfe0   :  { %v6692_v18 = vsel %vm933_vm2, %v16759_v3, 0.0  ;;  %v6317_v63 = vrot.slane %v6298_v4, 4  ;;  %v6261_v17 = vrot.slane %v6242_v24, 4 }
 0xfe4   :  { %v16763_v28 = vpop.eup %13928 }
 0xfe5   :  { %6693 = vadd.xlane.f32.xlu0 %v6692_v18  ;;  %v6683_v8 = vsel %vm933_vm2, %v16763_v28, 0.0  ;;  %v16767_v20 = vpop.eup %13930 }
 0xfe6   :  { %6684 = vadd.xlane.f32.xlu2 %v6683_v8  ;;  %v6686_v30 = vsel %vm933_vm2, %v16767_v20, 0.0 }
 0xfe7   :  { %v13675_v10 = vpop.permute.xlu0 %13674 }
 0xfe8   :  { %v13677_v26 = vunpack.i.h.bf16 %v13675_v10  ;;  %v13676_v31 = vunpack.i.l.bf16 %v13675_v10 }
 0xfea   :  { %v6305_v42 = vrot.slane %v13677_v26, 4  ;;  %v6249_v16 = vrot.slane %v13676_v31, 4 }
 0xfee   :  { %6687 = vadd.xlane.f32.xlu2 %v6686_v30 }
 0xff1   :  { %v13685_v14 = vpop.permute.xlu1 %13684 }
 0xff2   :  { %v13687_v57 = vunpack.i.h.bf16 %v13685_v14  ;;  %v13686_v35 = vunpack.i.l.bf16 %v13685_v14 }
 0xff4   :  { %v6303_v0 = vrot.slane %v13687_v57, 4  ;;  %v6306_v60 = vsel %vm209_vm1, %v13687_v57, %v6305_v42  ;;  %v6247_v21 = vrot.slane %v13686_v35, 4  ;;  %v6250_v41 = vsel %vm209_vm1, %v13686_v35, %v6249_v16 }
 0xff5   :  { %v6314_v37 = vperm.slane %v6306_v60, %v14217_v27  ;;  %v6258_v48 = vperm.slane %v6250_v41, %v14217_v27 }
 0xff6   :  { %v6304_v36 = vsel %vm209_vm1, %v6303_v0, %v13677_v26  ;;  %v6248_v11 = vsel %vm209_vm1, %v6247_v21, %v13676_v31 }
 0xff7   :  { %v6310_v56 = vperm.slane %v6304_v36, %v14217_v27  ;;  %v6327_v13 = vrot.slane %v6314_v37, 4  ;;  %v6330_v51 = vsel %vm209_vm1, %v6314_v37, %v6329_v39  ;;  %v6254_v23 = vperm.slane %v6248_v11, %v14217_v27 }
 0xff8   :  { %v6338_v59 = vperm.slane %v6330_v51, %v14229_v44  ;;  %v6271_v61 = vrot.slane %v6258_v48, 4  ;;  %v6274_v40 = vsel %vm209_vm1, %v6258_v48, %v6273_v9 }
 0xff9   :  { %v6315_v45 = vrot.slane %v6310_v56, 4  ;;  %v6318_v46 = vsel %vm209_vm1, %v6310_v56, %v6317_v63  ;;  %v6328_v62 = vsel %vm209_vm1, %v6327_v13, %v6302_v50  ;;  %v6259_v55 = vrot.slane %v6254_v23, 4 }
 0xffa   :  { %v6326_v18 = vperm.slane %v6318_v46, %v14229_v44  ;;  %v6334_v7 = vperm.slane %v6328_v62, %v14229_v44  ;;  %v6345_v8 = vrot.slane %v6338_v59, 4  ;;  %v6262_v58 = vsel %vm209_vm1, %v6254_v23, %v6261_v17 }
 0xffb   :  { %v6316_v54 = vsel %vm209_vm1, %v6315_v45, %v6298_v4  ;;  %v6260_v32 = vsel %vm209_vm1, %v6259_v55, %v6242_v24  ;;  %v6270_v53 = vperm.slane %v6262_v58, %v14229_v44  ;;  %v6272_v10 = vsel %vm209_vm1, %v6271_v61, %v6246_v47 }
 0xffc   :  { %v6322_v38 = vperm.slane %v6316_v54, %v14229_v44  ;;  %v6341_v49 = vrot.slane %v6326_v18, 4  ;;  %v6343_v34 = vrot.slane %v6334_v7, 4  ;;  %v6346_v2 = vsel %vm209_vm1, 0.0, %v6345_v8 }
 0xffd   :  { %v6412_v26 = vsel %vm209_vm1, %v6345_v8, %v6334_v7  ;;  %v6417_v31 = vrot.slane %v6346_v2, 4  ;;  %v6266_v30 = vperm.slane %v6260_v32, %v14229_v44  ;;  %v6278_v22 = vperm.slane %v6272_v10, %v14229_v44 }
 0xffe   :  { %v6339_v4 = vrot.slane %v6322_v38, 4  ;;  %v6342_v50 = vsel %vm209_vm1, 0.0, %v6341_v49  ;;  %v6344_v14 = vsel %vm209_vm1, 0.0, %v6343_v34  ;;  %v6416_v47 = vperm.slane %v6412_v26, %v14217_v27 }
 0xfff   :  { %v6406_v42 = vrot.slane %v6342_v50, 4  ;;  %v6282_v16 = vperm.slane %v6274_v40, %v14229_v44  ;;  %v6283_v57 = vrot.slane %v6266_v30, 4  ;;  %v6285_v35 = vrot.slane %v6270_v53, 4 }
0x1000   :  { %v6287_v24 = vrot.slane %v6278_v22, 4  ;;  %v6340_v0 = vsel %vm209_vm1, 0.0, %v6339_v4  ;;  %v6401_v60 = vsel %vm209_vm1, %v6341_v49, %v6322_v38  ;;  %v6418_v21 = vsel %vm209_vm1, %v6417_v31, %v6344_v14 }
0x1001   :  { %v6286_v41 = vsel %vm209_vm1, 0.0, %v6285_v35  ;;  %v6289_v39 = vrot.slane %v6282_v16, 4  ;;  %v6284_v37 = vsel %vm209_vm1, 0.0, %v6283_v57  ;;  %v6347_v48 = vsel %vm209_vm1, %v6285_v35, %v6266_v30 }
0x1002   :  { %v6288_v63 = vsel %vm209_vm1, 0.0, %v6287_v24  ;;  %v6352_v9 = vrot.slane %v6286_v41, 4  ;;  %v6351_v36 = vperm.slane %v6347_v48, %v14217_v27  ;;  %v6405_v11 = vperm.slane %v6401_v60, %v14217_v27 }
0x1003   :  { %v6290_v56 = vsel %vm209_vm1, 0.0, %v6289_v39  ;;  %v6358_v13 = vsel %vm209_vm1, %v6289_v39, %v6278_v22  ;;  %v6407_v51 = vsel %vm209_vm1, %v6406_v42, %v6340_v0  ;;  %v6422_v23 = vperm.slane %v6418_v21, %v14217_v27 }
0x1004   :  { %v6362_v17 = vperm.slane %v6358_v13, %v14217_v27  ;;  %v6363_v59 = vrot.slane %v6290_v56, 4  ;;  %v6353_v61 = vsel %vm209_vm1, %v6352_v9, %v6284_v37  ;;  %v6371_v40 = vrot.slane %v6351_v36, 4 }
0x1005   :  { %v6357_v45 = vperm.slane %v6353_v61, %v14217_v27  ;;  %v6411_v46 = vperm.slane %v6407_v51, %v14217_v27  ;;  %v6425_v62 = vrot.slane %v6405_v11, 4  ;;  %v6437_v55 = vrot.slane %v6416_v47, 4 }
0x1006   :  { %v6364_v18 = vsel %vm209_vm1, %v6363_v59, %v6288_v63  ;;  %v6383_v7 = vrot.slane %v6362_v17, 4  ;;  %v6435_v8 = vrot.slane %v6422_v23, 4 }
0x1007   :  { %v6368_v58 = vperm.slane %v6364_v18, %v14217_v27  ;;  %v6372_v54 = vsel %vm209_vm1, %v6357_v45, %v6371_v40  ;;  %v6426_v32 = vsel %vm209_vm1, %v6411_v46, %v6425_v62  ;;  %v6438_v53 = vsel %vm209_vm1, %v6422_v23, %v6437_v55 }
0x1008   :  { %v6380_v10 = vperm.slane %v6372_v54, %v14229_v44  ;;  %v6434_v38 = vperm.slane %v6426_v32, %v14229_v44  ;;  %v6446_v49 = vperm.slane %v6438_v53, %v14229_v44  ;;  %v6369_v34 = vrot.slane %v6357_v45, 4 }
0x1009   :  { %v6384_v2 = vsel %vm209_vm1, %v6368_v58, %v6383_v7  ;;  %v6381_v26 = vrot.slane %v6368_v58, 4  ;;  %v6423_v31 = vrot.slane %v6411_v46, 4  ;;  %v6436_v30 = vsel %vm209_vm1, %v6435_v8, %v6416_v47 }
0x100a   :  { %v6392_v22 = vperm.slane %v6384_v2, %v14229_v44  ;;  %v6451_v4 = vrot.slane %v6446_v49, 4  ;;  %v6370_v50 = vsel %vm209_vm1, %v6369_v34, %v6351_v36  ;;  %v6399_v14 = vrot.slane %v6380_v10, 4 }
0x100b   :  { %v6376_v42 = vperm.slane %v6370_v50, %v14229_v44  ;;  %v6382_v16 = vsel %vm209_vm1, %v6381_v26, %v6362_v17  ;;  %v6424_v57 = vsel %vm209_vm1, %v6423_v31, %v6405_v11  ;;  %v6442_v35 = vperm.slane %v6436_v30, %v14229_v44 }
0x100c   :  { %v6397_v24 = vrot.slane %v6392_v22, 4  ;;  %v6452_v0 = vsel %vm209_vm1, %v6451_v4, %v6434_v38  ;;  %v6388_v60 = vperm.slane %v6382_v16, %v14229_v44  ;;  %v6400_v47 = vsel %vm209_vm1, %v6392_v22, %v6399_v14 }
0x100d   :  { %v6461_v21 = vpack.c.bf16 %v6452_v0, %v6452_v0  ;;  %v6458_v41 = vpack.c.bf16 %v6400_v47, %v6400_v47  ;;  %v6430_v39 = vperm.slane %v6424_v57, %v14229_v44  ;;  %v6447_v37 = vrot.slane %v6442_v35, 4 }
0x100e   :  { %v6398_v48 = vsel %vm209_vm1, %v6397_v24, %v6380_v10  ;;  %v6393_v63 = vrot.slane %v6388_v60, 4  ;;  %v6453_v9 = vrot.slane %v6434_v38, 4  ;;  %v6395_v36 = vrot.slane %v6376_v42, 4 }
0x100f   :  { %v6457_v11 = vpack.c.bf16 %v6398_v48, %v6398_v48  ;;  %v6941_v56 = vsel %vm1297_vm4, %v6461_v21, 0  ;;  %v6884_v13 = vsel %vm1297_vm4, %v6458_v41, 0  ;;  %v6448_v51 = vsel %vm209_vm1, %v6447_v37, %v6430_v39 }
0x1010   :  { %v6394_v23 = vsel %vm209_vm1, %v6393_v63, %v6376_v42  ;;  %6893 = vmatpush.bf16.msrb.mxu2 %v6884_v13  ;;  %v6459_v17 = vpack.c.bf16 %v6448_v51, %v6448_v51  ;;  %v6454_v59 = vsel %vm209_vm1, %v6446_v49, %v6453_v9  ;;  %v6396_v61 = vsel %vm209_vm1, %v6388_v60, %v6395_v36 }
0x1011   :  { %v6865_v40 = vsel %vm1297_vm4, %v6457_v11, 0  ;;  %v6455_v45 = vpack.c.bf16 %v6394_v23, %v6394_v23  ;;  %v6462_v46 = vpack.c.bf16 %v6454_v59, %v6454_v59  ;;  %v6456_v62 = vpack.c.bf16 %v6396_v61, %v6396_v61 }
0x1012   :  { %6874 = vmatpush.bf16.msrb.mxu1 %v6865_v40  ;;  %v6903_v55 = vsel %vm1297_vm4, %v6459_v17, 0  ;;  %v6449_v18 = vrot.slane %v6430_v39, 4 }
0x1013   :  { %v6827_v7 = vsel %vm1297_vm4, %v6455_v45, 0  ;;  %v6960_v8 = vsel %vm1297_vm4, %v6462_v46, 0  ;;  %v6846_v58 = vsel %vm1297_vm4, %v6456_v62, 0 }
0x1014   :  { %6836 = vmatpush.bf16.msra.mxu3 %v6827_v7  ;;  %6969 = vmatpush.bf16.msra.mxu2 %v6960_v8  ;;  %v6450_v54 = vsel %vm209_vm1, %v6442_v35, %v6449_v18 }
0x1015   :  { %6855 = vmatpush.bf16.msrb.mxu0 %v6846_v58  ;;  %v6460_v32 = vpack.c.bf16 %v6450_v54, %v6450_v54 }
0x1016   :  { %6950 = vmatpush.bf16.msra.mxu1 %v6941_v56 }
0x1017   :  { %v6922_v53 = vsel %vm1297_vm4, %v6460_v32, 0 }
0x1018   :  { %6912 = vmatpush.bf16.msrb.mxu3 %v6903_v55 }
0x1019   :  { %6931 = vmatpush.bf16.msra.mxu0 %v6922_v53 }
0x1040   :  { %v6679_v10 = vpop.xlane.xlu1 %6678 }
0x1041   :  { %13932 = vrcp.f32 %v6679_v10  ;;  %v6736_v30 = vand.u32 2147483648, %v6679_v10  ;;  %v6734_v50 = vand.u32 2147483647, %v6679_v10  ;;  %vm6730_vm5 = vweird.f32 %v6679_v10 }
0x1043   :  { %v6682_v38 = vpop.xlane.xlu2 %6681  ;;  %v6737_v24 = vor.u32 1.1754944e-38, %v6736_v30  ;;  %vm6735_vm8 = vcmp.eq.f32.partialorder %v6734_v50, 8.507059e+37 }
0x1044   :  { %13934 = vrcp.f32 %v6682_v38  ;;  %v6749_v16 = vand.u32 2147483647, %v6682_v38  ;;  %v6751_v57 = vand.u32 2147483648, %v6682_v38  ;;  %vm6745_vm9 = vweird.f32 %v6682_v38 }
0x1046   :  { %vm6750_vm11 = vcmp.eq.f32.partialorder %v6749_v16, 8.507059e+37  ;;  %v6752_v63 = vor.u32 1.1754944e-38, %v6751_v57 }
0x1047   :  { %v13933_v49 = vpop.eup %13932 }
0x1048   :  { %v6726_v34 = vmul.f32 %v13933_v49, %v6679_v10  ;;  %v6673_v2 = vpop.xlane.xlu0 %6672  ;;  %vm6731_vm3 = vweird.f32 %v13933_v49 }
0x1049   :  { %13936 = vrcp.f32 %v6673_v2  ;;  %vm6732_vm6 = vmor %vm6730_vm5, %vm6731_vm3  ;;  %v6704_v11 = vand.u32 2147483647, %v6673_v2  ;;  %v6706_v56 = vand.u32 2147483648, %v6673_v2  ;;  %vm6700_vm15 = vweird.f32 %v6673_v2 }
0x104a   :  { %v13935_v26 = vpop.eup %13934  ;;  %v6727_v31 = vsub.f32 1.0, %v6726_v34 }
0x104b   :  { %v6741_v22 = vmul.f32 %v13935_v26, %v6682_v38  ;;  %vm6746_vm7 = vweird.f32 %v13935_v26  ;;  %v6707_v40 = vor.u32 1.1754944e-38, %v6706_v56  ;;  %vm6705_vm5 = vcmp.eq.f32.partialorder %v6704_v11, 8.507059e+37 }
0x104c   :  { %v6728_v4 = vmul.f32 %v13933_v49, %v6727_v31  ;;  %vm6747_vm10 = vmor %vm6745_vm9, %vm6746_vm7 }
0x104d   :  { %v6742_v14 = vsub.f32 1.0, %v6741_v22 }
0x104e   :  { %v6729_v42 = vadd.f32 %v13933_v49, %v6728_v4 }
0x104f   :  { %v13937_v35 = vpop.eup %13936  ;;  %v6743_v0 = vmul.f32 %v13935_v26, %v6742_v14 }
0x1050   :  { %v6733_v60 = vsel %vm6732_vm6, %v13933_v49, %v6729_v42  ;;  %v6696_v47 = vmul.f32 %v13937_v35, %v6673_v2  ;;  %v6676_v21 = vpop.xlane.xlu0 %6675  ;;  %v16863_v41 = vpop.xlane.xlu1 %6690  ;;  %vm6701_vm12 = vweird.f32 %v13937_v35 }
0x1051   :  { %v6738_v39 = vsel %vm6735_vm8, %v6737_v24, %v6733_v60  ;;  %v6744_v37 = vadd.f32 %v13935_v26, %v6743_v0  ;;  %13938 = vrcp.f32 %v6676_v21  ;;  %vm6702_vm3 = vmor %vm6700_vm15, %vm6701_vm12  ;;  %v6719_v54 = vand.u32 2147483647, %v6676_v21 }
0x1052   :  { %v6739_v48 = vmul.f32 %v16738_v1, %v6738_v39  ;;  %v6697_v9 = vsub.f32 1.0, %v6696_v47  ;;  %13940 = vrcp.f32 %v16863_v41  ;;  %v6721_v32 = vand.u32 2147483648, %v6676_v21 }
0x1053   :  { %v6748_v36 = vsel %vm6747_vm10, %v13935_v26, %v6744_v37  ;;  %v6794_v49 = vand.u32 2147483647, %v16863_v41  ;;  %v6796_v34 = vand.u32 2147483648, %v16863_v41  ;;  %vm6715_vm7 = vweird.f32 %v6676_v21 }
0x1054   :  { %v6817_v13 = vpack.c.bf16 %v6739_v48, %v6739_v48  ;;  %v6753_v51 = vsel %vm6750_vm11, %v6752_v63, %v6748_v36  ;;  %v6698_v23 = vmul.f32 %v13937_v35, %v6697_v9  ;;  %v6722_v31 = vor.u32 1.1754944e-38, %v6721_v32 }
0x1055   :  { %v6754_v17 = vmul.f32 %v16742_v6, %v6753_v51  ;;  %vm6790_vm10 = vweird.f32 %v16863_v41  ;;  %vm6720_vm11 = vcmp.eq.f32.partialorder %v6719_v54, 8.507059e+37  ;;  %vm6795_vm15 = vcmp.eq.f32.partialorder %v6794_v49, 8.507059e+37 }
0x1056   :  { %v6699_v59 = vadd.f32 %v13937_v35, %v6698_v23  ;;  %12171 = vmatmul.msk.bf16.vlgmr.msrb.gmra.mxu1 %vm933_vm2, %v6817_v13  ;;  %v6797_v42 = vor.u32 1.1754944e-38, %v6796_v34 }
0x1057   :  { %v13939_v1 = vpop.eup %13938  ;;  %v6818_v61 = vpack.c.bf16 %v6754_v17, %v6754_v17 }
0x1058   :  { %v6703_v45 = vsel %vm6702_vm3, %v13937_v35, %v6699_v59  ;;  %v6711_v46 = vmul.f32 %v13939_v1, %v6676_v21  ;;  %v6694_v62 = vpop.xlane.xlu0 %6693  ;;  %v13941_v55 = vpop.eup %13940  ;;  %vm6716_vm6 = vweird.f32 %v13939_v1 }
0x1059   :  { %v6708_v18 = vsel %vm6705_vm5, %v6707_v40, %v6703_v45  ;;  %13942 = vrcp.f32 %v6694_v62  ;;  %12172 = vmatmul.msk.bf16.vlgmr.msrb.gmra.mxu2 %vm933_vm2, %v6818_v61  ;;  %v6786_v8 = vmul.f32 %v13941_v55, %v16863_v41  ;;  %v16872_v58 = vpop.xlane.xlu2 %6684  ;;  %vm6791_vm8 = vweird.f32 %v13941_v55  ;;  %vm6717_vm9 = vmor %vm6715_vm7, %vm6716_vm6 }
0x105a   :  { %v6709_v7 = vmul.f32 %v16746_v29, %v6708_v18  ;;  %v6712_v6 = vsub.f32 1.0, %v6711_v46  ;;  %13944 = vrcp.f32 %v16872_v58  ;;  %vm6792_vm12 = vmor %vm6790_vm10, %vm6791_vm8  ;;  %v6809_v16 = vand.u32 2147483647, %v6694_v62 }
0x105b   :  { %v6787_v38 = vsub.f32 1.0, %v6786_v8  ;;  %v6811_v21 = vand.u32 2147483648, %v6694_v62  ;;  %vm6805_vm5 = vweird.f32 %v6694_v62  ;;  %v6764_v63 = vand.u32 2147483647, %v16872_v58 }
0x105c   :  { %v6815_v53 = vpack.c.bf16 %v6709_v7, %v6709_v7  ;;  %v6713_v10 = vmul.f32 %v13939_v1, %v6712_v6  ;;  %v6766_v9 = vand.u32 2147483648, %v16872_v58  ;;  %vm6810_vm8 = vcmp.eq.f32.partialorder %v6809_v16, 8.507059e+37 }
0x105d   :  { %v6788_v29 = vmul.f32 %v13941_v55, %v6787_v38  ;;  %v6812_v56 = vor.u32 1.1754944e-38, %v6811_v21 }
0x105e   :  { %v6714_v2 = vadd.f32 %v13939_v1, %v6713_v10  ;;  %12169 = vmatmul.msk.bf16.vlgmr.msra.gmra.mxu3 %vm933_vm2, %v6815_v53  ;;  %v6767_v17 = vor.u32 1.1754944e-38, %v6766_v9 }
0x105f   :  { %v13943_v26 = vpop.eup %13942  ;;  %v6789_v22 = vadd.f32 %v13941_v55, %v6788_v29 }
0x1060   :  { %v6718_v30 = vsel %vm6717_vm9, %v13939_v1, %v6714_v2  ;;  %v6801_v4 = vmul.f32 %v13943_v26, %v6694_v62  ;;  %v13945_v50 = vpop.eup %13944  ;;  %vm6806_vm3 = vweird.f32 %v13943_v26  ;;  %vm6760_vm9 = vweird.f32 %v16872_v58 }
0x1061   :  { %v6723_v14 = vsel %vm6720_vm11, %v6722_v31, %v6718_v30  ;;  %v6793_v35 = vsel %vm6792_vm12, %v13941_v55, %v6789_v22  ;;  %v6756_v0 = vmul.f32 %v13945_v50, %v16872_v58  ;;  %v6688_v60 = vpop.xlane.xlu2 %6687  ;;  %vm6761_vm6 = vweird.f32 %v13945_v50  ;;  %vm6807_vm7 = vmor %vm6805_vm5, %vm6806_vm3 }
0x1062   :  { %v6724_v57 = vmul.f32 %v16750_v15, %v6723_v14  ;;  %v6802_v24 = vsub.f32 1.0, %v6801_v4  ;;  %v6798_v47 = vsel %vm6795_vm15, %v6797_v42, %v6793_v35  ;;  %13946 = vrcp.f32 %v6688_v60  ;;  %vm6762_vm10 = vmor %vm6760_vm9, %vm6761_vm6 }
0x1063   :  { %v6799_v39 = vmul.f32 %v16752_v33, %v6798_v47  ;;  %v6757_v48 = vsub.f32 1.0, %v6756_v0  ;;  %vm6765_vm11 = vcmp.eq.f32.partialorder %v6764_v63, 8.507059e+37  ;;  %v6781_v55 = vand.u32 2147483648, %v6688_v60 }
0x1064   :  { %v6816_v41 = vpack.c.bf16 %v6724_v57, %v6724_v57  ;;  %v6803_v37 = vmul.f32 %v13943_v26, %v6802_v24  ;;  %v6779_v6 = vand.u32 2147483647, %v6688_v60  ;;  %vm6775_vm15 = vweird.f32 %v6688_v60 }
0x1065   :  { %v6821_v15 = vpack.c.bf16 %v6799_v39, %v6799_v39  ;;  %v6758_v11 = vmul.f32 %v13945_v50, %v6757_v48 }
0x1066   :  { %v6804_v36 = vadd.f32 %v13943_v26, %v6803_v37  ;;  %12170 = vmatmul.msk.bf16.vlgmr.msrb.gmra.mxu0 %vm933_vm2, %v6816_v41  ;;  %vm6780_vm5 = vcmp.eq.f32.partialorder %v6779_v6, 8.507059e+37 }
0x1067   :  { %v6759_v51 = vadd.f32 %v13945_v50, %v6758_v11  ;;  %12175 = vmatmul.msk.bf16.vlgmr.msra.gmra.mxu1 %vm933_vm2, %v6821_v15 }
0x1068   :  { %v6808_v13 = vsel %vm6807_vm7, %v13943_v26, %v6804_v36  ;;  %v13947_v33 = vpop.eup %13946 }
0x1069   :  { %v6813_v23 = vsel %vm6810_vm8, %v6812_v56, %v6808_v13  ;;  %v6763_v1 = vsel %vm6762_vm10, %v13945_v50, %v6759_v51  ;;  %v6771_v61 = vmul.f32 %v13947_v33, %v6688_v60  ;;  %vm6776_vm12 = vweird.f32 %v13947_v33 }
0x106a   :  { %v6814_v59 = vmul.f32 %v16759_v3, %v6813_v23  ;;  %v6768_v40 = vsel %vm6765_vm11, %v6767_v17, %v6763_v1  ;;  %vm6777_vm3 = vmor %vm6775_vm15, %vm6776_vm12  ;;  %v6782_v3 = vor.u32 1.1754944e-38, %v6781_v55 }
0x106b   :  { %v6769_v46 = vmul.f32 %v16763_v28, %v6768_v40  ;;  %v6772_v62 = vsub.f32 1.0, %v6771_v61 }
0x106c   :  { %v6822_v45 = vpack.c.bf16 %v6814_v59, %v6814_v59 }
0x106d   :  { %v6819_v18 = vpack.c.bf16 %v6769_v46, %v6769_v46  ;;  %v6773_v7 = vmul.f32 %v13947_v33, %v6772_v62 }
0x106e   :  { %12176 = vmatmul.msk.bf16.vlgmr.msra.gmra.mxu2 %vm933_vm2, %v6822_v45 }
0x106f   :  { %v6774_v8 = vadd.f32 %v13947_v33, %v6773_v7  ;;  %12173 = vmatmul.msk.bf16.vlgmr.msrb.gmra.mxu3 %vm933_vm2, %v6819_v18 }
0x1071   :  { %v6778_v58 = vsel %vm6777_vm3, %v13947_v33, %v6774_v8 }
0x1072   :  { %v6783_v54 = vsel %vm6780_vm5, %v6782_v3, %v6778_v58 }
0x1073   :  { %v6784_v32 = vmul.f32 %v16767_v20, %v6783_v54 }
0x1075   :  { %v6820_v28 = vpack.c.bf16 %v6784_v32, %v6784_v32 }
0x1077   :  { %12174 = vmatmul.msk.bf16.vlgmr.msra.gmra.mxu0 %vm933_vm2, %v6820_v28 }
0x10d3   :  { %v6876_v53 = vpop.f32.mrf.mxu1 }
0x10d4   :  { %v6975_v49 = vrot.slane %v6876_v53, 4 }
0x10db   :  { %v6878_v10 = vpop.f32.mrf.mxu1 }
0x10dc   :  { %v6895_v38 = vpop.f32.mrf.mxu2 }
0x10dd   :  { %v6987_v2 = vrot.slane %v6895_v38, 4 }
0x10e1   :  { %v6838_v34 = vpop.f32.mrf.mxu3 }
0x10e2   :  { %v6976_v29 = vsel %vm209_vm1, %v6975_v49, %v6838_v34  ;;  %v6977_v26 = vrot.slane %v6838_v34, 4 }
0x10e3   :  { %v6982_v31 = vperm.slane %v6976_v29, %v14217_v27  ;;  %v6857_v30 = vpop.f32.mrf.mxu0 }
0x10e4   :  { %v6978_v22 = vsel %vm209_vm1, %v6876_v53, %v6977_v26  ;;  %v6988_v4 = vsel %vm209_vm1, %v6987_v2, %v6857_v30  ;;  %v6989_v20 = vrot.slane %v6857_v30, 4  ;;  %v6897_v50 = vpop.f32.mrf.mxu2  ;;  %v6952_v57 = vpop.f32.mrf.mxu1 }
0x10e5   :  { %v6986_v14 = vperm.slane %v6978_v22, %v14217_v27  ;;  %v7001_v42 = vrot.slane %v6982_v31, 4  ;;  %v6994_v16 = vperm.slane %v6988_v4, %v14217_v27  ;;  %v7031_v8 = vrot.slane %v6952_v57, 4 }
0x10e6   :  { %v6990_v35 = vsel %vm209_vm1, %v6895_v38, %v6989_v20 }
0x10e7   :  { %v7013_v24 = vrot.slane %v6986_v14, 4  ;;  %v6998_v0 = vperm.slane %v6990_v35, %v14217_v27  ;;  %v6999_v60 = vrot.slane %v6994_v16, 4  ;;  %v7002_v47 = vsel %vm209_vm1, %v6994_v16, %v7001_v42 }
0x10e8   :  { %v7010_v21 = vperm.slane %v7002_v47, %v14229_v44 }
0x10e9   :  { %v7000_v41 = vsel %vm209_vm1, %v6999_v60, %v6982_v31  ;;  %v7011_v39 = vrot.slane %v6998_v0, 4  ;;  %v7014_v37 = vsel %vm209_vm1, %v6998_v0, %v7013_v24  ;;  %v6840_v48 = vpop.f32.mrf.mxu3 }
0x10ea   :  { %v7006_v63 = vperm.slane %v7000_v41, %v14229_v44  ;;  %v7022_v9 = vperm.slane %v7014_v37, %v14229_v44  ;;  %v7025_v15 = vrot.slane %v7010_v21, 4 }
0x10eb   :  { %v7012_v36 = vsel %vm209_vm1, %v7011_v39, %v6986_v14  ;;  %v6859_v11 = vpop.f32.mrf.mxu0 }
0x10ec   :  { %v7018_v56 = vperm.slane %v7012_v36, %v14229_v44  ;;  %v7023_v13 = vrot.slane %v7006_v63, 4  ;;  %v7026_v51 = vsel %vm209_vm1, 0.0, %v7025_v15  ;;  %v7029_v33 = vrot.slane %v7022_v9, 4  ;;  %v6954_v17 = vpop.f32.mrf.mxu1 }
0x10ed   :  { %v7092_v23 = vrot.slane %v7026_v51, 4  ;;  %v7087_v46 = vsel %vm209_vm1, %v7025_v15, %v7006_v63 }
0x10ee   :  { %v7024_v59 = vsel %vm209_vm1, 0.0, %v7023_v13  ;;  %v7027_v1 = vrot.slane %v7018_v56, 4  ;;  %v7030_v61 = vsel %vm209_vm1, 0.0, %v7029_v33  ;;  %v7098_v55 = vsel %vm209_vm1, %v7029_v33, %v7018_v56 }
0x10ef   :  { %v7093_v40 = vsel %vm209_vm1, %v7092_v23, %v7024_v59  ;;  %v7103_v45 = vrot.slane %v7030_v61, 4  ;;  %v7091_v54 = vperm.slane %v7087_v46, %v14217_v27  ;;  %v7102_v10 = vperm.slane %v7098_v55, %v14217_v27 }
0x10f0   :  { %v7028_v62 = vsel %vm209_vm1, 0.0, %v7027_v1  ;;  %v7097_v6 = vperm.slane %v7093_v40, %v14217_v27 }
0x10f1   :  { %v6971_v18 = vpop.f32.mrf.mxu2  ;;  %v7104_v7 = vsel %vm209_vm1, %v7103_v45, %v7028_v62  ;;  %v7111_v30 = vrot.slane %v7091_v54, 4  ;;  %v7123_v14 = vrot.slane %v7102_v10, 4 }
0x10f2   :  { %v7043_v3 = vrot.slane %v6971_v18, 4  ;;  %v7108_v58 = vperm.slane %v7104_v7, %v14217_v27  ;;  %v6914_v32 = vpop.f32.mrf.mxu3  ;;  %v7109_v31 = vrot.slane %v7097_v6, 4 }
0x10f3   :  { %v7032_v28 = vsel %vm209_vm1, %v7031_v8, %v6914_v32  ;;  %v7033_v53 = vrot.slane %v6914_v32, 4  ;;  %v7112_v63 = vsel %vm209_vm1, %v7097_v6, %v7111_v30 }
0x10f4   :  { %v7121_v38 = vrot.slane %v7108_v58, 4  ;;  %v7038_v49 = vperm.slane %v7032_v28, %v14217_v27  ;;  %v6933_v34 = vpop.f32.mrf.mxu0  ;;  %v7110_v47 = vsel %vm209_vm1, %v7109_v31, %v7091_v54  ;;  %v7124_v51 = vsel %vm209_vm1, %v7108_v58, %v7123_v14 }
0x10f5   :  { %v7034_v2 = vsel %vm209_vm1, %v6952_v57, %v7033_v53  ;;  %v7044_v29 = vsel %vm209_vm1, %v7043_v3, %v6933_v34  ;;  %v7045_v26 = vrot.slane %v6933_v34, 4  ;;  %v7116_v33 = vperm.slane %v7110_v47, %v14229_v44 }
0x10f6   :  { %v7042_v22 = vperm.slane %v7034_v2, %v14217_v27  ;;  %v7057_v4 = vrot.slane %v7038_v49, 4  ;;  %v7050_v20 = vperm.slane %v7044_v29, %v14217_v27  ;;  %v7122_v42 = vsel %vm209_vm1, %v7121_v38, %v7102_v10 }
0x10f7   :  { %v7046_v50 = vsel %vm209_vm1, %v6971_v18, %v7045_v26  ;;  %v7128_v21 = vperm.slane %v7122_v42, %v14229_v44  ;;  %v7120_v45 = vperm.slane %v7112_v63, %v14229_v44  ;;  %v7132_v58 = vperm.slane %v7124_v51, %v14229_v44 }
0x10f8   :  { %v7069_v16 = vrot.slane %v7042_v22, 4  ;;  %v7054_v35 = vperm.slane %v7046_v50, %v14217_v27  ;;  %v7055_v24 = vrot.slane %v7050_v20, 4  ;;  %v7058_v57 = vsel %vm209_vm1, %v7050_v20, %v7057_v4 }
0x10f9   :  { %v6973_v0 = vpop.f32.mrf.mxu2  ;;  %v7066_v60 = vperm.slane %v7058_v57, %v14229_v44  ;;  %v7133_v11 = vrot.slane %v7128_v21, 4  ;;  %v7139_v10 = vrot.slane %v7120_v45, 4  ;;  %v7137_v30 = vrot.slane %v7132_v58, 4 }
0x10fa   :  { %v7056_v41 = vsel %vm209_vm1, %v7055_v24, %v7038_v49  ;;  %v7067_v39 = vrot.slane %v7054_v35, 4  ;;  %v7070_v37 = vsel %vm209_vm1, %v7054_v35, %v7069_v16  ;;  %v6916_v48 = vpop.f32.mrf.mxu3  ;;  %v7135_v14 = vrot.slane %v7116_v33, 4 }
0x10fb   :  { %v7062_v9 = vperm.slane %v7056_v41, %v14229_v44  ;;  %v7078_v15 = vperm.slane %v7070_v37, %v14229_v44  ;;  %v7081_v36 = vrot.slane %v7066_v60, 4  ;;  %v7134_v46 = vsel %vm209_vm1, %v7133_v11, %v7116_v33  ;;  %v13415_v11 = vld [vmem:[%s18609_s4 + $0xb8] sm:$0xff] }
0x10fc   :  { %v7068_v56 = vsel %vm209_vm1, %v7067_v39, %v7042_v22  ;;  %v6935_v13 = vpop.f32.mrf.mxu0  ;;  %v7140_v16 = vsel %vm209_vm1, %v7132_v58, %v7139_v10  ;;  %v7138_v41 = vsel %vm209_vm1, %v7137_v30, %v7120_v45  ;;  %v7136_v37 = vsel %vm209_vm1, %v7128_v21, %v7135_v14  ;;  %7250 = vmatpush.bf16.msra.mxu3 %v13415_v11  ;;  %v13414_v21 = vld [vmem:[%s18609_s4 + $0xb0] sm:$0xff] }
0x10fd   :  { %v7074_v23 = vperm.slane %v7068_v56, %v14229_v44  ;;  %v7079_v17 = vrot.slane %v7062_v9, 4  ;;  %v7082_v59 = vsel %vm209_vm1, 0.0, %v7081_v36  ;;  %v7085_v1 = vrot.slane %v7078_v15, 4 }
0x10fe   :  { %v7141_v61 = vsel %vm209_vm1, %v7081_v36, %v7062_v9  ;;  %v7146_v40 = vrot.slane %v7082_v59, 4 }
0x10ff   :  { %v7080_v62 = vsel %vm209_vm1, 0.0, %v7079_v17  ;;  %v7083_v55 = vrot.slane %v7074_v23, 4  ;;  %v7086_v18 = vsel %vm209_vm1, 0.0, %v7085_v1  ;;  %v7145_v7 = vperm.slane %v7141_v61, %v14217_v27 }
0x1100   :  { %v7147_v6 = vsel %vm209_vm1, %v7146_v40, %v7080_v62  ;;  %v7152_v8 = vsel %vm209_vm1, %v7085_v1, %v7074_v23  ;;  %v7157_v3 = vrot.slane %v7086_v18, 4  ;;  %7251 = vmatpush.bf16.msra.mxu3 %v13414_v21 }
0x1101   :  { %v7151_v54 = vperm.slane %v7147_v6, %v14217_v27  ;;  %v7165_v32 = vrot.slane %v7145_v7, 4  ;;  %v7084_v28 = vsel %vm209_vm1, 0.0, %v7083_v55  ;;  %v7156_v53 = vperm.slane %v7152_v8, %v14217_v27  ;;  %v13756_v8 = vld [vmem:[%s18611_s5 + $0x12] ss:$0 sm:$0xff] }
0x1102   :  { %v7158_v38 = vsel %vm209_vm1, %v7157_v3, %v7084_v28 }
0x1103   :  { %v7162_v49 = vperm.slane %v7158_v38, %v14217_v27  ;;  %v7166_v34 = vsel %vm209_vm1, %v7151_v54, %v7165_v32  ;;  %v7177_v2 = vrot.slane %v7156_v53, 4  ;;  %v7163_v29 = vrot.slane %v7151_v54, 4  ;;  %v13419_v38 = vld [vmem:[%s18609_s4 + $0xd8] sm:$0xff] }
0x1104   :  { %v7174_v26 = vperm.slane %v7166_v34, %v14229_v44  ;;  %7386 = vmatpush.bf16.msrb.mxu1 %v13419_v38 }
0x1105   :  { %v7178_v31 = vsel %vm209_vm1, %v7162_v49, %v7177_v2  ;;  %v7164_v22 = vsel %vm209_vm1, %v7163_v29, %v7145_v7  ;;  %v7175_v4 = vrot.slane %v7162_v49, 4  ;;  %v13418_v49 = vld [vmem:[%s18609_s4 + $0xd0] sm:$0xff] }
0x1106   :  { %v7186_v20 = vperm.slane %v7178_v31, %v14229_v44  ;;  %v7193_v50 = vrot.slane %v7174_v26, 4  ;;  %v7170_v42 = vperm.slane %v7164_v22, %v14229_v44 }
0x1107   :  { %v7176_v35 = vsel %vm209_vm1, %v7175_v4, %v7156_v53 }
0x1108   :  { %v7194_v24 = vsel %vm209_vm1, %v7186_v20, %v7193_v50  ;;  %v7191_v57 = vrot.slane %v7186_v20, 4  ;;  %v7182_v0 = vperm.slane %v7176_v35, %v14229_v44  ;;  %v7189_v60 = vrot.slane %v7170_v42, 4  ;;  %7387 = vmatpush.bf16.msrb.mxu1 %v13418_v49  ;;  %v13759_v35 = vld [vmem:[%s18611_s5 + $0x14] ss:$0 sm:$0xff] }
0x1109   :  { %v13698_v47 = vpack.i.bf16 %v7194_v24, %v7140_v16  ;;  %v13416_v16 = vld [vmem:[%s18609_s4 + $0xc0] sm:$0xff] }
0x110a   :  { %v7192_v39 = vsel %vm209_vm1, %v7191_v57, %v7174_v26  ;;  %v7187_v48 = vrot.slane %v7182_v0, 4  ;;  %v7190_v63 = vsel %vm209_vm1, %v7182_v0, %v7189_v60 }
0x110b   :  { %13699 = vrot.lane.b32.xlu2 %v13698_v47, %s14072_s23  ;;  %v13693_v9 = vpack.i.bf16 %v7192_v39, %v7138_v41  ;;  %v13688_v15 = vpack.i.bf16 %v7190_v63, %v7136_v37  ;;  %12215 = vmatmul.msk.bf16.vlgmr.msrb.gmra.mxu1 %vm91_vm0, %v14831_v25 }
0x110c   :  { %v7188_v36 = vsel %vm209_vm1, %v7187_v48, %v7170_v42  ;;  %v13417_v42 = vld [vmem:[%s18609_s4 + $0xc8] sm:$0xff] }
0x110d   :  { %13694 = vrot.lane.b32.xlu1 %v13693_v9, %s14073_s24  ;;  %13689 = vrot.lane.b32.xlu0 %v13688_v15, %s14074_s25 }
0x110e   :  { %7350 = vmatpush.bf16.msrb.mxu0 %v13417_v42 }
0x1112   :  { %7351 = vmatpush.bf16.msrb.mxu0 %v13416_v16 }
0x1165   :  { %v13700_v56 = vpop.permute.xlu2 %13699 }
0x1166   :  { %v13702_v1 = vunpack.i.h.bf16 %v13700_v56  ;;  %v13701_v61 = vunpack.i.l.bf16 %v13700_v56 }
0x117f   :  { %v13695_v13 = vpop.permute.xlu1 %13694  ;;  %v13690_v51 = vpop.permute.xlu0 %13689 }
0x1180   :  { %v13697_v33 = vunpack.i.h.bf16 %v13695_v13  ;;  %v13696_v23 = vunpack.i.l.bf16 %v13695_v13  ;;  %v13692_v17 = vunpack.i.h.bf16 %v13690_v51  ;;  %v13691_v59 = vunpack.i.l.bf16 %v13690_v51 }
0x1182   :  { %v7219_v40 = vsel %vm933_vm2, %v7134_v46, %v13691_v59  ;;  %v7220_v45 = vsel %vm933_vm2, %v7188_v36, %v13692_v17 }
0x1183   :  { %v7221_v62 = vsel %vm1693_vm13, %v7219_v40, %v13696_v23  ;;  %v7222_v55 = vsel %vm1693_vm13, %v7220_v45, %v13697_v33  ;;  %v13757_v23 = vld [vmem:[%s18611_s5 + $0x18] ss:$0 sm:$0xff] }
0x1184   :  { %v7223_v18 = vsel %vm1696_vm14, %v7221_v62, %v13701_v61  ;;  %v7224_v7 = vsel %vm1696_vm14, %v7222_v55, %v13702_v1  ;;  %v13758_v61 = vld [vmem:[%s18611_s5 + $0x19] ss:$0 sm:$0xff] }
0x1185   :  { %v7225_v6 = vpack.c.bf16 %v7224_v7, %v7223_v18 }
0x1187   :  { %12185 = vmatmul.msk.bf16.vlgmr.msra.gmra.mxu3 %vm91_vm0, %v7225_v6  ;;  %v13760_v6 = vld [vmem:[%s18611_s5 + $0x13] ss:$0 sm:$0xff] }
0x1188   :  { %v7389_v24 = vpop.f32.mrf.mxu1 }
0x1189   :  { %v7390_v60 = vadd.f32 %v13759_v35, %v7389_v24 }
0x1190   :  { %v7391_v48 = vpop.f32.mrf.mxu1 }
0x1191   :  { %v17022_v9 = vadd.f32 %v13759_v35, %v7391_v48 }
0x120a   :  { %v7253_v3 = vpop.f32.mrf.mxu3 }
0x120b   :  { %v7254_v58 = vadd.f32 %v13756_v8, %v7253_v3 }
0x120d   :  { %v7258_v46 = vadd.f32 %v7254_v58, %v16412_v5 }
0x120f   :  { %v7264_v54 = vsel %vm91_vm0, %v7258_v46, 0.0 }
0x1210   :  { %7265 = vadd.xlane.f32.xlu0 %v7264_v54 }
0x1212   :  { %v7255_v32 = vpop.f32.mrf.mxu3 }
0x1213   :  { %v7256_v28 = vadd.f32 %v13756_v8, %v7255_v32 }
0x1215   :  { %v7259_v53 = vadd.f32 %v7256_v28, %v16414_v12  ;;  %v13421_v28 = vld [vmem:[%s18609_s4 + $0xe8] sm:$0xff] }
0x1216   :  { %7422 = vmatpush.bf16.msrb.mxu2 %v13421_v28 }
0x1217   :  { %v7267_v10 = vsel %vm91_vm0, %v7259_v53, 0.0 }
0x1218   :  { %7268 = vadd.xlane.f32.xlu1 %v7267_v10  ;;  %v7707_v10 = vrot.slane %v7390_v60, 4 }
0x1231   :  { %7699 = vrot.lane.b32.xlu1 %v7390_v60, %s14066_s29 }
0x1239   :  { %7689 = vrot.lane.b32.xlu1 %v17022_v9, %s14067_s30 }
0x1283   :  { %v7266_v5 = vpop.xlane.xlu0 %7265 }
0x1284   :  { %v7270_v34 = vmul.f32 %v7266_v5, %v14835_v43 }
0x1286   :  { %v7272_v12 = vsub.f32 %v7258_v46, %v7270_v34 }
0x1288   :  { %v7274_v2 = vmul.f32 %v7272_v12, %v7272_v12 }
0x128a   :  { %v7276_v29 = vsel %vm91_vm0, %v7274_v2, 0.0 }
0x128b   :  { %v7269_v26 = vpop.xlane.xlu1 %7268  ;;  %7277 = vadd.xlane.f32.xlu2 %v7276_v29 }
0x128c   :  { %v7271_v31 = vmul.f32 %v7269_v26, %v14835_v43 }
0x128e   :  { %v7273_v30 = vsub.f32 %v7259_v53, %v7271_v31 }
0x1290   :  { %v7275_v22 = vmul.f32 %v7273_v30, %v7273_v30 }
0x1292   :  { %v7279_v4 = vsel %vm91_vm0, %v7275_v22, 0.0 }
0x1293   :  { %7280 = vadd.xlane.f32.xlu0 %v7279_v4 }
0x12a3   :  { %v7700_v38 = vpop.permute.xlu1 %7699 }
0x12a4   :  { %v7717_v34 = vrot.slane %v7700_v38, 4 }
0x12a7   :  { %7693 = vrot.lane.b32.xlu0 %v7390_v60, %s14068_s15 }
0x12ab   :  { %v7690_v48 = vpop.permute.xlu1 %7689 }
0x12fe   :  { %v7278_v20 = vpop.xlane.xlu2 %7277 }
0x12ff   :  { %v7282_v50 = vmul.f32 %v7278_v20, %v14835_v43 }
0x1301   :  { %v7284_v14 = vadd.f32 1e-05, %v7282_v50 }
0x1303   :  { %13948 = vrsqrt.f32 %v7284_v14  ;;  %vm7292_vm7 = vweird.f32 %v7284_v14 }
0x1306   :  { %v7281_v57 = vpop.xlane.xlu0 %7280 }
0x1307   :  { %v7283_v0 = vmul.f32 %v7281_v57, %v14835_v43 }
0x1309   :  { %v13949_v47 = vpop.eup %13948  ;;  %v7285_v41 = vadd.f32 1e-05, %v7283_v0 }
0x130a   :  { %v7287_v39 = vmul.f32 %v13949_v47, %v7284_v14  ;;  %vm7293_vm6 = vweird.f32 %v13949_v47 }
0x130b   :  { %13950 = vrsqrt.f32 %v7285_v41  ;;  %vm7294_vm8 = vmor %vm7292_vm7, %vm7293_vm6  ;;  %vm7302_vm10 = vweird.f32 %v7285_v41 }
0x130c   :  { %v7288_v37 = vmul.f32 %v13949_v47, %v7287_v39 }
0x130e   :  { %v7289_v63 = vmul.f32 0.5, %v7288_v37 }
0x1310   :  { %v7290_v15 = vsub.f32 1.5, %v7289_v63 }
0x1311   :  { %v13951_v36 = vpop.eup %13950 }
0x1312   :  { %v7291_v11 = vmul.f32 %v13949_v47, %v7290_v15  ;;  %v7297_v21 = vmul.f32 %v13951_v36, %v7285_v41  ;;  %vm7303_vm9 = vweird.f32 %v13951_v36 }
0x1313   :  { %vm7304_vm11 = vmor %vm7302_vm10, %vm7303_vm9 }
0x1314   :  { %v7298_v56 = vmul.f32 %v13951_v36, %v7297_v21  ;;  %v7295_v13 = vsel %vm7294_vm8, %v13949_v47, %v7291_v11 }
0x1315   :  { %v7306_v17 = vmul.f32 %v7295_v13, %v7272_v12  ;;  %v13420_v12 = vld [vmem:[%s18609_s4 + $0xe0] sm:$0xff] }
0x1316   :  { %v7299_v51 = vmul.f32 0.5, %v7298_v56  ;;  %7423 = vmatpush.bf16.msrb.mxu2 %v13420_v12 }
0x1317   :  { %v7311_v40 = vmul.f32 %v13757_v23, %v7306_v17  ;;  %v7775_v17 = vrot.slane %v7690_v48, 4 }
0x1318   :  { %v7300_v33 = vsub.f32 1.5, %v7299_v51 }
0x1319   :  { %v17032_v55 = vadd.f32 %v13758_v61, %v7311_v40  ;;  %v7694_v32 = vpop.permute.xlu0 %7693  ;;  %12229 = vmatmul.msk.bf16.vlgmr.msrb.gmra.mxu2 %vm91_vm0, %v14831_v25 }
0x131a   :  { %v7301_v59 = vmul.f32 %v13951_v36, %v7300_v33  ;;  %v7705_v53 = vrot.slane %v7694_v32, 4  ;;  %v7708_v5 = vsel %vm209_vm1, %v7694_v32, %v7707_v10 }
0x131b   :  { %v7716_v26 = vperm.slane %v7708_v5, %v14217_v27 }
0x131c   :  { %v7305_v1 = vsel %vm7304_vm11, %v13951_v36, %v7301_v59  ;;  %v7706_v49 = vsel %vm209_vm1, %v7705_v53, %v7390_v60 }
0x131d   :  { %v7307_v45 = vmul.f32 %v7305_v1, %v7273_v30  ;;  %v7712_v2 = vperm.slane %v7706_v49, %v14217_v27  ;;  %v7743_v50 = vrot.slane %v7716_v26, 4 }
0x131f   :  { %v7312_v62 = vmul.f32 %v13757_v23, %v7307_v45  ;;  %v7731_v4 = vrot.slane %v7712_v2, 4 }
0x1321   :  { %v17034_v18 = vadd.f32 %v13758_v61, %v7312_v62 }
0x1323   :  { %v7323_v7 = vpack.c.bf16 %v17034_v18, %v17032_v55 }
0x1325   :  { %12201 = vmatmul.msk.bf16.vlgmr.msrb.gmra.mxu0 %vm91_vm0, %v7323_v7 }
0x13a2   :  { %v7353_v8 = vpop.f32.mrf.mxu0 }
0x13a3   :  { %v17042_v3 = vadd.f32 %v13760_v6, %v7353_v8 }
0x13a5   :  { %7445 = vrot.lane.b32.xlu0 %v17042_v3, %s14068_s15  ;;  %v13703_v58 = vpack.i.bf16 %v17042_v3, %v7390_v60 }
0x13a7   :  { %13704 = vrot.lane.b32.xlu2 %v13703_v58, %s14067_s30 }
0x13aa   :  { %v7355_v46 = vpop.f32.mrf.mxu0 }
0x13ab   :  { %v17048_v54 = vadd.f32 %v13760_v6, %v7355_v46 }
0x13ad   :  { %7441 = vrot.lane.b32.xlu1 %v17048_v54, %s14067_s30  ;;  %7695 = vrot.lane.b32.xlu0 %v17022_v9, %s14068_s15 }
0x13af   :  { %7451 = vrot.lane.b32.xlu2 %v17042_v3, %s14066_s29 }
0x13b5   :  { %7447 = vrot.lane.b32.xlu0 %v17048_v54, %s14068_s15 }
0x13b7   :  { %7701 = vrot.lane.b32.xlu2 %v17022_v9, %s14066_s29 }
0x13bf   :  { %7453 = vrot.lane.b32.xlu2 %v17048_v54, %s14066_s29 }
0x1401   :  { %v13705_v29 = vpop.permute.xlu2 %13704 }
0x1402   :  { %v13706_v31 = vunpack.i.l.bf16 %v13705_v29  ;;  %v13707_v42 = vunpack.i.h.bf16 %v13705_v29 }
0x1404   :  { %v7718_v30 = vsel %vm209_vm1, %v7717_v34, %v13706_v31  ;;  %v7719_v22 = vrot.slane %v13706_v31, 4  ;;  %v7471_v63 = vrot.slane %v13707_v42, 4 }
0x1405   :  { %v7724_v20 = vperm.slane %v7718_v30, %v14217_v27  ;;  %v7459_v30 = vrot.slane %v17042_v3, 4 }
0x1406   :  { %v7720_v14 = vsel %vm209_vm1, %v7700_v38, %v7719_v22 }
0x1407   :  { %v7728_v16 = vperm.slane %v7720_v14, %v14217_v27  ;;  %v7729_v35 = vrot.slane %v7724_v20, 4  ;;  %v7732_v24 = vsel %vm209_vm1, %v7724_v20, %v7731_v4  ;;  %v7763_v4 = vrot.slane %v17022_v9, 4 }
0x1408   :  { %v7740_v57 = vperm.slane %v7732_v24, %v14229_v44 }
0x1409   :  { %v7730_v0 = vsel %vm209_vm1, %v7729_v35, %v7712_v2  ;;  %v7741_v60 = vrot.slane %v7728_v16, 4  ;;  %v7744_v47 = vsel %vm209_vm1, %v7728_v16, %v7743_v50  ;;  %v7452_v41 = vpop.permute.xlu2 %7451 }
0x140a   :  { %v7736_v39 = vperm.slane %v7730_v0, %v14229_v44  ;;  %v7752_v25 = vperm.slane %v7744_v47, %v14229_v44  ;;  %v7755_v37 = vrot.slane %v7740_v57, 4  ;;  %v7469_v36 = vrot.slane %v7452_v41, 4 }
0x140b   :  { %v7742_v15 = vsel %vm209_vm1, %v7741_v60, %v7716_v26  ;;  %v7472_v23 = vsel %vm209_vm1, %v7452_v41, %v7471_v63 }
0x140c   :  { %v7748_v11 = vperm.slane %v7742_v15, %v14229_v44  ;;  %v7753_v21 = vrot.slane %v7736_v39, 4  ;;  %v7756_v56 = vsel %vm209_vm1, 0.0, %v7755_v37  ;;  %v7759_v13 = vrot.slane %v7752_v25, 4 }
0x140d   :  { %v7817_v51 = vsel %vm209_vm1, %v7755_v37, %v7736_v39  ;;  %v7822_v33 = vrot.slane %v7756_v56, 4  ;;  %v7470_v62 = vsel %vm209_vm1, %v7469_v36, %v13707_v42  ;;  %v7480_v32 = vperm.slane %v7472_v23, %v14217_v27 }
0x140e   :  { %v7754_v59 = vsel %vm209_vm1, 0.0, %v7753_v21  ;;  %v7757_v1 = vrot.slane %v7748_v11, 4  ;;  %v7760_v61 = vsel %vm209_vm1, 0.0, %v7759_v13  ;;  %v7821_v40 = vperm.slane %v7817_v51, %v14217_v27 }
0x140f   :  { %v7833_v45 = vrot.slane %v7760_v61, 4  ;;  %v7823_v7 = vsel %vm209_vm1, %v7822_v33, %v7754_v59  ;;  %v7828_v58 = vsel %vm209_vm1, %v7759_v13, %v7748_v11  ;;  %v7476_v12 = vperm.slane %v7470_v62, %v14217_v27 }
0x1410   :  { %v7758_v6 = vsel %vm209_vm1, 0.0, %v7757_v1  ;;  %v7827_v8 = vperm.slane %v7823_v7, %v14217_v27  ;;  %v7841_v46 = vrot.slane %v7821_v40, 4  ;;  %v7832_v53 = vperm.slane %v7828_v58, %v14217_v27 }
0x1411   :  { %v7702_v28 = vpop.permute.xlu2 %7701  ;;  %v7834_v10 = vsel %vm209_vm1, %v7833_v45, %v7758_v6  ;;  %v7515_v42 = vrot.slane %v17048_v54, 4  ;;  %v7481_v0 = vrot.slane %v7476_v12, 4  ;;  %v7493_v60 = vrot.slane %v7480_v32, 4 }
0x1412   :  { %v7773_v38 = vrot.slane %v7702_v28, 4  ;;  %v7776_v49 = vsel %vm209_vm1, %v7702_v28, %v7775_v17  ;;  %v7838_v5 = vperm.slane %v7834_v10, %v14217_v27  ;;  %v7842_v34 = vsel %vm209_vm1, %v7827_v8, %v7841_v46 }
0x1413   :  { %v7850_v2 = vperm.slane %v7842_v34, %v14229_v44  ;;  %v7853_v29 = vrot.slane %v7832_v53, 4  ;;  %v7839_v26 = vrot.slane %v7827_v8, 4  ;;  %v17109_v20 = vperm.slane %v7776_v49, %v14217_v27 }
0x1414   :  { %v7774_v31 = vsel %vm209_vm1, %v7773_v38, %v7690_v48  ;;  %v7851_v22 = vrot.slane %v7838_v5, 4 }
0x1415   :  { %v7854_v50 = vsel %vm209_vm1, %v7838_v5, %v7853_v29  ;;  %v7869_v14 = vrot.slane %v7850_v2, 4  ;;  %v17114_v16 = vperm.slane %v7774_v31, %v14217_v27  ;;  %v7840_v24 = vsel %vm209_vm1, %v7839_v26, %v7821_v40 }
0x1416   :  { %v7862_v35 = vperm.slane %v7854_v50, %v14229_v44  ;;  %v7852_v57 = vsel %vm209_vm1, %v7851_v22, %v7832_v53  ;;  %v7846_v41 = vperm.slane %v7840_v24, %v14229_v44  ;;  %v7797_v13 = vrot.slane %v17109_v20, 4 }
0x1417   :  { %v7446_v47 = vpop.permute.xlu0 %7445  ;;  %v7858_v39 = vperm.slane %v7852_v57, %v14229_v44  ;;  %v7785_v56 = vrot.slane %v17114_v16, 4 }
0x1418   :  { %v7457_v25 = vrot.slane %v7446_v47, 4  ;;  %v7460_v37 = vsel %vm209_vm1, %v7446_v47, %v7459_v30  ;;  %v7870_v48 = vsel %vm209_vm1, %v7862_v35, %v7869_v14  ;;  %v7867_v63 = vrot.slane %v7862_v35, 4 }
0x1419   :  { %v7468_v15 = vperm.slane %v7460_v37, %v14217_v27  ;;  %v7928_v36 = vpack.c.bf16 %v7870_v48, %v7870_v48  ;;  %v7865_v11 = vrot.slane %v7846_v41, 4  ;;  %v7863_v21 = vrot.slane %v7858_v39, 4  ;;  %v7454_v40 = vpop.permute.xlu2 %7453 }
0x141a   :  { %v7458_v51 = vsel %vm209_vm1, %v7457_v25, %v17042_v3  ;;  %v7868_v33 = vsel %vm209_vm1, %v7867_v63, %v7850_v2  ;;  %v7525_v49 = vrot.slane %v7454_v40, 4 }
0x141b   :  { %v7464_v23 = vperm.slane %v7458_v51, %v14217_v27  ;;  %v7494_v17 = vsel %vm209_vm1, %v7493_v60, %v7468_v15  ;;  %v7495_v59 = vrot.slane %v7468_v15, 4  ;;  %v8242_v1 = vsel %vm933_vm2, %v7928_v36, 0 }
0x141c   :  { %v7500_v61 = vperm.slane %v7494_v17, %v14229_v44  ;;  %8251 = vmatpush.bf16.xpose.msra.mxu2 %v8242_v1  ;;  %v7866_v45 = vsel %vm209_vm1, %v7858_v39, %v7865_v11  ;;  %v7927_v62 = vpack.c.bf16 %v7868_v33, %v7868_v33  ;;  %v7864_v7 = vsel %vm209_vm1, %v7863_v21, %v7846_v41 }
0x141d   :  { %v7482_v3 = vsel %vm209_vm1, %v7481_v0, %v7464_v23  ;;  %v7483_v6 = vrot.slane %v7464_v23, 4  ;;  %v7496_v8 = vsel %vm209_vm1, %v7480_v32, %v7495_v59  ;;  %v7926_v58 = vpack.c.bf16 %v7866_v45, %v7866_v45 }
0x141e   :  { %v7488_v46 = vperm.slane %v7482_v3, %v14229_v44  ;;  %v7504_v28 = vperm.slane %v7496_v8, %v14229_v44  ;;  %v7509_v53 = vrot.slane %v7500_v61, 4  ;;  %v8223_v10 = vsel %vm933_vm2, %v7927_v62, 0 }
0x141f   :  { %v7484_v38 = vsel %vm209_vm1, %v7476_v12, %v7483_v6  ;;  %v8204_v5 = vsel %vm933_vm2, %v7926_v58, 0  ;;  %8232 = vmatpush.bf16.xpose.msra.mxu1 %v8223_v10  ;;  %v7442_v34 = vpop.permute.xlu1 %7441  ;;  %v7925_v2 = vpack.c.bf16 %v7864_v7, %v7864_v7  ;;  %v7696_v29 = vpop.permute.xlu0 %7695 }
0x1420   :  { %v7492_v26 = vperm.slane %v7484_v38, %v14229_v44  ;;  %v7505_v32 = vrot.slane %v7488_v46, 4  ;;  %v7510_v31 = vsel %vm209_vm1, 0.0, %v7509_v53  ;;  %v7511_v30 = vrot.slane %v7504_v28, 4  ;;  %8213 = vmatpush.bf16.xpose.msra.mxu0 %v8204_v5 }
0x1421   :  { %v7526_v22 = vsel %vm209_vm1, %v7525_v49, %v7442_v34  ;;  %v7527_v50 = vrot.slane %v7442_v34, 4  ;;  %v8185_v14 = vsel %vm933_vm2, %v7925_v2, 0  ;;  %v7761_v12 = vrot.slane %v7696_v29, 4 }
0x1422   :  { %v7506_v35 = vsel %vm209_vm1, 0.0, %v7505_v32  ;;  %v7507_v24 = vrot.slane %v7492_v26, 4  ;;  %v7512_v57 = vsel %vm209_vm1, 0.0, %v7511_v30  ;;  %v7580_v0 = vsel %vm209_vm1, %v7511_v30, %v7500_v61  ;;  %8194 = vmatpush.bf16.xpose.msrb.mxu3 %v8185_v14 }
0x1423   :  { %v7584_v60 = vperm.slane %v7580_v0, %v14217_v27  ;;  %v7585_v47 = vrot.slane %v7512_v57, 4  ;;  %v7528_v41 = vsel %vm209_vm1, %v7454_v40, %v7527_v50  ;;  %v7532_v39 = vperm.slane %v7526_v22, %v14217_v27 }
0x1424   :  { %v7508_v25 = vsel %vm209_vm1, 0.0, %v7507_v24  ;;  %v7569_v37 = vsel %vm209_vm1, %v7507_v24, %v7488_v46  ;;  %v17155_v48 = vperm.slane %v7528_v41, %v14217_v27  ;;  %v7762_v63 = vsel %vm209_vm1, %v7761_v12, %v17022_v9 }
0x1425   :  { %v7573_v15 = vperm.slane %v7569_v37, %v14217_v27  ;;  %v7574_v36 = vrot.slane %v7508_v25, 4  ;;  %v7586_v11 = vsel %vm209_vm1, %v7585_v47, %v7510_v31  ;;  %v7605_v21 = vrot.slane %v7584_v60, 4 }
0x1426   :  { %v7590_v51 = vperm.slane %v7586_v11, %v14217_v27  ;;  %v7537_v33 = vrot.slane %v7532_v39, 4  ;;  %v7549_v23 = vrot.slane %v17155_v48, 4  ;;  %v7764_v17 = vsel %vm209_vm1, %v7696_v29, %v7763_v4 }
0x1427   :  { %v7575_v59 = vsel %vm209_vm1, %v7574_v36, %v7506_v35  ;;  %v7593_v1 = vrot.slane %v7573_v15, 4  ;;  %v7768_v61 = vperm.slane %v7762_v63, %v14217_v27  ;;  %v7772_v40 = vperm.slane %v7764_v17, %v14217_v27  ;;  %v7448_v45 = vpop.permute.xlu0 %7447 }
0x1428   :  { %v7579_v62 = vperm.slane %v7575_v59, %v14217_v27  ;;  %v7603_v7 = vrot.slane %v7590_v51, 4  ;;  %v7606_v3 = vsel %vm209_vm1, %v7590_v51, %v7605_v21  ;;  %v7513_v6 = vrot.slane %v7448_v45, 4 }
0x1429   :  { %v17172_v8 = vperm.slane %v7606_v3, %v14229_v44  ;;  %v7786_v9 = vsel %vm209_vm1, %v7785_v56, %v7768_v61  ;;  %v7787_v4 = vrot.slane %v7768_v61, 4  ;;  %v7798_v58 = vsel %vm209_vm1, %v7797_v13, %v7772_v40 }
0x142a   :  { %v7591_v46 = vrot.slane %v7579_v62, 4  ;;  %v7604_v28 = vsel %vm209_vm1, %v7603_v7, %v7584_v60  ;;  %v7792_v53 = vperm.slane %v7786_v9, %v14229_v44  ;;  %v7799_v10 = vrot.slane %v7772_v40, 4 }
0x142b   :  { %v17183_v38 = vperm.slane %v7604_v28, %v14229_v44  ;;  %v7788_v49 = vsel %vm209_vm1, %v17114_v16, %v7787_v4  ;;  %v7804_v5 = vperm.slane %v7798_v58, %v14229_v44  ;;  %v7514_v56 = vsel %vm209_vm1, %v7513_v6, %v17048_v54 }
0x142c   :  { %v7592_v34 = vsel %vm209_vm1, %v7591_v46, %v7573_v15  ;;  %v7796_v13 = vperm.slane %v7788_v49, %v14229_v44  ;;  %v7800_v2 = vsel %vm209_vm1, %v17109_v20, %v7799_v10  ;;  %v7809_v29 = vrot.slane %v7792_v53, 4 }
0x142d   :  { %v7615_v26 = vrot.slane %v17183_v38, 4  ;;  %v7808_v32 = vperm.slane %v7800_v2, %v14229_v44  ;;  %v7813_v31 = vrot.slane %v7804_v5, 4  ;;  %v7516_v16 = vsel %vm209_vm1, %v7448_v45, %v7515_v42 }
0x142e   :  { %v7810_v30 = vsel %vm209_vm1, 0.0, %v7809_v29  ;;  %v7811_v22 = vrot.slane %v7796_v13, 4  ;;  %v7520_v50 = vperm.slane %v7514_v56, %v14217_v27  ;;  %v7524_v14 = vperm.slane %v7516_v16, %v14217_v27 }
0x142f   :  { %v7814_v12 = vsel %vm209_vm1, 0.0, %v7813_v31  ;;  %v7815_v20 = vrot.slane %v7808_v32, 4  ;;  %v7594_v35 = vsel %vm209_vm1, %v7579_v62, %v7593_v1  ;;  %v7619_v24 = vrot.slane %v17172_v8, 4 }
0x1430   :  { %v7812_v57 = vsel %vm209_vm1, 0.0, %v7811_v22  ;;  %v7871_v54 = vsel %vm209_vm1, %v7811_v22, %v7792_v53  ;;  %v7538_v42 = vsel %vm209_vm1, %v7537_v33, %v7520_v50  ;;  %v7539_v0 = vrot.slane %v7520_v50, 4 }
0x1431   :  { %v7816_v60 = vsel %vm209_vm1, 0.0, %v7815_v20  ;;  %v7876_v47 = vrot.slane %v7812_v57, 4  ;;  %v7882_v41 = vsel %vm209_vm1, %v7815_v20, %v7804_v5  ;;  %v7544_v25 = vperm.slane %v7538_v42, %v14229_v44 }
0x1432   :  { %v7886_v37 = vperm.slane %v7882_v41, %v14217_v27  ;;  %v7887_v63 = vrot.slane %v7816_v60, 4  ;;  %v7540_v15 = vsel %vm209_vm1, %v7532_v39, %v7539_v0  ;;  %v7550_v36 = vsel %vm209_vm1, %v7549_v23, %v7524_v14 }
0x1433   :  { %v7548_v11 = vperm.slane %v7540_v15, %v14229_v44  ;;  %v7551_v21 = vrot.slane %v7524_v14, 4  ;;  %v7556_v51 = vperm.slane %v7550_v36, %v14229_v44  ;;  %v7561_v33 = vrot.slane %v7544_v25, 4 }
0x1434   :  { %v7888_v17 = vsel %vm209_vm1, %v7887_v63, %v7814_v12  ;;  %v7907_v59 = vrot.slane %v7886_v37, 4  ;;  %v7602_v1 = vperm.slane %v7594_v35, %v14229_v44  ;;  %v7598_v61 = vperm.slane %v7592_v34, %v14229_v44 }
0x1435   :  { %v7892_v40 = vperm.slane %v7888_v17, %v14217_v27  ;;  %v7552_v39 = vsel %vm209_vm1, %v17155_v48, %v7551_v21  ;;  %v7562_v23 = vsel %vm209_vm1, 0.0, %v7561_v33  ;;  %v7563_v45 = vrot.slane %v7548_v11, 4 }
0x1436   :  { %v7560_v62 = vperm.slane %v7552_v39, %v14229_v44  ;;  %v7565_v7 = vrot.slane %v7556_v51, 4  ;;  %v7620_v3 = vsel %vm209_vm1, %v7619_v24, %v7602_v1  ;;  %v7616_v6 = vsel %vm209_vm1, %v7615_v26, %v7598_v61 }
0x1437   :  { %v7905_v9 = vrot.slane %v7892_v40, 4  ;;  %v7564_v4 = vsel %vm209_vm1, 0.0, %v7563_v45  ;;  %v7623_v58 = vsel %vm209_vm1, %v7563_v45, %v7544_v25  ;;  %v7679_v46 = vpack.c.bf16 %v7620_v3, %v7620_v3 }
0x1438   :  { %v7566_v28 = vsel %vm209_vm1, 0.0, %v7565_v7  ;;  %v7567_v53 = vrot.slane %v7560_v62, 4  ;;  %v7627_v48 = vperm.slane %v7623_v58, %v14217_v27  ;;  %v7628_v10 = vrot.slane %v7564_v4, 4 }
0x1439   :  { %12237 = vmatmul.msk.bf16.vlgmr.msra.gmra.mxu1 %vm933_vm2, %v7679_v46  ;;  %v7677_v49 = vpack.c.bf16 %v7616_v6, %v7616_v6  ;;  %v7621_v5 = vrot.slane %v7602_v1, 4  ;;  %v7617_v56 = vrot.slane %v7598_v61, 4  ;;  %v7875_v34 = vperm.slane %v7871_v54, %v14217_v27 }
0x143a   :  { %v7568_v13 = vsel %vm209_vm1, 0.0, %v7567_v53  ;;  %v7629_v2 = vsel %vm209_vm1, %v7628_v10, %v7562_v23  ;;  %v7634_v29 = vsel %vm209_vm1, %v7567_v53, %v7556_v51  ;;  %v7647_v26 = vrot.slane %v7627_v48, 4 }
0x143b   :  { %v7633_v32 = vperm.slane %v7629_v2, %v14217_v27  ;;  %v7638_v31 = vperm.slane %v7634_v29, %v14217_v27  ;;  %v7639_v16 = vrot.slane %v7568_v13, 4  ;;  %12235 = vmatmul.msk.bf16.vlgmr.msrb.gmra.mxu3 %vm933_vm2, %v7677_v49  ;;  %v7622_v22 = vsel %vm209_vm1, %v17172_v8, %v7621_v5 }
0x143c   :  { %v7680_v50 = vpack.c.bf16 %v7622_v22, %v7622_v22  ;;  %v7618_v14 = vsel %vm209_vm1, %v17183_v38, %v7617_v56  ;;  %v7877_v12 = vsel %vm209_vm1, %v7876_v47, %v7810_v30  ;;  %v7895_v20 = vrot.slane %v7875_v34, 4  ;;  %v7425_v22 = vpop.f32.mrf.mxu2 }
0x143d   :  { %v7640_v35 = vsel %vm209_vm1, %v7639_v16, %v7566_v28  ;;  %v7645_v24 = vrot.slane %v7633_v32, 4  ;;  %v7659_v57 = vrot.slane %v7638_v31, 4  ;;  %v7678_v54 = vpack.c.bf16 %v7618_v14, %v7618_v14 }
0x143e   :  { %v7644_v42 = vperm.slane %v7640_v35, %v14217_v27  ;;  %12238 = vmatmul.msk.bf16.vlgmr.msra.gmra.mxu2 %vm933_vm2, %v7680_v50  ;;  %v7881_v0 = vperm.slane %v7877_v12, %v14217_v27  ;;  %v7908_v8 = vsel %vm209_vm1, %v7892_v40, %v7907_v59  ;;  %v7906_v60 = vsel %vm209_vm1, %v7905_v9, %v7886_v37 }
0x143f   :  { %v7646_v38 = vsel %vm209_vm1, %v7645_v24, %v7627_v48  ;;  %12236 = vmatmul.msk.bf16.vlgmr.msra.gmra.mxu0 %vm933_vm2, %v7678_v54  ;;  %v7916_v30 = vperm.slane %v7908_v8, %v14229_v44  ;;  %v7912_v47 = vperm.slane %v7906_v60, %v14229_v44  ;;  %v7648_v41 = vsel %vm209_vm1, %v7633_v32, %v7647_v26 }
0x1440   :  { %v7657_v25 = vrot.slane %v7644_v42, 4  ;;  %v7660_v63 = vsel %vm209_vm1, %v7644_v42, %v7659_v57  ;;  %v7896_v15 = vsel %vm209_vm1, %v7881_v0, %v7895_v20  ;;  %v7893_v36 = vrot.slane %v7881_v0, 4 }
0x1441   :  { %v7668_v11 = vperm.slane %v7660_v63, %v14229_v44  ;;  %v7904_v37 = vperm.slane %v7896_v15, %v14229_v44  ;;  %v7921_v21 = vrot.slane %v7916_v30, 4  ;;  %v7917_v51 = vrot.slane %v7912_v47, 4 }
0x1442   :  { %v7658_v33 = vsel %vm209_vm1, %v7657_v25, %v7638_v31  ;;  %v7894_v17 = vsel %vm209_vm1, %v7893_v36, %v7875_v34  ;;  %v7656_v59 = vperm.slane %v7648_v41, %v14229_v44  ;;  %v7652_v1 = vperm.slane %v7646_v38, %v14229_v44 }
0x1443   :  { %v7664_v61 = vperm.slane %v7658_v33, %v14229_v44  ;;  %v7922_v40 = vsel %vm209_vm1, %v7921_v21, %v7904_v37  ;;  %v7900_v39 = vperm.slane %v7894_v17, %v14229_v44  ;;  %v7923_v23 = vrot.slane %v7904_v37, 4 }
0x1444   :  { %v7931_v45 = vpack.c.bf16 %v7922_v40, %v7922_v40  ;;  %v7673_v62 = vrot.slane %v7668_v11, 4  ;;  %v7675_v7 = vrot.slane %v7656_v59, 4  ;;  %v7671_v10 = vrot.slane %v7652_v1, 4  ;;  %v7427_v12 = vpop.f32.mrf.mxu2 }
0x1445   :  { %v7669_v3 = vrot.slane %v7664_v61, 4  ;;  %v7918_v6 = vsel %vm209_vm1, %v7917_v51, %v7900_v39  ;;  %v7924_v9 = vsel %vm209_vm1, %v7916_v30, %v7923_v23  ;;  %v7919_v4 = vrot.slane %v7900_v39, 4 }
0x1446   :  { %v8299_v58 = vsel %vm933_vm2, %v7931_v45, 0  ;;  %v7929_v46 = vpack.c.bf16 %v7918_v6, %v7918_v6  ;;  %v7932_v28 = vpack.c.bf16 %v7924_v9, %v7924_v9  ;;  %v7674_v48 = vsel %vm209_vm1, %v7673_v62, %v7656_v59  ;;  %v13761_v45 = vld [vmem:[%s18611_s5 + $0x15] ss:$0 sm:$0xff] }
0x1447   :  { %8308 = vmatpush.bf16.xpose.msrb.mxu1 %v8299_v58  ;;  %v7920_v53 = vsel %vm209_vm1, %v7912_v47, %v7919_v4  ;;  %v7670_v34 = vsel %vm209_vm1, %v7669_v3, %v7652_v1  ;;  %v7676_v13 = vsel %vm209_vm1, %v7668_v11, %v7675_v7  ;;  %v7683_v29 = vpack.c.bf16 %v7674_v48, %v7674_v48 }
0x1448   :  { %v8261_v49 = vsel %vm933_vm2, %v7929_v46, 0  ;;  %v8318_v5 = vsel %vm933_vm2, %v7932_v28, 0  ;;  %v7930_v56 = vpack.c.bf16 %v7920_v53, %v7920_v53  ;;  %v7672_v26 = vsel %vm209_vm1, %v7664_v61, %v7671_v10 }
0x1449   :  { %8270 = vmatpush.bf16.xpose.msra.mxu3 %v8261_v49  ;;  %8327 = vmatpush.bf16.xpose.msrb.mxu2 %v8318_v5  ;;  %v7681_v32 = vpack.c.bf16 %v7670_v34, %v7670_v34  ;;  %v7684_v31 = vpack.c.bf16 %v7676_v13, %v7676_v13  ;;  %v7682_v16 = vpack.c.bf16 %v7672_v26, %v7672_v26 }
0x144a   :  { %v8280_v2 = vsel %vm933_vm2, %v7930_v56, 0  ;;  %v17302_v62 = vadd.f32 %v13761_v45, %v7425_v22  ;;  %v17304_v7 = vadd.f32 %v13761_v45, %v7427_v12 }
0x144b   :  { %8289 = vmatpush.bf16.xpose.msrb.mxu0 %v8280_v2 }
0x144e   :  { %12241 = vmatmul.msk.bf16.vlgmr.msrb.gmra.mxu1 %vm933_vm2, %v7683_v29 }
0x1450   :  { %12239 = vmatmul.msk.bf16.vlgmr.msra.gmra.mxu3 %vm933_vm2, %v7681_v32  ;;  %12242 = vmatmul.msk.bf16.vlgmr.msrb.gmra.mxu2 %vm933_vm2, %v7684_v31 }
0x1452   :  { %12240 = vmatmul.msk.bf16.vlgmr.msrb.gmra.mxu0 %vm933_vm2, %v7682_v16 }
0x14b6   :  { %v8234_v50 = vpop.f32.mrf.mxu1 }
0x14b7   :  { %v8335_v14 = vadd.f32 %v8234_v50, %v15114_v52 }
0x14b9   :  { %v8347_v20 = vsel %vm933_vm2, %v8335_v14, -inf }
0x14ba   :  { %8348 = vmax.xlane.f32.xlu2 %v8347_v20 }
0x14bc   :  { %v8215_v35 = vpop.f32.mrf.mxu0 }
0x14bd   :  { %v8334_v24 = vadd.f32 %v8215_v35, %v15114_v52 }
0x14be   :  { %v8236_v57 = vpop.f32.mrf.mxu1  ;;  %v8196_v54 = vpop.f32.mrf.mxu3 }
0x14bf   :  { %v8344_v42 = vsel %vm933_vm2, %v8334_v24, -inf  ;;  %v8333_v60 = vadd.f32 %v8196_v54, %v15114_v52 }
0x14c0   :  { %8345 = vmax.xlane.f32.xlu1 %v8344_v42 }
0x14c1   :  { %v8253_v0 = vpop.f32.mrf.mxu2  ;;  %v8341_v41 = vsel %vm933_vm2, %v8333_v60, -inf }
0x14c2   :  { %v8336_v8 = vadd.f32 %v8253_v0, %v15114_v52 }
0x14c4   :  { %v8350_v38 = vsel %vm933_vm2, %v8336_v8, -inf  ;;  %v8217_v30 = vpop.f32.mrf.mxu0 }
0x14c5   :  { %8351 = vmax.xlane.f32.xlu0 %v8350_v38 }
0x14c6   :  { %v8198_v47 = vpop.f32.mrf.mxu3 }
0x14c8   :  { %8342 = vmax.xlane.f32.xlu1 %v8341_v41 }
0x14c9   :  { %v8255_v25 = vpop.f32.mrf.mxu2 }
0x14cb   :  { %v8310_v63 = vpop.f32.mrf.mxu1 }
0x14cc   :  { %v8339_v15 = vadd.f32 %v8310_v63, %v15124_v19 }
0x14ce   :  { %v8359_v11 = vsel %vm933_vm2, %v8339_v15, -inf }
0x14cf   :  { %v8291_v36 = vpop.f32.mrf.mxu0 }
0x14d0   :  { %v17291_v37 = vadd.f32 %v8291_v36, %v15124_v19  ;;  %8360 = vmax.xlane.f32.xlu1 %v8359_v11  ;;  %v8011_v36 = vrot.slane %v17304_v7, 4 }
0x14d2   :  { %v8356_v52 = vsel %vm933_vm2, %v17291_v37, -inf }
0x14d3   :  { %v8329_v21 = vpop.f32.mrf.mxu2  ;;  %v8312_v51 = vpop.f32.mrf.mxu1  ;;  %8357 = vmax.xlane.f32.xlu0 %v8356_v52 }
0x14d4   :  { %v8340_v33 = vadd.f32 %v8329_v21, %v15124_v19  ;;  %v8272_v17 = vpop.f32.mrf.mxu3 }
0x14d5   :  { %v8337_v59 = vadd.f32 %v8272_v17, %v15124_v19  ;;  %v13713_v19 = vpack.i.bf16 %v17304_v7, %v17302_v62 }
0x14d6   :  { %v8362_v1 = vsel %vm933_vm2, %v8340_v33, -inf }
0x14d7   :  { %8363 = vmax.xlane.f32.xlu2 %v8362_v1  ;;  %v8293_v61 = vpop.f32.mrf.mxu0  ;;  %v8353_v40 = vsel %vm933_vm2, %v8337_v59, -inf }
0x14db   :  { %v8331_v39 = vpop.f32.mrf.mxu2  ;;  %8354 = vmax.xlane.f32.xlu0 %v8353_v40 }
0x14dc   :  { %v8274_v23 = vpop.f32.mrf.mxu3 }
0x14e9   :  { %13714 = vrot.lane.b32.xlu1 %v13713_v19, %s14068_s15 }
0x14ef   :  { %13709 = vrot.lane.b32.xlu2 %v13713_v19, %s14067_s30  ;;  %13719 = vrot.lane.b32.xlu0 %v13713_v19, %s14066_s29 }
0x152d   :  { %v8349_v3 = vpop.xlane.xlu2 %8348 }
0x152e   :  { %v8367_v6 = vsub.f32 %v8335_v14, %v8349_v3 }
0x1530   :  { %v8377_v9 = vmul.f32 1.442695, %v8367_v6 }
0x1532   :  { %13952 = vpow2.f32 %v8377_v9 }
0x1533   :  { %v8346_v4 = vpop.xlane.xlu1 %8345 }
0x1534   :  { %v8366_v5 = vsub.f32 %v8334_v24, %v8346_v4 }
0x1536   :  { %v8375_v34 = vmul.f32 1.442695, %v8366_v5 }
0x1538   :  { %v17311_v58 = vpop.eup %13952  ;;  %v8352_v46 = vpop.xlane.xlu0 %8351 }
0x1539   :  { %v8368_v28 = vsub.f32 %v8336_v8, %v8352_v46  ;;  %v8395_v53 = vsel %vm933_vm2, %v17311_v58, 0.0 }
0x153a   :  { %8396 = vadd.xlane.f32.xlu1 %v8395_v53 }
0x153b   :  { %v8379_v48 = vmul.f32 1.442695, %v8368_v28  ;;  %v8343_v10 = vpop.xlane.xlu1 %8342 }
0x153c   :  { %v8365_v49 = vsub.f32 %v8333_v60, %v8343_v10 }
0x153d   :  { %13954 = vpow2.f32 %v8379_v48 }
0x153e   :  { %v8373_v56 = vmul.f32 1.442695, %v8365_v49 }
0x1540   :  { %13956 = vpow2.f32 %v8373_v56 }
0x1541   :  { %13958 = vpow2.f32 %v8375_v34 }
0x1543   :  { %v17315_v13 = vpop.eup %13954  ;;  %v8361_v2 = vpop.xlane.xlu1 %8360 }
0x1544   :  { %v8398_v29 = vsel %vm933_vm2, %v17315_v13, 0.0  ;;  %v8371_v32 = vsub.f32 %v8339_v15, %v8361_v2  ;;  %v7955_v15 = vrot.slane %v17302_v62, 4 }
0x1545   :  { %8399 = vadd.xlane.f32.xlu0 %v8398_v29 }
0x1546   :  { %v17319_v26 = vpop.eup %13956  ;;  %v8358_v31 = vpop.xlane.xlu0 %8357  ;;  %v8385_v22 = vmul.f32 1.442695, %v8371_v32 }
0x1547   :  { %v8389_v16 = vsel %vm933_vm2, %v17319_v26, 0.0  ;;  %v17323_v12 = vpop.eup %13958  ;;  %v8370_v54 = vsub.f32 %v17291_v37, %v8358_v31 }
0x1548   :  { %8390 = vadd.xlane.f32.xlu2 %v8389_v16  ;;  %13960 = vpow2.f32 %v8385_v22  ;;  %v8392_v57 = vsel %vm933_vm2, %v17323_v12, 0.0 }
0x1549   :  { %v8383_v8 = vmul.f32 1.442695, %v8370_v54 }
0x154a   :  { %v8364_v50 = vpop.xlane.xlu2 %8363 }
0x154b   :  { %v8372_v14 = vsub.f32 %v8340_v33, %v8364_v50 }
0x154d   :  { %v8387_v20 = vmul.f32 1.442695, %v8372_v14 }
0x154e   :  { %v8355_v35 = vpop.xlane.xlu0 %8354  ;;  %v17328_v0 = vpop.eup %13960 }
0x154f   :  { %13962 = vpow2.f32 %v8387_v20  ;;  %v8369_v24 = vsub.f32 %v8337_v59, %v8355_v35  ;;  %v8407_v30 = vsel %vm933_vm2, %v17328_v0, 0.0 }
0x1550   :  { %8393 = vadd.xlane.f32.xlu2 %v8392_v57 }
0x1551   :  { %v8381_v42 = vmul.f32 1.442695, %v8369_v24 }
0x1552   :  { %v13710_v41 = vpop.permute.xlu2 %13709 }
0x1553   :  { %13964 = vpow2.f32 %v8381_v42  ;;  %v13712_v52 = vunpack.i.h.bf16 %v13710_v41  ;;  %v13711_v21 = vunpack.i.l.bf16 %v13710_v41 }
0x1554   :  { %13966 = vpow2.f32 %v8383_v8 }
0x1555   :  { %v17330_v60 = vpop.eup %13962  ;;  %v8023_v45 = vrot.slane %v13712_v52, 4  ;;  %v7967_v9 = vrot.slane %v13711_v21, 4 }
0x1556   :  { %v8410_v38 = vsel %vm933_vm2, %v17330_v60, 0.0 }
0x1557   :  { %8411 = vadd.xlane.f32.xlu1 %v8410_v38 }
0x1558   :  { %8408 = vadd.xlane.f32.xlu2 %v8407_v30 }
0x1559   :  { %v17336_v47 = vpop.eup %13964 }
0x155a   :  { %v8401_v25 = vsel %vm933_vm2, %v17336_v47, 0.0  ;;  %v17342_v51 = vpop.eup %13966 }
0x155b   :  { %8402 = vadd.xlane.f32.xlu0 %v8401_v25  ;;  %v13715_v63 = vpop.permute.xlu1 %13714  ;;  %v8404_v6 = vsel %vm933_vm2, %v17342_v51, 0.0 }
0x155c   :  { %v13717_v11 = vunpack.i.h.bf16 %v13715_v63  ;;  %v13716_v37 = vunpack.i.l.bf16 %v13715_v63 }
0x155e   :  { %v8009_v33 = vrot.slane %v13717_v11, 4  ;;  %v8012_v17 = vsel %vm209_vm1, %v13717_v11, %v8011_v36  ;;  %v7953_v59 = vrot.slane %v13716_v37, 4  ;;  %v7956_v1 = vsel %vm209_vm1, %v13716_v37, %v7955_v15 }
0x155f   :  { %v8020_v61 = vperm.slane %v8012_v17, %v14217_v27  ;;  %v7964_v40 = vperm.slane %v7956_v1, %v14217_v27 }
0x1560   :  { %v8010_v39 = vsel %vm209_vm1, %v8009_v33, %v17304_v7  ;;  %v7954_v23 = vsel %vm209_vm1, %v7953_v59, %v17302_v62 }
0x1561   :  { %v8016_v19 = vperm.slane %v8010_v39, %v14217_v27  ;;  %v13720_v3 = vpop.permute.xlu0 %13719  ;;  %v7960_v4 = vperm.slane %v7954_v23, %v14217_v27  ;;  %v8047_v53 = vrot.slane %v8020_v61, 4  ;;  %v7991_v48 = vrot.slane %v7964_v40, 4 }
0x1562   :  { %v13722_v46 = vunpack.i.h.bf16 %v13720_v3  ;;  %v13721_v28 = vunpack.i.l.bf16 %v13720_v3 }
0x1563   :  { %8405 = vadd.xlane.f32.xlu0 %v8404_v6  ;;  %v8035_v5 = vrot.slane %v8016_v19, 4  ;;  %v7979_v2 = vrot.slane %v7960_v4, 4 }
0x1564   :  { %v8021_v10 = vrot.slane %v13722_v46, 4  ;;  %v8024_v7 = vsel %vm209_vm1, %v13722_v46, %v8023_v45  ;;  %v7965_v49 = vrot.slane %v13721_v28, 4  ;;  %v7968_v62 = vsel %vm209_vm1, %v13721_v28, %v7967_v9 }
0x1565   :  { %v8032_v56 = vperm.slane %v8024_v7, %v14217_v27  ;;  %v7976_v34 = vperm.slane %v7968_v62, %v14217_v27 }
0x1566   :  { %v8022_v29 = vsel %vm209_vm1, %v8021_v10, %v13712_v52  ;;  %v7966_v32 = vsel %vm209_vm1, %v7965_v49, %v13711_v21 }
0x1567   :  { %v8028_v31 = vperm.slane %v8022_v29, %v14217_v27  ;;  %v8045_v16 = vrot.slane %v8032_v56, 4  ;;  %v8048_v22 = vsel %vm209_vm1, %v8032_v56, %v8047_v53  ;;  %v7972_v50 = vperm.slane %v7966_v32, %v14217_v27 }
0x1568   :  { %v8056_v14 = vperm.slane %v8048_v22, %v14229_v44  ;;  %v7989_v20 = vrot.slane %v7976_v34, 4  ;;  %v7992_v35 = vsel %vm209_vm1, %v7976_v34, %v7991_v48 }
0x1569   :  { %v8033_v24 = vrot.slane %v8028_v31, 4  ;;  %v8036_v57 = vsel %vm209_vm1, %v8028_v31, %v8035_v5  ;;  %v8046_v54 = vsel %vm209_vm1, %v8045_v16, %v8020_v61  ;;  %v7977_v42 = vrot.slane %v7972_v50, 4 }
0x156a   :  { %v8044_v8 = vperm.slane %v8036_v57, %v14229_v44  ;;  %v8052_v38 = vperm.slane %v8046_v54, %v14229_v44  ;;  %v8063_v30 = vrot.slane %v8056_v14, 4  ;;  %v7980_v41 = vsel %vm209_vm1, %v7972_v50, %v7979_v2 }
0x156b   :  { %v8034_v25 = vsel %vm209_vm1, %v8033_v24, %v8016_v19  ;;  %v7978_v63 = vsel %vm209_vm1, %v7977_v42, %v7960_v4  ;;  %v7988_v15 = vperm.slane %v7980_v41, %v14229_v44  ;;  %v7990_v36 = vsel %vm209_vm1, %v7989_v20, %v7964_v40 }
0x156c   :  { %v8040_v11 = vperm.slane %v8034_v25, %v14229_v44  ;;  %v8059_v37 = vrot.slane %v8044_v8, 4  ;;  %v8061_v52 = vrot.slane %v8052_v38, 4  ;;  %v8064_v21 = vsel %vm209_vm1, 0.0, %v8063_v30 }
0x156d   :  { %v8130_v33 = vsel %vm209_vm1, %v8063_v30, %v8052_v38  ;;  %v8135_v17 = vrot.slane %v8064_v21, 4  ;;  %v7984_v59 = vperm.slane %v7978_v63, %v14229_v44  ;;  %v7996_v1 = vperm.slane %v7990_v36, %v14229_v44 }
0x156e   :  { %v8057_v61 = vrot.slane %v8040_v11, 4  ;;  %v8060_v39 = vsel %vm209_vm1, 0.0, %v8059_v37  ;;  %v8062_v23 = vsel %vm209_vm1, 0.0, %v8061_v52  ;;  %v8134_v40 = vperm.slane %v8130_v33, %v14217_v27 }
0x156f   :  { %v8124_v45 = vrot.slane %v8060_v39, 4  ;;  %v8000_v19 = vperm.slane %v7992_v35, %v14229_v44  ;;  %v8001_v3 = vrot.slane %v7984_v59, 4  ;;  %v8003_v6 = vrot.slane %v7988_v15, 4 }
0x1570   :  { %v8005_v9 = vrot.slane %v7996_v1, 4  ;;  %v8058_v4 = vsel %vm209_vm1, 0.0, %v8057_v61  ;;  %v8119_v46 = vsel %vm209_vm1, %v8059_v37, %v8040_v11  ;;  %v8136_v28 = vsel %vm209_vm1, %v8135_v17, %v8062_v23 }
0x1571   :  { %v8004_v53 = vsel %vm209_vm1, 0.0, %v8003_v6  ;;  %v8007_v48 = vrot.slane %v8000_v19, 4  ;;  %v8002_v10 = vsel %vm209_vm1, 0.0, %v8001_v3  ;;  %v8065_v7 = vsel %vm209_vm1, %v8003_v6, %v7984_v59 }
0x1572   :  { %v8006_v49 = vsel %vm209_vm1, 0.0, %v8005_v9  ;;  %v8070_v62 = vrot.slane %v8004_v53, 4  ;;  %v8069_v5 = vperm.slane %v8065_v7, %v14217_v27  ;;  %v8123_v56 = vperm.slane %v8119_v46, %v14217_v27 }
0x1573   :  { %v8008_v34 = vsel %vm209_vm1, 0.0, %v8007_v48  ;;  %v8076_v2 = vsel %vm209_vm1, %v8007_v48, %v7996_v1  ;;  %v8125_v29 = vsel %vm209_vm1, %v8124_v45, %v8058_v4  ;;  %v8140_v32 = vperm.slane %v8136_v28, %v14217_v27 }
0x1574   :  { %v8080_v31 = vperm.slane %v8076_v2, %v14217_v27  ;;  %v8081_v16 = vrot.slane %v8008_v34, 4  ;;  %v8071_v22 = vsel %vm209_vm1, %v8070_v62, %v8002_v10  ;;  %v8089_v50 = vrot.slane %v8069_v5, 4 }
0x1575   :  { %v8075_v14 = vperm.slane %v8071_v22, %v14217_v27  ;;  %v8129_v20 = vperm.slane %v8125_v29, %v14217_v27  ;;  %v8143_v35 = vrot.slane %v8123_v56, 4  ;;  %v8155_v24 = vrot.slane %v8134_v40, 4 }
0x1576   :  { %v8082_v57 = vsel %vm209_vm1, %v8081_v16, %v8006_v49  ;;  %v8101_v54 = vrot.slane %v8080_v31, 4  ;;  %v8153_v42 = vrot.slane %v8140_v32, 4 }
0x1577   :  { %v8086_v8 = vperm.slane %v8082_v57, %v14217_v27  ;;  %v8090_v38 = vsel %vm209_vm1, %v8075_v14, %v8089_v50  ;;  %v8144_v30 = vsel %vm209_vm1, %v8129_v20, %v8143_v35  ;;  %v8156_v41 = vsel %vm209_vm1, %v8140_v32, %v8155_v24 }
0x1578   :  { %v8098_v25 = vperm.slane %v8090_v38, %v14229_v44  ;;  %v8152_v63 = vperm.slane %v8144_v30, %v14229_v44  ;;  %v8164_v15 = vperm.slane %v8156_v41, %v14229_v44  ;;  %v8087_v36 = vrot.slane %v8075_v14, 4 }
0x1579   :  { %v8102_v11 = vsel %vm209_vm1, %v8086_v8, %v8101_v54  ;;  %v8099_v37 = vrot.slane %v8086_v8, 4  ;;  %v8141_v52 = vrot.slane %v8129_v20, 4  ;;  %v8154_v21 = vsel %vm209_vm1, %v8153_v42, %v8134_v40 }
0x157a   :  { %v8110_v33 = vperm.slane %v8102_v11, %v14229_v44  ;;  %v8169_v17 = vrot.slane %v8164_v15, 4  ;;  %v8088_v59 = vsel %vm209_vm1, %v8087_v36, %v8069_v5  ;;  %v8117_v1 = vrot.slane %v8098_v25, 4 }
0x157b   :  { %v8094_v61 = vperm.slane %v8088_v59, %v14229_v44  ;;  %v8100_v39 = vsel %vm209_vm1, %v8099_v37, %v8080_v31  ;;  %v8142_v23 = vsel %vm209_vm1, %v8141_v52, %v8123_v56  ;;  %v8160_v45 = vperm.slane %v8154_v21, %v14229_v44 }
0x157c   :  { %v8115_v19 = vrot.slane %v8110_v33, 4  ;;  %v8170_v3 = vsel %vm209_vm1, %v8169_v17, %v8152_v63  ;;  %v8106_v6 = vperm.slane %v8100_v39, %v14229_v44  ;;  %v8118_v40 = vsel %vm209_vm1, %v8110_v33, %v8117_v1 }
0x157d   :  { %v8179_v9 = vpack.c.bf16 %v8170_v3, %v8170_v3  ;;  %v8176_v4 = vpack.c.bf16 %v8118_v40, %v8118_v40  ;;  %v8148_v46 = vperm.slane %v8142_v23, %v14229_v44  ;;  %v8165_v28 = vrot.slane %v8160_v45, 4 }
0x157e   :  { %v8116_v53 = vsel %vm209_vm1, %v8115_v19, %v8098_v25  ;;  %v8111_v48 = vrot.slane %v8106_v6, 4  ;;  %v8171_v10 = vrot.slane %v8152_v63, 4  ;;  %v8113_v7 = vrot.slane %v8094_v61, 4 }
0x157f   :  { %v8175_v49 = vpack.c.bf16 %v8116_v53, %v8116_v53  ;;  %v8659_v62 = vsel %vm1297_vm4, %v8179_v9, 0  ;;  %v8602_v5 = vsel %vm1297_vm4, %v8176_v4, 0  ;;  %v8166_v56 = vsel %vm209_vm1, %v8165_v28, %v8148_v46 }
0x1580   :  { %v8112_v34 = vsel %vm209_vm1, %v8111_v48, %v8094_v61  ;;  %8611 = vmatpush.bf16.msra.mxu2 %v8602_v5  ;;  %v8177_v2 = vpack.c.bf16 %v8166_v56, %v8166_v56  ;;  %v8172_v29 = vsel %vm209_vm1, %v8164_v15, %v8171_v10  ;;  %v8114_v32 = vsel %vm209_vm1, %v8106_v6, %v8113_v7 }
0x1581   :  { %v8583_v31 = vsel %vm1297_vm4, %v8175_v49, 0  ;;  %v8173_v16 = vpack.c.bf16 %v8112_v34, %v8112_v34  ;;  %v8180_v22 = vpack.c.bf16 %v8172_v29, %v8172_v29  ;;  %v8174_v50 = vpack.c.bf16 %v8114_v32, %v8114_v32 }
0x1582   :  { %8592 = vmatpush.bf16.msra.mxu1 %v8583_v31  ;;  %v8621_v14 = vsel %vm1297_vm4, %v8177_v2, 0  ;;  %v8167_v20 = vrot.slane %v8148_v46, 4 }
0x1583   :  { %v8545_v35 = vsel %vm1297_vm4, %v8173_v16, 0  ;;  %v8678_v24 = vsel %vm1297_vm4, %v8180_v22, 0  ;;  %v8564_v57 = vsel %vm1297_vm4, %v8174_v50, 0 }
0x1584   :  { %8554 = vmatpush.bf16.msrb.mxu3 %v8545_v35  ;;  %8687 = vmatpush.bf16.msrb.mxu2 %v8678_v24  ;;  %v8168_v54 = vsel %vm209_vm1, %v8160_v45, %v8167_v20 }
0x1585   :  { %8573 = vmatpush.bf16.msra.mxu0 %v8564_v57  ;;  %v8178_v42 = vpack.c.bf16 %v8168_v54, %v8168_v54 }
0x1586   :  { %8668 = vmatpush.bf16.msrb.mxu1 %v8659_v62 }
0x1587   :  { %v8640_v8 = vsel %vm1297_vm4, %v8178_v42, 0 }
0x1588   :  { %8630 = vmatpush.bf16.msra.mxu3 %v8621_v14 }
0x1589   :  { %8649 = vmatpush.bf16.msrb.mxu0 %v8640_v8 }
0x15ad   :  { %v8397_v38 = vpop.xlane.xlu1 %8396 }
0x15ae   :  { %13968 = vrcp.f32 %v8397_v38  ;;  %v8454_v63 = vand.u32 2147483648, %v8397_v38  ;;  %v8452_v11 = vand.u32 2147483647, %v8397_v38  ;;  %vm8448_vm15 = vweird.f32 %v8397_v38 }
0x15b0   :  { %v8455_v21 = vor.u32 1.1754944e-38, %v8454_v63  ;;  %vm8453_vm4 = vcmp.eq.f32.partialorder %v8452_v11, 8.507059e+37 }
0x15b4   :  { %v13969_v30 = vpop.eup %13968 }
0x15b5   :  { %v8444_v41 = vmul.f32 %v13969_v30, %v8397_v38  ;;  %vm8449_vm12 = vweird.f32 %v13969_v30 }
0x15b6   :  { %vm8450_vm3 = vmor %vm8448_vm15, %vm8449_vm12 }
0x15b7   :  { %v8445_v25 = vsub.f32 1.0, %v8444_v41 }
0x15b8   :  { %v8400_v15 = vpop.xlane.xlu0 %8399 }
0x15b9   :  { %v8446_v36 = vmul.f32 %v13969_v30, %v8445_v25  ;;  %13970 = vrcp.f32 %v8400_v15  ;;  %v8469_v19 = vand.u32 2147483648, %v8400_v15  ;;  %v8467_v9 = vand.u32 2147483647, %v8400_v15 }
0x15ba   :  { %vm8463_vm6 = vweird.f32 %v8400_v15 }
0x15bb   :  { %v8447_v37 = vadd.f32 %v13969_v30, %v8446_v36  ;;  %v8391_v52 = vpop.xlane.xlu2 %8390  ;;  %v8470_v53 = vor.u32 1.1754944e-38, %v8469_v19  ;;  %vm8468_vm9 = vcmp.eq.f32.partialorder %v8467_v9, 8.507059e+37 }
0x15bc   :  { %13972 = vrcp.f32 %v8391_v52  ;;  %v8424_v28 = vand.u32 2147483648, %v8391_v52  ;;  %v8422_v48 = vand.u32 2147483647, %v8391_v52  ;;  %vm8418_vm10 = vweird.f32 %v8391_v52 }
0x15bd   :  { %v8451_v33 = vsel %vm8450_vm3, %v13969_v30, %v8447_v37 }
0x15be   :  { %v8456_v17 = vsel %vm8453_vm4, %v8455_v21, %v8451_v33  ;;  %v8425_v56 = vor.u32 1.1754944e-38, %v8424_v28  ;;  %vm8423_vm12 = vcmp.eq.f32.partialorder %v8422_v48, 8.507059e+37 }
0x15bf   :  { %v13971_v59 = vpop.eup %13970  ;;  %v8457_v1 = vmul.f32 %v17311_v58, %v8456_v17 }
0x15c0   :  { %v8459_v61 = vmul.f32 %v13971_v59, %v8400_v15  ;;  %vm8464_vm5 = vweird.f32 %v13971_v59 }
0x15c1   :  { %v8535_v39 = vpack.c.bf16 %v8457_v1, %v8457_v1  ;;  %vm8465_vm7 = vmor %vm8463_vm6, %vm8464_vm5 }
0x15c2   :  { %v13973_v23 = vpop.eup %13972  ;;  %v8460_v45 = vsub.f32 1.0, %v8459_v61 }
0x15c3   :  { %v8414_v3 = vmul.f32 %v13973_v23, %v8391_v52  ;;  %v8394_v6 = vpop.xlane.xlu2 %8393  ;;  %12245 = vmatmul.msk.bf16.vlgmr.msra.gmra.mxu1 %vm933_vm2, %v8535_v39  ;;  %vm8419_vm8 = vweird.f32 %v13973_v23 }
0x15c4   :  { %v8461_v40 = vmul.f32 %v13971_v59, %v8460_v45  ;;  %13974 = vrcp.f32 %v8394_v6  ;;  %vm8420_vm11 = vmor %vm8418_vm10, %vm8419_vm8  ;;  %v8437_v14 = vand.u32 2147483647, %v8394_v6  ;;  %v8439_v20 = vand.u32 2147483648, %v8394_v6 }
0x15c5   :  { %v8415_v4 = vsub.f32 1.0, %v8414_v3  ;;  %vm8433_vm3 = vweird.f32 %v8394_v6 }
0x15c6   :  { %v8462_v46 = vadd.f32 %v13971_v59, %v8461_v40  ;;  %v8440_v8 = vor.u32 1.1754944e-38, %v8439_v20  ;;  %vm8438_vm5 = vcmp.eq.f32.partialorder %v8437_v14, 8.507059e+37 }
0x15c7   :  { %v8416_v58 = vmul.f32 %v13973_v23, %v8415_v4 }
0x15c8   :  { %v8466_v10 = vsel %vm8465_vm7, %v13971_v59, %v8462_v46 }
0x15c9   :  { %v8471_v7 = vsel %vm8468_vm9, %v8470_v53, %v8466_v10  ;;  %v8417_v49 = vadd.f32 %v13973_v23, %v8416_v58 }
0x15ca   :  { %v13975_v62 = vpop.eup %13974  ;;  %v8472_v5 = vmul.f32 %v17315_v13, %v8471_v7  ;;  %v8412_v34 = vpop.xlane.xlu1 %8411 }
0x15cb   :  { %v8421_v2 = vsel %vm8420_vm11, %v13973_v23, %v8417_v49  ;;  %v8429_v29 = vmul.f32 %v13975_v62, %v8394_v6  ;;  %13976 = vrcp.f32 %v8412_v34  ;;  %v8409_v32 = vpop.xlane.xlu2 %8408  ;;  %vm8434_vm15 = vweird.f32 %v13975_v62 }
0x15cc   :  { %v8536_v31 = vpack.c.bf16 %v8472_v5, %v8472_v5  ;;  %v8426_v16 = vsel %vm8423_vm12, %v8425_v56, %v8421_v2  ;;  %13978 = vrcp.f32 %v8409_v32  ;;  %v8527_v42 = vand.u32 2147483647, %v8412_v34  ;;  %vm8435_vm4 = vmor %vm8433_vm3, %vm8434_vm15 }
0x15cd   :  { %v8427_v22 = vmul.f32 %v17319_v26, %v8426_v16  ;;  %v8430_v50 = vsub.f32 1.0, %v8429_v29  ;;  %vm8523_vm6 = vweird.f32 %v8412_v34  ;;  %v8529_v37 = vand.u32 2147483648, %v8412_v34 }
0x15ce   :  { %v8403_v35 = vpop.xlane.xlu0 %8402  ;;  %12246 = vmatmul.msk.bf16.vlgmr.msra.gmra.mxu2 %vm933_vm2, %v8536_v31  ;;  %vm17443_vm7 = vcmp.eq.f32.partialorder %v8527_v42, 8.507059e+37  ;;  %v8512_v1 = vand.u32 2147483647, %v8409_v32  ;;  %v8514_v61 = vand.u32 2147483648, %v8409_v32  ;;  %vm8508_vm11 = vweird.f32 %v8409_v32 }
0x15cf   :  { %v8533_v13 = vpack.c.bf16 %v8427_v22, %v8427_v22  ;;  %v8431_v24 = vmul.f32 %v13975_v62, %v8430_v50  ;;  %13980 = vrcp.f32 %v8403_v35  ;;  %v8482_v19 = vand.u32 2147483647, %v8403_v35 }
0x15d0   :  { %v8484_v3 = vand.u32 2147483648, %v8403_v35  ;;  %vm8513_vm3 = vcmp.eq.f32.partialorder %v8512_v1, 8.507059e+37  ;;  %v8515_v46 = vor.u32 1.1754944e-38, %v8514_v61 }
0x15d1   :  { %v13977_v57 = vpop.eup %13976  ;;  %v8432_v54 = vadd.f32 %v13975_v62, %v8431_v24  ;;  %12243 = vmatmul.msk.bf16.vlgmr.msrb.gmra.mxu3 %vm933_vm2, %v8533_v13 }
0x15d2   :  { %v8519_v26 = vmul.f32 %v13977_v57, %v8412_v34  ;;  %v13979_v38 = vpop.eup %13978  ;;  %vm8524_vm8 = vweird.f32 %v13977_v57  ;;  %v8485_v7 = vor.u32 1.1754944e-38, %v8484_v3 }
0x15d3   :  { %v8436_v30 = vsel %vm8435_vm4, %v13975_v62, %v8432_v54  ;;  %v8504_v63 = vmul.f32 %v13979_v38, %v8409_v32  ;;  %vm8509_vm9 = vweird.f32 %v13979_v38  ;;  %vm8525_vm10 = vmor %vm8523_vm6, %vm8524_vm8  ;;  %vm8478_vm4 = vweird.f32 %v8403_v35 }
0x15d4   :  { %v8441_v41 = vsel %vm8438_vm5, %v8440_v8, %v8436_v30  ;;  %v8520_v25 = vsub.f32 1.0, %v8519_v26  ;;  %vm8510_vm15 = vmor %vm8508_vm11, %vm8509_vm9  ;;  %vm8483_vm6 = vcmp.eq.f32.partialorder %v8482_v19, 8.507059e+37 }
0x15d5   :  { %v13981_v15 = vpop.eup %13980  ;;  %v8442_v36 = vmul.f32 %v17323_v12, %v8441_v41  ;;  %v8505_v21 = vsub.f32 1.0, %v8504_v63  ;;  %v8530_v12 = vor.u32 1.1754944e-38, %v8529_v37 }
0x15d6   :  { %v8521_v52 = vmul.f32 %v13977_v57, %v8520_v25  ;;  %v8474_v33 = vmul.f32 %v13981_v15, %v8403_v35  ;;  %v8406_v17 = vpop.xlane.xlu0 %8405  ;;  %vm8479_vm12 = vweird.f32 %v13981_v15 }
0x15d7   :  { %v8534_v59 = vpack.c.bf16 %v8442_v36, %v8442_v36  ;;  %13982 = vrcp.f32 %v8406_v17  ;;  %v8506_v23 = vmul.f32 %v13979_v38, %v8505_v21  ;;  %vm8480_vm5 = vmor %vm8478_vm4, %vm8479_vm12  ;;  %v8497_v22 = vand.u32 2147483647, %v8406_v17 }
0x15d8   :  { %v8522_v39 = vadd.f32 %v13977_v57, %v8521_v52  ;;  %v8475_v45 = vsub.f32 1.0, %v8474_v33  ;;  %vm8493_vm8 = vweird.f32 %v8406_v17 }
0x15d9   :  { %12244 = vmatmul.msk.bf16.vlgmr.msra.gmra.mxu0 %vm933_vm2, %v8534_v59  ;;  %v8507_v40 = vadd.f32 %v13979_v38, %v8506_v23 }
0x15da   :  { %v8526_v6 = vsel %vm8525_vm10, %v13977_v57, %v8522_v39  ;;  %v8476_v9 = vmul.f32 %v13981_v15, %v8475_v45  ;;  %vm8498_vm10 = vcmp.eq.f32.partialorder %v8497_v22, 8.507059e+37 }
0x15db   :  { %v8531_v4 = vsel %vm17443_vm7, %v8530_v12, %v8526_v6  ;;  %v8511_v53 = vsel %vm8510_vm15, %v13979_v38, %v8507_v40 }
0x15dc   :  { %v8532_v28 = vmul.f32 %v17330_v60, %v8531_v4  ;;  %v8477_v58 = vadd.f32 %v13981_v15, %v8476_v9  ;;  %v8516_v10 = vsel %vm8513_vm3, %v8515_v46, %v8511_v53  ;;  %v8499_v60 = vand.u32 2147483648, %v8406_v17 }
0x15dd   :  { %v13983_v48 = vpop.eup %13982  ;;  %v8517_v62 = vmul.f32 %v17328_v0, %v8516_v10 }
0x15de   :  { %v8540_v49 = vpack.c.bf16 %v8532_v28, %v8532_v28  ;;  %v8481_v5 = vsel %vm8480_vm5, %v13981_v15, %v8477_v58  ;;  %v8489_v56 = vmul.f32 %v13983_v48, %v8406_v17  ;;  %vm8494_vm7 = vweird.f32 %v13983_v48 }
0x15df   :  { %v8486_v34 = vsel %vm8483_vm6, %v8485_v7, %v8481_v5  ;;  %v8539_v2 = vpack.c.bf16 %v8517_v62, %v8517_v62  ;;  %vm8495_vm9 = vmor %vm8493_vm8, %vm8494_vm7  ;;  %v8500_v0 = vor.u32 1.1754944e-38, %v8499_v60 }
0x15e0   :  { %v8487_v29 = vmul.f32 %v17336_v47, %v8486_v34  ;;  %v8490_v32 = vsub.f32 1.0, %v8489_v56  ;;  %12250 = vmatmul.msk.bf16.vlgmr.msrb.gmra.mxu2 %vm933_vm2, %v8540_v49 }
0x15e1   :  { %12249 = vmatmul.msk.bf16.vlgmr.msrb.gmra.mxu1 %vm933_vm2, %v8539_v2 }
0x15e2   :  { %v8537_v31 = vpack.c.bf16 %v8487_v29, %v8487_v29  ;;  %v8491_v16 = vmul.f32 %v13983_v48, %v8490_v32 }
0x15e4   :  { %v8492_v50 = vadd.f32 %v13983_v48, %v8491_v16  ;;  %12247 = vmatmul.msk.bf16.vlgmr.msra.gmra.mxu3 %vm933_vm2, %v8537_v31 }
0x15e6   :  { %v8496_v14 = vsel %vm8495_vm9, %v13983_v48, %v8492_v50 }
0x15e7   :  { %v8501_v20 = vsel %vm8498_vm10, %v8500_v0, %v8496_v14 }
0x15e8   :  { %v8502_v47 = vmul.f32 %v17342_v51, %v8501_v20 }
0x15ea   :  { %v8538_v35 = vpack.c.bf16 %v8502_v47, %v8502_v47 }
0x15ec   :  { %12248 = vmatmul.msk.bf16.vlgmr.msrb.gmra.mxu0 %vm933_vm2, %v8538_v35 }
0x1640   :  { %v8594_v13 = vpop.f32.mrf.mxu1 }
0x1641   :  { %v8693_v54 = vrot.slane %v8594_v13, 4 }
0x1648   :  { %v8596_v24 = vpop.f32.mrf.mxu1 }
0x1651   :  { %v8613_v57 = vpop.f32.mrf.mxu2 }
0x1652   :  { %v8705_v8 = vrot.slane %v8613_v57, 4 }
0x1654   :  { %v8556_v42 = vpop.f32.mrf.mxu3 }
0x1655   :  { %v8694_v26 = vsel %vm209_vm1, %v8693_v54, %v8556_v42  ;;  %v8695_v38 = vrot.slane %v8556_v42, 4 }
0x1656   :  { %v8700_v30 = vperm.slane %v8694_v26, %v14217_v27  ;;  %v8575_v41 = vpop.f32.mrf.mxu0 }
0x1657   :  { %v8696_v25 = vsel %vm209_vm1, %v8594_v13, %v8695_v38  ;;  %v8706_v63 = vsel %vm209_vm1, %v8705_v8, %v8575_v41  ;;  %v8707_v51 = vrot.slane %v8575_v41, 4 }
0x1658   :  { %v8704_v15 = vperm.slane %v8696_v25, %v14217_v27  ;;  %v8719_v36 = vrot.slane %v8700_v30, 4  ;;  %v8712_v11 = vperm.slane %v8706_v63, %v14217_v27 }
0x1659   :  { %v8708_v37 = vsel %vm209_vm1, %v8613_v57, %v8707_v51  ;;  %v8615_v52 = vpop.f32.mrf.mxu2 }
0x165a   :  { %v8731_v21 = vrot.slane %v8704_v15, 4  ;;  %v8716_v33 = vperm.slane %v8708_v37, %v14217_v27  ;;  %v8717_v17 = vrot.slane %v8712_v11, 4  ;;  %v8720_v59 = vsel %vm209_vm1, %v8712_v11, %v8719_v36 }
0x165b   :  { %v8728_v1 = vperm.slane %v8720_v59, %v14229_v44 }
0x165c   :  { %v8718_v61 = vsel %vm209_vm1, %v8717_v17, %v8700_v30  ;;  %v8729_v39 = vrot.slane %v8716_v33, 4  ;;  %v8732_v23 = vsel %vm209_vm1, %v8716_v33, %v8731_v21  ;;  %v8558_v45 = vpop.f32.mrf.mxu3 }
0x165d   :  { %v8724_v12 = vperm.slane %v8718_v61, %v14229_v44  ;;  %v8740_v19 = vperm.slane %v8732_v23, %v14229_v44  ;;  %v8743_v3 = vrot.slane %v8728_v1, 4 }
0x165e   :  { %v8730_v6 = vsel %vm209_vm1, %v8729_v39, %v8704_v15  ;;  %v8577_v40 = vpop.f32.mrf.mxu0  ;;  %v8670_v53 = vpop.f32.mrf.mxu1 }
0x165f   :  { %v8736_v9 = vperm.slane %v8730_v6, %v14229_v44  ;;  %v8741_v4 = vrot.slane %v8724_v12, 4  ;;  %v8744_v46 = vsel %vm209_vm1, 0.0, %v8743_v3  ;;  %v8747_v28 = vrot.slane %v8740_v19, 4 }
0x1660   :  { %v8810_v58 = vrot.slane %v8744_v46, 4  ;;  %v8805_v56 = vsel %vm209_vm1, %v8743_v3, %v8724_v12  ;;  %v8749_v16 = vrot.slane %v8670_v53, 4 }
0x1661   :  { %v8742_v48 = vsel %vm209_vm1, 0.0, %v8741_v4  ;;  %v8745_v10 = vrot.slane %v8736_v9, 4  ;;  %v8748_v7 = vsel %vm209_vm1, 0.0, %v8747_v28  ;;  %v8816_v29 = vsel %vm209_vm1, %v8747_v28, %v8736_v9 }
0x1662   :  { %v8811_v49 = vsel %vm209_vm1, %v8810_v58, %v8742_v48  ;;  %v8821_v62 = vrot.slane %v8748_v7, 4  ;;  %v8809_v31 = vperm.slane %v8805_v56, %v14217_v27  ;;  %v8820_v22 = vperm.slane %v8816_v29, %v14217_v27 }
0x1663   :  { %v8746_v5 = vsel %vm209_vm1, 0.0, %v8745_v10  ;;  %v8815_v34 = vperm.slane %v8811_v49, %v14217_v27  ;;  %v8689_v2 = vpop.f32.mrf.mxu2 }
0x1664   :  { %v8822_v32 = vsel %vm209_vm1, %v8821_v62, %v8746_v5  ;;  %v8761_v47 = vrot.slane %v8689_v2, 4  ;;  %v8829_v42 = vrot.slane %v8809_v31, 4  ;;  %v8841_v36 = vrot.slane %v8820_v22, 4 }
0x1665   :  { %v8826_v60 = vperm.slane %v8822_v32, %v14217_v27  ;;  %v8827_v14 = vrot.slane %v8815_v34, 4 }
0x1666   :  { %v8672_v0 = vpop.f32.mrf.mxu1  ;;  %v8830_v12 = vsel %vm209_vm1, %v8815_v34, %v8829_v42 }
0x1667   :  { %v8632_v50 = vpop.f32.mrf.mxu3  ;;  %v8839_v20 = vrot.slane %v8826_v60, 4  ;;  %v8828_v51 = vsel %vm209_vm1, %v8827_v14, %v8809_v31  ;;  %v8842_v46 = vsel %vm209_vm1, %v8826_v60, %v8841_v36  ;;  %v8838_v49 = vperm.slane %v8830_v12, %v14229_v44 }
0x1668   :  { %v8750_v35 = vsel %vm209_vm1, %v8749_v16, %v8632_v50  ;;  %v8751_v13 = vrot.slane %v8632_v50, 4  ;;  %v8834_v59 = vperm.slane %v8828_v51, %v14229_v44  ;;  %v8850_v60 = vperm.slane %v8842_v46, %v14229_v44 }
0x1669   :  { %v8756_v24 = vperm.slane %v8750_v35, %v14217_v27  ;;  %v8651_v57 = vpop.f32.mrf.mxu0  ;;  %v8840_v54 = vsel %vm209_vm1, %v8839_v20, %v8820_v22  ;;  %v8857_v0 = vrot.slane %v8838_v49, 4 }
0x166a   :  { %v8752_v8 = vsel %vm209_vm1, %v8670_v53, %v8751_v13  ;;  %v8762_v26 = vsel %vm209_vm1, %v8761_v47, %v8651_v57  ;;  %v8763_v38 = vrot.slane %v8651_v57, 4  ;;  %v17497_v11 = vperm.slane %v8840_v54, %v14229_v44 }
0x166b   :  { %v8760_v30 = vperm.slane %v8752_v8, %v14217_v27  ;;  %v8775_v41 = vrot.slane %v8756_v24, 4  ;;  %v8768_v25 = vperm.slane %v8762_v26, %v14217_v27  ;;  %v8691_v63 = vpop.f32.mrf.mxu2  ;;  %v8855_v54 = vrot.slane %v8850_v60, 4 }
0x166c   :  { %v8764_v15 = vsel %vm209_vm1, %v8689_v2, %v8763_v38  ;;  %v8851_v1 = vrot.slane %v17497_v11, 4 }
0x166d   :  { %v8787_v37 = vrot.slane %v8760_v30, 4  ;;  %v8772_v52 = vperm.slane %v8764_v15, %v14217_v27  ;;  %v8773_v21 = vrot.slane %v8768_v25, 4  ;;  %v8776_v33 = vsel %vm209_vm1, %v8768_v25, %v8775_v41 }
0x166e   :  { %v8784_v17 = vperm.slane %v8776_v33, %v14229_v44  ;;  %v17510_v40 = vsel %vm209_vm1, %v8851_v1, %v8834_v59 }
0x166f   :  { %v8774_v61 = vsel %vm209_vm1, %v8773_v21, %v8756_v24  ;;  %v8785_v39 = vrot.slane %v8772_v52, 4  ;;  %v8788_v23 = vsel %vm209_vm1, %v8772_v52, %v8787_v37  ;;  %v8634_v45 = vpop.f32.mrf.mxu3  ;;  %v8856_v52 = vsel %vm209_vm1, %v8855_v54, %v8838_v49  ;;  %v13448_v54 = vld [vmem:[%s18615_s6 + $0x1bc] sm:$0xf0] }
0x1670   :  { %v8780_v19 = vperm.slane %v8774_v61, %v14229_v44  ;;  %v8796_v3 = vperm.slane %v8788_v23, %v14229_v44  ;;  %v8799_v6 = vrot.slane %v8784_v17, 4 }
0x1671   :  { %v8786_v9 = vsel %vm209_vm1, %v8785_v39, %v8760_v30  ;;  %v8653_v4 = vpop.f32.mrf.mxu0  ;;  %v8853_v30 = vrot.slane %v8834_v59, 4 }
0x1672   :  { %v8792_v28 = vperm.slane %v8786_v9, %v14229_v44  ;;  %v8797_v53 = vrot.slane %v8780_v19, 4  ;;  %v8800_v58 = vsel %vm209_vm1, 0.0, %v8799_v6  ;;  %v8803_v48 = vrot.slane %v8796_v3, 4 }
0x1673   :  { %v8859_v10 = vsel %vm209_vm1, %v8799_v6, %v8780_v19  ;;  %v8864_v7 = vrot.slane %v8800_v58, 4  ;;  %v8854_v33 = vsel %vm209_vm1, %v17497_v11, %v8853_v30  ;;  %v13422_v11 = vld [vmem:[%s18609_s4 + $0xf0] sm:$0xff]  ;;  %v13449_v30 = vld [vmem:[%s18615_s6 + $0x1c4] sm:$0xf0] }
0x1674   :  { %v8798_v62 = vsel %vm209_vm1, 0.0, %v8797_v53  ;;  %v8801_v5 = vrot.slane %v8792_v28, 4  ;;  %v8804_v56 = vsel %vm209_vm1, 0.0, %v8803_v48  ;;  %v8863_v34 = vperm.slane %v8859_v10, %v14217_v27 }
0x1675   :  { %v8865_v2 = vsel %vm209_vm1, %v8864_v7, %v8798_v62  ;;  %v8870_v29 = vsel %vm209_vm1, %v8803_v48, %v8792_v28  ;;  %v8875_v32 = vrot.slane %v8804_v56, 4  ;;  %v13762_v62 = vld [vmem:[%s18611_s5 + $0x16] ss:$0 sm:$0xff] }
0x1676   :  { %v8802_v31 = vsel %vm209_vm1, 0.0, %v8801_v5  ;;  %v8869_v16 = vperm.slane %v8865_v2, %v14217_v27  ;;  %v8874_v22 = vperm.slane %v8870_v29, %v14217_v27  ;;  %v8883_v50 = vrot.slane %v8863_v34, 4 }
0x1677   :  { %v8876_v14 = vsel %vm209_vm1, %v8875_v32, %v8802_v31 }
0x1678   :  { %v8880_v20 = vperm.slane %v8876_v14, %v14217_v27  ;;  %v8884_v47 = vsel %vm209_vm1, %v8869_v16, %v8883_v50  ;;  %v8895_v35 = vrot.slane %v8874_v22, 4  ;;  %v8881_v13 = vrot.slane %v8869_v16, 4 }
0x1679   :  { %v8892_v24 = vperm.slane %v8884_v47, %v14229_v44  ;;  %v8858_v27 = vsel %vm209_vm1, %v8850_v60, %v8857_v0 }
0x167a   :  { %v8896_v57 = vsel %vm209_vm1, %v8880_v20, %v8895_v35  ;;  %v8882_v42 = vsel %vm209_vm1, %v8881_v13, %v8863_v34  ;;  %v8893_v8 = vrot.slane %v8880_v20, 4 }
0x167b   :  { %v8904_v26 = vperm.slane %v8896_v57, %v14229_v44  ;;  %v8911_v38 = vrot.slane %v8892_v24, 4  ;;  %v8888_v41 = vperm.slane %v8882_v42, %v14229_v44  ;;  %v12362_v57 = vld [vmem:[%s18615_s6 + $0x180] sm:$0xf]  ;;  %v13440_v42 = vld [vmem:[%s18615_s6 + $0x184] sm:$0xf] }
0x167c   :  { %v8894_v25 = vsel %vm209_vm1, %v8893_v8, %v8874_v22  ;;  %v12363_v8 = vor.u32 %v13448_v54, %v12362_v57 }
0x167d   :  { %v8912_v63 = vsel %vm209_vm1, %v8904_v26, %v8911_v38  ;;  %v8909_v51 = vrot.slane %v8904_v26, 4  ;;  %v8900_v15 = vperm.slane %v8894_v25, %v14229_v44  ;;  %v8907_v36 = vrot.slane %v8888_v41, 4  ;;  %v13423_v44 = vld [vmem:[%s18609_s4 + $0xf8] sm:$0xff]  ;;  %v12364_v26 = vld [vmem:[%s18615_s6 + $0x1c0] sm:$0xf0] }
0x167e   :  { %v13733_v37 = vpack.i.bf16 %v8912_v63, %v8858_v27  ;;  %8968 = vmatpush.bf16.msrb.mxu3 %v13423_v44  ;;  %v12370_v38 = vld [vmem:[%s18615_s6 + $0x188] sm:$0xf]  ;;  %v13441_v25 = vld [vmem:[%s18615_s6 + $0x18c] sm:$0xf]  ;;  %9276 = vmatpush.bf16.msra.mxu0 %v12363_v8  ;;  %v13763_v8 = vld [vmem:[%s18611_s5 + $0x1a] ss:$0 sm:$0xff] }
0x167f   :  { %v8910_v21 = vsel %vm209_vm1, %v8909_v51, %v8892_v24  ;;  %v8905_v17 = vrot.slane %v8900_v15, 4  ;;  %v8908_v59 = vsel %vm209_vm1, %v8900_v15, %v8907_v36  ;;  %v12371_v27 = vor.u32 %v13449_v30, %v12370_v38  ;;  %v12372_v63 = vld [vmem:[%s18615_s6 + $0x1c8] sm:$0xf0]  ;;  %v12298_v51 = vld [vmem:[%s18615_s6 + $0x100] sm:$0xf] }
0x1680   :  { %13734 = vrot.lane.b32.xlu0 %v13733_v37, %s14072_s23  ;;  %v13728_v1 = vpack.i.bf16 %v8910_v21, %v8856_v52  ;;  %v13723_v61 = vpack.i.bf16 %v8908_v59, %v8854_v33  ;;  %v12375_v36 = vor.u32 %v13441_v25, %v12372_v63  ;;  %v13432_v37 = vld [vmem:[%s18615_s6 + $0x13c] sm:$0xf0]  ;;  %v13424_v52 = vld [vmem:[%s18615_s6 + $0x104] sm:$0xf] }
0x1681   :  { %v8906_v39 = vsel %vm209_vm1, %v8905_v17, %v8888_v41  ;;  %v12367_v41 = vor.u32 %v13440_v42, %v12364_v26  ;;  %v12300_v21 = vld [vmem:[%s18615_s6 + $0x140] sm:$0xf0]  ;;  %9304 = vmatpush.bf16.msra.mxu2 %v12371_v27  ;;  %v12299_v17 = vor.u32 %v13432_v37, %v12298_v51  ;;  %v12394_v63 = vld [vmem:[%s18615_s6 + $0x1a0] sm:$0xf] }
0x1682   :  { %13729 = vrot.lane.b32.xlu2 %v13728_v1, %s14073_s24  ;;  %13724 = vrot.lane.b32.xlu1 %v13723_v61, %s14074_s25  ;;  %v12303_v59 = vor.u32 %v13424_v52, %v12300_v21  ;;  %v12306_v1 = vld [vmem:[%s18615_s6 + $0x108] sm:$0xf]  ;;  %v13444_v51 = vld [vmem:[%s18615_s6 + $0x1a4] sm:$0xf] }
0x1683   :  { %8969 = vmatpush.bf16.msrb.mxu3 %v13422_v11  ;;  %9290 = vmatpush.bf16.msra.mxu1 %v12367_v41  ;;  %v13433_v61 = vld [vmem:[%s18615_s6 + $0x144] sm:$0xf0]  ;;  %v12308_v11 = vld [vmem:[%s18615_s6 + $0x148] sm:$0xf0] }
0x1684   :  { %v12307_v44 = vor.u32 %v13433_v61, %v12306_v1  ;;  %9277 = vmatpush.bf16.msra.mxu0 %v12299_v17  ;;  %v13453_v52 = vld [vmem:[%s18615_s6 + $0x1e4] sm:$0xf0]  ;;  %v13445_v21 = vld [vmem:[%s18615_s6 + $0x1ac] sm:$0xf]  ;;  %v12330_v61 = vld [vmem:[%s18615_s6 + $0x120] sm:$0xf] }
0x1686   :  { %9305 = vmatpush.bf16.msra.mxu2 %v12307_v44 }
0x1687   :  { %9318 = vmatpush.bf16.msra.mxu3 %v12375_v36  ;;  %9291 = vmatpush.bf16.msra.mxu1 %v12303_v59 }
0x16dc   :  { %v13730_v23 = vpop.permute.xlu2 %13729 }
0x16dd   :  { %v13732_v6 = vunpack.i.h.bf16 %v13730_v23  ;;  %v13731_v9 = vunpack.i.l.bf16 %v13730_v23  ;;  %v12378_v23 = vld [vmem:[%s18615_s6 + $0x190] sm:$0xf] }
0x16f2   :  { %v13735_v45 = vpop.permute.xlu0 %13734 }
0x16f3   :  { %v13737_v4 = vunpack.i.h.bf16 %v13735_v45  ;;  %v13736_v46 = vunpack.i.l.bf16 %v13735_v45  ;;  %v13450_v45 = vld [vmem:[%s18615_s6 + $0x1cc] sm:$0xf0] }
0x16f4   :  { %v13725_v12 = vpop.permute.xlu1 %13724 }
0x16f5   :  { %v13727_v19 = vunpack.i.h.bf16 %v13725_v12  ;;  %v13726_v3 = vunpack.i.l.bf16 %v13725_v12 }
0x16f7   :  { %v8937_v28 = vsel %vm933_vm2, %v17510_v40, %v13726_v3  ;;  %v8938_v53 = vsel %vm933_vm2, %v8906_v39, %v13727_v19  ;;  %v13425_v39 = vld [vmem:[%s18615_s6 + $0x10c] sm:$0xf] }
0x16f8   :  { %v8939_v58 = vsel %vm1693_vm13, %v8937_v28, %v13731_v9  ;;  %v8940_v48 = vsel %vm1693_vm13, %v8938_v53, %v13732_v6  ;;  %v12311_v3 = vor.u32 %v13425_v39, %v12308_v11  ;;  %v12379_v6 = vor.u32 %v13450_v45, %v12378_v23  ;;  %v13442_v9 = vld [vmem:[%s18615_s6 + $0x194] sm:$0xf]  ;;  %v12386_v53 = vld [vmem:[%s18615_s6 + $0x198] sm:$0xf]  ;;  %v13436_v39 = vld [vmem:[%s18615_s6 + $0x15c] sm:$0xf0] }
0x16f9   :  { %v8941_v10 = vsel %vm1696_vm14, %v8939_v58, %v13736_v46  ;;  %v8942_v7 = vsel %vm1696_vm14, %v8940_v48, %v13737_v4  ;;  %v12380_v4 = vld [vmem:[%s18615_s6 + $0x1d0] sm:$0xf0]  ;;  %v13451_v58 = vld [vmem:[%s18615_s6 + $0x1d4] sm:$0xf0]  ;;  %v13443_v48 = vld [vmem:[%s18615_s6 + $0x19c] sm:$0xf] }
0x16fa   :  { %v8943_v49 = vpack.c.bf16 %v8942_v7, %v8941_v10  ;;  %v12383_v28 = vor.u32 %v13442_v9, %v12380_v4  ;;  %v12387_v10 = vor.u32 %v13451_v58, %v12386_v53  ;;  %v12388_v7 = vld [vmem:[%s18615_s6 + $0x1d8] sm:$0xf0]  ;;  %9319 = vmatpush.bf16.msra.mxu3 %v12311_v3  ;;  %9332 = vmatpush.bf16.msrb.mxu0 %v12379_v6  ;;  %v13428_v23 = vld [vmem:[%s18615_s6 + $0x124] sm:$0xf]  ;;  %v13429_v3 = vld [vmem:[%s18615_s6 + $0x12c] sm:$0xf] }
0x16fb   :  { %v12332_v45 = vld [vmem:[%s18615_s6 + $0x160] sm:$0xf0]  ;;  %v12340_v6 = vld [vmem:[%s18615_s6 + $0x168] sm:$0xf0]  ;;  %v12331_v9 = vor.u32 %v13436_v39, %v12330_v61  ;;  %v12410_v53 = vld [vmem:[%s18615_s6 + $0x1b0] sm:$0xf] }
0x16fc   :  { %12259 = vmatmul.msk.bf16.vlgmr.msrb.gmra.mxu3 %vm91_vm0, %v8943_v49  ;;  %v12314_v49 = vld [vmem:[%s18615_s6 + $0x110] sm:$0xf]  ;;  %9346 = vmatpush.bf16.msrb.mxu1 %v12383_v28  ;;  %v12335_v4 = vor.u32 %v13428_v23, %v12332_v45  ;;  %v12343_v28 = vor.u32 %v13429_v3, %v12340_v6  ;;  %v13457_v61 = vld [vmem:[%s18616_s8 + $0x408] sm:$0xff]  ;;  %v13464_v23 = vld [vmem:[%s18616_s8 + $0x440] sm:$0xff] }
0x16fd   :  { %9360 = vmatpush.bf16.msrb.mxu2 %v12387_v10  ;;  %v13454_v58 = vld [vmem:[%s18615_s6 + $0x1ec] sm:$0xf0]  ;;  %v12412_v10 = vld [vmem:[%s18615_s6 + $0x1f0] sm:$0xf0]  ;;  %v13495_v45 = vld [vmem:[%s18616_s8 + $0x538] sm:$0xff] }
0x16fe   :  { %v13474_v39 = vld [vmem:[%s18616_s8 + $0x490] sm:$0xff]  ;;  %v13481_v3 = vld [vmem:[%s18616_s8 + $0x4c8] sm:$0xff] }
0x16ff   :  { %v13494_v6 = vld [vmem:[%s18616_s8 + $0x530] sm:$0xff] }
0x177f   :  { %v8971_v5 = vpop.f32.mrf.mxu3 }
0x1780   :  { %v8972_v56 = vadd.f32 %v13762_v62, %v8971_v5  ;;  %v12391_v5 = vor.u32 %v13443_v48, %v12388_v7  ;;  %v13446_v48 = vld [vmem:[%s18615_s6 + $0x1b4] sm:$0xf]  ;;  %v12418_v7 = vld [vmem:[%s18615_s6 + $0x1b8] sm:$0xf] }
0x1782   :  { %v8976_v40 = vadd.f32 %v8972_v56, %v17032_v55  ;;  %v13434_v56 = vld [vmem:[%s18615_s6 + $0x14c] sm:$0xf0]  ;;  %9374 = vmatpush.bf16.msrb.mxu3 %v12391_v5  ;;  %v12420_v5 = vld [vmem:[%s18615_s6 + $0x1f8] sm:$0xf0] }
0x1784   :  { %v8982_v34 = vsel %vm91_vm0, %v8976_v40, 0.0 }
0x1785   :  { %8983 = vadd.xlane.f32.xlu1 %v8982_v34  ;;  %v12316_v34 = vld [vmem:[%s18615_s6 + $0x150] sm:$0xf0] }
0x1787   :  { %v8973_v2 = vpop.f32.mrf.mxu3 }
0x1788   :  { %v8974_v29 = vadd.f32 %v13762_v62, %v8973_v2  ;;  %v12315_v2 = vor.u32 %v13434_v56, %v12314_v49  ;;  %v13455_v49 = vld [vmem:[%s18615_s6 + $0x1f4] sm:$0xf0]  ;;  %v12411_v56 = vor.u32 %v13454_v58, %v12410_v53  ;;  %v13493_v58 = vld [vmem:[%s18616_s8 + $0x528] sm:$0xff] }
0x1789   :  { %v13519_v53 = vld [vmem:[%s18616_s8 + $0x5f8] sm:$0xff] }
0x178a   :  { %v8977_v32 = vadd.f32 %v8974_v29, %v17034_v18  ;;  %9333 = vmatpush.bf16.msrb.mxu0 %v12315_v2  ;;  %v13438_v2 = vld [vmem:[%s18615_s6 + $0x16c] sm:$0xf0] }
0x178c   :  { %v8985_v60 = vsel %vm91_vm0, %v8977_v32, 0.0 }
0x178d   :  { %8986 = vadd.xlane.f32.xlu0 %v8985_v60  ;;  %v13435_v60 = vld [vmem:[%s18615_s6 + $0x154] sm:$0xf0] }
0x17f8   :  { %v8984_v31 = vpop.xlane.xlu1 %8983 }
0x17f9   :  { %v8988_v16 = vmul.f32 %v8984_v31, %v14835_v43  ;;  %v13427_v31 = vld [vmem:[%s18615_s6 + $0x11c] sm:$0xf] }
0x17fb   :  { %v17570_v22 = vsub.f32 %v8976_v40, %v8988_v16  ;;  %v13426_v40 = vld [vmem:[%s18615_s6 + $0x114] sm:$0xf] }
0x17fc   :  { %v12319_v29 = vor.u32 %v13426_v40, %v12316_v34  ;;  %v12415_v40 = vor.u32 %v13446_v48, %v12412_v10  ;;  %v12346_v34 = vld [vmem:[%s18615_s6 + $0x130] sm:$0xf]  ;;  %v13501_v48 = vld [vmem:[%s18616_s8 + $0x568] sm:$0xff] }
0x17fd   :  { %v8992_v50 = vmul.f32 %v17570_v22, %v17570_v22  ;;  %v13510_v10 = vld [vmem:[%s18616_s8 + $0x5b0] sm:$0xff] }
0x17fe   :  { %9347 = vmatpush.bf16.msrb.mxu1 %v12319_v29  ;;  %v12419_v29 = vor.u32 %v13455_v49, %v12418_v7  ;;  %v13518_v7 = vld [vmem:[%s18616_s8 + $0x5f0] sm:$0xff]  ;;  %v13492_v49 = vld [vmem:[%s18616_s8 + $0x520] sm:$0xff] }
0x17ff   :  { %v8994_v55 = vsel %vm91_vm0, %v8992_v50, 0.0 }
0x1800   :  { %v8987_v0 = vpop.xlane.xlu0 %8986  ;;  %8995 = vadd.xlane.f32.xlu2 %v8994_v55  ;;  %v12324_v55 = vld [vmem:[%s18615_s6 + $0x158] sm:$0xf0] }
0x1801   :  { %v8989_v14 = vmul.f32 %v8987_v0, %v14835_v43  ;;  %v12327_v0 = vor.u32 %v13427_v31, %v12324_v55  ;;  %v12348_v31 = vld [vmem:[%s18615_s6 + $0x170] sm:$0xf0]  ;;  %v13431_v55 = vld [vmem:[%s18615_s6 + $0x13c] sm:$0xf] }
0x1803   :  { %v17576_v20 = vsub.f32 %v8977_v32, %v8989_v14  ;;  %v12322_v32 = vld [vmem:[%s18615_s6 + $0x118] sm:$0xf]  ;;  %9375 = vmatpush.bf16.msrb.mxu3 %v12327_v0  ;;  %v12356_v0 = vld [vmem:[%s18615_s6 + $0x178] sm:$0xf0] }
0x1804   :  { %v12323_v50 = vor.u32 %v13435_v60, %v12322_v32  ;;  %v13430_v60 = vld [vmem:[%s18615_s6 + $0x134] sm:$0xf] }
0x1805   :  { %v8993_v18 = vmul.f32 %v17576_v20, %v17576_v20 }
0x1806   :  { %9361 = vmatpush.bf16.msrb.mxu2 %v12323_v50  ;;  %v13439_v50 = vld [vmem:[%s18615_s6 + $0x174] sm:$0xf0] }
0x1807   :  { %v8997_v47 = vsel %vm91_vm0, %v8993_v18, 0.0 }
0x1808   :  { %8998 = vadd.xlane.f32.xlu1 %v8997_v47 }
0x1873   :  { %v8996_v35 = vpop.xlane.xlu2 %8995 }
0x1874   :  { %v9000_v13 = vmul.f32 %v8996_v35, %v14835_v43 }
0x1876   :  { %v17582_v24 = vadd.f32 1e-05, %v9000_v13 }
0x1878   :  { %13984 = vrsqrt.f32 %v17582_v24  ;;  %vm9010_vm2 = vweird.f32 %v17582_v24 }
0x187b   :  { %v8999_v15 = vpop.xlane.xlu1 %8998 }
0x187c   :  { %v9001_v33 = vmul.f32 %v8999_v15, %v14835_v43  ;;  %v12396_v15 = vld [vmem:[%s18615_s6 + $0x1e0] sm:$0xf0] }
0x187d   :  { %v12399_v1 = vor.u32 %v13444_v51, %v12396_v15  ;;  %v13476_v51 = vld [vmem:[%s18616_s8 + $0x4a0] sm:$0xff] }
0x187e   :  { %v13985_v12 = vpop.eup %13984  ;;  %v9003_v19 = vadd.f32 1e-05, %v9001_v33  ;;  %v12404_v33 = vld [vmem:[%s18615_s6 + $0x1e8] sm:$0xf0]  ;;  %v13484_v15 = vld [vmem:[%s18616_s8 + $0x4e0] sm:$0xff] }
0x187f   :  { %v9005_v46 = vmul.f32 %v13985_v12, %v17582_v24  ;;  %vm9011_vm1 = vweird.f32 %v13985_v12  ;;  %v13764_v24 = vld [vmem:[%s18611_s5 + $0x1b] ss:$0 sm:$0xff]  ;;  %v12407_v11 = vor.u32 %v13445_v21, %v12404_v33 }
0x1880   :  { %13986 = vrsqrt.f32 %v9003_v19  ;;  %vm9012_vm13 = vmor %vm9010_vm2, %vm9011_vm1  ;;  %vm9020_vm11 = vweird.f32 %v9003_v19  ;;  %v13475_v21 = vld [vmem:[%s18616_s8 + $0x498] sm:$0xff] }
0x1881   :  { %v9006_v62 = vmul.f32 %v13985_v12, %v9005_v46  ;;  %v13483_v33 = vld [vmem:[%s18616_s8 + $0x4d8] sm:$0xff] }
0x1883   :  { %v9007_v16 = vmul.f32 0.5, %v9006_v62  ;;  %v13447_v62 = vld [vmem:[%s18615_s6 + $0x1bc] sm:$0xf] }
0x1884   :  { %v12423_v32 = vor.u32 %v13447_v62, %v12420_v5  ;;  %v13500_v62 = vld [vmem:[%s18616_s8 + $0x560] sm:$0xff]  ;;  %v13509_v5 = vld [vmem:[%s18616_s8 + $0x5a8] sm:$0xff] }
0x1885   :  { %v9008_v14 = vsub.f32 1.5, %v9007_v16  ;;  %v12354_v16 = vld [vmem:[%s18615_s6 + $0x138] sm:$0xf] }
0x1886   :  { %v13987_v18 = vpop.eup %13986 }
0x1887   :  { %v9009_v47 = vmul.f32 %v13985_v12, %v9008_v14  ;;  %v9015_v35 = vmul.f32 %v13987_v18, %v9003_v19  ;;  %vm9021_vm14 = vweird.f32 %v13987_v18  ;;  %v13437_v19 = vld [vmem:[%s18615_s6 + $0x164] sm:$0xf0]  ;;  %v12347_v14 = vor.u32 %v13438_v2, %v12346_v34  ;;  %v13491_v34 = vld [vmem:[%s18616_s8 + $0x518] sm:$0xff] }
0x1888   :  { %vm9022_vm12 = vmor %vm9020_vm11, %vm9021_vm14  ;;  %v13499_v2 = vld [vmem:[%s18616_s8 + $0x558] sm:$0xff] }
0x1889   :  { %v9016_v13 = vmul.f32 %v13987_v18, %v9015_v35  ;;  %v9013_v57 = vsel %vm9012_vm13, %v13985_v12, %v9009_v47  ;;  %v12338_v12 = vld [vmem:[%s18615_s6 + $0x128] sm:$0xf]  ;;  %v12355_v47 = vor.u32 %v13439_v50, %v12354_v16  ;;  %v12359_v35 = vor.u32 %v13431_v55, %v12356_v0  ;;  %v13490_v50 = vld [vmem:[%s18616_s8 + $0x510] sm:$0xff] }
0x188a   :  { %v9024_v26 = vmul.f32 %v9013_v57, %v17570_v22  ;;  %v13452_v22 = vld [vmem:[%s18615_s6 + $0x1dc] sm:$0xf0]  ;;  %v12339_v46 = vor.u32 %v13437_v19, %v12338_v12  ;;  %v13471_v57 = vld [vmem:[%s18616_s8 + $0x478] sm:$0xff]  ;;  %v13473_v19 = vld [vmem:[%s18616_s8 + $0x488] sm:$0xff] }
0x188b   :  { %v9017_v54 = vmul.f32 0.5, %v9016_v13  ;;  %v12395_v59 = vor.u32 %v13452_v22, %v12394_v63  ;;  %v13463_v13 = vld [vmem:[%s18616_s8 + $0x438] sm:$0xff]  ;;  %v13460_v63 = vld [vmem:[%s18616_s8 + $0x420] sm:$0xff]  ;;  %v13498_v55 = vld [vmem:[%s18616_s8 + $0x550] sm:$0xff] }
0x188c   :  { %v9029_v41 = vmul.f32 %v13763_v8, %v9024_v26  ;;  %v13470_v26 = vld [vmem:[%s18616_s8 + $0x470] sm:$0xff]  ;;  %v13468_v22 = vld [vmem:[%s18616_s8 + $0x460] sm:$0xff]  ;;  %v13503_v12 = vld [vmem:[%s18616_s8 + $0x578] sm:$0xff] }
0x188d   :  { %v9018_v42 = vsub.f32 1.5, %v9017_v54  ;;  %v13479_v54 = vld [vmem:[%s18616_s8 + $0x4b8] sm:$0xff] }
0x188e   :  { %v17707_v36 = vadd.f32 %v13764_v24, %v9029_v41  ;;  %v13469_v41 = vld [vmem:[%s18616_s8 + $0x468] sm:$0xff] }
0x188f   :  { %v9019_v38 = vmul.f32 %v13987_v18, %v9018_v42  ;;  %v13487_v42 = vld [vmem:[%s18616_s8 + $0x4f8] sm:$0xff] }
0x1891   :  { %v9023_v30 = vsel %vm9022_vm12, %v13987_v18, %v9019_v38  ;;  %v12351_v18 = vor.u32 %v13430_v60, %v12348_v31  ;;  %v13478_v38 = vld [vmem:[%s18616_s8 + $0x4b0] sm:$0xff] }
0x1892   :  { %v9025_v27 = vmul.f32 %v9023_v30, %v17576_v20  ;;  %v12402_v20 = vld [vmem:[%s18615_s6 + $0x1a8] sm:$0xf]  ;;  %v13486_v30 = vld [vmem:[%s18616_s8 + $0x4f0] sm:$0xff] }
0x1893   :  { %v12403_v44 = vor.u32 %v13453_v52, %v12402_v20  ;;  %v13459_v20 = vld [vmem:[%s18616_s8 + $0x418] sm:$0xff] }
0x1894   :  { %v9030_v25 = vmul.f32 %v13763_v8, %v9025_v27  ;;  %v13462_v8 = vld [vmem:[%s18616_s8 + $0x430] sm:$0xff]  ;;  %v13477_v27 = vld [vmem:[%s18616_s8 + $0x4a8] sm:$0xff]  ;;  %v13467_v52 = vld [vmem:[%s18616_s8 + $0x458] sm:$0xff] }
0x1896   :  { %v17709_v37 = vadd.f32 %v13764_v24, %v9030_v25  ;;  %v13461_v24 = vld [vmem:[%s18616_s8 + $0x428] sm:$0xff] }
0x1897   :  { %v13485_v25 = vld [vmem:[%s18616_s8 + $0x4e8] sm:$0xff] }
0x1898   :  { %v17722_v17 = vpack.c.bf16 %v17709_v37, %v17707_v36 }
0x189a   :  { %12424 = vmatmul.msk.bf16.vlgmr.msra.gmra.mxu0 %vm91_vm0, %v17722_v17  ;;  %12425 = vmatmul.msk.bf16.vlgmr.msra.gmra.mxu1 %vm91_vm0, %v17722_v17 }
0x189b   :  { %12426 = vmatmul.msk.bf16.vlgmr.msra.gmra.mxu2 %vm91_vm0, %v17722_v17  ;;  %12427 = vmatmul.msk.bf16.vlgmr.msra.gmra.mxu3 %vm91_vm0, %v17722_v17 }
0x189c   :  { %9388 = vmatpush.bf16.msra.mxu0 %v12395_v59  ;;  %9402 = vmatpush.bf16.msra.mxu1 %v12399_v1  ;;  %v13458_v59 = vld [vmem:[%s18616_s8 + $0x410] sm:$0xff] }
0x189d   :  { %9416 = vmatpush.bf16.msra.mxu2 %v12403_v44  ;;  %9430 = vmatpush.bf16.msra.mxu3 %v12407_v11  ;;  %v13466_v1 = vld [vmem:[%s18616_s8 + $0x450] sm:$0xff]  ;;  %v13456_v11 = vld [vmem:[%s18616_s8 + $0x400] sm:$0xff] }
0x189e   :  { %v13482_v44 = vld [vmem:[%s18616_s8 + $0x4d0] sm:$0xff] }
0x18a0   :  { %9389 = vmatpush.bf16.msra.mxu0 %v12331_v9  ;;  %9403 = vmatpush.bf16.msra.mxu1 %v12335_v4  ;;  %v13502_v9 = vld [vmem:[%s18616_s8 + $0x570] sm:$0xff]  ;;  %v13472_v4 = vld [vmem:[%s18616_s8 + $0x480] sm:$0xff] }
0x18a1   :  { %9417 = vmatpush.bf16.msra.mxu2 %v12339_v46  ;;  %9431 = vmatpush.bf16.msra.mxu3 %v12343_v28  ;;  %v13480_v46 = vld [vmem:[%s18616_s8 + $0x4c0] sm:$0xff]  ;;  %v13511_v28 = vld [vmem:[%s18616_s8 + $0x5b8] sm:$0xff] }
0x18aa   :  { %12428 = vmatmul.msk.bf16.vlgmr.msrb.gmra.mxu0 %vm91_vm0, %v17722_v17  ;;  %12429 = vmatmul.msk.bf16.vlgmr.msrb.gmra.mxu1 %vm91_vm0, %v17722_v17 }
0x18ab   :  { %12430 = vmatmul.msk.bf16.vlgmr.msrb.gmra.mxu2 %vm91_vm0, %v17722_v17  ;;  %12431 = vmatmul.msk.bf16.vlgmr.msrb.gmra.mxu3 %vm91_vm0, %v17722_v17 }
0x18ac   :  { %9444 = vmatpush.bf16.msrb.mxu0 %v12411_v56  ;;  %9458 = vmatpush.bf16.msrb.mxu1 %v12415_v40  ;;  %v13517_v56 = vld [vmem:[%s18616_s8 + $0x5e8] sm:$0xff]  ;;  %v17969_v40 = vld [vmem:[%s18617_s7 + $0x10] sm:$0xff] }
0x18ad   :  { %9472 = vmatpush.bf16.msrb.mxu2 %v12419_v29  ;;  %9486 = vmatpush.bf16.msrb.mxu3 %v12423_v32  ;;  %v13508_v29 = vld [vmem:[%s18616_s8 + $0x5a0] sm:$0xff]  ;;  %v9075_v60 = vperm.slane %v17969_v40, 0  ;;  %v9076_v0 = vperm.slane %v17969_v40, 1 }
0x18ae   :  { %v13516_v32 = vld [vmem:[%s18616_s8 + $0x5e0] sm:$0xff] }
0x18b0   :  { %9445 = vmatpush.bf16.msrb.mxu0 %v12347_v14  ;;  %9459 = vmatpush.bf16.msrb.mxu1 %v12351_v18  ;;  %v13507_v14 = vld [vmem:[%s18616_s8 + $0x598] sm:$0xff] }
0x18b1   :  { %9473 = vmatpush.bf16.msrb.mxu2 %v12355_v47  ;;  %9487 = vmatpush.bf16.msrb.mxu3 %v12359_v35  ;;  %v13515_v18 = vld [vmem:[%s18616_s8 + $0x5d8] sm:$0xff]  ;;  %v13489_v35 = vld [vmem:[%s18616_s8 + $0x508] sm:$0xff] }
0x18ba   :  { %12432 = vmatmul.msk.bf16.vlgmr.msra.gmra.mxu0 %vm91_vm0, %v17722_v17  ;;  %12433 = vmatmul.msk.bf16.vlgmr.msra.gmra.mxu1 %vm91_vm0, %v17722_v17 }
0x18bb   :  { %12434 = vmatmul.msk.bf16.vlgmr.msra.gmra.mxu2 %vm91_vm0, %v17722_v17  ;;  %12435 = vmatmul.msk.bf16.vlgmr.msra.gmra.mxu3 %vm91_vm0, %v17722_v17 }
0x18bc   :  { %10828 = vmatpush.bf16.msra.mxu0 %v13463_v13  ;;  %10842 = vmatpush.bf16.msra.mxu1 %v13471_v57  ;;  %v13497_v13 = vld [vmem:[%s18616_s8 + $0x548] sm:$0xff]  ;;  %v9077_v57 = vperm.slane %v17969_v40, 2 }
0x18bd   :  { %10856 = vmatpush.bf16.msra.mxu2 %v13479_v54  ;;  %10870 = vmatpush.bf16.msra.mxu3 %v13487_v42  ;;  %v13506_v42 = vld [vmem:[%s18616_s8 + $0x590] sm:$0xff] }
0x18c0   :  { %10829 = vmatpush.bf16.msra.mxu0 %v13462_v8  ;;  %10843 = vmatpush.bf16.msra.mxu1 %v13470_v26  ;;  %v13514_v8 = vld [vmem:[%s18616_s8 + $0x5d0] sm:$0xff] }
0x18c1   :  { %10857 = vmatpush.bf16.msra.mxu2 %v13478_v38  ;;  %10871 = vmatpush.bf16.msra.mxu3 %v13486_v30 }
0x18c4   :  { %10830 = vmatpush.bf16.msra.mxu0 %v13461_v24  ;;  %10844 = vmatpush.bf16.msra.mxu1 %v13469_v41 }
0x18c5   :  { %10858 = vmatpush.bf16.msra.mxu2 %v13477_v27  ;;  %10872 = vmatpush.bf16.msra.mxu3 %v13485_v25  ;;  %v13488_v27 = vld [vmem:[%s18616_s8 + $0x500] sm:$0xff] }
0x18c6   :  { %v13496_v25 = vld [vmem:[%s18616_s8 + $0x540] sm:$0xff] }
0x18c8   :  { %10831 = vmatpush.bf16.msra.mxu0 %v13460_v63  ;;  %10845 = vmatpush.bf16.msra.mxu1 %v13468_v22  ;;  %v9078_v22 = vperm.slane %v17969_v40, 3 }
0x18c9   :  { %10859 = vmatpush.bf16.msra.mxu2 %v13476_v51  ;;  %10873 = vmatpush.bf16.msra.mxu3 %v13484_v15 }
0x18ca   :  { %12436 = vmatmul.msk.bf16.vlgmr.msrb.gmra.mxu0 %vm91_vm0, %v17722_v17  ;;  %12437 = vmatmul.msk.bf16.vlgmr.msrb.gmra.mxu1 %vm91_vm0, %v17722_v17 }
0x18cb   :  { %12438 = vmatmul.msk.bf16.vlgmr.msrb.gmra.mxu2 %vm91_vm0, %v17722_v17  ;;  %12439 = vmatmul.msk.bf16.vlgmr.msrb.gmra.mxu3 %vm91_vm0, %v17722_v17  ;;  %v13465_v17 = vld [vmem:[%s18616_s8 + $0x448] sm:$0xff] }
0x18cc   :  { %10832 = vmatpush.bf16.msra.mxu0 %v13459_v20  ;;  %10846 = vmatpush.bf16.msra.mxu1 %v13467_v52 }
0x18cd   :  { %10860 = vmatpush.bf16.msra.mxu2 %v13475_v21  ;;  %10874 = vmatpush.bf16.msra.mxu3 %v13483_v33 }
0x18d0   :  { %10833 = vmatpush.bf16.msra.mxu0 %v13458_v59  ;;  %10847 = vmatpush.bf16.msra.mxu1 %v13466_v1 }
0x18d1   :  { %10861 = vmatpush.bf16.msra.mxu2 %v13474_v39  ;;  %10875 = vmatpush.bf16.msra.mxu3 %v13482_v44 }
0x18d4   :  { %10834 = vmatpush.bf16.msra.mxu0 %v13457_v61  ;;  %10848 = vmatpush.bf16.msra.mxu1 %v13465_v17 }
0x18d5   :  { %10862 = vmatpush.bf16.msra.mxu2 %v13473_v19  ;;  %10876 = vmatpush.bf16.msra.mxu3 %v13481_v3 }
0x18d8   :  { %10835 = vmatpush.bf16.msra.mxu0 %v13456_v11  ;;  %10849 = vmatpush.bf16.msra.mxu1 %v13464_v23 }
0x18d9   :  { %10863 = vmatpush.bf16.msra.mxu2 %v13472_v4  ;;  %10877 = vmatpush.bf16.msra.mxu3 %v13480_v46 }
0x18dc   :  { %10884 = vmatpush.bf16.msrb.mxu0 %v13495_v45  ;;  %10898 = vmatpush.bf16.msrb.mxu1 %v13503_v12 }
0x18dd   :  { %10912 = vmatpush.bf16.msrb.mxu2 %v13511_v28  ;;  %10926 = vmatpush.bf16.msrb.mxu3 %v13519_v53  ;;  %v9079_v28 = vperm.slane %v17969_v40, 4 }
0x18e0   :  { %10885 = vmatpush.bf16.msrb.mxu0 %v13494_v6  ;;  %10899 = vmatpush.bf16.msrb.mxu1 %v13502_v9 }
0x18e1   :  { %10913 = vmatpush.bf16.msrb.mxu2 %v13510_v10  ;;  %10927 = vmatpush.bf16.msrb.mxu3 %v13518_v7  ;;  %v9080_v10 = vperm.slane %v17969_v40, 5 }
0x18e4   :  { %10886 = vmatpush.bf16.msrb.mxu0 %v13493_v58  ;;  %10900 = vmatpush.bf16.msrb.mxu1 %v13501_v48 }
0x18e5   :  { %10914 = vmatpush.bf16.msrb.mxu2 %v13509_v5  ;;  %10928 = vmatpush.bf16.msrb.mxu3 %v13517_v56  ;;  %v13505_v56 = vld [vmem:[%s18616_s8 + $0x588] sm:$0xff] }
0x18e8   :  { %10887 = vmatpush.bf16.msrb.mxu0 %v13492_v49  ;;  %10901 = vmatpush.bf16.msrb.mxu1 %v13500_v62 }
0x18e9   :  { %10915 = vmatpush.bf16.msrb.mxu2 %v13508_v29  ;;  %10929 = vmatpush.bf16.msrb.mxu3 %v13516_v32 }
0x18ec   :  { %10888 = vmatpush.bf16.msrb.mxu0 %v13491_v34  ;;  %10902 = vmatpush.bf16.msrb.mxu1 %v13499_v2  ;;  %v13513_v34 = vld [vmem:[%s18616_s8 + $0x5c8] sm:$0xff] }
0x18ed   :  { %10916 = vmatpush.bf16.msrb.mxu2 %v13507_v14  ;;  %10930 = vmatpush.bf16.msrb.mxu3 %v13515_v18 }
0x18f0   :  { %10889 = vmatpush.bf16.msrb.mxu0 %v13490_v50  ;;  %10903 = vmatpush.bf16.msrb.mxu1 %v13498_v55 }
0x18f1   :  { %10917 = vmatpush.bf16.msrb.mxu2 %v13506_v42  ;;  %10931 = vmatpush.bf16.msrb.mxu3 %v13514_v8 }
0x18f4   :  { %10890 = vmatpush.bf16.msrb.mxu0 %v13489_v35  ;;  %10904 = vmatpush.bf16.msrb.mxu1 %v13497_v13  ;;  %v9081_v35 = vperm.slane %v17969_v40, 6  ;;  %v9082_v13 = vperm.slane %v17969_v40, 7  ;;  %v13512_v40 = vld [vmem:[%s18616_s8 + $0x5c0] sm:$0xff] }
0x18f5   :  { %10918 = vmatpush.bf16.msrb.mxu2 %v13505_v56  ;;  %10932 = vmatpush.bf16.msrb.mxu3 %v13513_v34 }
0x18f8   :  { %10891 = vmatpush.bf16.msrb.mxu0 %v13488_v27  ;;  %10905 = vmatpush.bf16.msrb.mxu1 %v13496_v25 }
0x18f9   :  { %10933 = vmatpush.bf16.msrb.mxu3 %v13512_v40 }
0x1917   :  { %v9279_v31 = vpop.f32.mrf.mxu0  ;;  %v9293_v16 = vpop.f32.mrf.mxu1 }
0x1918   :  { %v17997_v47 = vadd.f32 %v9279_v31, %v9075_v60  ;;  %v18006_v54 = vadd.f32 %v9293_v16, %v9076_v0 }
0x191a   :  { %v9526_v26 = vmul.f32 0.044715, %v17997_v47  ;;  %v9527_v20 = vmul.f32 0.044715, %v18006_v54  ;;  %v18078_v42 = vmul.f32 0.5, %v17997_v47  ;;  %v18081_v8 = vmul.f32 0.5, %v18006_v54 }
0x191c   :  { %v9558_v52 = vmul.f32 %v9526_v26, %v17997_v47  ;;  %v9559_v61 = vmul.f32 %v9527_v20, %v18006_v54 }
0x191e   :  { %v9307_v38 = vpop.f32.mrf.mxu2  ;;  %v9321_v30 = vpop.f32.mrf.mxu3  ;;  %v9590_v39 = vmul.f32 %v9558_v52, %v17997_v47  ;;  %v9591_v46 = vmul.f32 %v9559_v61, %v18006_v54 }
0x191f   :  { %v9281_v24 = vpop.f32.mrf.mxu0  ;;  %v9295_v41 = vpop.f32.mrf.mxu1  ;;  %v18021_v63 = vadd.f32 %v9307_v38, %v9077_v57  ;;  %v18033_v1 = vadd.f32 %v9321_v30, %v9078_v22 }
0x1920   :  { %v18024_v51 = vadd.f32 %v9281_v24, %v9075_v60  ;;  %v18026_v15 = vadd.f32 %v9295_v41, %v9076_v0  ;;  %v9622_v53 = vadd.f32 %v9590_v39, %v17997_v47  ;;  %v9623_v2 = vadd.f32 %v9591_v46, %v18006_v54  ;;  %v18072_v0 = vld [vmem:[%s18617_s7 + $0x18] sm:$0xff]  ;;  %v13504_v24 = vld [vmem:[%s18616_s8 + $0x580] sm:$0xff] }
0x1921   :  { %v9528_v59 = vmul.f32 0.044715, %v18021_v63  ;;  %v9529_v9 = vmul.f32 0.044715, %v18033_v1  ;;  %v9083_v54 = vperm.slane %v18072_v0, 0  ;;  %10919 = vmatpush.bf16.msrb.mxu2 %v13504_v24 }
0x1922   :  { %v9542_v21 = vmul.f32 0.044715, %v18024_v51  ;;  %v9543_v33 = vmul.f32 0.044715, %v18026_v15  ;;  %v9654_v60 = vmul.f32 0.7978846, %v9622_v53 }
0x1923   :  { %v9560_v6 = vmul.f32 %v9528_v59, %v18021_v63  ;;  %v9561_v5 = vmul.f32 %v9529_v9, %v18033_v1  ;;  %v9655_v41 = vmul.f32 0.7978846, %v9623_v2  ;;  %v18102_v59 = vmul.f32 0.5, %v18021_v63 }
0x1924   :  { %v9574_v17 = vmul.f32 %v9542_v21, %v18024_v51  ;;  %v9575_v44 = vmul.f32 %v9543_v33, %v18026_v15  ;;  %13988 = vtanh.f32 %v9654_v60  ;;  %v9084_v33 = vperm.slane %v18072_v0, 1 }
0x1925   :  { %v9592_v62 = vmul.f32 %v9560_v6, %v18021_v63  ;;  %v9593_v38 = vmul.f32 %v9561_v5, %v18033_v1  ;;  %v9510_v6 = vmul.f32 0.5, %v18024_v51  ;;  %v18118_v9 = vmul.f32 0.5, %v18026_v15 }
0x1926   :  { %v9309_v11 = vpop.f32.mrf.mxu2  ;;  %v9323_v23 = vpop.f32.mrf.mxu3  ;;  %v9606_v45 = vmul.f32 %v9574_v17, %v18024_v51  ;;  %v9607_v58 = vmul.f32 %v9575_v44, %v18026_v15  ;;  %v18105_v17 = vmul.f32 0.5, %v18033_v1 }
0x1927   :  { %v18040_v12 = vadd.f32 %v9309_v11, %v9077_v57  ;;  %v9335_v19 = vpop.f32.mrf.mxu0  ;;  %v9349_v3 = vpop.f32.mrf.mxu1  ;;  %v18044_v4 = vadd.f32 %v9323_v23, %v9078_v22  ;;  %v9624_v26 = vadd.f32 %v9592_v62, %v18021_v63  ;;  %v9625_v39 = vadd.f32 %v9593_v38, %v18033_v1 }
0x1928   :  { %v9638_v7 = vadd.f32 %v9606_v45, %v18024_v51  ;;  %v18064_v32 = vadd.f32 %v9335_v19, %v9079_v28  ;;  %v9639_v31 = vadd.f32 %v9607_v58, %v18026_v15  ;;  %v18067_v16 = vadd.f32 %v9349_v3, %v9080_v10 }
0x1929   :  { %v9544_v48 = vmul.f32 0.044715, %v18040_v12  ;;  %v9545_v49 = vmul.f32 0.044715, %v18044_v4  ;;  %v9656_v61 = vmul.f32 0.7978846, %v9624_v26 }
0x192a   :  { %v9670_v14 = vmul.f32 0.7978846, %v9638_v7  ;;  %v9530_v27 = vmul.f32 0.044715, %v18064_v32  ;;  %v9671_v25 = vmul.f32 0.7978846, %v9639_v31  ;;  %v13989_v53 = vpop.eup %13988 }
0x192b   :  { %v9576_v29 = vmul.f32 %v9544_v48, %v18040_v12  ;;  %v9577_v18 = vmul.f32 %v9545_v49, %v18044_v4  ;;  %v9531_v22 = vmul.f32 0.044715, %v18067_v16  ;;  %v9657_v58 = vmul.f32 0.7978846, %v9625_v39 }
0x192c   :  { %13990 = vtanh.f32 %v9670_v14  ;;  %v9562_v11 = vmul.f32 %v9530_v27, %v18064_v32  ;;  %v18126_v49 = vmul.f32 0.5, %v18040_v12  ;;  %v18145_v38 = vmul.f32 0.5, %v18064_v32 }
0x192d   :  { %v9608_v47 = vmul.f32 %v9576_v29, %v18040_v12  ;;  %v9609_v52 = vmul.f32 %v9577_v18, %v18044_v4  ;;  %13992 = vtanh.f32 %v9655_v41  ;;  %v9563_v45 = vmul.f32 %v9531_v22, %v18067_v16 }
0x192e   :  { %v9363_v50 = vpop.f32.mrf.mxu2  ;;  %v9377_v55 = vpop.f32.mrf.mxu3  ;;  %13994 = vtanh.f32 %v9671_v25  ;;  %v9594_v15 = vmul.f32 %v9562_v11, %v18064_v32 }
0x192f   :  { %v9337_v57 = vpop.f32.mrf.mxu0  ;;  %v9351_v30 = vpop.f32.mrf.mxu1  ;;  %v9640_v44 = vadd.f32 %v9608_v47, %v18040_v12  ;;  %v18110_v23 = vadd.f32 %v9363_v50, %v9081_v35  ;;  %v18113_v19 = vadd.f32 %v9377_v55, %v9082_v13  ;;  %v9641_v1 = vadd.f32 %v9609_v52, %v18044_v4 }
0x1930   :  { %v18095_v20 = vadd.f32 %v9337_v57, %v9079_v28  ;;  %v18098_v21 = vadd.f32 %v9351_v30, %v9080_v10  ;;  %13996 = vtanh.f32 %v9656_v61  ;;  %v9595_v56 = vmul.f32 %v9563_v45, %v18067_v16 }
0x1931   :  { %v9672_v51 = vmul.f32 0.7978846, %v9640_v44  ;;  %v9532_v62 = vmul.f32 0.044715, %v18110_v23  ;;  %v9533_v34 = vmul.f32 0.044715, %v18113_v19  ;;  %13998 = vtanh.f32 %v9657_v58 }
0x1932   :  { %v9546_v63 = vmul.f32 0.044715, %v18095_v20  ;;  %v9547_v46 = vmul.f32 0.044715, %v18098_v21  ;;  %v13991_v7 = vpop.eup %13990  ;;  %v9718_v50 = vadd.f32 1.0, %v13989_v53  ;;  %v18135_v12 = vmul.f32 0.5, %v18044_v4 }
0x1933   :  { %v13993_v31 = vpop.eup %13992  ;;  %v9673_v55 = vmul.f32 0.7978846, %v9641_v1  ;;  %14000 = vtanh.f32 %v9672_v51  ;;  %v9626_v30 = vadd.f32 %v9594_v15, %v18064_v32  ;;  %v9564_v4 = vmul.f32 %v9532_v62, %v18110_v23 }
0x1934   :  { %v9578_v48 = vmul.f32 %v9546_v63, %v18095_v20  ;;  %v9579_v29 = vmul.f32 %v9547_v46, %v18098_v21  ;;  %v13995_v18 = vpop.eup %13994  ;;  %v9565_v40 = vmul.f32 %v9533_v34, %v18113_v19  ;;  %v9719_v27 = vadd.f32 1.0, %v13993_v31 }
0x1935   :  { %v9735_v25 = vadd.f32 1.0, %v13995_v18  ;;  %14002 = vtanh.f32 %v9673_v55  ;;  %v9658_v11 = vmul.f32 0.7978846, %v9626_v30  ;;  %v9596_v45 = vmul.f32 %v9564_v4, %v18110_v23  ;;  %v13526_v30 = vld [vmem:[%s18616_s8 + $0x630] sm:$0xff] }
0x1936   :  { %v9365_v3 = vpop.f32.mrf.mxu2  ;;  %v9379_v28 = vpop.f32.mrf.mxu3  ;;  %v9610_v2 = vmul.f32 %v9578_v48, %v18095_v20  ;;  %v9611_v47 = vmul.f32 %v9579_v29, %v18098_v21  ;;  %v9750_v63 = vmul.f32 %v9718_v50, %v18078_v42  ;;  %v9597_v53 = vmul.f32 %v9565_v40, %v18113_v19  ;;  %v13535_v29 = vld [vmem:[%s18616_s8 + $0x678] sm:$0xff] }
0x1937   :  { %v18123_v10 = vadd.f32 %v9365_v3, %v9081_v35  ;;  %v9391_v5 = vpop.f32.mrf.mxu0  ;;  %v9405_v60 = vpop.f32.mrf.mxu1  ;;  %v18137_v14 = vadd.f32 %v9379_v28, %v9082_v13  ;;  %v9734_v35 = vadd.f32 1.0, %v13991_v7  ;;  %v9627_v13 = vadd.f32 %v9595_v56, %v18067_v16 }
0x1938   :  { %v18142_v26 = vadd.f32 %v9391_v5, %v9083_v54  ;;  %v13997_v24 = vpop.eup %13996  ;;  %v9642_v41 = vadd.f32 %v9610_v2, %v18095_v20  ;;  %v18158_v61 = vadd.f32 %v9405_v60, %v9084_v33  ;;  %v9643_v48 = vadd.f32 %v9611_v47, %v18098_v21 }
0x1939   :  { %v9548_v57 = vmul.f32 0.044715, %v18123_v10  ;;  %v9549_v22 = vmul.f32 0.044715, %v18137_v14  ;;  %v9766_v39 = vmul.f32 %v9734_v35, %v9510_v6  ;;  %v9720_v44 = vadd.f32 1.0, %v13997_v24  ;;  %v13999_v46 = vpop.eup %13998  ;;  %v13527_v6 = vld [vmem:[%s18616_s8 + $0x638] sm:$0xff] }
0x193a   :  { %v9534_v32 = vmul.f32 0.044715, %v18142_v26  ;;  %v9659_v28 = vmul.f32 0.7978846, %v9627_v13  ;;  %v9674_v58 = vmul.f32 0.7978846, %v9642_v41  ;;  %v14001_v7 = vpop.eup %14000  ;;  %v9751_v42 = vmul.f32 %v9719_v27, %v18081_v8 }
0x193b   :  { %v9580_v52 = vmul.f32 %v9548_v57, %v18123_v10  ;;  %v9581_v51 = vmul.f32 %v9549_v22, %v18137_v14  ;;  %v10039_v15 = vpack.c.bf16 %v9766_v39, %v9750_v63  ;;  %v9767_v62 = vmul.f32 %v9735_v25, %v18118_v9  ;;  %v14003_v50 = vpop.eup %14002  ;;  %v13525_v63 = vld [vmem:[%s18616_s8 + $0x628] sm:$0xff] }
0x193c   :  { %v9566_v34 = vmul.f32 %v9534_v32, %v18142_v26  ;;  %v9535_v2 = vmul.f32 0.044715, %v18158_v61  ;;  %v9085_v60 = vperm.slane %v18072_v0, 2  ;;  %v9721_v55 = vadd.f32 1.0, %v13999_v46 }
0x193d   :  { %v9612_v56 = vmul.f32 %v9580_v52, %v18123_v10  ;;  %14004 = vtanh.f32 %v9658_v11  ;;  %v9628_v8 = vadd.f32 %v9596_v45, %v18110_v23  ;;  %10836 = vmatmul.bf16.vlgmr.msra.gmra.mxu0 %v10039_v15  ;;  %v10040_v9 = vpack.c.bf16 %v9767_v62, %v9751_v42 }
0x193e   :  { %v9419_v3 = vpop.f32.mrf.mxu2  ;;  %v18162_v1 = vpop.f32.mrf.mxu3  ;;  %v9736_v18 = vadd.f32 1.0, %v14001_v7  ;;  %v9629_v35 = vadd.f32 %v9597_v53, %v18113_v19  ;;  %10940 = vmatpush.bf16.msra.mxu0 %v13527_v6  ;;  %14006 = vtanh.f32 %v9659_v28  ;;  %v9675_v24 = vmul.f32 0.7978846, %v9643_v48 }
0x193f   :  { %v9393_v5 = vpop.f32.mrf.mxu0  ;;  %v9407_v31 = vpop.f32.mrf.mxu1  ;;  %v18181_v57 = vadd.f32 %v9419_v3, %v9085_v60  ;;  %v9613_v13 = vmul.f32 %v9581_v51, %v18137_v14  ;;  %10850 = vmatmul.bf16.vlgmr.msra.gmra.mxu1 %v10040_v9  ;;  %14008 = vtanh.f32 %v9674_v58  ;;  %v9644_v41 = vadd.f32 %v9612_v56, %v18123_v10  ;;  %v13543_v58 = vld [vmem:[%s18616_s8 + $0x6b8] sm:$0xff]  ;;  %v13533_v51 = vld [vmem:[%s18616_s8 + $0x668] sm:$0xff] }
0x1940   :  { %v18188_v4 = vadd.f32 %v9393_v5, %v9083_v54  ;;  %v18193_v40 = vadd.f32 %v9407_v31, %v9084_v33  ;;  %v9598_v47 = vmul.f32 %v9566_v34, %v18142_v26  ;;  %v9567_v27 = vmul.f32 %v9535_v2, %v18158_v61  ;;  %10954 = vmatpush.bf16.msra.mxu1 %v13535_v29  ;;  %v13534_v54 = vld [vmem:[%s18616_s8 + $0x670] sm:$0xff] }
0x1941   :  { %v9737_v25 = vadd.f32 1.0, %v14003_v50  ;;  %v9660_v22 = vmul.f32 0.7978846, %v9628_v8  ;;  %v9536_v52 = vmul.f32 0.044715, %v18181_v57  ;;  %v9086_v32 = vperm.slane %v18072_v0, 3 }
0x1942   :  { %v9661_v33 = vmul.f32 0.7978846, %v9629_v35  ;;  %10941 = vmatpush.bf16.msra.mxu0 %v13526_v30  ;;  %v9550_v39 = vmul.f32 0.044715, %v18188_v4  ;;  %v9752_v11 = vmul.f32 %v9720_v44, %v18102_v59  ;;  %v9768_v45 = vmul.f32 %v9736_v18, %v18126_v49  ;;  %v13532_v30 = vld [vmem:[%s18616_s8 + $0x660] sm:$0xff] }
0x1943   :  { %v14005_v3 = vpop.eup %14004  ;;  %14010 = vtanh.f32 %v9675_v24  ;;  %v9645_v46 = vadd.f32 %v9613_v13, %v18137_v14  ;;  %v9568_v28 = vmul.f32 %v9536_v52, %v18181_v57  ;;  %v9551_v53 = vmul.f32 0.044715, %v18193_v40 }
0x1944   :  { %v9676_v44 = vmul.f32 0.7978846, %v9644_v41  ;;  %v9630_v49 = vadd.f32 %v9598_v47, %v18142_v26  ;;  %v9599_v6 = vmul.f32 %v9567_v27, %v18158_v61  ;;  %10955 = vmatpush.bf16.msra.mxu1 %v13534_v54  ;;  %v10041_v7 = vpack.c.bf16 %v9768_v45, %v9752_v11  ;;  %v14007_v15 = vpop.eup %14006  ;;  %v13550_v45 = vld [vmem:[%s18616_s8 + $0x6f0] sm:$0xff] }
0x1945   :  { %v18221_v42 = vadd.f32 %v18162_v1, %v9086_v32  ;;  %v9582_v62 = vmul.f32 %v9550_v39, %v18188_v4  ;;  %v9753_v5 = vmul.f32 %v9721_v55, %v18105_v17  ;;  %v9769_v56 = vmul.f32 %v9737_v25, %v18135_v12  ;;  %v14009_v34 = vpop.eup %14008  ;;  %v13524_v1 = vld [vmem:[%s18616_s8 + $0x620] sm:$0xff] }
0x1946   :  { %v9421_v48 = vpop.f32.mrf.mxu2  ;;  %v9435_v59 = vpop.f32.mrf.mxu3  ;;  %v18227_v2 = vmul.f32 0.5, %v18067_v16  ;;  %v9583_v29 = vmul.f32 %v9551_v53, %v18193_v40  ;;  %10864 = vmatmul.bf16.vlgmr.msra.gmra.mxu2 %v10041_v7  ;;  %10942 = vmatpush.bf16.msra.mxu0 %v13525_v63  ;;  %v9722_v8 = vadd.f32 1.0, %v14005_v3  ;;  %14012 = vtanh.f32 %v9660_v22  ;;  %v13551_v16 = vld [vmem:[%s18616_s8 + $0x6f8] sm:$0xff]  ;;  %v13541_v63 = vld [vmem:[%s18616_s8 + $0x6a8] sm:$0xff] }
0x1947   :  { %v18230_v31 = vadd.f32 %v9421_v48, %v9085_v60  ;;  %v18232_v50 = vadd.f32 %v9435_v59, %v9086_v32  ;;  %v9677_v17 = vmul.f32 0.7978846, %v9645_v46  ;;  %v9600_v12 = vmul.f32 %v9568_v28, %v18181_v57  ;;  %10968 = vmatpush.bf16.msra.mxu2 %v13543_v58  ;;  %v13542_v60 = vld [vmem:[%s18616_s8 + $0x6b0] sm:$0xff]  ;;  %v18244_v55 = vpop.f32.mrf.mxu0  ;;  %v18256_v52 = vpop.f32.mrf.mxu1  ;;  %v13523_v32 = vld [vmem:[%s18616_s8 + $0x618] sm:$0xff] }
0x1948   :  { %14014 = vtanh.f32 %v9661_v33  ;;  %v9631_v9 = vadd.f32 %v9599_v6, %v18158_v61  ;;  %v10042_v18 = vpack.c.bf16 %v9769_v56, %v9753_v5  ;;  %10956 = vmatpush.bf16.msra.mxu1 %v13533_v51  ;;  %v9738_v13 = vadd.f32 1.0, %v14009_v34 }
0x1949   :  { %v9552_v35 = vmul.f32 0.044715, %v18230_v31  ;;  %v14011_v24 = vpop.eup %14010  ;;  %14016 = vtanh.f32 %v9676_v44  ;;  %v9537_v41 = vmul.f32 0.044715, %v18221_v42  ;;  %v9614_v47 = vmul.f32 %v9582_v62, %v18188_v4  ;;  %v13522_v62 = vld [vmem:[%s18616_s8 + $0x610] sm:$0xff] }
0x194a   :  { %v9662_v27 = vmul.f32 0.7978846, %v9630_v49  ;;  %v9615_v54 = vmul.f32 %v9583_v29, %v18193_v40  ;;  %10878 = vmatmul.bf16.vlgmr.msra.gmra.mxu3 %v10042_v18  ;;  %v9553_v22 = vmul.f32 0.044715, %v18232_v50  ;;  %10943 = vmatpush.bf16.msra.mxu0 %v13524_v1  ;;  %v9723_v33 = vadd.f32 1.0, %v14007_v15  ;;  %v13540_v29 = vld [vmem:[%s18616_s8 + $0x6a0] sm:$0xff] }
0x194b   :  { %v9584_v25 = vmul.f32 %v9552_v35, %v18230_v31  ;;  %v9514_v39 = vmul.f32 0.5, %v18095_v20  ;;  %14018 = vtanh.f32 %v9677_v17  ;;  %v9632_v11 = vadd.f32 %v9600_v12, %v18181_v57  ;;  %10982 = vmatpush.bf16.msra.mxu3 %v13551_v16  ;;  %10969 = vmatpush.bf16.msra.mxu2 %v13542_v60  ;;  %v13531_v20 = vld [vmem:[%s18616_s8 + $0x658] sm:$0xff] }
0x194c   :  { %v9739_v3 = vadd.f32 1.0, %v14011_v24  ;;  %v9663_v46 = vmul.f32 0.7978846, %v9631_v9  ;;  %v9585_v53 = vmul.f32 %v9553_v22, %v18232_v50  ;;  %10957 = vmatpush.bf16.msra.mxu1 %v13532_v30  ;;  %v14013_v58 = vpop.eup %14012  ;;  %v9569_v48 = vmul.f32 %v9537_v41, %v18221_v42  ;;  %v13530_v24 = vld [vmem:[%s18616_s8 + $0x650] sm:$0xff] }
0x194d   :  { %v9616_v28 = vmul.f32 %v9584_v25, %v18230_v31  ;;  %v9646_v59 = vadd.f32 %v9614_v47, %v18188_v4  ;;  %v9754_v44 = vmul.f32 %v9722_v8, %v18145_v38  ;;  %v9770_v49 = vmul.f32 %v9738_v13, %v9514_v39 }
0x194e   :  { %v14015_v6 = vpop.eup %14014  ;;  %v18278_v7 = vmul.f32 0.5, %v18110_v23  ;;  %v9515_v51 = vmul.f32 0.5, %v18098_v21  ;;  %14020 = vtanh.f32 %v9662_v27  ;;  %v9647_v15 = vadd.f32 %v9615_v54, %v18193_v40  ;;  %10944 = vmatpush.bf16.msra.mxu0 %v13523_v32  ;;  %v13549_v21 = vld [vmem:[%s18616_s8 + $0x6e8] sm:$0xff]  ;;  %v18296_v16 = vpop.f32.mrf.mxu2 }
0x194f   :  { %v14017_v5 = vpop.eup %14016  ;;  %v9664_v56 = vmul.f32 0.7978846, %v9632_v11  ;;  %10983 = vmatpush.bf16.msra.mxu3 %v13550_v45  ;;  %v9617_v38 = vmul.f32 %v9585_v53, %v18232_v50  ;;  %v9087_v34 = vperm.slane %v18072_v0, 4  ;;  %10970 = vmatpush.bf16.msra.mxu2 %v13541_v63  ;;  %v10043_v23 = vpack.c.bf16 %v9770_v49, %v9754_v44  ;;  %v18298_v60 = vpop.f32.mrf.mxu3 }
0x1950   :  { %v9648_v1 = vadd.f32 %v9616_v28, %v18230_v31  ;;  %v9088_v8 = vperm.slane %v18072_v0, 5  ;;  %v9755_v17 = vmul.f32 %v9723_v33, %v18227_v2  ;;  %v9771_v12 = vmul.f32 %v9739_v3, %v9515_v51  ;;  %10958 = vmatpush.bf16.msra.mxu1 %v13531_v20  ;;  %v9449_v2 = vpop.f32.mrf.mxu0  ;;  %v13538_v20 = vld [vmem:[%s18616_s8 + $0x690] sm:$0xff] }
0x1951   :  { %v14019_v9 = vpop.eup %14018  ;;  %v18301_v18 = vmul.f32 0.5, %v18113_v19  ;;  %14022 = vtanh.f32 %v9663_v46  ;;  %v9601_v35 = vmul.f32 %v9569_v48, %v18221_v42  ;;  %v9678_v30 = vmul.f32 0.7978846, %v9646_v59  ;;  %10892 = vmatmul.bf16.vlgmr.msrb.gmra.mxu0 %v10043_v23  ;;  %v13521_v19 = vld [vmem:[%s18616_s8 + $0x608] sm:$0xff] }
0x1952   :  { %v9516_v13 = vmul.f32 0.5, %v18123_v10  ;;  %v18309_v41 = vmul.f32 0.5, %v18137_v14  ;;  %v9679_v47 = vmul.f32 0.7978846, %v9647_v15  ;;  %v10044_v27 = vpack.c.bf16 %v9771_v12, %v9755_v17  ;;  %10945 = vmatpush.bf16.msra.mxu0 %v13522_v62  ;;  %v13548_v10 = vld [vmem:[%s18616_s8 + $0x6e0] sm:$0xff]  ;;  %v13539_v14 = vld [vmem:[%s18616_s8 + $0x698] sm:$0xff] }
0x1953   :  { %v9740_v54 = vadd.f32 1.0, %v14017_v5  ;;  %v18315_v25 = vmul.f32 0.5, %v18142_v26  ;;  %v9649_v22 = vadd.f32 %v9617_v38, %v18232_v50  ;;  %v18319_v32 = vadd.f32 %v18244_v55, %v9087_v34  ;;  %10984 = vmatpush.bf16.msra.mxu3 %v13549_v21  ;;  %10971 = vmatpush.bf16.msra.mxu2 %v13540_v29  ;;  %v9463_v55 = vpop.f32.mrf.mxu1  ;;  %v13529_v46 = vld [vmem:[%s18616_s8 + $0x648] sm:$0xff]  ;;  %v13559_v62 = vld [vmem:[%s18616_s8 + $0x738] sm:$0xff]  ;;  %v13528_v21 = vld [vmem:[%s18616_s8 + $0x640] sm:$0xff] }
0x1954   :  { %v14021_v33 = vpop.eup %14020  ;;  %14024 = vtanh.f32 %v9664_v56  ;;  %v9680_v39 = vmul.f32 0.7978846, %v9648_v1  ;;  %v18328_v26 = vadd.f32 %v18256_v52, %v9088_v8  ;;  %10906 = vmatmul.bf16.vlgmr.msrb.gmra.mxu1 %v10044_v27  ;;  %v18330_v11 = vadd.f32 %v9449_v2, %v9087_v34  ;;  %v13537_v2 = vld [vmem:[%s18616_s8 + $0x688] sm:$0xff] }
0x1955   :  { %v9724_v45 = vadd.f32 1.0, %v14013_v58  ;;  %v18333_v63 = vmul.f32 0.5, %v18158_v61  ;;  %v9633_v3 = vadd.f32 %v9601_v35, %v18221_v42  ;;  %14026 = vtanh.f32 %v9678_v30  ;;  %10959 = vmatpush.bf16.msra.mxu1 %v13530_v24  ;;  %v13547_v61 = vld [vmem:[%s18616_s8 + $0x6d8] sm:$0xff]  ;;  %v13520_v58 = vld [vmem:[%s18616_s8 + $0x600] sm:$0xff] }
0x1956   :  { %v9725_v28 = vadd.f32 1.0, %v14015_v6  ;;  %v18340_v52 = vmul.f32 0.5, %v18181_v57  ;;  %14028 = vtanh.f32 %v9679_v47  ;;  %v9089_v53 = vperm.slane %v18072_v0, 6  ;;  %10946 = vmatpush.bf16.msra.mxu0 %v13521_v19 }
0x1957   :  { %v14023_v48 = vpop.eup %14022  ;;  %v9681_v59 = vmul.f32 0.7978846, %v9649_v22  ;;  %v9538_v57 = vmul.f32 0.044715, %v18319_v32  ;;  %10985 = vmatpush.bf16.msra.mxu3 %v13548_v10  ;;  %v9554_v44 = vmul.f32 0.044715, %v18330_v11  ;;  %v18354_v49 = vadd.f32 %v9463_v55, %v9088_v8  ;;  %10972 = vmatpush.bf16.msra.mxu2 %v13539_v14  ;;  %v9491_v12 = vpop.f32.mrf.mxu3 }
0x1958   :  { %v9741_v6 = vadd.f32 1.0, %v14019_v9  ;;  %14030 = vtanh.f32 %v9680_v39  ;;  %v9539_v51 = vmul.f32 0.044715, %v18328_v26  ;;  %v9772_v15 = vmul.f32 %v9740_v54, %v9516_v13  ;;  %v13558_v54 = vld [vmem:[%s18616_s8 + $0x730] sm:$0xff] }
0x1959   :  { %v9665_v5 = vmul.f32 0.7978846, %v9633_v3  ;;  %v18361_v56 = vmul.f32 0.5, %v18188_v4  ;;  %v9586_v38 = vmul.f32 %v9554_v44, %v18330_v11  ;;  %v9756_v34 = vmul.f32 %v9724_v45, %v18278_v7  ;;  %10960 = vmatpush.bf16.msra.mxu1 %v13529_v46  ;;  %v9477_v4 = vpop.f32.mrf.mxu2  ;;  %v13567_v7 = vld [vmem:[%s18616_s8 + $0x778] sm:$0xff]  ;;  %v13566_v45 = vld [vmem:[%s18616_s8 + $0x770] sm:$0xff]  ;;  %v13557_v44 = vld [vmem:[%s18616_s8 + $0x728] sm:$0xff] }
0x195a   :  { %v14025_v23 = vpop.eup %14024  ;;  %v9726_v29 = vadd.f32 1.0, %v14021_v33  ;;  %v18368_v1 = vadd.f32 1.0, %v14023_v48  ;;  %v18371_v8 = vadd.f32 %v18296_v16, %v9089_v53  ;;  %v9555_v17 = vmul.f32 0.044715, %v18354_v49  ;;  %10947 = vmatpush.bf16.msra.mxu0 %v13520_v58  ;;  %v13546_v16 = vld [vmem:[%s18616_s8 + $0x6d0] sm:$0xff] }
0x195b   :  { %v14027_v9 = vpop.eup %14026  ;;  %14032 = vtanh.f32 %v9681_v59  ;;  %v9570_v35 = vmul.f32 %v9538_v57, %v18319_v32  ;;  %v9090_v30 = vperm.slane %v18072_v0, 7  ;;  %v10045_v24 = vpack.c.bf16 %v9772_v15, %v9756_v34  ;;  %10986 = vmatpush.bf16.msra.mxu3 %v13547_v61  ;;  %10973 = vmatpush.bf16.msra.mxu2 %v13538_v20  ;;  %v13545_v61 = vld [vmem:[%s18616_s8 + $0x6c8] sm:$0xff]  ;;  %v13536_v20 = vld [vmem:[%s18616_s8 + $0x680] sm:$0xff]  ;;  %v13575_v57 = vld [vmem:[%s18616_s8 + $0x7b8] sm:$0xff] }
0x195c   :  { %v14029_v13 = vpop.eup %14028  ;;  %v9571_v47 = vmul.f32 %v9539_v51, %v18328_v26  ;;  %v9587_v27 = vmul.f32 %v9555_v17, %v18354_v49  ;;  %v9757_v19 = vmul.f32 %v9725_v28, %v18301_v18  ;;  %v9773_v0 = vmul.f32 %v9741_v6, %v18309_v41 }
0x195d   :  { %14034 = vtanh.f32 %v9665_v5  ;;  %v9618_v22 = vmul.f32 %v9586_v38, %v18330_v11  ;;  %10920 = vmatmul.bf16.vlgmr.msrb.gmra.mxu2 %v10045_v24  ;;  %v18393_v10 = vadd.f32 %v9477_v4, %v9089_v53  ;;  %v18395_v14 = vadd.f32 %v9491_v12, %v9090_v30  ;;  %10961 = vmatpush.bf16.msra.mxu1 %v13528_v21  ;;  %v13565_v21 = vld [vmem:[%s18616_s8 + $0x768] sm:$0xff] }
0x195e   :  { %10996 = vmatpush.bf16.msrb.mxu0 %v13559_v62  ;;  %v14031_v33 = vpop.eup %14030  ;;  %v9742_v39 = vadd.f32 1.0, %v14027_v9  ;;  %v9540_v18 = vmul.f32 0.044715, %v18371_v8  ;;  %v9619_v41 = vmul.f32 %v9587_v27, %v18354_v49  ;;  %v10046_v55 = vpack.c.bf16 %v9773_v0, %v9757_v19 }
0x195f   :  { %v9743_v3 = vadd.f32 1.0, %v14029_v13  ;;  %v9602_v46 = vmul.f32 %v9570_v35, %v18319_v32  ;;  %v18404_v28 = vadd.f32 %v18298_v60, %v9090_v30  ;;  %10987 = vmatpush.bf16.msra.mxu3 %v13546_v16  ;;  %v9556_v53 = vmul.f32 0.044715, %v18393_v10  ;;  %10974 = vmatpush.bf16.msra.mxu2 %v13537_v2  ;;  %v13583_v30 = vld [vmem:[%s18616_s8 + $0x7f8] sm:$0xff]  ;;  %v13556_v13 = vld [vmem:[%s18616_s8 + $0x720] sm:$0xff] }
0x1960   :  { %v9728_v58 = vadd.f32 1.0, %v14025_v23  ;;  %v9519_v48 = vmul.f32 0.5, %v18193_v40  ;;  %v9520_v59 = vmul.f32 0.5, %v18230_v31  ;;  %v9603_v60 = vmul.f32 %v9571_v47, %v18328_v26  ;;  %10934 = vmatmul.bf16.vlgmr.msrb.gmra.mxu3 %v10046_v55 }
0x1961   :  { %11010 = vmatpush.bf16.msrb.mxu1 %v13567_v7  ;;  %v14033_v6 = vpop.eup %14032  ;;  %v9744_v51 = vadd.f32 1.0, %v14031_v33  ;;  %v9650_v15 = vadd.f32 %v9618_v22, %v18330_v11  ;;  %v9588_v40 = vmul.f32 %v9556_v53, %v18393_v10  ;;  %v9557_v31 = vmul.f32 0.044715, %v18395_v14 }
0x1962   :  { %10997 = vmatpush.bf16.msrb.mxu0 %v13558_v54  ;;  %v9572_v62 = vmul.f32 %v9540_v18, %v18371_v8  ;;  %v9651_v5 = vadd.f32 %v9619_v41, %v18354_v49  ;;  %v9758_v38 = vmul.f32 %v9726_v29, %v18315_v25  ;;  %v9774_v34 = vmul.f32 %v9742_v39, %v18361_v56  ;;  %v13544_v25 = vld [vmem:[%s18616_s8 + $0x6c0] sm:$0xff] }
0x1963   :  { %v14035_v23 = vpop.eup %14034  ;;  %v9634_v17 = vadd.f32 %v9602_v46, %v18319_v32  ;;  %v9541_v4 = vmul.f32 0.044715, %v18404_v28  ;;  %10988 = vmatpush.bf16.msra.mxu3 %v13545_v61  ;;  %v9759_v12 = vmul.f32 %v18368_v1, %v18333_v63  ;;  %v9775_v7 = vmul.f32 %v9743_v3, %v9519_v48  ;;  %10975 = vmatpush.bf16.msra.mxu2 %v13536_v20  ;;  %v13574_v63 = vld [vmem:[%s18616_s8 + $0x7b0] sm:$0xff]  ;;  %v13564_v54 = vld [vmem:[%s18616_s8 + $0x760] sm:$0xff]  ;;  %v13573_v3 = vld [vmem:[%s18616_s8 + $0x7a8] sm:$0xff] }
0x1964   :  { %v9745_v56 = vadd.f32 1.0, %v14033_v6  ;;  %v9635_v29 = vadd.f32 %v9603_v60, %v18328_v26  ;;  %v9620_v9 = vmul.f32 %v9588_v40, %v18393_v10  ;;  %v10047_v35 = vpack.c.bf16 %v9774_v34, %v9758_v38  ;;  %v13563_v20 = vld [vmem:[%s18616_s8 + $0x758] sm:$0xff]  ;;  %v13572_v60 = vld [vmem:[%s18616_s8 + $0x7a0] sm:$0xff]  ;;  %v13554_v6 = vld [vmem:[%s18616_s8 + $0x710] sm:$0xff] }
0x1965   :  { %11011 = vmatpush.bf16.msrb.mxu1 %v13566_v45  ;;  %v9682_v1 = vmul.f32 0.7978846, %v9650_v15  ;;  %v9589_v24 = vmul.f32 %v9557_v31, %v18395_v14  ;;  %v10048_v16 = vpack.c.bf16 %v9775_v7, %v9759_v12  ;;  %v9776_v2 = vmul.f32 %v9744_v51, %v9520_v59  ;;  %v13582_v45 = vld [vmem:[%s18616_s8 + $0x7f0] sm:$0xff]  ;;  %v13561_v12 = vld [vmem:[%s18616_s8 + $0x748] sm:$0xff] }
0x1966   :  { %10998 = vmatpush.bf16.msrb.mxu0 %v13557_v44  ;;  %v9729_v47 = vadd.f32 1.0, %v14035_v23  ;;  %v9521_v27 = vmul.f32 0.5, %v18232_v50  ;;  %v9604_v19 = vmul.f32 %v9572_v62, %v18371_v8  ;;  %v9683_v0 = vmul.f32 0.7978846, %v9651_v5  ;;  %v13581_v44 = vld [vmem:[%s18616_s8 + $0x7e8] sm:$0xff]  ;;  %v13562_v15 = vld [vmem:[%s18616_s8 + $0x750] sm:$0xff] }
0x1967   :  { %11024 = vmatpush.bf16.msrb.mxu2 %v13575_v57  ;;  %10948 = vmatmul.bf16.vlgmr.msra.gmra.mxu0 %v10047_v35  ;;  %v9666_v22 = vmul.f32 0.7978846, %v9634_v17  ;;  %v9573_v33 = vmul.f32 %v9541_v4, %v18404_v28  ;;  %v9760_v39 = vmul.f32 %v9728_v58, %v18340_v52  ;;  %v9505_v18 = vmul.f32 0.5, %v18221_v42  ;;  %v13555_v42 = vld [vmem:[%s18616_s8 + $0x718] sm:$0xff]  ;;  %v13553_v23 = vld [vmem:[%s18616_s8 + $0x708] sm:$0xff] }
0x1968   :  { %10962 = vmatmul.bf16.vlgmr.msra.gmra.mxu1 %v10048_v16  ;;  %10989 = vmatpush.bf16.msra.mxu3 %v13544_v25  ;;  %v9667_v41 = vmul.f32 0.7978846, %v9635_v29  ;;  %v9652_v50 = vadd.f32 %v9620_v9, %v18393_v10  ;;  %v9777_v55 = vmul.f32 %v9745_v56, %v9521_v27  ;;  %14036 = vtanh.f32 %v9682_v1  ;;  %v13571_v5 = vld [vmem:[%s18616_s8 + $0x798] sm:$0xff]  ;;  %v13570_v9 = vld [vmem:[%s18616_s8 + $0x790] sm:$0xff]  ;;  %v13552_v1 = vld [vmem:[%s18616_s8 + $0x700] sm:$0xff] }
0x1969   :  { %11012 = vmatpush.bf16.msrb.mxu1 %v13565_v21  ;;  %v9621_v46 = vmul.f32 %v9589_v24, %v18395_v14  ;;  %v10049_v52 = vpack.c.bf16 %v9776_v2, %v9760_v39  ;;  %v9636_v53 = vadd.f32 %v9604_v19, %v18371_v8  ;;  %14038 = vtanh.f32 %v9683_v0  ;;  %v13580_v21 = vld [vmem:[%s18616_s8 + $0x7e0] sm:$0xff]  ;;  %v13569_v27 = vld [vmem:[%s18616_s8 + $0x788] sm:$0xff] }
0x196a   :  { %10999 = vmatpush.bf16.msrb.mxu0 %v13556_v13  ;;  %v9761_v61 = vmul.f32 %v9729_v47, %v9505_v18  ;;  %14040 = vtanh.f32 %v9666_v22  ;;  %v9605_v58 = vmul.f32 %v9573_v33, %v18404_v28  ;;  %v9684_v48 = vmul.f32 0.7978846, %v9652_v50  ;;  %v13560_v16 = vld [vmem:[%s18616_s8 + $0x740] sm:$0xff] }
0x196b   :  { %11025 = vmatpush.bf16.msrb.mxu2 %v13574_v63  ;;  %14042 = vtanh.f32 %v9667_v41  ;;  %v9653_v57 = vadd.f32 %v9621_v46, %v18395_v14  ;;  %v9668_v51 = vmul.f32 0.7978846, %v9636_v53  ;;  %v9522_v29 = vmul.f32 0.5, %v18330_v11  ;;  %v13579_v63 = vld [vmem:[%s18616_s8 + $0x7d8] sm:$0xff]  ;;  %v13568_v41 = vld [vmem:[%s18616_s8 + $0x780] sm:$0xff] }
0x196c   :  { %11038 = vmatpush.bf16.msrb.mxu3 %v13583_v30  ;;  %v10050_v59 = vpack.c.bf16 %v9777_v55, %v9761_v61  ;;  %v9637_v31 = vadd.f32 %v9605_v58, %v18404_v28  ;;  %14044 = vtanh.f32 %v9684_v48  ;;  %v9523_v30 = vmul.f32 0.5, %v18354_v49  ;;  %v13576_v53 = vld [vmem:[%s18616_s8 + $0x7c0] sm:$0xff] }
0x196d   :  { %11013 = vmatpush.bf16.msrb.mxu1 %v13564_v54  ;;  %10976 = vmatmul.bf16.vlgmr.msra.gmra.mxu2 %v10049_v52  ;;  %v9685_v34 = vmul.f32 0.7978846, %v9653_v57  ;;  %14046 = vtanh.f32 %v9668_v51  ;;  %v9506_v24 = vmul.f32 0.5, %v18319_v32  ;;  %v9507_v2 = vmul.f32 0.5, %v18328_v26  ;;  %v13578_v32 = vld [vmem:[%s18616_s8 + $0x7d0] sm:$0xff] }
0x196e   :  { %11000 = vmatpush.bf16.msrb.mxu0 %v13555_v42  ;;  %v14037_v40 = vpop.eup %14036  ;;  %v9669_v7 = vmul.f32 0.7978846, %v9637_v31  ;;  %v9524_v39 = vmul.f32 0.5, %v18393_v10  ;;  %v9508_v55 = vmul.f32 0.5, %v18371_v8  ;;  %v9525_v42 = vmul.f32 0.5, %v18395_v14 }
0x196f   :  { %11026 = vmatpush.bf16.msrb.mxu2 %v13573_v3  ;;  %v14039_v62 = vpop.eup %14038  ;;  %v9746_v4 = vadd.f32 1.0, %v14037_v40  ;;  %14048 = vtanh.f32 %v9685_v34  ;;  %v9509_v8 = vmul.f32 0.5, %v18404_v28  ;;  %v13765_v51 = vld [vmem:[%s18611_s5 + $0x17] ss:$0 sm:$0xff] }
0x1970   :  { %11039 = vmatpush.bf16.msrb.mxu3 %v13582_v45  ;;  %v14041_v38 = vpop.eup %14040  ;;  %v9747_v25 = vadd.f32 1.0, %v14039_v62  ;;  %14050 = vtanh.f32 %v9669_v7  ;;  %v13577_v45 = vld [vmem:[%s18616_s8 + $0x7c8] sm:$0xff] }
0x1971   :  { %11014 = vmatpush.bf16.msrb.mxu1 %v13563_v20  ;;  %10990 = vmatmul.bf16.vlgmr.msra.gmra.mxu3 %v10050_v59  ;;  %v14043_v17 = vpop.eup %14042  ;;  %v9730_v56 = vadd.f32 1.0, %v14041_v38  ;;  %v9778_v49 = vmul.f32 %v9746_v4, %v9522_v29 }
0x1972   :  { %11001 = vmatpush.bf16.msrb.mxu0 %v13554_v6  ;;  %v9731_v35 = vadd.f32 1.0, %v14043_v17  ;;  %v14045_v11 = vpop.eup %14044  ;;  %v9779_v13 = vmul.f32 %v9747_v25, %v9523_v30 }
0x1973   :  { %11027 = vmatpush.bf16.msrb.mxu2 %v13572_v60  ;;  %v14047_v47 = vpop.eup %14046  ;;  %v9762_v19 = vmul.f32 %v9730_v56, %v9506_v24  ;;  %v9748_v0 = vadd.f32 1.0, %v14045_v11 }
0x1974   :  { %11040 = vmatpush.bf16.msrb.mxu3 %v13581_v44  ;;  %v9763_v54 = vmul.f32 %v9731_v35, %v9507_v2  ;;  %v9732_v33 = vadd.f32 1.0, %v14047_v47 }
0x1975   :  { %11015 = vmatpush.bf16.msrb.mxu1 %v13562_v15  ;;  %v10051_v22 = vpack.c.bf16 %v9778_v49, %v9762_v19  ;;  %v14049_v26 = vpop.eup %14048  ;;  %v9780_v3 = vmul.f32 %v9748_v0, %v9524_v39 }
0x1976   :  { %11002 = vmatpush.bf16.msrb.mxu0 %v13553_v23  ;;  %v10052_v18 = vpack.c.bf16 %v9779_v13, %v9763_v54  ;;  %v14051_v50 = vpop.eup %14050  ;;  %v9749_v46 = vadd.f32 1.0, %v14049_v26  ;;  %v9764_v52 = vmul.f32 %v9732_v33, %v9508_v55 }
0x1977   :  { %11028 = vmatpush.bf16.msrb.mxu2 %v13571_v5  ;;  %v9733_v10 = vadd.f32 1.0, %v14051_v50 }
0x1978   :  { %11041 = vmatpush.bf16.msrb.mxu3 %v13580_v21  ;;  %v10053_v61 = vpack.c.bf16 %v9780_v3, %v9764_v52  ;;  %v9781_v20 = vmul.f32 %v9749_v46, %v9525_v42 }
0x1979   :  { %11016 = vmatpush.bf16.msrb.mxu1 %v13561_v12  ;;  %v9765_v58 = vmul.f32 %v9733_v10, %v9509_v8 }
0x197a   :  { %11003 = vmatpush.bf16.msrb.mxu0 %v13552_v1 }
0x197b   :  { %11029 = vmatpush.bf16.msrb.mxu2 %v13570_v9  ;;  %v10054_v48 = vpack.c.bf16 %v9781_v20, %v9765_v58 }
0x197c   :  { %11042 = vmatpush.bf16.msrb.mxu3 %v13579_v63 }
0x197d   :  { %11017 = vmatpush.bf16.msrb.mxu1 %v13560_v16  ;;  %11004 = vmatmul.bf16.vlgmr.msrb.gmra.mxu0 %v10051_v22 }
0x197f   :  { %11030 = vmatpush.bf16.msrb.mxu2 %v13569_v27 }
0x1980   :  { %11043 = vmatpush.bf16.msrb.mxu3 %v13578_v32  ;;  %11018 = vmatmul.bf16.vlgmr.msrb.gmra.mxu1 %v10052_v18 }
0x1983   :  { %11031 = vmatpush.bf16.msrb.mxu2 %v13568_v41 }
0x1984   :  { %11044 = vmatpush.bf16.msrb.mxu3 %v13577_v45 }
0x1986   :  { %11032 = vmatmul.bf16.vlgmr.msrb.gmra.mxu2 %v10053_v61 }
0x1988   :  { %11045 = vmatpush.bf16.msrb.mxu3 %v13576_v53 }
0x198b   :  { %11046 = vmatmul.bf16.vlgmr.msrb.gmra.mxu3 %v10054_v48 }
0x19ba   :  { %v10837_v59 = vpop.f32.mrf.mxu0 }
0x19bb   :  { %v10838_v31 = vadd.f32 %v13765_v51, %v10837_v59 }
0x19bc   :  { %v10851_v60 = vpop.f32.mrf.mxu1 }
0x19bd   :  { %v10852_v5 = vadd.f32 %v10851_v60, %v10838_v31 }
0x19c2   :  { %v10839_v44 = vpop.f32.mrf.mxu0 }
0x19c3   :  { %v10840_v23 = vadd.f32 %v13765_v51, %v10839_v44 }
0x19c4   :  { %v10853_v6 = vpop.f32.mrf.mxu1 }
0x19c5   :  { %v10854_v12 = vadd.f32 %v10853_v6, %v10840_v23 }
0x19c9   :  { %v10865_v57 = vpop.f32.mrf.mxu2 }
0x19ca   :  { %v10866_v38 = vadd.f32 %v10865_v57, %v10852_v5 }
0x19cd   :  { %v10879_v14 = vpop.f32.mrf.mxu3 }
0x19ce   :  { %v10893_v40 = vpop.f32.mrf.mxu0  ;;  %v10880_v17 = vadd.f32 %v10879_v14, %v10866_v38 }
0x19d0   :  { %v10894_v25 = vadd.f32 %v10893_v40, %v10880_v17 }
0x19d1   :  { %v10867_v15 = vpop.f32.mrf.mxu2  ;;  %v10907_v62 = vpop.f32.mrf.mxu1 }
0x19d2   :  { %v10868_v56 = vadd.f32 %v10867_v15, %v10854_v12  ;;  %v10908_v35 = vadd.f32 %v10907_v62, %v10894_v25 }
0x19d5   :  { %v10881_v28 = vpop.f32.mrf.mxu3 }
0x19d6   :  { %v10895_v21 = vpop.f32.mrf.mxu0  ;;  %v10882_v30 = vadd.f32 %v10881_v28, %v10868_v56 }
0x19d8   :  { %v10896_v11 = vadd.f32 %v10895_v21, %v10882_v30 }
0x19d9   :  { %v10909_v7 = vpop.f32.mrf.mxu1 }
0x19da   :  { %v10910_v49 = vadd.f32 %v10909_v7, %v10896_v11 }
0x19e0   :  { %v10921_v34 = vpop.f32.mrf.mxu2 }
0x19e1   :  { %v10922_v63 = vadd.f32 %v10921_v34, %v10908_v35 }
0x19e3   :  { %v10935_v4 = vpop.f32.mrf.mxu3 }
0x19e4   :  { %v10949_v9 = vpop.f32.mrf.mxu0  ;;  %v10936_v16 = vadd.f32 %v10935_v4, %v10922_v63 }
0x19e5   :  { %v10963_v24 = vpop.f32.mrf.mxu1 }
0x19e6   :  { %v10950_v47 = vadd.f32 %v10949_v9, %v10936_v16 }
0x19e8   :  { %v10923_v29 = vpop.f32.mrf.mxu2  ;;  %v10964_v0 = vadd.f32 %v10963_v24, %v10950_v47  ;;  %v13766_v24 = vld [vmem:[%s18611_s5 + $0x1c] ss:$0 sm:$0xff] }
0x19e9   :  { %v10924_v27 = vadd.f32 %v10923_v29, %v10910_v49 }
0x19eb   :  { %v10937_v1 = vpop.f32.mrf.mxu3 }
0x19ec   :  { %v10951_v13 = vpop.f32.mrf.mxu0  ;;  %v10938_v32 = vadd.f32 %v10937_v1, %v10924_v27 }
0x19ed   :  { %v10965_v54 = vpop.f32.mrf.mxu1 }
0x19ee   :  { %v10952_v33 = vadd.f32 %v10951_v13, %v10938_v32  ;;  %v13767_v13 = vld [vmem:[%s18611_s5 + $0x1d] ss:$0 sm:$0xff] }
0x19f0   :  { %v10977_v2 = vpop.f32.mrf.mxu2  ;;  %v10966_v41 = vadd.f32 %v10965_v54, %v10952_v33 }
0x19f1   :  { %v10978_v22 = vadd.f32 %v10977_v2, %v10964_v0 }
0x19f4   :  { %v10991_v19 = vpop.f32.mrf.mxu3 }
0x19f5   :  { %v10992_v18 = vadd.f32 %v10991_v19, %v10978_v22 }
0x19f8   :  { %v10979_v39 = vpop.f32.mrf.mxu2 }
0x19f9   :  { %v10980_v3 = vadd.f32 %v10979_v39, %v10966_v41 }
0x19fa   :  { %v11005_v26 = vpop.f32.mrf.mxu0 }
0x19fb   :  { %v11006_v50 = vadd.f32 %v11005_v26, %v10992_v18 }
0x19fc   :  { %v10993_v55 = vpop.f32.mrf.mxu3 }
0x19fd   :  { %v11019_v45 = vpop.f32.mrf.mxu1  ;;  %v10994_v42 = vadd.f32 %v10993_v55, %v10980_v3 }
0x19fe   :  { %v11020_v46 = vadd.f32 %v11019_v45, %v11006_v50 }
0x1a02   :  { %v11007_v10 = vpop.f32.mrf.mxu0 }
0x1a03   :  { %v11008_v61 = vadd.f32 %v11007_v10, %v10994_v42 }
0x1a05   :  { %v11021_v58 = vpop.f32.mrf.mxu1 }
0x1a06   :  { %v11022_v48 = vadd.f32 %v11021_v58, %v11008_v61 }
0x1a09   :  { %v11033_v52 = vpop.f32.mrf.mxu2 }
0x1a0a   :  { %v11034_v53 = vadd.f32 %v11033_v52, %v11020_v46 }
0x1a0e   :  { %v11047_v8 = vpop.f32.mrf.mxu3 }
0x1a0f   :  { %v11048_v20 = vadd.f32 %v11047_v8, %v11034_v53 }
0x1a11   :  { %v11052_v59 = vadd.f32 %v11048_v20, %v17707_v36  ;;  %v11035_v60 = vpop.f32.mrf.mxu2 }
0x1a12   :  { %v11036_v57 = vadd.f32 %v11035_v60, %v11022_v48 }
0x1a13   :  { %v11058_v44 = vsel %vm91_vm0, %v11052_v59, 0.0 }
0x1a14   :  { %11059 = vadd.xlane.f32.xlu0 %v11058_v44 }
0x1a16   :  { %v11049_v14 = vpop.f32.mrf.mxu3 }
0x1a17   :  { %v11050_v6 = vadd.f32 %v11049_v14, %v11036_v57 }
0x1a19   :  { %v11053_v51 = vadd.f32 %v11050_v6, %v17709_v37 }
0x1a1b   :  { %v11061_v15 = vsel %vm91_vm0, %v11053_v51, 0.0 }
0x1a1c   :  { %11062 = vadd.xlane.f32.xlu2 %v11061_v15 }
0x1a87   :  { %v11060_v40 = vpop.xlane.xlu0 %11059 }
0x1a88   :  { %v11064_v31 = vmul.f32 %v11060_v40, %v14835_v43 }
0x1a8a   :  { %v11066_v28 = vsub.f32 %v11052_v59, %v11064_v31  ;;  %v13768_v31 = vld [vmem:[%s18618_s9] ss:$0 sm:$0xff] }
0x1a8c   :  { %v11068_v62 = vmul.f32 %v11066_v28, %v11066_v28 }
0x1a8e   :  { %v11070_v5 = vsel %vm91_vm0, %v11068_v62, 0.0 }
0x1a8f   :  { %v11063_v36 = vpop.xlane.xlu2 %11062  ;;  %11071 = vadd.xlane.f32.xlu1 %v11070_v5 }
0x1a90   :  { %v11065_v38 = vmul.f32 %v11063_v36, %v14835_v43  ;;  %v13769_v36 = vld [vmem:[%s18618_s9 + $0x1] ss:$0 sm:$0xff] }
0x1a92   :  { %v11067_v34 = vsub.f32 %v11053_v51, %v11065_v38 }
0x1a94   :  { %v11069_v21 = vmul.f32 %v11067_v34, %v11067_v34 }
0x1a96   :  { %v11073_v23 = vsel %vm91_vm0, %v11069_v21, 0.0 }
0x1a97   :  { %11074 = vadd.xlane.f32.xlu0 %v11073_v23 }
0x1b02   :  { %v11072_v37 = vpop.xlane.xlu1 %11071 }
0x1b03   :  { %v11076_v17 = vmul.f32 %v11072_v37, %v14835_v43 }
0x1b05   :  { %v11078_v4 = vadd.f32 1e-05, %v11076_v17 }
0x1b07   :  { %14052 = vrsqrt.f32 %v11078_v4  ;;  %vm11086_vm3 = vweird.f32 %v11078_v4 }
0x1b0a   :  { %v11075_v12 = vpop.xlane.xlu0 %11074 }
0x1b0b   :  { %v11077_v7 = vmul.f32 %v11075_v12, %v14835_v43 }
0x1b0d   :  { %v14053_v25 = vpop.eup %14052  ;;  %v11079_v56 = vadd.f32 1e-05, %v11077_v7 }
0x1b0e   :  { %v11081_v29 = vmul.f32 %v14053_v25, %v11078_v4  ;;  %vm11087_vm15 = vweird.f32 %v14053_v25 }
0x1b0f   :  { %14054 = vrsqrt.f32 %v11079_v56  ;;  %vm11088_vm4 = vmor %vm11086_vm3, %vm11087_vm15  ;;  %vm11096_vm6 = vweird.f32 %v11079_v56 }
0x1b10   :  { %v11082_v9 = vmul.f32 %v14053_v25, %v11081_v29 }
0x1b12   :  { %v11083_v35 = vmul.f32 0.5, %v11082_v9 }
0x1b14   :  { %v11084_v30 = vsub.f32 1.5, %v11083_v35 }
0x1b15   :  { %v14055_v63 = vpop.eup %14054 }
0x1b16   :  { %v11085_v1 = vmul.f32 %v14053_v25, %v11084_v30  ;;  %v11091_v11 = vmul.f32 %v14055_v63, %v11079_v56  ;;  %vm11097_vm5 = vweird.f32 %v14055_v63 }
0x1b17   :  { %vm11098_vm7 = vmor %vm11096_vm6, %vm11097_vm5 }
0x1b18   :  { %v11092_v16 = vmul.f32 %v14055_v63, %v11091_v11  ;;  %v11089_v49 = vsel %vm11088_vm4, %v14053_v25, %v11085_v1 }
0x1b19   :  { %v11100_v2 = vmul.f32 %v11089_v49, %v11066_v28 }
0x1b1a   :  { %v11093_v47 = vmul.f32 0.5, %v11092_v16 }
0x1b1b   :  { %v11105_v27 = vmul.f32 %v13766_v24, %v11100_v2 }
0x1b1c   :  { %v11094_v19 = vsub.f32 1.5, %v11093_v47 }
0x1b1d   :  { %v11110_v0 = vadd.f32 %v13767_v13, %v11105_v27  ;;  %v13585_v27 = vld [vmem:[%s18620_s10 + $0x8] sm:$0xff] }
0x1b1e   :  { %v11095_v32 = vmul.f32 %v14055_v63, %v11094_v19  ;;  %11257 = vmatpush.bf16.msra.mxu0 %v13585_v27  ;;  %v13584_v19 = vld [vmem:[%s18620_s10] sm:$0xff] }
0x1b1f   :  { %v11115_v54 = vsel %vm91_vm0, %v11110_v0, 0.0 }
0x1b20   :  { %11116 = vadd.xlane.f32.xlu2 %v11115_v54  ;;  %v11099_v22 = vsel %vm11098_vm7, %v14055_v63, %v11095_v32 }
0x1b21   :  { %v11101_v26 = vmul.f32 %v11099_v22, %v11067_v34 }
0x1b22   :  { %11258 = vmatpush.bf16.msra.mxu0 %v13584_v19 }
0x1b23   :  { %v11106_v33 = vmul.f32 %v13766_v24, %v11101_v26 }
0x1b25   :  { %v11111_v39 = vadd.f32 %v13767_v13, %v11106_v33 }
0x1b27   :  { %v11118_v18 = vsel %vm91_vm0, %v11111_v39, 0.0 }
0x1b28   :  { %11119 = vadd.xlane.f32.xlu1 %v11118_v18 }
0x1b93   :  { %v11117_v41 = vpop.xlane.xlu2 %11116 }
0x1b94   :  { %v11121_v50 = vmul.f32 %v11117_v41, %v14835_v43 }
0x1b96   :  { %v11123_v55 = vsub.f32 %v11110_v0, %v11121_v50  ;;  %v13587_v0 = vld [vmem:[%s18621_s12 + $0x8] sm:$0xff] }
0x1b97   :  { %11297 = vmatpush.bf16.msra.mxu1 %v13587_v0 }
0x1b98   :  { %v11125_v45 = vmul.f32 %v11123_v55, %v11123_v55 }
0x1b9a   :  { %v11127_v3 = vsel %vm91_vm0, %v11125_v45, 0.0 }
0x1b9b   :  { %11128 = vadd.xlane.f32.xlu0 %v11127_v3  ;;  %v11120_v46 = vpop.xlane.xlu1 %11119 }
0x1b9c   :  { %v11122_v52 = vmul.f32 %v11120_v46, %v14835_v43 }
0x1b9e   :  { %v11124_v10 = vsub.f32 %v11111_v39, %v11122_v52 }
0x1ba0   :  { %v11126_v42 = vmul.f32 %v11124_v10, %v11124_v10 }
0x1ba2   :  { %v11130_v53 = vsel %vm91_vm0, %v11126_v42, 0.0 }
0x1ba3   :  { %11131 = vadd.xlane.f32.xlu2 %v11130_v53 }
0x1c0e   :  { %v11129_v61 = vpop.xlane.xlu0 %11128 }
0x1c0f   :  { %v11133_v8 = vmul.f32 %v11129_v61, %v14835_v43 }
0x1c11   :  { %v11135_v20 = vadd.f32 1e-05, %v11133_v8  ;;  %v13770_v8 = vld [vmem:[%s18618_s9 + $0x3] ss:$0 sm:$0xff] }
0x1c13   :  { %14056 = vrsqrt.f32 %v11135_v20  ;;  %vm11143_vm9 = vweird.f32 %v11135_v20 }
0x1c16   :  { %v11132_v58 = vpop.xlane.xlu2 %11131 }
0x1c17   :  { %v11134_v48 = vmul.f32 %v11132_v58, %v14835_v43 }
0x1c19   :  { %v14057_v59 = vpop.eup %14056  ;;  %v11136_v60 = vadd.f32 1e-05, %v11134_v48 }
0x1c1a   :  { %v11138_v57 = vmul.f32 %v14057_v59, %v11135_v20  ;;  %vm11144_vm8 = vweird.f32 %v14057_v59 }
0x1c1b   :  { %14058 = vrsqrt.f32 %v11136_v60  ;;  %vm11145_vm10 = vmor %vm11143_vm9, %vm11144_vm8  ;;  %vm11153_vm2 = vweird.f32 %v11136_v60 }
0x1c1c   :  { %v11139_v44 = vmul.f32 %v14057_v59, %v11138_v57 }
0x1c1e   :  { %v11140_v14 = vmul.f32 0.5, %v11139_v44  ;;  %v13586_v44 = vld [vmem:[%s18621_s12] sm:$0xff] }
0x1c1f   :  { %11298 = vmatpush.bf16.msra.mxu1 %v13586_v44 }
0x1c20   :  { %v11141_v6 = vsub.f32 1.5, %v11140_v14 }
0x1c21   :  { %v14059_v51 = vpop.eup %14058 }
0x1c22   :  { %v11142_v15 = vmul.f32 %v14057_v59, %v11141_v6  ;;  %v11148_v40 = vmul.f32 %v14059_v51, %v11136_v60  ;;  %vm11154_vm1 = vweird.f32 %v14059_v51  ;;  %v13772_v6 = vld [vmem:[%s18619_s11] ss:$0 sm:$0xff] }
0x1c23   :  { %vm11155_vm13 = vmor %vm11153_vm2, %vm11154_vm1 }
0x1c24   :  { %v11149_v28 = vmul.f32 %v14059_v51, %v11148_v40  ;;  %v11146_v62 = vsel %vm11145_vm10, %v14057_v59, %v11142_v15 }
0x1c25   :  { %v11157_v5 = vmul.f32 %v11146_v62, %v11123_v55 }
0x1c26   :  { %v11150_v38 = vmul.f32 0.5, %v11149_v28 }
0x1c27   :  { %v11162_v34 = vmul.f32 %v13768_v31, %v11157_v5  ;;  %v13773_v5 = vld [vmem:[%s18622_s13] ss:$0 sm:$0xff] }
0x1c28   :  { %v11151_v21 = vsub.f32 1.5, %v11150_v38 }
0x1c29   :  { %v11167_v23 = vadd.f32 %v13769_v36, %v11162_v34 }
0x1c2a   :  { %v11152_v37 = vmul.f32 %v14059_v51, %v11151_v21 }
0x1c2b   :  { %v11173_v17 = vsel %vm91_vm0, %v11167_v23, 0.0 }
0x1c2c   :  { %11174 = vadd.xlane.f32.xlu1 %v11173_v17  ;;  %v11156_v4 = vsel %vm11155_vm13, %v14059_v51, %v11152_v37 }
0x1c2d   :  { %v11158_v12 = vmul.f32 %v11156_v4, %v11124_v10 }
0x1c2f   :  { %v11163_v7 = vmul.f32 %v13768_v31, %v11158_v12 }
0x1c31   :  { %v11168_v25 = vadd.f32 %v13769_v36, %v11163_v7 }
0x1c33   :  { %v11176_v56 = vsel %vm91_vm0, %v11168_v25, 0.0 }
0x1c34   :  { %11177 = vadd.xlane.f32.xlu0 %v11176_v56 }
0x1c9f   :  { %v11175_v29 = vpop.xlane.xlu1 %11174 }
0x1ca0   :  { %v11179_v9 = vmul.f32 %v11175_v29, %v14835_v43 }
0x1ca2   :  { %v11181_v35 = vsub.f32 %v11167_v23, %v11179_v9 }
0x1ca4   :  { %v11183_v30 = vmul.f32 %v11181_v35, %v11181_v35 }
0x1ca6   :  { %v11185_v63 = vsel %vm91_vm0, %v11183_v30, 0.0 }
0x1ca7   :  { %11186 = vadd.xlane.f32.xlu2 %v11185_v63  ;;  %v11178_v1 = vpop.xlane.xlu0 %11177 }
0x1ca8   :  { %v11180_v11 = vmul.f32 %v11178_v1, %v14835_v43 }
0x1caa   :  { %v11182_v24 = vsub.f32 %v11168_v25, %v11180_v11 }
0x1cac   :  { %v11184_v16 = vmul.f32 %v11182_v24, %v11182_v24 }
0x1cae   :  { %v11188_v49 = vsel %vm91_vm0, %v11184_v16, 0.0 }
0x1caf   :  { %11189 = vadd.xlane.f32.xlu1 %v11188_v49 }
0x1d1a   :  { %v11187_v2 = vpop.xlane.xlu2 %11186 }
0x1d1b   :  { %v11191_v13 = vmul.f32 %v11187_v2, %v14835_v43 }
0x1d1d   :  { %v11193_v47 = vadd.f32 1e-05, %v11191_v13 }
0x1d1f   :  { %14060 = vrsqrt.f32 %v11193_v47  ;;  %vm11201_vm11 = vweird.f32 %v11193_v47 }
0x1d22   :  { %v11190_v32 = vpop.xlane.xlu1 %11189 }
0x1d23   :  { %v11192_v54 = vmul.f32 %v11190_v32, %v14835_v43  ;;  %v13771_v43 = vld [vmem:[%s18618_s9 + $0x2] ss:$0 sm:$0xff] }
0x1d25   :  { %v14061_v22 = vpop.eup %14060  ;;  %v11194_v26 = vadd.f32 1e-05, %v11192_v54 }
0x1d26   :  { %v11196_v33 = vmul.f32 %v14061_v22, %v11193_v47  ;;  %vm11202_vm14 = vweird.f32 %v14061_v22 }
0x1d27   :  { %14062 = vrsqrt.f32 %v11194_v26  ;;  %vm11203_vm12 = vmor %vm11201_vm11, %vm11202_vm14  ;;  %vm11211_vm3 = vweird.f32 %v11194_v26 }
0x1d28   :  { %v11197_v39 = vmul.f32 %v14061_v22, %v11196_v33 }
0x1d2a   :  { %v11198_v18 = vmul.f32 0.5, %v11197_v39 }
0x1d2c   :  { %v11199_v41 = vsub.f32 1.5, %v11198_v18 }
0x1d2d   :  { %v14063_v50 = vpop.eup %14062 }
0x1d2e   :  { %v11200_v55 = vmul.f32 %v14061_v22, %v11199_v41  ;;  %v11206_v45 = vmul.f32 %v14063_v50, %v11194_v26  ;;  %vm11212_vm15 = vweird.f32 %v14063_v50 }
0x1d2f   :  { %vm11213_vm4 = vmor %vm11211_vm3, %vm11212_vm15 }
0x1d30   :  { %v11207_v3 = vmul.f32 %v14063_v50, %v11206_v45  ;;  %v11204_v46 = vsel %vm11203_vm12, %v14061_v22, %v11200_v55 }
0x1d31   :  { %v11215_v42 = vmul.f32 %v11204_v46, %v11181_v35 }
0x1d32   :  { %v11208_v52 = vmul.f32 0.5, %v11207_v3 }
0x1d33   :  { %v11220_v20 = vmul.f32 %v13771_v43, %v11215_v42 }
0x1d34   :  { %v11209_v10 = vsub.f32 1.5, %v11208_v52 }
0x1d35   :  { %v11225_v59 = vadd.f32 %v13770_v8, %v11220_v20 }
0x1d36   :  { %v11210_v53 = vmul.f32 %v14063_v50, %v11209_v10 }
0x1d38   :  { %v11214_v61 = vsel %vm11213_vm4, %v14063_v50, %v11210_v53 }
0x1d39   :  { %v11216_v58 = vmul.f32 %v11214_v61, %v11182_v24 }
0x1d3b   :  { %v11221_v48 = vmul.f32 %v13771_v43, %v11216_v58 }
0x1d3d   :  { %v11226_v60 = vadd.f32 %v13770_v8, %v11221_v48 }
0x1d3f   :  { %v11231_v57 = vpack.c.bf16 %v11226_v60, %v11225_v59 }
0x1d41   :  { %13222 = vmatmul.msk.bf16.vlgmr.msra.gmra.mxu0 %vm91_vm0, %v11231_v57 }
0x1dbe   :  { %v11260_v14 = vpop.f32.mrf.mxu0 }
0x1dbf   :  { %v11261_v51 = vadd.f32 %v13772_v6, %v11260_v14 }
0x1dc1   :  { %v11265_v31 = vmax.f32 %v11261_v51, 0.0 }
0x1dc6   :  { %v11262_v15 = vpop.f32.mrf.mxu0 }
0x1dc7   :  { %v11263_v40 = vadd.f32 %v13772_v6, %v11262_v15 }
0x1dc9   :  { %v11266_v28 = vmax.f32 %v11263_v40, 0.0 }
0x1dcb   :  { %v11271_v62 = vpack.c.bf16 %v11266_v28, %v11265_v31 }
0x1dcd   :  { %13231 = vmatmul.msk.bf16.vlgmr.msra.gmra.mxu1 %vm91_vm0, %v11271_v62 }
0x1e4a   :  { %v11300_v36 = vpop.f32.mrf.mxu1 }
0x1e4b   :  { %v11301_v38 = vadd.f32 %v13773_v5, %v11300_v36 }
0x1e4d   :  { %11305 = vst [vmem:[%s18623_s14] sm:$0xff] %v11301_v38 }
0x1e52   :  { %v11302_v34 = vpop.f32.mrf.mxu1 }
0x1e53   :  { %v11303_v21 = vadd.f32 %v13773_v5, %v11302_v34 }
0x1e55   :  { %11306 = vst [vmem:[%s18623_s14 + $0x8] sm:$0xff] %v11303_v21 }

</bundles_post_ra>
